<compile_context>
chip_gen: v7x
topology: tpu7x:2x2x1
jax: 0.10.0
libtpu: 0.0.40
codegen_flags: <defaults>
</compile_context>

<pallas_src>
import functools

import jax
import jax.numpy as jnp
from jax.experimental import pallas as pl
from jax.experimental.pallas import tpu as pltpu

_EPS = 1e-5


def _im2col3x3(x3, flat_center, H, W):
    """Build the (9*C, H*W) im2col matrix of a stride-1, pad-1 3x3 conv.

    x3          : (C, H, W)   f32 value (channels on sublanes-ish axis)
    flat_center : (C, H*W)    f32 value == x3 flattened (reused as the
                              (dy=1,dx=1) tap to avoid a duplicate relayout)
    Returns bf16 (9*C, H*W); rows ordered (tap=dy*3+dx, channel).
    """
    C = x3.shape[0]
    # 1-ring zero halo built as a value (no scratch buffer, no full zero-fill).
    zc = jnp.zeros((C, H, 1), x3.dtype)
    xw = jnp.concatenate([zc, x3, zc], axis=2)          # (C, H,   W+2)
    zr = jnp.zeros((C, 1, W + 2), x3.dtype)
    xp = jnp.concatenate([zr, xw, zr], axis=1)          # (C, H+2, W+2)
    taps = []
    for dy in range(3):
        for dx in range(3):
            if dy == 1 and dx == 1:
                taps.append(flat_center)                # reuse, no reslice
            else:
                taps.append(xp[:, dy:dy + H, dx:dx + W].reshape(C, H * W))
    # single bf16 cast of the assembled matrix -> bf16 MXU operands
    return jnp.concatenate(taps, axis=0).astype(jnp.bfloat16)


def _residual_block_kernel(x_ref, w1_ref, g1_ref, b1_ref, w2_ref, g2_ref,
                           b2_ref, o_ref):
    """Fused ResidualBlock forward.

    x_ref  : (N, Cin, H, W)      input, NCHW (module-native layout)
    w1_ref : (Cout, 9*Cin)       conv1 weights, im2col layout, bf16
    g1/b1  : (Cout, 1)           bn1 gamma / beta, f32
    w2_ref : (Cout, 9*Cout)      conv2 weights, im2col layout, bf16
    g2/b2  : (Cout, 1)           bn2 gamma / beta, f32
    o_ref  : (N, Cout, H*W)      output (lane-dense last dim)
    """
    N, C, H, W = x_ref.shape
    HW = H * W
    Cout = w1_ref.shape[0]
    inv_cnt = 1.0 / float(N * HW)

    w1 = w1_ref[...]
    w2 = w2_ref[...]
    g1 = g1_ref[...]
    b1 = b1_ref[...]
    g2 = g2_ref[...]
    b2 = b2_ref[...]

    # ---- conv1: one im2col matmul per image (bf16 operands, f32 acc) ----
    res = []   # f32 residuals (C, HW)
    y1 = []    # f32 conv1 outputs (Cout, HW)
    for n in range(N):
        x3 = x_ref[n].astype(jnp.float32)         # (C, H, W)
        xf = x3.reshape(C, HW)                    # f32; residual + center tap
        res.append(xf)
        cols = _im2col3x3(x3, xf, H, W)           # (9C, HW) bf16
        y1.append(jnp.dot(w1, cols, preferred_element_type=jnp.float32))

    # ---- bn1 (training mode, single fused stats pass) + relu ----
    s = sum(jnp.sum(y, axis=1, keepdims=True) for y in y1)
    ss = sum(jnp.sum(y * y, axis=1, keepdims=True) for y in y1)
    mean = s * inv_cnt
    var = ss * inv_cnt - mean * mean              # biased variance
    scale = g1 * jax.lax.rsqrt(var + _EPS)
    shift = b1 - mean * scale
    h1 = [jnp.maximum(y * scale + shift, 0.0) for y in y1]

    # ---- conv2 ----
    y2 = []
    for n in range(N):
        h3 = h1[n].reshape(Cout, H, W)
        cols = _im2col3x3(h3, h1[n], H, W)        # (9*Cout, HW) bf16
        y2.append(jnp.dot(w2, cols, preferred_element_type=jnp.float32))

    # ---- bn2 ----
    s = sum(jnp.sum(y, axis=1, keepdims=True) for y in y2)
    ss = sum(jnp.sum(y * y, axis=1, keepdims=True) for y in y2)
    mean = s * inv_cnt
    var = ss * inv_cnt - mean * mean
    scale = g2 * jax.lax.rsqrt(var + _EPS)
    shift = b2 - mean * scale

    # ---- residual add (f32) + relu, lane-dense store ----
    for n in range(N):
        out = jnp.maximum(y2[n] * scale + shift + res[n], 0.0)
        o_ref[n] = out.astype(o_ref.dtype)


@functools.partial(jax.jit, static_argnames=())
def residual_block(x_nchw, w1, g1, b1, w2, g2, b2):
    """ResidualBlock forward. x_nchw: (N, C, H, W) f32 -> (N, C, H, W)."""
    N, Cin, H, W = x_nchw.shape
    Cout = w1.shape[-1]

    # Fold the 9-tap conv weights into (Cout, 9*Cin) im2col matrices, bf16 for
    # the MXU (accumulation stays f32 inside the kernel). Tiny host-side prep.
    w1m = jnp.transpose(w1, (2, 0, 1)).reshape(Cout, 9 * Cin).astype(jnp.bfloat16)
    w2m = jnp.transpose(w2, (2, 0, 1)).reshape(Cout, 9 * Cout).astype(jnp.bfloat16)

    out_flat = pl.pallas_call(
        _residual_block_kernel,
        out_shape=jax.ShapeDtypeStruct((N, Cout, H * W), x_nchw.dtype),
        in_specs=[pl.BlockSpec(memory_space=pltpu.MemorySpace.VMEM)] * 7,
        out_specs=pl.BlockSpec(memory_space=pltpu.MemorySpace.VMEM),
    )(x_nchw, w1m,
      g1.reshape(Cout, 1).astype(jnp.float32),
      b1.reshape(Cout, 1).astype(jnp.float32),
      w2m,
      g2.reshape(Cout, 1).astype(jnp.float32),
      b2.reshape(Cout, 1).astype(jnp.float32))

    # (N, Cout, H*W) -> NCHW with a free reshape (no transpose, no extra pass)
    return out_flat.reshape(N, Cout, H, W)


def _reference_block(x_nchw, w1, g1, b1, w2, g2, b2):
    """Pure-JAX f32 reference (lax conv) mirroring the PyTorch module."""
    def conv(x, w):
        w_hwio = w.reshape(3, 3, w.shape[1], w.shape[2])
        return jax.lax.conv_general_dilated(
            x, w_hwio, window_strides=(1, 1), padding=((1, 1), (1, 1)),
            dimension_numbers=('NCHW', 'HWIO', 'NCHW'))

    def bn(y, g, b):
        mean = y.mean(axis=(0, 2, 3), keepdims=True)
        var = ((y - mean) ** 2).mean(axis=(0, 2, 3), keepdims=True)
        return ((y - mean) / jnp.sqrt(var + _EPS)
                * g.reshape(1, -1, 1, 1) + b.reshape(1, -1, 1, 1))

    out = jnp.maximum(bn(conv(x_nchw, w1), g1, b1), 0.0)
    out = bn(conv(out, w2), g2, b2)
    return jnp.maximum(out + x_nchw, 0.0)


if __name__ == "__main__":
    # Module config: in_channels = out_channels = 4, stride = 1, no downsample.
    N, C, H, W = 2, 4, 16, 16
    key = jax.random.PRNGKey(0)
    kx, kw1, kw2, kg1, kb1, kg2, kb2 = jax.random.split(key, 7)

    x = jax.random.normal(kx, (N, C, H, W), jnp.float32)
    # conv weights as (9 taps, Cin, Cout), tap index = dy*3 + dx
    w1 = jax.random.normal(kw1, (9, C, C), jnp.float32) * 0.2
    w2 = jax.random.normal(kw2, (9, C, C), jnp.float32) * 0.2
    # BN affine params (deterministic, non-trivial)
    g1 = 1.0 + 0.1 * jax.random.normal(kg1, (C,), jnp.float32)
    b1 = 0.1 * jax.random.normal(kb1, (C,), jnp.float32)
    g2 = 1.0 + 0.1 * jax.random.normal(kg2, (C,), jnp.float32)
    b2 = 0.1 * jax.random.normal(kb2, (C,), jnp.float32)

    out = jax.block_until_ready(residual_block(x, w1, g1, b1, w2, g2, b2))
    ref = jax.block_until_ready(_reference_block(x, w1, g1, b1, w2, g2, b2))

    assert out.shape == (N, C, H, W), out.shape
    # bf16 MXU operands -> bf16-appropriate tolerance vs the f32 reference
    assert jnp.allclose(out, ref, rtol=2e-2, atol=2e-2), (
        float(jnp.max(jnp.abs(out - ref))))

    print("KERNEL_OK")
</pallas_src>

<mosaic_0001>
module attributes {stable_mosaic.version = 11 : i64} {
  func.func @_residual_block_kernel(%arg0: memref<2x4x16x16xf32, #tpu.memory_space<vmem>>, %arg1: memref<4x36xbf16, #tpu.memory_space<vmem>>, %arg2: memref<4x1xf32, #tpu.memory_space<vmem>>, %arg3: memref<4x1xf32, #tpu.memory_space<vmem>>, %arg4: memref<4x36xbf16, #tpu.memory_space<vmem>>, %arg5: memref<4x1xf32, #tpu.memory_space<vmem>>, %arg6: memref<4x1xf32, #tpu.memory_space<vmem>>, %arg7: memref<2x4x256xf32, #tpu.memory_space<vmem>>) attributes {dimension_semantics = [], scalar_prefetch = 0 : i64, scratch_operands = 0 : i64, tpu.core_type = #tpu.core_type<tc>} {
    %c0 = arith.constant 0 : index
    %c0_0 = arith.constant 0 : index
    %0 = vector.load %arg1[%c0, %c0_0] : memref<4x36xbf16, #tpu.memory_space<vmem>>, vector<4x36xbf16>
    %c0_1 = arith.constant 0 : index
    %c0_2 = arith.constant 0 : index
    %1 = vector.load %arg4[%c0_1, %c0_2] : memref<4x36xbf16, #tpu.memory_space<vmem>>, vector<4x36xbf16>
    %c0_3 = arith.constant 0 : index
    %c0_4 = arith.constant 0 : index
    %2 = vector.load %arg2[%c0_3, %c0_4] : memref<4x1xf32, #tpu.memory_space<vmem>>, vector<4x1xf32>
    %c0_5 = arith.constant 0 : index
    %c0_6 = arith.constant 0 : index
    %3 = vector.load %arg3[%c0_5, %c0_6] : memref<4x1xf32, #tpu.memory_space<vmem>>, vector<4x1xf32>
    %c0_7 = arith.constant 0 : index
    %c0_8 = arith.constant 0 : index
    %4 = vector.load %arg5[%c0_7, %c0_8] : memref<4x1xf32, #tpu.memory_space<vmem>>, vector<4x1xf32>
    %c0_9 = arith.constant 0 : index
    %c0_10 = arith.constant 0 : index
    %5 = vector.load %arg6[%c0_9, %c0_10] : memref<4x1xf32, #tpu.memory_space<vmem>>, vector<4x1xf32>
    %c0_11 = arith.constant 0 : index
    %c0_12 = arith.constant 0 : index
    %c0_13 = arith.constant 0 : index
    %c0_14 = arith.constant 0 : index
    %6 = vector.load %arg0[%c0_11, %c0_12, %c0_13, %c0_14] : memref<2x4x16x16xf32, #tpu.memory_space<vmem>>, vector<1x4x16x16xf32>
    %7 = vector.shape_cast %6 : vector<1x4x16x16xf32> to vector<4x16x16xf32>
    %8 = vector.shape_cast %7 : vector<4x16x16xf32> to vector<4x256xf32>
    %cst = arith.constant 0.000000e+00 : f32
    %9 = vector.broadcast %cst : f32 to vector<4x16x1xf32>
    %10 = tpu.concatenate %9, %7, %9 in 2 : vector<4x16x1xf32>, vector<4x16x16xf32>, vector<4x16x1xf32> -> vector<4x16x18xf32>
    %cst_15 = arith.constant 0.000000e+00 : f32
    %11 = vector.broadcast %cst_15 : f32 to vector<4x1x18xf32>
    %12 = tpu.concatenate %11, %10, %11 in 1 : vector<4x1x18xf32>, vector<4x16x18xf32>, vector<4x1x18xf32> -> vector<4x18x18xf32>
    %13 = vector.extract_strided_slice %12 {offsets = [0, 0, 0], sizes = [4, 16, 16], strides = [1, 1, 1]} : vector<4x18x18xf32> to vector<4x16x16xf32>
    %14 = vector.shape_cast %13 : vector<4x16x16xf32> to vector<4x256xf32>
    %15 = vector.extract_strided_slice %12 {offsets = [0, 0, 1], sizes = [4, 16, 16], strides = [1, 1, 1]} : vector<4x18x18xf32> to vector<4x16x16xf32>
    %16 = vector.shape_cast %15 : vector<4x16x16xf32> to vector<4x256xf32>
    %17 = vector.extract_strided_slice %12 {offsets = [0, 0, 2], sizes = [4, 16, 16], strides = [1, 1, 1]} : vector<4x18x18xf32> to vector<4x16x16xf32>
    %18 = vector.shape_cast %17 : vector<4x16x16xf32> to vector<4x256xf32>
    %19 = vector.extract_strided_slice %12 {offsets = [0, 1, 0], sizes = [4, 16, 16], strides = [1, 1, 1]} : vector<4x18x18xf32> to vector<4x16x16xf32>
    %20 = vector.shape_cast %19 : vector<4x16x16xf32> to vector<4x256xf32>
    %21 = vector.extract_strided_slice %12 {offsets = [0, 1, 2], sizes = [4, 16, 16], strides = [1, 1, 1]} : vector<4x18x18xf32> to vector<4x16x16xf32>
    %22 = vector.shape_cast %21 : vector<4x16x16xf32> to vector<4x256xf32>
    %23 = vector.extract_strided_slice %12 {offsets = [0, 2, 0], sizes = [4, 16, 16], strides = [1, 1, 1]} : vector<4x18x18xf32> to vector<4x16x16xf32>
    %24 = vector.shape_cast %23 : vector<4x16x16xf32> to vector<4x256xf32>
    %25 = vector.extract_strided_slice %12 {offsets = [0, 2, 1], sizes = [4, 16, 16], strides = [1, 1, 1]} : vector<4x18x18xf32> to vector<4x16x16xf32>
    %26 = vector.shape_cast %25 : vector<4x16x16xf32> to vector<4x256xf32>
    %27 = vector.extract_strided_slice %12 {offsets = [0, 2, 2], sizes = [4, 16, 16], strides = [1, 1, 1]} : vector<4x18x18xf32> to vector<4x16x16xf32>
    %28 = vector.shape_cast %27 : vector<4x16x16xf32> to vector<4x256xf32>
    %29 = tpu.concatenate %14, %16, %18, %20, %8, %22, %24, %26, %28 in 0 : vector<4x256xf32>, vector<4x256xf32>, vector<4x256xf32>, vector<4x256xf32>, vector<4x256xf32>, vector<4x256xf32>, vector<4x256xf32>, vector<4x256xf32>, vector<4x256xf32> -> vector<36x256xf32>
    %30 = arith.truncf %29 : vector<36x256xf32> to vector<36x256xbf16>
    %cst_16 = arith.constant dense<0.000000e+00> : vector<4x256xf32>
    %31 = tpu.matmul %0, %30, %cst_16 {dimension_numbers = #tpu.dot_dimension_numbers<[1], [0], [0], [1], [0, 0, 1, 1], [], []>} : vector<4x36xbf16>, vector<36x256xbf16>, vector<4x256xf32> -> vector<4x256xf32>
    %c1 = arith.constant 1 : index
    %c0_17 = arith.constant 0 : index
    %c0_18 = arith.constant 0 : index
    %c0_19 = arith.constant 0 : index
    %32 = vector.load %arg0[%c1, %c0_17, %c0_18, %c0_19] : memref<2x4x16x16xf32, #tpu.memory_space<vmem>>, vector<1x4x16x16xf32>
    %33 = vector.shape_cast %32 : vector<1x4x16x16xf32> to vector<4x16x16xf32>
    %34 = vector.shape_cast %33 : vector<4x16x16xf32> to vector<4x256xf32>
    %cst_20 = arith.constant 0.000000e+00 : f32
    %35 = vector.broadcast %cst_20 : f32 to vector<4x16x1xf32>
    %36 = tpu.concatenate %35, %33, %35 in 2 : vector<4x16x1xf32>, vector<4x16x16xf32>, vector<4x16x1xf32> -> vector<4x16x18xf32>
    %cst_21 = arith.constant 0.000000e+00 : f32
    %37 = vector.broadcast %cst_21 : f32 to vector<4x1x18xf32>
    %38 = tpu.concatenate %37, %36, %37 in 1 : vector<4x1x18xf32>, vector<4x16x18xf32>, vector<4x1x18xf32> -> vector<4x18x18xf32>
    %39 = vector.extract_strided_slice %38 {offsets = [0, 0, 0], sizes = [4, 16, 16], strides = [1, 1, 1]} : vector<4x18x18xf32> to vector<4x16x16xf32>
    %40 = vector.shape_cast %39 : vector<4x16x16xf32> to vector<4x256xf32>
    %41 = vector.extract_strided_slice %38 {offsets = [0, 0, 1], sizes = [4, 16, 16], strides = [1, 1, 1]} : vector<4x18x18xf32> to vector<4x16x16xf32>
    %42 = vector.shape_cast %41 : vector<4x16x16xf32> to vector<4x256xf32>
    %43 = vector.extract_strided_slice %38 {offsets = [0, 0, 2], sizes = [4, 16, 16], strides = [1, 1, 1]} : vector<4x18x18xf32> to vector<4x16x16xf32>
    %44 = vector.shape_cast %43 : vector<4x16x16xf32> to vector<4x256xf32>
    %45 = vector.extract_strided_slice %38 {offsets = [0, 1, 0], sizes = [4, 16, 16], strides = [1, 1, 1]} : vector<4x18x18xf32> to vector<4x16x16xf32>
    %46 = vector.shape_cast %45 : vector<4x16x16xf32> to vector<4x256xf32>
    %47 = vector.extract_strided_slice %38 {offsets = [0, 1, 2], sizes = [4, 16, 16], strides = [1, 1, 1]} : vector<4x18x18xf32> to vector<4x16x16xf32>
    %48 = vector.shape_cast %47 : vector<4x16x16xf32> to vector<4x256xf32>
    %49 = vector.extract_strided_slice %38 {offsets = [0, 2, 0], sizes = [4, 16, 16], strides = [1, 1, 1]} : vector<4x18x18xf32> to vector<4x16x16xf32>
    %50 = vector.shape_cast %49 : vector<4x16x16xf32> to vector<4x256xf32>
    %51 = vector.extract_strided_slice %38 {offsets = [0, 2, 1], sizes = [4, 16, 16], strides = [1, 1, 1]} : vector<4x18x18xf32> to vector<4x16x16xf32>
    %52 = vector.shape_cast %51 : vector<4x16x16xf32> to vector<4x256xf32>
    %53 = vector.extract_strided_slice %38 {offsets = [0, 2, 2], sizes = [4, 16, 16], strides = [1, 1, 1]} : vector<4x18x18xf32> to vector<4x16x16xf32>
    %54 = vector.shape_cast %53 : vector<4x16x16xf32> to vector<4x256xf32>
    %55 = tpu.concatenate %40, %42, %44, %46, %34, %48, %50, %52, %54 in 0 : vector<4x256xf32>, vector<4x256xf32>, vector<4x256xf32>, vector<4x256xf32>, vector<4x256xf32>, vector<4x256xf32>, vector<4x256xf32>, vector<4x256xf32>, vector<4x256xf32> -> vector<36x256xf32>
    %56 = arith.truncf %55 : vector<36x256xf32> to vector<36x256xbf16>
    %cst_22 = arith.constant dense<0.000000e+00> : vector<4x256xf32>
    %57 = tpu.matmul %0, %56, %cst_22 {dimension_numbers = #tpu.dot_dimension_numbers<[1], [0], [0], [1], [0, 0, 1, 1], [], []>} : vector<4x36xbf16>, vector<36x256xbf16>, vector<4x256xf32> -> vector<4x256xf32>
    %cst_23 = arith.constant dense<0.000000e+00> : vector<4xf32>
    %58 = vector.multi_reduction <add>, %31, %cst_23 [1] : vector<4x256xf32> to vector<4xf32>
    %59 = vector.shape_cast %58 : vector<4xf32> to vector<4x1xf32>
    %cst_24 = arith.constant 0.000000e+00 : f32
    %60 = vector.broadcast %cst_24 : f32 to vector<4x1xf32>
    %61 = arith.addf %60, %59 : vector<4x1xf32>
    %cst_25 = arith.constant dense<0.000000e+00> : vector<4xf32>
    %62 = vector.multi_reduction <add>, %57, %cst_25 [1] : vector<4x256xf32> to vector<4xf32>
    %63 = vector.shape_cast %62 : vector<4xf32> to vector<4x1xf32>
    %64 = arith.addf %61, %63 : vector<4x1xf32>
    %65 = arith.mulf %31, %31 : vector<4x256xf32>
    %cst_26 = arith.constant dense<0.000000e+00> : vector<4xf32>
    %66 = vector.multi_reduction <add>, %65, %cst_26 [1] : vector<4x256xf32> to vector<4xf32>
    %67 = vector.shape_cast %66 : vector<4xf32> to vector<4x1xf32>
    %cst_27 = arith.constant 0.000000e+00 : f32
    %68 = vector.broadcast %cst_27 : f32 to vector<4x1xf32>
    %69 = arith.addf %68, %67 : vector<4x1xf32>
    %70 = arith.mulf %57, %57 : vector<4x256xf32>
    %cst_28 = arith.constant dense<0.000000e+00> : vector<4xf32>
    %71 = vector.multi_reduction <add>, %70, %cst_28 [1] : vector<4x256xf32> to vector<4xf32>
    %72 = vector.shape_cast %71 : vector<4xf32> to vector<4x1xf32>
    %73 = arith.addf %69, %72 : vector<4x1xf32>
    %cst_29 = arith.constant 0.001953125 : f32
    %74 = vector.broadcast %cst_29 : f32 to vector<4x1xf32>
    %75 = arith.mulf %64, %74 : vector<4x1xf32>
    %cst_30 = arith.constant 0.001953125 : f32
    %76 = vector.broadcast %cst_30 : f32 to vector<4x1xf32>
    %77 = arith.mulf %73, %76 : vector<4x1xf32>
    %78 = arith.mulf %75, %75 : vector<4x1xf32>
    %79 = arith.subf %77, %78 : vector<4x1xf32>
    %cst_31 = arith.constant 9.99999974E-6 : f32
    %80 = vector.broadcast %cst_31 : f32 to vector<4x1xf32>
    %81 = arith.addf %79, %80 : vector<4x1xf32>
    %82 = math.rsqrt %81 : vector<4x1xf32>
    %83 = arith.mulf %2, %82 : vector<4x1xf32>
    %84 = arith.mulf %75, %83 : vector<4x1xf32>
    %85 = arith.subf %3, %84 : vector<4x1xf32>
    %86 = vector.broadcast %83 : vector<4x1xf32> to vector<4x256xf32>
    %87 = arith.mulf %31, %86 : vector<4x256xf32>
    %88 = vector.broadcast %85 : vector<4x1xf32> to vector<4x256xf32>
    %89 = arith.addf %87, %88 : vector<4x256xf32>
    %cst_32 = arith.constant 0.000000e+00 : f32
    %90 = vector.broadcast %cst_32 : f32 to vector<4x256xf32>
    %91 = arith.maximumf %89, %90 : vector<4x256xf32>
    %92 = vector.broadcast %83 : vector<4x1xf32> to vector<4x256xf32>
    %93 = arith.mulf %57, %92 : vector<4x256xf32>
    %94 = vector.broadcast %85 : vector<4x1xf32> to vector<4x256xf32>
    %95 = arith.addf %93, %94 : vector<4x256xf32>
    %cst_33 = arith.constant 0.000000e+00 : f32
    %96 = vector.broadcast %cst_33 : f32 to vector<4x256xf32>
    %97 = arith.maximumf %95, %96 : vector<4x256xf32>
    %98 = vector.shape_cast %91 : vector<4x256xf32> to vector<4x16x16xf32>
    %cst_34 = arith.constant 0.000000e+00 : f32
    %99 = vector.broadcast %cst_34 : f32 to vector<4x16x1xf32>
    %100 = tpu.concatenate %99, %98, %99 in 2 : vector<4x16x1xf32>, vector<4x16x16xf32>, vector<4x16x1xf32> -> vector<4x16x18xf32>
    %cst_35 = arith.constant 0.000000e+00 : f32
    %101 = vector.broadcast %cst_35 : f32 to vector<4x1x18xf32>
    %102 = tpu.concatenate %101, %100, %101 in 1 : vector<4x1x18xf32>, vector<4x16x18xf32>, vector<4x1x18xf32> -> vector<4x18x18xf32>
    %103 = vector.extract_strided_slice %102 {offsets = [0, 0, 0], sizes = [4, 16, 16], strides = [1, 1, 1]} : vector<4x18x18xf32> to vector<4x16x16xf32>
    %104 = vector.shape_cast %103 : vector<4x16x16xf32> to vector<4x256xf32>
    %105 = vector.extract_strided_slice %102 {offsets = [0, 0, 1], sizes = [4, 16, 16], strides = [1, 1, 1]} : vector<4x18x18xf32> to vector<4x16x16xf32>
    %106 = vector.shape_cast %105 : vector<4x16x16xf32> to vector<4x256xf32>
    %107 = vector.extract_strided_slice %102 {offsets = [0, 0, 2], sizes = [4, 16, 16], strides = [1, 1, 1]} : vector<4x18x18xf32> to vector<4x16x16xf32>
    %108 = vector.shape_cast %107 : vector<4x16x16xf32> to vector<4x256xf32>
    %109 = vector.extract_strided_slice %102 {offsets = [0, 1, 0], sizes = [4, 16, 16], strides = [1, 1, 1]} : vector<4x18x18xf32> to vector<4x16x16xf32>
    %110 = vector.shape_cast %109 : vector<4x16x16xf32> to vector<4x256xf32>
    %111 = vector.extract_strided_slice %102 {offsets = [0, 1, 2], sizes = [4, 16, 16], strides = [1, 1, 1]} : vector<4x18x18xf32> to vector<4x16x16xf32>
    %112 = vector.shape_cast %111 : vector<4x16x16xf32> to vector<4x256xf32>
    %113 = vector.extract_strided_slice %102 {offsets = [0, 2, 0], sizes = [4, 16, 16], strides = [1, 1, 1]} : vector<4x18x18xf32> to vector<4x16x16xf32>
    %114 = vector.shape_cast %113 : vector<4x16x16xf32> to vector<4x256xf32>
    %115 = vector.extract_strided_slice %102 {offsets = [0, 2, 1], sizes = [4, 16, 16], strides = [1, 1, 1]} : vector<4x18x18xf32> to vector<4x16x16xf32>
    %116 = vector.shape_cast %115 : vector<4x16x16xf32> to vector<4x256xf32>
    %117 = vector.extract_strided_slice %102 {offsets = [0, 2, 2], sizes = [4, 16, 16], strides = [1, 1, 1]} : vector<4x18x18xf32> to vector<4x16x16xf32>
    %118 = vector.shape_cast %117 : vector<4x16x16xf32> to vector<4x256xf32>
    %119 = tpu.concatenate %104, %106, %108, %110, %91, %112, %114, %116, %118 in 0 : vector<4x256xf32>, vector<4x256xf32>, vector<4x256xf32>, vector<4x256xf32>, vector<4x256xf32>, vector<4x256xf32>, vector<4x256xf32>, vector<4x256xf32>, vector<4x256xf32> -> vector<36x256xf32>
    %120 = arith.truncf %119 : vector<36x256xf32> to vector<36x256xbf16>
    %cst_36 = arith.constant dense<0.000000e+00> : vector<4x256xf32>
    %121 = tpu.matmul %1, %120, %cst_36 {dimension_numbers = #tpu.dot_dimension_numbers<[1], [0], [0], [1], [0, 0, 1, 1], [], []>} : vector<4x36xbf16>, vector<36x256xbf16>, vector<4x256xf32> -> vector<4x256xf32>
    %122 = vector.shape_cast %97 : vector<4x256xf32> to vector<4x16x16xf32>
    %cst_37 = arith.constant 0.000000e+00 : f32
    %123 = vector.broadcast %cst_37 : f32 to vector<4x16x1xf32>
    %124 = tpu.concatenate %123, %122, %123 in 2 : vector<4x16x1xf32>, vector<4x16x16xf32>, vector<4x16x1xf32> -> vector<4x16x18xf32>
    %cst_38 = arith.constant 0.000000e+00 : f32
    %125 = vector.broadcast %cst_38 : f32 to vector<4x1x18xf32>
    %126 = tpu.concatenate %125, %124, %125 in 1 : vector<4x1x18xf32>, vector<4x16x18xf32>, vector<4x1x18xf32> -> vector<4x18x18xf32>
    %127 = vector.extract_strided_slice %126 {offsets = [0, 0, 0], sizes = [4, 16, 16], strides = [1, 1, 1]} : vector<4x18x18xf32> to vector<4x16x16xf32>
    %128 = vector.shape_cast %127 : vector<4x16x16xf32> to vector<4x256xf32>
    %129 = vector.extract_strided_slice %126 {offsets = [0, 0, 1], sizes = [4, 16, 16], strides = [1, 1, 1]} : vector<4x18x18xf32> to vector<4x16x16xf32>
    %130 = vector.shape_cast %129 : vector<4x16x16xf32> to vector<4x256xf32>
    %131 = vector.extract_strided_slice %126 {offsets = [0, 0, 2], sizes = [4, 16, 16], strides = [1, 1, 1]} : vector<4x18x18xf32> to vector<4x16x16xf32>
    %132 = vector.shape_cast %131 : vector<4x16x16xf32> to vector<4x256xf32>
    %133 = vector.extract_strided_slice %126 {offsets = [0, 1, 0], sizes = [4, 16, 16], strides = [1, 1, 1]} : vector<4x18x18xf32> to vector<4x16x16xf32>
    %134 = vector.shape_cast %133 : vector<4x16x16xf32> to vector<4x256xf32>
    %135 = vector.extract_strided_slice %126 {offsets = [0, 1, 2], sizes = [4, 16, 16], strides = [1, 1, 1]} : vector<4x18x18xf32> to vector<4x16x16xf32>
    %136 = vector.shape_cast %135 : vector<4x16x16xf32> to vector<4x256xf32>
    %137 = vector.extract_strided_slice %126 {offsets = [0, 2, 0], sizes = [4, 16, 16], strides = [1, 1, 1]} : vector<4x18x18xf32> to vector<4x16x16xf32>
    %138 = vector.shape_cast %137 : vector<4x16x16xf32> to vector<4x256xf32>
    %139 = vector.extract_strided_slice %126 {offsets = [0, 2, 1], sizes = [4, 16, 16], strides = [1, 1, 1]} : vector<4x18x18xf32> to vector<4x16x16xf32>
    %140 = vector.shape_cast %139 : vector<4x16x16xf32> to vector<4x256xf32>
    %141 = vector.extract_strided_slice %126 {offsets = [0, 2, 2], sizes = [4, 16, 16], strides = [1, 1, 1]} : vector<4x18x18xf32> to vector<4x16x16xf32>
    %142 = vector.shape_cast %141 : vector<4x16x16xf32> to vector<4x256xf32>
    %143 = tpu.concatenate %128, %130, %132, %134, %97, %136, %138, %140, %142 in 0 : vector<4x256xf32>, vector<4x256xf32>, vector<4x256xf32>, vector<4x256xf32>, vector<4x256xf32>, vector<4x256xf32>, vector<4x256xf32>, vector<4x256xf32>, vector<4x256xf32> -> vector<36x256xf32>
    %144 = arith.truncf %143 : vector<36x256xf32> to vector<36x256xbf16>
    %cst_39 = arith.constant dense<0.000000e+00> : vector<4x256xf32>
    %145 = tpu.matmul %1, %144, %cst_39 {dimension_numbers = #tpu.dot_dimension_numbers<[1], [0], [0], [1], [0, 0, 1, 1], [], []>} : vector<4x36xbf16>, vector<36x256xbf16>, vector<4x256xf32> -> vector<4x256xf32>
    %cst_40 = arith.constant dense<0.000000e+00> : vector<4xf32>
    %146 = vector.multi_reduction <add>, %121, %cst_40 [1] : vector<4x256xf32> to vector<4xf32>
    %147 = vector.shape_cast %146 : vector<4xf32> to vector<4x1xf32>
    %cst_41 = arith.constant 0.000000e+00 : f32
    %148 = vector.broadcast %cst_41 : f32 to vector<4x1xf32>
    %149 = arith.addf %148, %147 : vector<4x1xf32>
    %cst_42 = arith.constant dense<0.000000e+00> : vector<4xf32>
    %150 = vector.multi_reduction <add>, %145, %cst_42 [1] : vector<4x256xf32> to vector<4xf32>
    %151 = vector.shape_cast %150 : vector<4xf32> to vector<4x1xf32>
    %152 = arith.addf %149, %151 : vector<4x1xf32>
    %153 = arith.mulf %121, %121 : vector<4x256xf32>
    %cst_43 = arith.constant dense<0.000000e+00> : vector<4xf32>
    %154 = vector.multi_reduction <add>, %153, %cst_43 [1] : vector<4x256xf32> to vector<4xf32>
    %155 = vector.shape_cast %154 : vector<4xf32> to vector<4x1xf32>
    %cst_44 = arith.constant 0.000000e+00 : f32
    %156 = vector.broadcast %cst_44 : f32 to vector<4x1xf32>
    %157 = arith.addf %156, %155 : vector<4x1xf32>
    %158 = arith.mulf %145, %145 : vector<4x256xf32>
    %cst_45 = arith.constant dense<0.000000e+00> : vector<4xf32>
    %159 = vector.multi_reduction <add>, %158, %cst_45 [1] : vector<4x256xf32> to vector<4xf32>
    %160 = vector.shape_cast %159 : vector<4xf32> to vector<4x1xf32>
    %161 = arith.addf %157, %160 : vector<4x1xf32>
    %cst_46 = arith.constant 0.001953125 : f32
    %162 = vector.broadcast %cst_46 : f32 to vector<4x1xf32>
    %163 = arith.mulf %152, %162 : vector<4x1xf32>
    %cst_47 = arith.constant 0.001953125 : f32
    %164 = vector.broadcast %cst_47 : f32 to vector<4x1xf32>
    %165 = arith.mulf %161, %164 : vector<4x1xf32>
    %166 = arith.mulf %163, %163 : vector<4x1xf32>
    %167 = arith.subf %165, %166 : vector<4x1xf32>
    %cst_48 = arith.constant 9.99999974E-6 : f32
    %168 = vector.broadcast %cst_48 : f32 to vector<4x1xf32>
    %169 = arith.addf %167, %168 : vector<4x1xf32>
    %170 = math.rsqrt %169 : vector<4x1xf32>
    %171 = arith.mulf %4, %170 : vector<4x1xf32>
    %172 = arith.mulf %163, %171 : vector<4x1xf32>
    %173 = arith.subf %5, %172 : vector<4x1xf32>
    %174 = vector.broadcast %171 : vector<4x1xf32> to vector<4x256xf32>
    %175 = arith.mulf %121, %174 : vector<4x256xf32>
    %176 = vector.broadcast %173 : vector<4x1xf32> to vector<4x256xf32>
    %177 = arith.addf %175, %176 : vector<4x256xf32>
    %178 = arith.addf %177, %8 : vector<4x256xf32>
    %cst_49 = arith.constant 0.000000e+00 : f32
    %179 = vector.broadcast %cst_49 : f32 to vector<4x256xf32>
    %180 = arith.maximumf %178, %179 : vector<4x256xf32>
    %c0_50 = arith.constant 0 : index
    %c0_51 = arith.constant 0 : index
    %c0_52 = arith.constant 0 : index
    %181 = vector.load %arg7[%c0_50, %c0_51, %c0_52] : memref<2x4x256xf32, #tpu.memory_space<vmem>>, vector<1x4x256xf32>
    %182 = vector.shape_cast %181 : vector<1x4x256xf32> to vector<4x256xf32>
    %183 = vector.shape_cast %180 : vector<4x256xf32> to vector<1x4x256xf32>
    tpu.vector_store %arg7[%c0_50, %c0_51, %c0_52], %183 {strides = array<i32>} : memref<2x4x256xf32, #tpu.memory_space<vmem>>, vector<1x4x256xf32>,
    %184 = vector.broadcast %171 : vector<4x1xf32> to vector<4x256xf32>
    %185 = arith.mulf %145, %184 : vector<4x256xf32>
    %186 = vector.broadcast %173 : vector<4x1xf32> to vector<4x256xf32>
    %187 = arith.addf %185, %186 : vector<4x256xf32>
    %188 = arith.addf %187, %34 : vector<4x256xf32>
    %cst_53 = arith.constant 0.000000e+00 : f32
    %189 = vector.broadcast %cst_53 : f32 to vector<4x256xf32>
    %190 = arith.maximumf %188, %189 : vector<4x256xf32>
    %c1_54 = arith.constant 1 : index
    %c0_55 = arith.constant 0 : index
    %c0_56 = arith.constant 0 : index
    %191 = vector.load %arg7[%c1_54, %c0_55, %c0_56] : memref<2x4x256xf32, #tpu.memory_space<vmem>>, vector<1x4x256xf32>
    %192 = vector.shape_cast %191 : vector<1x4x256xf32> to vector<4x256xf32>
    %193 = vector.shape_cast %190 : vector<4x256xf32> to vector<1x4x256xf32>
    tpu.vector_store %arg7[%c1_54, %c0_55, %c0_56], %193 {strides = array<i32>} : memref<2x4x256xf32, #tpu.memory_space<vmem>>, vector<1x4x256xf32>,
    return
  }
}

</mosaic_0001>

<bundles_post_ra>
// kernel: residual_block.1
= control target key start
LH: loop header
LB: loop body
LE: loop exit
PB: predicated region body
PF: predicated region fallthrough
CT: control target
= control target key end

     0   :  { %v46_v0 = vlaneseq  ;;  %v10157_v4 = vmov 1983009808   ;;  %v10158_v6 = vmov 1934713408   ;;  %s10159_s25 = smov 64   ;;  %s10160_s26 = smov 32   ;;  %s16583_s0 = inlined_call_operand.vmem [shape: f32[2,4,16,16], index: 0, kind: input, shape index: {}]   ;;  %s16584_s1 = inlined_call_operand.vmem [shape: bf16[4,36], index: 1, kind: input, shape index: {}]   ;;  %s16585_s2 = inlined_call_operand.vmem [shape: f32[4,1], index: 2, kind: input, shape index: {}]   ;;  %s16586_s3 = inlined_call_operand.vmem [shape: f32[4,1], index: 3, kind: input, shape index: {}]   ;;  %s16587_s4 = inlined_call_operand.vmem [shape: bf16[4,36], index: 4, kind: input, shape index: {}]   ;;  %s16588_s5 = inlined_call_operand.vmem [shape: f32[4,1], index: 5, kind: input, shape index: {}]   ;;  %s16589_s6 = inlined_call_operand.vmem [shape: f32[4,1], index: 6, kind: input, shape index: {}]   ;;  %s16590_s7 = inlined_call_operand.vmem [shape: f32[2,4,256], index: 7, kind: output, shape index: {}]  }
   0x1   :  { %v10214_v1 = vld [vmem:[%s16583_s0] sm:$0xff]  ;;  %v10219_v2 = vld [vmem:[%s16583_s0 + $0x10] sm:$0xff]  ;;  %v44_v5 = vunpack.c.l.s4 %v10157_v4  ;;  %v76_v7 = vunpack.c.l.s4 %v10158_v6  ;;  %v10238_v12 = vld [vmem:[%s16583_s0 + $0x8] sm:$0xff]  ;;  %v16591_v49 = vmov 0.0   ;;  %s10162_s12 = smov 96   ;;  %s10163_s13 = smov 16  }
   0x2   :  { %v10224_v3 = vld [vmem:[%s16583_s0 + $0x20] sm:$0xff]  ;;  %v10229_v8 = vld [vmem:[%s16583_s0 + $0x30] sm:$0xff]  ;;  %v47_v10 = vshrl.u32 %v46_v0, 7  ;;  %v10243_v13 = vld [vmem:[%s16583_s0 + $0x18] sm:$0xff]  ;;  %s10165_s14 = smov 80   ;;  %s10166_s15 = smov 112  }
   0x3   :  { %v42_v9 = vcombine.high %v10214_v1, %v10224_v3  ;;  %v41_v11 = vcombine.low %v10214_v1, %v10224_v3  ;;  %v45_v14 = vunpack.c.0.s8 %v44_v5  ;;  %v58_v15 = vcombine.high %v10219_v2, %v10229_v8  ;;  %v10252_v18 = vld [vmem:[%s16583_s0 + $0x28] sm:$0xff]  ;;  %v10257_v19 = vld [vmem:[%s16583_s0 + $0x38] sm:$0xff]  ;;  %v10266_v22 = vld [vmem:[%s16583_s0 + $0x40] sm:$0xff]  ;;  %s10167_s16 = smov 1   ;;  %s10168_s17 = smov 127  }
   0x4   :  { %v77_v16 = vunpack.c.0.s8 %v76_v7  ;;  %v57_v17 = vcombine.low %v10219_v2, %v10229_v8  ;;  %v109_v20 = vcombine.low %v10238_v12, %v10252_v18  ;;  %v125_v21 = vcombine.low %v10243_v13, %v10257_v19  ;;  %v10275_v25 = vld [vmem:[%s16583_s0 + $0x48] sm:$0xff]  ;;  %v10280_v26 = vld [vmem:[%s16583_s0 + $0x60] sm:$0xff]  ;;  %v10320_v54 = vld [vmem:[%s16583_s0 + $0x50] sm:$0xff]  ;;  %s10169_s18 = smov 126  }
   0x5   :  { %v10268_v23 = vsub.s32 %v45_v14, %v47_v10  ;;  %v10285_v27 = vld [vmem:[%s16583_s0 + $0x68] sm:$0xff]  ;;  %v2279_v28 = vcombine.low %v10266_v22, %v10280_v26  ;;  %v2280_v29 = vcombine.high %v10266_v22, %v10280_v26  ;;  %v110_v42 = vcombine.high %v10238_v12, %v10252_v18  ;;  %v9005_v58 = vld [vmem:[%s16583_s0 + $0x58] sm:$0xff]  ;;  %v9008_v60 = vld [vmem:[%s16583_s0 + $0x70] sm:$0xff] }
   0x6   :  { %v10270_v24 = vsub.s32 %v77_v16, %v47_v10  ;;  %v2347_v30 = vcombine.low %v10275_v25, %v10285_v27  ;;  %v2348_v31 = vcombine.high %v10275_v25, %v10285_v27  ;;  %v126_v43 = vcombine.high %v10243_v13, %v10257_v19  ;;  %v9009_v61 = vld [vmem:[%s16583_s0 + $0x78] sm:$0xff]  ;;  %s10164_s0 = smov 48  }
   0x7   :  { %16917 = vst [vmem:[#allocation2_spill] sm:$0xff] %v10268_v23  ;;  %v56_v32 = vrot.slane %v42_v9, %v10268_v23  ;;  %v72_v33 = vrot.slane %v58_v15, %v10268_v23  ;;  %v49_v34 = vrot.slane %v41_v11, %v10268_v23  ;;  %v65_v35 = vrot.slane %v57_v17, %v10268_v23 }
   0x8   :  { %16918 = vst [vmem:[#allocation3_spill] sm:$0xff] %v10270_v24  ;;  %v117_v36 = vrot.slane %v109_v20, %v10268_v23  ;;  %v133_v37 = vrot.slane %v125_v21, %v10268_v23  ;;  %v124_v52 = vrot.slane %v110_v42, %v10268_v23  ;;  %v140_v53 = vrot.slane %v126_v43, %v10268_v23 }
   0x9   :  { %v89_v38 = vcombine.low %v56_v32, %v72_v33  ;;  %v74_v39 = vcombine.high %v49_v34, %v65_v35  ;;  %v73_v40 = vcombine.low %v49_v34, %v65_v35  ;;  %v90_v41 = vcombine.high %v56_v32, %v72_v33 }
   0xa   :  { %v141_v47 = vcombine.low %v117_v36, %v133_v37  ;;  %v142_v51 = vcombine.high %v117_v36, %v133_v37  ;;  %v10331_v59 = vrot.slane %v2279_v28, %v10268_v23  ;;  %v10340_v62 = vrot.slane %v2280_v29, %v10268_v23 }
   0xb   :  { %v97_v44 = vrot.slane %v89_v38, %v10270_v24  ;;  %v88_v45 = vrot.slane %v74_v39, %v10270_v24  ;;  %v10308_v46 = vrot.slane %v73_v40, %v10270_v24  ;;  %v104_v48 = vrot.slane %v90_v41, %v10270_v24 }
   0xc   :  { %v10325_v57 = vrot.slane %v141_v47, %v10270_v24  ;;  %16921 = vst [vmem:[#allocation6_spill] sm:$0xff] %v10331_v59  ;;  %16922 = vst [vmem:[#allocation7_spill] sm:$0xff] %v10340_v62  ;;  %v2295_v63 = vcombine.low %v10320_v54, %v9008_v60  ;;  %v2296_v0 = vcombine.high %v10320_v54, %v9008_v60  ;;  %vm286_vm0 = vcmask 7168  }
   0xd   :  { %16919 = vst [vmem:[#allocation4_spill] sm:$0xff] %v10308_v46  ;;  %190 = vrot.lane.b32.xlu1 %v97_v44, %s10159_s25  ;;  %182 = vrot.lane.b32.xlu0 %v88_v45, %s10160_s26  ;;  %v105_v50 = vcombine.high %v10308_v46, %v16591_v49  ;;  %v107_v55 = vcombine.high %v97_v44, %v16591_v49  ;;  %vm295_vm1 = vcmask 138240   ;;  %vm312_vm2 = vcmask 1040384  }
   0xe   :  { %v106_v56 = vcombine.high %v88_v45, %v16591_v49  ;;  %16920 = vst [vmem:[#allocation5_spill] sm:$0xff] %v10325_v57  ;;  %v2363_v4 = vcombine.low %v9005_v58, %v9009_v61  ;;  %v10347_v5 = vrot.slane %v2347_v30, %v10268_v23  ;;  %v10350_v6 = vrot.slane %v2348_v31, %v10268_v23 }
   0xf   :  { %v2364_v7 = vcombine.high %v9005_v58, %v9009_v61  ;;  %v157_v9 = vcombine.low %v124_v52, %v140_v53  ;;  %v10353_v10 = vrot.slane %v2295_v63, %v10268_v23  ;;  %v10356_v11 = vrot.slane %v2296_v0, %v10268_v23 }
  0x10   :  { %16923 = vst [vmem:[#allocation8_spill] sm:$0xff] %v10347_v5  ;;  %16924 = vst [vmem:[#allocation9_spill] sm:$0xff] %v10350_v6  ;;  %v10359_v14 = vrot.slane %v2363_v4, %v10268_v23  ;;  %v173_v15 = vcombine.high %v10325_v57, %v16591_v49  ;;  %v108_v16 = vcombine.high %v104_v48, %v16591_v49  ;;  %vm1484_vm3 = vcmask 1045504  }
  0x11   :  { %198 = vrot.lane.b32.xlu1 %v104_v48, %s10162_s12  ;;  %178 = vrot.lane.b32.xlu0 %v105_v50, %s10163_s13  ;;  %16925 = vst [vmem:[#allocation10_spill] sm:$0xff] %v10353_v10  ;;  %16926 = vst [vmem:[#allocation11_spill] sm:$0xff] %v10356_v11  ;;  %v156_v17 = vrot.slane %v142_v51, %v10270_v24  ;;  %v10366_v20 = vrot.slane %v2364_v7, %v10268_v23  ;;  %vm1019_vm4 = vcmask 1046528   ;;  %vm233_vm5 = vcmask 130048  }
  0x12   :  { %16927 = vst [vmem:[#allocation12_spill] sm:$0xff] %v10359_v14  ;;  %v165_v36 = vrot.slane %v157_v9, %v10270_v24  ;;  %v158_v37 = vcombine.high %v124_v52, %v140_v53  ;;  %vm235_vm6 = vcmask 261120   ;;  %vm237_vm7 = vcmask 392192  }
  0x13   :  { %16928 = vst [vmem:[#allocation13_spill] sm:$0xff] %v10366_v20  ;;  %v174_v35 = vcombine.high %v156_v17, %v16591_v49  ;;  %vm239_vm8 = vcmask 523264   ;;  %vm241_vm9 = vcmask 654336   ;;  %vm243_vm10 = vcmask 785408  }
  0x14   :  { %v175_v38 = vcombine.high %v165_v36, %v16591_v49  ;;  %v172_v39 = vrot.slane %v158_v37, %v10270_v24  ;;  %vm245_vm11 = vcmask 916480   ;;  %vm2203_vm12 = vcmask 1043456  }
  0x15   :  { %186 = vrot.lane.b32.xlu1 %v106_v56, %s10164_s0  ;;  %194 = vrot.lane.b32.xlu0 %v107_v55, %s10165_s14  ;;  %vm2222_vm13 = vcmask 1041408   ;;  %vm2218_vm14 = vcmask 293888  }
  0x16   :  { %v176_v40 = vcombine.high %v172_v39, %v16591_v49 }
  0x19   :  { %206 = vrot.lane.b32.xlu1 %v173_v15, %s10163_s13  ;;  %202 = vrot.lane.b32.xlu0 %v108_v16, %s10166_s15 }
  0x1d   :  { %214 = vrot.lane.b32.xlu1 %v174_v35, %s10164_s0  ;;  %210 = vrot.lane.b32.xlu0 %v156_v17, %s10160_s26 }
  0x21   :  { %222 = vrot.lane.b32.xlu1 %v175_v38, %s10165_s14  ;;  %218 = vrot.lane.b32.xlu0 %v165_v36, %s10159_s25 }
  0x25   :  { %230 = vrot.lane.b32.xlu1 %v176_v40, %s10166_s15  ;;  %226 = vrot.lane.b32.xlu0 %v172_v39, %s10162_s12 }
  0x29   :  { %264 = vrot.lane.b32.xlu1 %v10238_v12, %s10167_s16  ;;  %262 = vrot.lane.b32.xlu0 %v10214_v1, %s10167_s16 }
  0x2d   :  { %268 = vrot.lane.b32.xlu1 %v10243_v13, %s10167_s16  ;;  %266 = vrot.lane.b32.xlu0 %v10219_v2, %s10167_s16 }
  0x31   :  { %272 = vrot.lane.b32.xlu1 %v10252_v18, %s10167_s16  ;;  %270 = vrot.lane.b32.xlu0 %v10224_v3, %s10167_s16 }
  0x35   :  { %276 = vrot.lane.b32.xlu1 %v10257_v19, %s10167_s16  ;;  %274 = vrot.lane.b32.xlu0 %v10229_v8, %s10167_s16 }
  0x39   :  { %2493 = vrot.lane.b32.xlu1 %v10266_v22, %s10167_s16  ;;  %2495 = vrot.lane.b32.xlu0 %v10275_v25, %s10167_s16 }
  0x3d   :  { %2497 = vrot.lane.b32.xlu1 %v10320_v54, %s10167_s16  ;;  %2499 = vrot.lane.b32.xlu0 %v9005_v58, %s10167_s16 }
  0x41   :  { %2501 = vrot.lane.b32.xlu1 %v10280_v26, %s10167_s16  ;;  %2503 = vrot.lane.b32.xlu0 %v10285_v27, %s10167_s16 }
  0x45   :  { %2505 = vrot.lane.b32.xlu1 %v9008_v60, %s10167_s16  ;;  %2507 = vrot.lane.b32.xlu0 %v9009_v61, %s10167_s16 }
  0x7f   :  { %v10428_v1 = vpop.permute.xlu1 %190  ;;  %v10430_v2 = vpop.permute.xlu0 %182 }
  0x80   :  { %16929 = vst [vmem:[#allocation14_spill] sm:$0xff] %v10428_v1  ;;  %16930 = vst [vmem:[#allocation15_spill] sm:$0xff] %v10430_v2 }
  0x83   :  { %v10432_v3 = vpop.permute.xlu1 %198  ;;  %v10434_v8 = vpop.permute.xlu0 %178 }
  0x84   :  { %16931 = vst [vmem:[#allocation16_spill] sm:$0xff] %v10432_v3  ;;  %16932 = vst [vmem:[#allocation17_spill] sm:$0xff] %v10434_v8 }
  0x87   :  { %v10436_v12 = vpop.permute.xlu1 %186  ;;  %v10438_v13 = vpop.permute.xlu0 %194 }
  0x88   :  { %16933 = vst [vmem:[#allocation18_spill] sm:$0xff] %v10436_v12  ;;  %16934 = vst [vmem:[#allocation19_spill] sm:$0xff] %v10438_v13 }
  0x8b   :  { %v10440_v18 = vpop.permute.xlu1 %206  ;;  %v10442_v19 = vpop.permute.xlu0 %202 }
  0x8c   :  { %16935 = vst [vmem:[#allocation20_spill] sm:$0xff] %v10440_v18  ;;  %16936 = vst [vmem:[#allocation21_spill] sm:$0xff] %v10442_v19 }
  0x8f   :  { %v10444_v22 = vpop.permute.xlu1 %214  ;;  %v10446_v25 = vpop.permute.xlu0 %210 }
  0x90   :  { %16937 = vst [vmem:[#allocation22_spill] sm:$0xff] %v10444_v22  ;;  %16938 = vst [vmem:[#allocation23_spill] sm:$0xff] %v10446_v25 }
  0x93   :  { %v10448_v26 = vpop.permute.xlu1 %222  ;;  %v10450_v27 = vpop.permute.xlu0 %218 }
  0x94   :  { %16939 = vst [vmem:[#allocation24_spill] sm:$0xff] %v10448_v26  ;;  %16940 = vst [vmem:[#allocation25_spill] sm:$0xff] %v10450_v27 }
  0x97   :  { %v10452_v41 = vpop.permute.xlu1 %230  ;;  %v10454_v42 = vpop.permute.xlu0 %226 }
  0x98   :  { %16941 = vst [vmem:[#allocation26_spill] sm:$0xff] %v10452_v41  ;;  %16942 = vst [vmem:[#allocation27_spill] sm:$0xff] %v10454_v42 }
  0x9b   :  { %v265_v43 = vpop.permute.xlu1 %264  ;;  %v263_v44 = vpop.permute.xlu0 %262 }
  0x9c   :  { %v288_v45 = vsel %vm286_vm0, 0.0, %v265_v43  ;;  %v287_v47 = vsel %vm286_vm0, 0.0, %v263_v44 }
  0x9d   :  { %v297_v48 = vsel %vm295_vm1, %v288_v45, 0.0  ;;  %v296_v50 = vsel %vm295_vm1, %v287_v47, 0.0 }
  0x9e   :  { %v314_v51 = vrot.slane %v297_v48, 7  ;;  %v313_v52 = vrot.slane %v296_v50, 7 }
  0x9f   :  { %v269_v53 = vpop.permute.xlu1 %268  ;;  %v267_v54 = vpop.permute.xlu0 %266 }
  0xa0   :  { %v10461_v55 = vsel %vm312_vm2, %v313_v52, %v314_v51  ;;  %v10464_v56 = vsel %vm312_vm2, 0.0, %v313_v52  ;;  %v290_v58 = vsel %vm286_vm0, 0.0, %v269_v53  ;;  %v289_v61 = vsel %vm286_vm0, 0.0, %v267_v54 }
  0xa1   :  { %555 = vrot.lane.b32.xlu1 %v10464_v56, %s10168_s17  ;;  %557 = vrot.lane.b32.xlu0 %v10461_v55, %s10168_s17  ;;  %v299_v60 = vsel %vm295_vm1, %v290_v58, 0.0  ;;  %v298_v0 = vsel %vm295_vm1, %v289_v61, 0.0 }
  0xa2   :  { %v317_v63 = vrot.slane %v299_v60, 7  ;;  %v316_v9 = vrot.slane %v298_v0, 7  ;;  %v341_v0 = vsel %vm312_vm2, %v314_v51, 0.0 }
  0xa3   :  { %v273_v4 = vpop.permute.xlu1 %272  ;;  %v271_v7 = vpop.permute.xlu0 %270 }
  0xa4   :  { %v292_v15 = vsel %vm286_vm0, 0.0, %v273_v4  ;;  %v291_v16 = vsel %vm286_vm0, 0.0, %v271_v7  ;;  %v10479_v36 = vsel %vm312_vm2, %v316_v9, %v317_v63  ;;  %v10482_v37 = vsel %vm312_vm2, 0.0, %v316_v9 }
  0xa5   :  { %v301_v17 = vsel %vm295_vm1, %v292_v15, 0.0  ;;  %v300_v35 = vsel %vm295_vm1, %v291_v16, 0.0  ;;  %559 = vrot.lane.b32.xlu1 %v10482_v37, %s10168_s17  ;;  %561 = vrot.lane.b32.xlu0 %v10479_v36, %s10168_s17  ;;  %v1485_v7 = vrot.slane %v10464_v56, 2  ;;  %v10525_v9 = vsel %vm312_vm2, %v317_v63, 0.0 }
  0xa6   :  { %v320_v38 = vrot.slane %v301_v17, 7  ;;  %v319_v39 = vrot.slane %v300_v35, 7  ;;  %v1486_v15 = vrot.slane %v10461_v55, 2  ;;  %v1028_v63 = vrot.slane %v10525_v9, 1 }
  0xa7   :  { %v277_v40 = vpop.permute.xlu1 %276  ;;  %v275_v43 = vpop.permute.xlu0 %274 }
  0xa8   :  { %v294_v44 = vsel %vm286_vm0, 0.0, %v277_v40  ;;  %v293_v45 = vsel %vm286_vm0, 0.0, %v275_v43  ;;  %v10491_v47 = vsel %vm312_vm2, %v319_v39, %v320_v38  ;;  %v10494_v48 = vsel %vm312_vm2, 0.0, %v319_v39 }
  0xa9   :  { %v303_v50 = vsel %vm295_vm1, %v294_v44, 0.0  ;;  %v302_v53 = vsel %vm295_vm1, %v293_v45, 0.0  ;;  %563 = vrot.lane.b32.xlu1 %v10494_v48, %s10168_s17  ;;  %565 = vrot.lane.b32.xlu0 %v10491_v47, %s10168_s17  ;;  %v10521_v4 = vsel %vm312_vm2, %v320_v38, 0.0  ;;  %v1488_v39 = vrot.slane %v341_v0, 2 }
  0xaa   :  { %v323_v52 = vrot.slane %v303_v50, 7  ;;  %v322_v54 = vrot.slane %v302_v53, 7  ;;  %v1033_v40 = vrot.slane %v10521_v4, 1  ;;  %v1031_v51 = vrot.slane %v10491_v47, 1 }
  0xab   :  { %v1026_v38 = vrot.slane %v10479_v36, 1  ;;  %v1025_v43 = vrot.slane %v10482_v37, 1  ;;  %v1030_v44 = vrot.slane %v10494_v48, 1  ;;  %v1023_v45 = vrot.slane %v341_v0, 1  ;;  %v2494_v41 = vpop.permute.xlu1 %2493  ;;  %v2496_v42 = vpop.permute.xlu0 %2495 }
  0xac   :  { %v10503_v58 = vsel %vm312_vm2, %v322_v54, %v323_v52  ;;  %v10506_v60 = vsel %vm312_vm2, 0.0, %v322_v54  ;;  %v10513_v61 = vsel %vm312_vm2, %v323_v52, 0.0  ;;  %v1021_v50 = vrot.slane %v10461_v55, 1 }
  0xad   :  { %567 = vrot.lane.b32.xlu1 %v10506_v60, %s10168_s17  ;;  %569 = vrot.lane.b32.xlu0 %v10503_v58, %s10168_s17  ;;  %v1038_v16 = vrot.slane %v10513_v61, 1  ;;  %v1036_v17 = vrot.slane %v10503_v58, 1  ;;  %v1035_v35 = vrot.slane %v10506_v60, 1  ;;  %v1020_v52 = vrot.slane %v10464_v56, 1 }
  0xae   :  { %v10550_v30 = vsel %vm1484_vm3, %v1485_v7, %v1486_v15  ;;  %v10557_v0 = vsel %vm1019_vm4, %v1031_v51, %v1033_v40  ;;  %v361_v29 = vcombine.low %v10482_v37, %v10506_v60  ;;  %v10568_v7 = vsel %vm1019_vm4, %v1025_v43, %v1026_v38 }
  0xaf   :  { %v10544_v53 = vsel %vm1019_vm4, %v1036_v17, %v1038_v16  ;;  %v10547_v54 = vsel %vm1019_vm4, %v1035_v35, %v1036_v17  ;;  %v10562_v16 = vsel %vm1484_vm3, %v1486_v15, %v1488_v39  ;;  %v10565_v17 = vsel %vm1019_vm4, %v1026_v38, %v1028_v63 }
  0xb0   :  { %v10571_v35 = vsel %vm1019_vm4, %v1030_v44, %v1031_v51  ;;  %v429_v34 = vcombine.low %v10479_v36, %v10503_v58  ;;  %v1024_v40 = vsel %vm1019_vm4, %v1021_v50, %v1023_v45  ;;  %v1132_v33 = vcombine.low %v10565_v17, %v10544_v53 }
  0xb1   :  { %787 = vrot.lane.b32.xlu1 %v10461_v55, %s10169_s18  ;;  %785 = vrot.lane.b32.xlu0 %v10464_v56, %s10169_s18  ;;  %v1064_v15 = vcombine.low %v10568_v7, %v10547_v54  ;;  %v345_v39 = vcombine.low %v10464_v56, %v10494_v48  ;;  %v1022_v38 = vsel %vm1019_vm4, %v1020_v52, %v1021_v50  ;;  %v1501_v27 = vrot.slane %v10503_v58, 2 }
  0xb2   :  { %v1116_v51 = vcombine.low %v1024_v40, %v10557_v0  ;;  %v413_v43 = vcombine.low %v10461_v55, %v10491_v47  ;;  %v1048_v28 = vcombine.low %v1022_v38, %v10571_v35  ;;  %v369_v21 = vrot.slane %v361_v29, %v10268_v23 }
  0xb3   :  { %v437_v32 = vrot.slane %v429_v34, %v10268_v23  ;;  %v346_v31 = vcombine.high %v10464_v56, %v10494_v48  ;;  %v1117_v63 = vcombine.high %v1024_v40, %v10557_v0  ;;  %v10602_v44 = vrot.slane %v1132_v33, %v10268_v23 }
  0xb4   :  { %v1072_v45 = vrot.slane %v1064_v15, %v10268_v23  ;;  %v353_v49 = vrot.slane %v345_v39, %v10268_v23  ;;  %v10607_v29 = vrot.slane %v1116_v51, %v10268_v23  ;;  %v421_v50 = vrot.slane %v413_v43, %v10268_v23 }
  0xb5   :  { %791 = vrot.lane.b32.xlu1 %v10479_v36, %s10169_s18  ;;  %789 = vrot.lane.b32.xlu0 %v10482_v37, %s10169_s18  ;;  %v362_v34 = vcombine.high %v10482_v37, %v10506_v60  ;;  %v430_v56 = vcombine.high %v10479_v36, %v10503_v58  ;;  %v1056_v33 = vrot.slane %v1048_v28, %v10268_v23 }
  0xb6   :  { %v378_v15 = vcombine.high %v353_v49, %v369_v21  ;;  %v377_v39 = vcombine.low %v353_v49, %v369_v21  ;;  %v445_v19 = vcombine.low %v421_v50, %v437_v32  ;;  %v414_v3 = vcombine.high %v10461_v55, %v10491_v47 }
  0xb7   :  { %v1049_v13 = vcombine.high %v1022_v38, %v10571_v35  ;;  %v1148_v52 = vcombine.low %v10607_v29, %v10602_v44  ;;  %v446_v1 = vcombine.high %v421_v50, %v437_v32  ;;  %v1133_v49 = vcombine.high %v10565_v17, %v10544_v53 }
  0xb8   :  { %v1065_v21 = vcombine.high %v10568_v7, %v10547_v54  ;;  %v376_v28 = vrot.slane %v362_v34, %v10268_v23  ;;  %v444_v51 = vrot.slane %v430_v56, %v10268_v23  ;;  %v10636_v32 = vrot.slane %v1117_v63, %v10268_v23 }
  0xb9   :  { %795 = vrot.lane.b32.xlu1 %v10491_v47, %s10169_s18  ;;  %793 = vrot.lane.b32.xlu0 %v10494_v48, %s10169_s18  ;;  %v392_v55 = vrot.slane %v378_v15, %v10270_v24  ;;  %v2517_v50 = vsel %vm286_vm0, 0.0, %v2494_v41  ;;  %v1081_v43 = vcombine.high %v1056_v33, %v1072_v45  ;;  %v10644_v34 = vrot.slane %v445_v19, %v10270_v24 }
  0xba   :  { %v360_v56 = vrot.slane %v346_v31, %v10268_v23  ;;  %v460_v63 = vrot.slane %v446_v1, %v10270_v24  ;;  %v10659_v41 = vrot.slane %v1133_v49, %v10268_v23  ;;  %v10662_v19 = vrot.slane %v1065_v21, %v10268_v23 }
  0xbb   :  { %16944 = vst [vmem:[#allocation29_spill] sm:$0xff] %v10644_v34  ;;  %v1149_v1 = vcombine.high %v10607_v29, %v10602_v44  ;;  %v16947_v49 = vmov 0.0  }
  0xbc   :  { %v393_v31 = vcombine.low %v360_v56, %v376_v28  ;;  %v477_v26 = vcombine.high %v10644_v34, %v16947_v49  ;;  %v478_v44 = vcombine.high %v460_v63, %v16947_v49  ;;  %v9031_v12 = vpack.i.bf16 %v460_v63, %v392_v55 }
  0xbd   :  { %799 = vrot.lane.b32.xlu1 %v10503_v58, %s10169_s18  ;;  %797 = vrot.lane.b32.xlu0 %v10506_v60, %s10169_s18 }
  0xc1   :  { %1256 = vrot.lane.b32.xlu1 %v1024_v40, %s10169_s18  ;;  %1254 = vrot.lane.b32.xlu0 %v1022_v38, %s10169_s18  ;;  %v1080_v40 = vcombine.low %v1056_v33, %v1072_v45  ;;  %v10640_v38 = vrot.slane %v377_v39, %v10270_v24  ;;  %v10656_v39 = vrot.slane %v1148_v52, %v10270_v24  ;;  %v10671_v52 = vsel %vm295_vm1, %v2517_v50, 0.0  ;;  %v2498_v33 = vpop.permute.xlu1 %2497 }
  0xc3   :  { %16943 = vst [vmem:[#allocation28_spill] sm:$0xff] %v10640_v38  ;;  %v10653_v15 = vrot.slane %v1080_v40, %v10270_v24  ;;  %16946 = vst [vmem:[#allocation31_spill] sm:$0xff] %v10656_v39  ;;  %v2500_v40 = vpop.permute.xlu0 %2499  ;;  %v409_v21 = vcombine.high %v10640_v38, %v16947_v49 }
  0xc5   :  { %1260 = vrot.lane.b32.xlu1 %v10565_v17, %s10169_s18  ;;  %1258 = vrot.lane.b32.xlu0 %v10568_v7, %s10169_s18  ;;  %v428_v17 = vrot.slane %v414_v3, %v10268_v23  ;;  %v10649_v7 = vrot.slane %v1049_v13, %v10268_v23  ;;  %16945 = vst [vmem:[#allocation30_spill] sm:$0xff] %v10653_v15 }
  0xc6   :  { %v394_v3 = vcombine.high %v360_v56, %v376_v28  ;;  %v10684_v29 = vcombine.high %v10653_v15, %v16947_v49  ;;  %v2518_v28 = vsel %vm286_vm0, 0.0, %v2496_v42 }
  0xc7   :  { %v461_v45 = vcombine.low %v428_v17, %v444_v51  ;;  %v462_v13 = vcombine.high %v428_v17, %v444_v51  ;;  %v10688_v51 = vcombine.high %v10656_v39, %v16947_v49  ;;  %v1096_v56 = vcombine.low %v10649_v7, %v10662_v19 }
  0xc8   :  { %v408_v42 = vrot.slane %v394_v3, %v10270_v24  ;;  %v10710_v58 = vsel %vm295_vm1, %v2518_v28, 0.0  ;;  %v2502_v3 = vpop.permute.xlu1 %2501  ;;  %v16949_v28 = vrot.slane %v10482_v37, 2  ;;  %v16954_v37 = vrot.slane %v10506_v60, 2 }
  0xc9   :  { %1264 = vrot.lane.b32.xlu1 %v10557_v0, %s10169_s18  ;;  %1262 = vrot.lane.b32.xlu0 %v10571_v35, %s10169_s18  ;;  %v410_v0 = vcombine.high %v392_v55, %v16947_v49  ;;  %v10679_v35 = vrot.slane %v1081_v43, %v10270_v24  ;;  %v401_v43 = vrot.slane %v393_v31, %v10270_v24  ;;  %v2521_v60 = vsel %vm286_vm0, 0.0, %v2502_v3 }
  0xca   :  { %v469_v17 = vrot.slane %v461_v45, %v10270_v24  ;;  %v476_v50 = vrot.slane %v462_v13, %v10270_v24  ;;  %v16595_v45 = vrot.slane %v10671_v52, 7  ;;  %v9081_v22 = vpack.i.bf16 %v10688_v51, %v10684_v29  ;;  %v2504_v13 = vpop.permute.xlu0 %2503 }
  0xcb   :  { %v9051_v2 = vpack.i.bf16 %v478_v44, %v410_v0  ;;  %v411_v31 = vcombine.high %v401_v43, %v16947_v49  ;;  %v10720_v55 = vrot.slane %v1149_v1, %v10270_v24  ;;  %v10723_v63 = vrot.slane %v1096_v56, %v10270_v24 }
  0xcc   :  { %v9036_v25 = vpack.i.bf16 %v469_v17, %v401_v43  ;;  %v16594_v0 = vrot.slane %v10710_v58, 7  ;;  %v2519_v44 = vsel %vm286_vm0, 0.0, %v2498_v33  ;;  %v412_v29 = vcombine.high %v408_v42, %v16947_v49  ;;  %v2506_v3 = vpop.permute.xlu1 %2505 }
  0xcd   :  { %1268 = vrot.lane.b32.xlu1 %v10544_v53, %s10169_s18  ;;  %1266 = vrot.lane.b32.xlu0 %v10547_v54, %s10169_s18  ;;  %v9046_v53 = vpack.i.bf16 %v477_v26, %v409_v21  ;;  %v10716_v54 = vcombine.high %v10679_v35, %v16947_v49  ;;  %v9041_v26 = vpack.i.bf16 %v476_v50, %v408_v42  ;;  %v16948_v1 = vrot.slane %v10479_v36, 2 }
  0xce   :  { %v479_v21 = vcombine.high %v469_v17, %v16947_v49  ;;  %v480_v51 = vcombine.high %v476_v50, %v16947_v49  ;;  %v16950_v43 = vrot.slane %v10525_v9, 2  ;;  %v16952_v33 = vrot.slane %v10491_v47, 2 }
  0xcf   :  { %v10737_v56 = vsel %vm1484_vm3, %v16949_v28, %v16948_v1  ;;  %v16951_v17 = vmov %v16948_v1  ;;  %v16953_v50 = vrot.slane %v10494_v48, 2  ;;  %v10757_v1 = vsel %vm1484_vm3, %v16954_v37, %v1501_v27 }
  0xd0   :  { %v16957_v36 = vrot.slane %v10521_v4, 2  ;;  %v16958_v28 = vmov %v16952_v33  ;;  %v10772_v48 = vsel %vm295_vm1, %v2519_v44, 0.0 }
  0xd1   :  { %9032 = vrot.lane.b32.xlu1 %v9031_v12, %s10160_s26  ;;  %9047 = vrot.lane.b32.xlu0 %v9046_v53, %s10163_s13  ;;  %v2520_v12 = vsel %vm286_vm0, 0.0, %v2500_v40  ;;  %v10745_v53 = vsel %vm1484_vm3, %v16951_v17, %v16950_v43  ;;  %v10752_v42 = vsel %vm1484_vm3, %v16953_v50, %v16952_v33  ;;  %v16955_v40 = vrot.slane %v10513_v61, 2 }
  0xd2   :  { %v10769_v43 = vsel %vm1484_vm3, %v16958_v28, %v16957_v36  ;;  %v2522_v17 = vsel %vm286_vm0, 0.0, %v2504_v13  ;;  %v10786_v47 = vsel %vm295_vm1, %v2520_v12, 0.0  ;;  %v2529_v61 = vsel %vm295_vm1, %v2521_v60, 0.0  ;;  %v2508_v13 = vpop.permute.xlu0 %2507 }
  0xd3   :  { %v10762_v9 = vsel %vm1484_vm3, %v1501_v27, %v16955_v40  ;;  %v10783_v27 = vsel %vm312_vm2, %v16595_v45, %v16594_v0  ;;  %v10790_v4 = vsel %vm295_vm1, %v2522_v17, 0.0  ;;  %v2547_v44 = vrot.slane %v2529_v61, 7 }
  0xd4   :  { %16956 = vst [vmem:[#allocation32_spill] sm:$0xff] %v10762_v9  ;;  %v16593_v33 = vrot.slane %v10790_v4, 7  ;;  %v9056_v50 = vpack.i.bf16 %v479_v21, %v411_v31  ;;  %v1513_v12 = vcombine.low %v10550_v30, %v10752_v42  ;;  %v1581_v37 = vcombine.low %v10562_v16, %v10769_v43 }
  0xd5   :  { %9037 = vrot.lane.b32.xlu1 %v9036_v25, %s10159_s25  ;;  %9052 = vrot.lane.b32.xlu0 %v9051_v2, %s10164_s0  ;;  %v1529_v2 = vcombine.low %v10737_v56, %v10757_v1  ;;  %v1597_v25 = vcombine.low %v10745_v53, %v10762_v9  ;;  %v2544_v40 = vrot.slane %v10772_v48, 7  ;;  %v16597_v36 = vrot.slane %v10786_v47, 7 }
  0xd6   :  { %v10806_v28 = vsel %vm312_vm2, %v2547_v44, %v16593_v33  ;;  %v2523_v60 = vsel %vm286_vm0, 0.0, %v2506_v3  ;;  %v2524_v17 = vsel %vm286_vm0, 0.0, %v2508_v13  ;;  %v1181_v31 = vcombine.high %v10720_v55, %v16947_v49 }
  0xd7   :  { %v9066_v21 = vpack.i.bf16 %v10720_v55, %v10679_v35  ;;  %v1114_v61 = vcombine.high %v10723_v63, %v16947_v49  ;;  %v16959_v3 = vcombine.low %v10636_v32, %v10659_v41  ;;  %v9061_v33 = vpack.i.bf16 %v480_v51, %v412_v29 }
  0xd8   :  { %v1521_v0 = vrot.slane %v1513_v12, %v10268_v23  ;;  %v2531_v35 = vsel %vm295_vm1, %v2523_v60, 0.0  ;;  %v10829_v55 = vsel %vm295_vm1, %v2524_v17, 0.0  ;;  %v1589_v48 = vrot.slane %v1581_v37, %v10268_v23 }
  0xd9   :  { %9042 = vrot.lane.b32.xlu1 %v9041_v26, %s10162_s12  ;;  %9057 = vrot.lane.b32.xlu0 %v9056_v50, %s10165_s14  ;;  %v1172_v13 = vrot.slane %v16959_v3, %v10270_v24  ;;  %v1537_v26 = vrot.slane %v1529_v2, %v10268_v23  ;;  %v1605_v50 = vrot.slane %v1597_v25, %v10268_v23  ;;  %v2550_v3 = vrot.slane %v2531_v35, 7 }
  0xda   :  { %v10835_v45 = vsel %vm312_vm2, %v2544_v40, %v16597_v36  ;;  %v16596_v2 = vrot.slane %v10829_v55, 7  ;;  %v9086_v29 = vpack.i.bf16 %v1181_v31, %v10716_v54  ;;  %v16960_v51 = vcombine.high %v10649_v7, %v10662_v19 }
  0xdb   :  { %v16961_v12 = vcombine.high %v10636_v32, %v10659_v41  ;;  %v16962_v60 = vrot.slane %v10671_v52, 7  ;;  %v1613_v35 = vcombine.low %v1589_v48, %v1605_v50  ;;  %v1530_v54 = vcombine.high %v10737_v56, %v10757_v1 }
  0xdc   :  { %v1111_v25 = vrot.slane %v16960_v51, %v10270_v24  ;;  %v10859_v7 = vsel %vm312_vm2, %v2550_v3, %v16596_v2  ;;  %v1182_v19 = vcombine.high %v1172_v13, %v16947_v49  ;;  %v9071_v32 = vpack.i.bf16 %v1172_v13, %v10723_v63 }
  0xdd   :  { %9082 = vrot.lane.b32.xlu1 %v9081_v22, %s10163_s13  ;;  %9062 = vrot.lane.b32.xlu0 %v9061_v33, %s10166_s15  ;;  %v1179_v37 = vrot.slane %v16961_v12, %v10270_v24  ;;  %v10852_v17 = vsel %vm312_vm2, 0.0, %v16962_v60  ;;  %v1545_v22 = vcombine.low %v1521_v0, %v1537_v26  ;;  %v1598_v41 = vcombine.high %v10745_v53, %v10762_v9 }
  0xde   :  { %16963 = vst [vmem:[#allocation33_spill] sm:$0xff] %v10852_v17  ;;  %v1546_v33 = vcombine.high %v1521_v0, %v1537_v26  ;;  %v1614_v31 = vcombine.high %v1589_v48, %v1605_v50  ;;  %v1514_v51 = vcombine.high %v10550_v30, %v10752_v42  ;;  %v1582_v12 = vcombine.high %v10562_v16, %v10769_v43 }
  0xdf   :  { %v1115_v63 = vcombine.high %v1111_v25, %v16947_v49  ;;  %v1183_v13 = vcombine.high %v1179_v37, %v16947_v49  ;;  %v9076_v60 = vpack.i.bf16 %v1179_v37, %v1111_v25  ;;  %v10876_v2 = vsel %vm312_vm2, 0.0, %v2544_v40 }
  0xe0   :  { %16964 = vst [vmem:[#allocation34_spill] sm:$0xff] %v10876_v2  ;;  %v10879_v0 = vrot.slane %v1545_v22, %v10270_v24  ;;  %v10882_v48 = vrot.slane %v1613_v35, %v10270_v24  ;;  %v1544_v26 = vrot.slane %v1530_v54, %v10268_v23  ;;  %v10886_v50 = vsel %vm312_vm2, 0.0, %v2547_v44 }
  0xe1   :  { %9087 = vrot.lane.b32.xlu1 %v9086_v29, %s10164_s0  ;;  %9067 = vrot.lane.b32.xlu0 %v9066_v21, %s10160_s26  ;;  %16967 = vst [vmem:[#allocation37_spill] sm:$0xff] %v10886_v50  ;;  %v9091_v21 = vpack.i.bf16 %v1182_v19, %v1114_v61  ;;  %v1612_v29 = vrot.slane %v1598_v41, %v10268_v23  ;;  %v16599_v36 = vrot.slane %v10783_v27, 1  ;;  %v3247_v25 = vrot.slane %v10852_v17, 1 }
  0xe2   :  { %16965 = vst [vmem:[#allocation35_spill] sm:$0xff] %v10879_v0  ;;  %16966 = vst [vmem:[#allocation36_spill] sm:$0xff] %v10882_v48  ;;  %v1560_v40 = vrot.slane %v1546_v33, %v10270_v24  ;;  %v1628_v37 = vrot.slane %v1614_v31, %v10270_v24  ;;  %v1528_v22 = vrot.slane %v1514_v51, %v10268_v23  ;;  %v3252_v54 = vrot.slane %v10876_v2, 1 }
  0xe3   :  { %v1596_v35 = vrot.slane %v1582_v12, %v10268_v23  ;;  %v3257_v19 = vrot.slane %v10886_v50, 1  ;;  %v1577_v41 = vcombine.high %v10879_v0, %v16947_v49  ;;  %v1645_v33 = vcombine.high %v10882_v48, %v16947_v49 }
  0xe4   :  { %v1561_v31 = vcombine.low %v1528_v22, %v1544_v26  ;;  %v10906_v51 = vsel %vm312_vm2, 0.0, %v2550_v3  ;;  %v9096_v12 = vpack.i.bf16 %v1183_v13, %v1115_v63  ;;  %v10912_v52 = vsel %vm1019_vm4, %v3247_v25, %v16599_v36 }
  0xe5   :  { %9092 = vrot.lane.b32.xlu1 %v9091_v21, %s10165_s14  ;;  %9072 = vrot.lane.b32.xlu0 %v9071_v32, %s10159_s25  ;;  %16968 = vst [vmem:[#allocation38_spill] sm:$0xff] %v10906_v51  ;;  %v1629_v32 = vcombine.low %v1596_v35, %v1612_v29  ;;  %v9106_v61 = vpack.i.bf16 %v1628_v37, %v1560_v40  ;;  %v16969_v0 = vrot.slane %v10835_v45, 1  ;;  %v16970_v63 = vrot.slane %v10806_v28, 1 }
  0xe6   :  { %v1578_v44 = vcombine.high %v1560_v40, %v16947_v49  ;;  %v3262_v25 = vrot.slane %v10906_v51, 1  ;;  %v9101_v36 = vpack.i.bf16 %v1645_v33, %v1577_v41  ;;  %v1646_v21 = vcombine.high %v1628_v37, %v16947_v49 }
  0xe7   :  { %v10920_v3 = vsel %vm1019_vm4, %v3252_v54, %v16969_v0  ;;  %v10925_v13 = vsel %vm1019_vm4, %v3257_v19, %v16970_v63  ;;  %v1637_v40 = vrot.slane %v1629_v32, %v10270_v24  ;;  %v1562_v48 = vcombine.high %v1528_v22, %v1544_v26 }
  0xe8   :  { %v1630_v0 = vcombine.high %v1596_v35, %v1612_v29  ;;  %v16971_v54 = vrot.slane %v10859_v7, 1  ;;  %v9111_v41 = vpack.i.bf16 %v1646_v21, %v1578_v44  ;;  %v16990_v39 = vrot.slane %v10835_v45, 2 }
  0xe9   :  { %9097 = vrot.lane.b32.xlu1 %v9096_v12, %s10166_s15  ;;  %9077 = vrot.lane.b32.xlu0 %v9076_v60, %s10162_s12  ;;  %v1569_v12 = vrot.slane %v1561_v31, %v10270_v24  ;;  %v3276_v60 = vcombine.high %v10912_v52, %v10925_v13  ;;  %v1647_v22 = vcombine.high %v1637_v40, %v16947_v49 }
  0xea   :  { %v10936_v57 = vsel %vm1019_vm4, %v3262_v25, %v16971_v54  ;;  %v1576_v35 = vrot.slane %v1562_v48, %v10270_v24  ;;  %v1644_v31 = vrot.slane %v1630_v0, %v10270_v24  ;;  %v2642_v54 = vcombine.high %v10783_v27, %v10806_v28 }
  0xeb   :  { %v10939_v19 = vrot.slane %v3276_v60, %v10268_v23  ;;  %v3292_v37 = vcombine.high %v10920_v3, %v10936_v57  ;;  %v1579_v33 = vcombine.high %v1569_v12, %v16947_v49  ;;  %v9116_v29 = vpack.i.bf16 %v1637_v40, %v1569_v12 }
  0xec   :  { %v9126_v63 = vpack.i.bf16 %v1644_v31, %v1576_v35  ;;  %v1580_v25 = vcombine.high %v1576_v35, %v16947_v49  ;;  %v1648_v12 = vcombine.high %v1644_v31, %v16947_v49 }
  0xed   :  { %16972 = vst [vmem:[#allocation39_spill] sm:$0xff] %v10939_v19  ;;  %9102 = vrot.lane.b32.xlu1 %v9101_v36, %s10163_s13  ;;  %9107 = vrot.lane.b32.xlu0 %v9106_v61, %s10160_s26  ;;  %v10947_v26 = vrot.slane %v3292_v37, %v10268_v23  ;;  %v16974_v36 = vcombine.low %v10783_v27, %v10806_v28 }
  0xee   :  { %v16976_v61 = vcombine.low %v10835_v45, %v10859_v7  ;;  %v9121_v21 = vpack.i.bf16 %v1647_v22, %v1579_v33  ;;  %v9131_v0 = vpack.i.bf16 %v1648_v12, %v1580_v25  ;;  %v2658_v37 = vcombine.high %v10835_v45, %v10859_v7 }
  0xef   :  { %16973 = vst [vmem:[#allocation40_spill] sm:$0xff] %v10947_v26  ;;  %v10958_v44 = vrot.slane %v16974_v36, %v10268_v23 }
  0xf0   :  { %v10966_v48 = vrot.slane %v16976_v61, %v10268_v23  ;;  %v10987_v33 = vrot.slane %v2658_v37, %v10268_v23  ;;  %v16981_v37 = vrot.slane %v10786_v47, 7  ;;  %v16983_v47 = vrot.slane %v10829_v55, 7 }
  0xf1   :  { %16975 = vst [vmem:[#allocation41_spill] sm:$0xff] %v10958_v44  ;;  %9112 = vrot.lane.b32.xlu1 %v9111_v41, %s10164_s0  ;;  %9117 = vrot.lane.b32.xlu0 %v9116_v29, %s10159_s25  ;;  %v10984_v41 = vrot.slane %v2642_v54, %v10268_v23 }
  0xf2   :  { %16977 = vst [vmem:[#allocation42_spill] sm:$0xff] %v10966_v48  ;;  %16979 = vst [vmem:[#allocation44_spill] sm:$0xff] %v10987_v33  ;;  %v2570_v29 = vsel %vm312_vm2, %v16981_v37, 0.0  ;;  %v11053_v37 = vsel %vm312_vm2, %v16983_v47, 0.0 }
  0xf3   :  { %16978 = vst [vmem:[#allocation43_spill] sm:$0xff] %v10984_v41  ;;  %v3255_v8 = vrot.slane %v2570_v29, 1 }
  0xf5   :  { %9122 = vrot.lane.b32.xlu1 %v9121_v21, %s10165_s14  ;;  %9127 = vrot.lane.b32.xlu0 %v9126_v63, %s10162_s12 }
  0xf9   :  { %9132 = vrot.lane.b32.xlu1 %v9131_v0, %s10166_s15  ;;  %1719 = vrot.lane.b32.xlu0 %v10550_v30, %s10168_s17  ;;  %v16980_v0 = vrot.slane %v10710_v58, 7  ;;  %v16982_v58 = vrot.slane %v10790_v4, 7 }
  0xfb   :  { %v2569_v54 = vsel %vm312_vm2, %v16980_v0, 0.0  ;;  %v11046_v0 = vsel %vm312_vm2, %v16982_v58, 0.0  ;;  %v3719_v58 = vrot.slane %v2570_v29, 2 }
  0xfc   :  { %v3250_v18 = vrot.slane %v2569_v54, 1  ;;  %v3714_v4 = vrot.slane %v2569_v54, 2  ;;  %v3260_v10 = vrot.slane %v11046_v0, 1  ;;  %v3724_v54 = vrot.slane %v11046_v0, 2 }
  0xfd   :  { %1721 = vrot.lane.b32.xlu1 %v10562_v16, %s10168_s17  ;;  %1723 = vrot.lane.b32.xlu0 %v10737_v56, %s10168_s17  ;;  %v16988_v0 = vrot.slane %v10783_v27, 2  ;;  %v11126_v38 = vsel %vm1484_vm3, %v16990_v39, %v3719_v58 }
  0xfe   :  { %16991 = vst [vmem:[#allocation46_spill] sm:$0xff] %v11126_v38 }
 0x101   :  { %1725 = vrot.lane.b32.xlu1 %v10745_v53, %s10168_s17  ;;  %1727 = vrot.lane.b32.xlu0 %v10752_v42, %s10168_s17 }
 0x105   :  { %2785 = vrot.lane.b32.xlu1 %v10783_v27, %s10168_s17  ;;  %2789 = vrot.lane.b32.xlu0 %v10835_v45, %s10168_s17 }
 0x109   :  { %2793 = vrot.lane.b32.xlu1 %v10806_v28, %s10168_s17  ;;  %2797 = vrot.lane.b32.xlu0 %v10859_v7, %s10168_s17 }
 0x10d   :  { %2783 = vrot.lane.b32.xlu1 %v10852_v17, %s10168_s17  ;;  %2787 = vrot.lane.b32.xlu0 %v10876_v2, %s10168_s17 }
 0x111   :  { %2791 = vrot.lane.b32.xlu1 %v10886_v50, %s10168_s17  ;;  %2795 = vrot.lane.b32.xlu0 %v10906_v51, %s10168_s17 }
 0x113   :  { %v556_v35 = vpop.permute.xlu1 %555  ;;  %v558_v31 = vpop.permute.xlu0 %557 }
 0x115   :  { %3015 = vrot.lane.b32.xlu1 %v10783_v27, %s10169_s18  ;;  %3019 = vrot.lane.b32.xlu0 %v10835_v45, %s10169_s18 }
 0x117   :  { %v560_v36 = vpop.permute.xlu1 %559  ;;  %v562_v61 = vpop.permute.xlu0 %561 }
 0x119   :  { %3023 = vrot.lane.b32.xlu1 %v10806_v28, %s10169_s18  ;;  %3027 = vrot.lane.b32.xlu0 %v10859_v7, %s10169_s18 }
 0x11b   :  { %v564_v21 = vpop.permute.xlu1 %563  ;;  %v566_v63 = vpop.permute.xlu0 %565 }
 0x11c   :  { %v579_v46 = vcombine.low %v556_v35, %v564_v21  ;;  %v647_v11 = vcombine.low %v558_v31, %v566_v63  ;;  %v580_v5 = vcombine.high %v556_v35, %v564_v21 }
 0x11d   :  { %3013 = vrot.lane.b32.xlu1 %v10852_v17, %s10169_s18  ;;  %3017 = vrot.lane.b32.xlu0 %v10876_v2, %s10169_s18 }
 0x11e   :  { %v11065_v47 = vrot.slane %v579_v46, %v10268_v23  ;;  %v11074_v29 = vrot.slane %v647_v11, %v10268_v23  ;;  %v16987_v11 = vrot.slane %v10859_v7, 1 }
 0x11f   :  { %v568_v25 = vpop.permute.xlu1 %567  ;;  %v570_v12 = vpop.permute.xlu0 %569 }
 0x120   :  { %v595_v40 = vcombine.low %v560_v36, %v568_v25  ;;  %v663_v22 = vcombine.low %v562_v61, %v570_v12  ;;  %v596_v62 = vcombine.high %v560_v36, %v568_v25  ;;  %v664_v6 = vcombine.high %v562_v61, %v570_v12 }
 0x121   :  { %3021 = vrot.lane.b32.xlu1 %v10886_v50, %s10169_s18  ;;  %3025 = vrot.lane.b32.xlu0 %v10906_v51, %s10169_s18  ;;  %v648_v36 = vcombine.high %v558_v31, %v566_v63  ;;  %v3265_v25 = vrot.slane %v11053_v37, 1 }
 0x122   :  { %v11056_v20 = vrot.slane %v595_v40, %v10268_v23  ;;  %v11062_v59 = vrot.slane %v663_v22, %v10268_v23  ;;  %v16984_v40 = vrot.slane %v10783_v27, 1  ;;  %v16985_v22 = vrot.slane %v10835_v45, 1 }
 0x123   :  { %v11039_v60 = vpop.permute.xlu1 %787  ;;  %v11041_v32 = vpop.permute.xlu0 %785  ;;  %v11085_v31 = vrot.slane %v596_v62, %v10268_v23  ;;  %v11090_v21 = vrot.slane %v664_v6, %v10268_v23  ;;  %v594_v62 = vrot.slane %v580_v5, %v10268_v23  ;;  %v11111_v15 = vsel %vm1019_vm4, %v16987_v11, %v3265_v25 }
 0x124   :  { %v11070_v61 = vsel %vm1019_vm4, %v16984_v40, %v3250_v18  ;;  %v11081_v35 = vsel %vm1019_vm4, %v16985_v22, %v3255_v8  ;;  %v612_v18 = vcombine.high %v11065_v47, %v11056_v20  ;;  %v680_v8 = vcombine.high %v11074_v29, %v11062_v59 }
 0x125   :  { %1729 = vrot.lane.b32.xlu1 %v10769_v43, %s10168_s17  ;;  %1733 = vrot.lane.b32.xlu0 %v10762_v9, %s10168_s17  ;;  %v662_v40 = vrot.slane %v648_v36, %v10268_v23  ;;  %v16986_v22 = vrot.slane %v10806_v28, 1  ;;  %v11116_v5 = vsel %vm1484_vm3, %v16988_v0, %v3714_v4  ;;  %v628_v39 = vcombine.high %v594_v62, %v11085_v31 }
 0x126   :  { %16989 = vst [vmem:[#allocation45_spill] sm:$0xff] %v11116_v5  ;;  %v11129_v25 = vrot.slane %v612_v18, %v10270_v24  ;;  %v11135_v33 = vrot.slane %v680_v8, %v10270_v24 }
 0x127   :  { %v792_v14 = vpop.permute.xlu1 %791  ;;  %v790_v55 = vpop.permute.xlu0 %789  ;;  %v11103_v6 = vsel %vm1019_vm4, %v16986_v22, %v3260_v10  ;;  %v627_v10 = vcombine.low %v594_v62, %v11085_v31  ;;  %v695_v22 = vcombine.low %v662_v40, %v11090_v21  ;;  %v696_v58 = vcombine.high %v662_v40, %v11090_v21 }
 0x129   :  { %3483 = vrot.lane.b32.xlu1 %v11070_v61, %s10169_s18  ;;  %3487 = vrot.lane.b32.xlu0 %v11081_v35, %s10169_s18 }
 0x12b   :  { %v796_v63 = vpop.permute.xlu1 %795  ;;  %v794_v12 = vpop.permute.xlu0 %793 }
 0x12c   :  { %v877_v46 = vcombine.low %v11039_v60, %v796_v63  ;;  %v878_v4 = vcombine.high %v11039_v60, %v796_v63  ;;  %v809_v11 = vcombine.low %v11041_v32, %v794_v12  ;;  %v810_v0 = vcombine.high %v11041_v32, %v794_v12 }
 0x12d   :  { %3491 = vrot.lane.b32.xlu1 %v11103_v6, %s10169_s18  ;;  %3495 = vrot.lane.b32.xlu0 %v11111_v15, %s10169_s18  ;;  %v16992_v32 = vrot.slane %v10806_v28, 2 }
 0x12e   :  { %v885_v18 = vrot.slane %v877_v46, %v10268_v23  ;;  %v892_v46 = vrot.slane %v878_v4, %v10268_v23  ;;  %v817_v31 = vrot.slane %v809_v11, %v10268_v23  ;;  %v824_v21 = vrot.slane %v810_v0, %v10268_v23 }
 0x12f   :  { %v800_v36 = vpop.permute.xlu1 %799  ;;  %v798_v34 = vpop.permute.xlu0 %797  ;;  %v11145_v60 = vsel %vm1484_vm3, %v16992_v32, %v3724_v54  ;;  %v11166_v54 = vrot.slane %v695_v22, %v10270_v24  ;;  %v611_v11 = vcombine.low %v11065_v47, %v11056_v20  ;;  %v679_v0 = vcombine.low %v11074_v29, %v11062_v59 }
 0x130   :  { %v893_v41 = vcombine.low %v792_v14, %v800_v36  ;;  %v894_v48 = vcombine.high %v792_v14, %v800_v36  ;;  %v825_v44 = vcombine.low %v790_v55, %v798_v34  ;;  %v826_v26 = vcombine.high %v790_v55, %v798_v34  ;;  %16993 = vst [vmem:[#allocation47_spill] sm:$0xff] %v11145_v60 }
 0x131   :  { %3947 = vrot.lane.b32.xlu1 %v11116_v5, %s10168_s17  ;;  %3951 = vrot.lane.b32.xlu0 %v11126_v38, %s10168_s17 }
 0x132   :  { %v901_v8 = vrot.slane %v893_v41, %v10268_v23  ;;  %v908_v14 = vrot.slane %v894_v48, %v10268_v23  ;;  %v833_v34 = vrot.slane %v825_v44, %v10268_v23  ;;  %v840_v55 = vrot.slane %v826_v26, %v10268_v23 }
 0x133   :  { %v11156_v63 = vpop.permute.xlu1 %1256  ;;  %v11158_v12 = vpop.permute.xlu0 %1254  ;;  %v11161_v41 = vrot.slane %v627_v10, %v10270_v24  ;;  %v9136_v26 = vpack.i.bf16 %v11135_v33, %v11129_v25 }
 0x134   :  { %v909_v48 = vcombine.low %v885_v18, %v901_v8  ;;  %v910_v44 = vcombine.high %v885_v18, %v901_v8  ;;  %v925_v62 = vcombine.low %v892_v46, %v908_v14  ;;  %v841_v40 = vcombine.low %v817_v31, %v833_v34 }
 0x135   :  { %v842_v36 = vcombine.high %v817_v31, %v833_v34  ;;  %v857_v4 = vcombine.low %v824_v21, %v840_v55  ;;  %3955 = vrot.lane.b32.xlu1 %v11145_v60, %s10168_s17  ;;  %9137 = vrot.lane.b32.xlu0 %v9136_v26, %s10160_s26  ;;  %v11182_v8 = vrot.slane %v628_v39, %v10270_v24 }
 0x136   :  { %v924_v10 = vrot.slane %v910_v44, %v10270_v24  ;;  %v11185_v34 = vrot.slane %v696_v58, %v10270_v24  ;;  %v11188_v20 = vrot.slane %v909_v48, %v10270_v24  ;;  %v926_v47 = vcombine.high %v892_v46, %v908_v14 }
 0x137   :  { %v11176_v18 = vpop.permute.xlu1 %1260  ;;  %v11178_v22 = vpop.permute.xlu0 %1258  ;;  %v856_v32 = vrot.slane %v842_v36, %v10270_v24  ;;  %v11191_v31 = vrot.slane %v841_v40, %v10270_v24  ;;  %v9141_v59 = vpack.i.bf16 %v11166_v54, %v11161_v41  ;;  %v858_v29 = vcombine.high %v824_v21, %v840_v55 }
 0x138   :  { %16994 = vst [vmem:[#allocation48_spill] sm:$0xff] %v11188_v20  ;;  %v865_v26 = vrot.slane %v857_v4, %v10270_v24  ;;  %v933_v39 = vrot.slane %v925_v62, %v10270_v24  ;;  %v11200_v14 = vrot.slane %v611_v11, %v10270_v24  ;;  %v9146_v46 = vpack.i.bf16 %v11185_v34, %v11182_v8 }
 0x139   :  { %16995 = vst [vmem:[#allocation49_spill] sm:$0xff] %v11191_v31  ;;  %v9151_v44 = vpack.i.bf16 %v924_v10, %v856_v32  ;;  %9142 = vrot.lane.b32.xlu0 %v9141_v59, %s10159_s25  ;;  %v873_v55 = vcombine.high %v11191_v31, %v16947_v49  ;;  %v941_v21 = vcombine.high %v11188_v20, %v16947_v49 }
 0x13a   :  { %16996 = vst [vmem:[#allocation50_spill] sm:$0xff] %v11200_v14  ;;  %v11209_v62 = vrot.slane %v679_v0, %v10270_v24  ;;  %v9156_v40 = vpack.i.bf16 %v933_v39, %v865_v26  ;;  %v872_v36 = vrot.slane %v858_v29, %v10270_v24  ;;  %v940_v4 = vrot.slane %v926_v47, %v10270_v24 }
 0x13b   :  { %9152 = vrot.lane.b32.xlu1 %v9151_v44, %s10160_s26  ;;  %v1265_v58 = vpop.permute.xlu1 %1264  ;;  %v1263_v48 = vpop.permute.xlu0 %1262  ;;  %v942_v20 = vcombine.high %v924_v10, %v16947_v49  ;;  %v9186_v19 = vpack.i.bf16 %v941_v21, %v873_v55  ;;  %v874_v29 = vcombine.high %v856_v32, %v16947_v49  ;;  %v643_v38 = vcombine.high %v11200_v14, %v16947_v49 }
 0x13c   :  { %16997 = vst [vmem:[#allocation51_spill] sm:$0xff] %v11209_v62  ;;  %v1346_v11 = vcombine.low %v11156_v63, %v1265_v58  ;;  %v1278_v59 = vcombine.low %v11158_v12, %v1263_v48  ;;  %v9161_v47 = vpack.i.bf16 %v940_v4, %v872_v36  ;;  %v943_v9 = vcombine.high %v933_v39, %v16947_v49 }
 0x13d   :  { %9147 = vrot.lane.b32.xlu0 %v9146_v46, %s10162_s12  ;;  %v711_v46 = vcombine.high %v11209_v62, %v16947_v49  ;;  %v712_v39 = vcombine.high %v11135_v33, %v16947_v49 }
 0x13e   :  { %v1286_v55 = vrot.slane %v1278_v59, %v10268_v23 }
 0x13f   :  { %9157 = vrot.lane.b32.xlu1 %v9156_v40, %s10159_s25  ;;  %v1269_v44 = vpop.permute.xlu1 %1268  ;;  %v1267_v31 = vpop.permute.xlu0 %1266  ;;  %v1354_v40 = vrot.slane %v1346_v11, %v10268_v23  ;;  %v875_v11 = vcombine.high %v865_v26, %v16947_v49  ;;  %v9166_v59 = vpack.i.bf16 %v711_v46, %v643_v38  ;;  %v645_v26 = vcombine.high %v11161_v41, %v16947_v49 }
 0x140   :  { %v1362_v0 = vcombine.low %v11176_v18, %v1269_v44  ;;  %v1294_v60 = vcombine.low %v11178_v22, %v1267_v31  ;;  %v1363_v32 = vcombine.high %v11176_v18, %v1269_v44  ;;  %v1295_v21 = vcombine.high %v11178_v22, %v1267_v31 }
 0x141   :  { %9187 = vrot.lane.b32.xlu0 %v9186_v19, %s10163_s13  ;;  %v644_v19 = vcombine.high %v11129_v25, %v16947_v49  ;;  %v1347_v18 = vcombine.high %v11156_v63, %v1265_v58  ;;  %v1279_v22 = vcombine.high %v11158_v12, %v1263_v48  ;;  %v944_v44 = vcombine.high %v940_v4, %v16947_v49 }
 0x142   :  { %v1370_v5 = vrot.slane %v1362_v0, %v10268_v23  ;;  %v1302_v10 = vrot.slane %v1294_v60, %v10268_v23  ;;  %v9191_v60 = vpack.i.bf16 %v942_v20, %v874_v29  ;;  %v1377_v20 = vrot.slane %v1363_v32, %v10268_v23 }
 0x143   :  { %9162 = vrot.lane.b32.xlu1 %v9161_v47, %s10162_s12  ;;  %v11234_v14 = vpop.permute.xlu1 %9032  ;;  %v11236_v62 = vpop.permute.xlu0 %9047  ;;  %v1309_v25 = vrot.slane %v1295_v21, %v10268_v23  ;;  %v9196_v12 = vpack.i.bf16 %v943_v9, %v875_v11  ;;  %v876_v38 = vcombine.high %v872_v36, %v16947_v49  ;;  %v1361_v29 = vrot.slane %v1347_v18, %v10268_v23 }
 0x144   :  { %v1378_v0 = vcombine.low %v1354_v40, %v1370_v5  ;;  %v1310_v31 = vcombine.low %v1286_v55, %v1302_v10  ;;  %v1379_v58 = vcombine.high %v1354_v40, %v1370_v5  ;;  %v1311_v4 = vcombine.high %v1286_v55, %v1302_v10 }
 0x145   :  { %9192 = vrot.lane.b32.xlu0 %v9191_v60, %s10164_s0  ;;  %v1293_v47 = vrot.slane %v1279_v22, %v10268_v23  ;;  %v9171_v46 = vpack.i.bf16 %v712_v39, %v644_v19  ;;  %v713_v32 = vcombine.high %v11166_v54, %v16947_v49  ;;  %v1394_v9 = vcombine.low %v1361_v29, %v1377_v20 }
 0x146   :  { %v11258_v48 = vrot.slane %v1378_v0, %v10270_v24  ;;  %v11261_v41 = vrot.slane %v1310_v31, %v10270_v24  ;;  %v9201_v10 = vpack.i.bf16 %v944_v44, %v876_v38  ;;  %v1393_v55 = vrot.slane %v1379_v58, %v10270_v24 }
 0x147   :  { %9167 = vrot.lane.b32.xlu1 %v9166_v59, %s10163_s13  ;;  %v11252_v33 = vpop.permute.xlu1 %9037  ;;  %v11254_v63 = vpop.permute.xlu0 %9052  ;;  %v1326_v36 = vcombine.low %v1293_v47, %v1309_v25  ;;  %v1325_v21 = vrot.slane %v1311_v4, %v10270_v24  ;;  %v9176_v0 = vpack.i.bf16 %v713_v32, %v645_v26  ;;  %v646_v60 = vcombine.high %v11182_v8, %v16947_v49 }
 0x148   :  { %16998 = vst [vmem:[#allocation52_spill] sm:$0xff] %v11258_v48  ;;  %16999 = vst [vmem:[#allocation53_spill] sm:$0xff] %v11261_v41  ;;  %v1342_v11 = vcombine.high %v11261_v41, %v16947_v49  ;;  %v1410_v54 = vcombine.high %v11258_v48, %v16947_v49  ;;  %v714_v19 = vcombine.high %v11185_v34, %v16947_v49 }
 0x149   :  { %9197 = vrot.lane.b32.xlu0 %v9196_v12, %s10165_s14  ;;  %v1395_v39 = vcombine.high %v1361_v29, %v1377_v20  ;;  %v1402_v18 = vrot.slane %v1394_v9, %v10270_v24  ;;  %v1327_v22 = vcombine.high %v1293_v47, %v1309_v25  ;;  %v1334_v44 = vrot.slane %v1326_v36, %v10270_v24 }
 0x14a   :  { %v9221_v26 = vpack.i.bf16 %v1410_v54, %v1342_v11  ;;  %v1343_v8 = vcombine.high %v1325_v21, %v16947_v49  ;;  %v1411_v12 = vcombine.high %v1393_v55, %v16947_v49  ;;  %v9181_v34 = vpack.i.bf16 %v714_v19, %v646_v60 }
 0x14b   :  { %9172 = vrot.lane.b32.xlu1 %v9171_v46, %s10164_s0  ;;  %v11269_v5 = vpop.permute.xlu1 %9042  ;;  %v11271_v40 = vpop.permute.xlu0 %9057  ;;  %v1409_v20 = vrot.slane %v1395_v39, %v10270_v24  ;;  %v1341_v58 = vrot.slane %v1327_v22, %v10270_v24  ;;  %v1344_v29 = vcombine.high %v1334_v44, %v16947_v49  ;;  %v1412_v47 = vcombine.high %v1402_v18, %v16947_v49 }
 0x14c   :  { %v9226_v4 = vpack.i.bf16 %v1411_v12, %v1343_v8  ;;  %v9206_v46 = vpack.i.bf16 %v1393_v55, %v1325_v21  ;;  %v9211_v54 = vpack.i.bf16 %v1402_v18, %v1334_v44  ;;  %v3729_v60 = vrot.slane %v11053_v37, 2 }
 0x14d   :  { %9202 = vrot.lane.b32.xlu0 %v9201_v10, %s10166_s15  ;;  %v9231_v36 = vpack.i.bf16 %v1412_v47, %v1344_v29  ;;  %v1345_v10 = vcombine.high %v1341_v58, %v16947_v49  ;;  %v1413_v11 = vcombine.high %v1409_v20, %v16947_v49  ;;  %v9216_v19 = vpack.i.bf16 %v1409_v20, %v1341_v58 }
 0x14e   :  { %v3727_v39 = vrot.slane %v10859_v7, 2  ;;  %v3711_v12 = vrot.slane %v10852_v17, 2  ;;  %v3721_v47 = vrot.slane %v10886_v50, 2 }
 0x14f   :  { %9177 = vrot.lane.b32.xlu1 %v9176_v0, %s10165_s14  ;;  %v11286_v31 = vpop.permute.xlu1 %9082  ;;  %v11288_v59 = vpop.permute.xlu0 %9062  ;;  %v9236_v21 = vpack.i.bf16 %v1413_v11, %v1345_v10  ;;  %v3726_v10 = vrot.slane %v10906_v51, 2 }
 0x150   :  { %v11326_v44 = vsel %vm1484_vm3, %v3727_v39, %v3729_v60 }
 0x151   :  { %9222 = vrot.lane.b32.xlu0 %v9221_v26, %s10163_s13  ;;  %17004 = vst [vmem:[#allocation58_spill] sm:$0xff] %v11326_v44 }
 0x153   :  { %9182 = vrot.lane.b32.xlu1 %v9181_v34, %s10166_s15  ;;  %v11296_v25 = vpop.permute.xlu1 %9087  ;;  %v11298_v38 = vpop.permute.xlu0 %9067  ;;  %v3716_v34 = vrot.slane %v10876_v2, 2 }
 0x155   :  { %9227 = vrot.lane.b32.xlu0 %v9226_v4, %s10164_s0  ;;  %v17011_v4 = vrot.slane %v10783_v27, 2 }
 0x157   :  { %9207 = vrot.lane.b32.xlu1 %v9206_v46, %s10160_s26  ;;  %v11305_v32 = vpop.permute.xlu1 %9092  ;;  %v11307_v9 = vpop.permute.xlu0 %9072  ;;  %v11357_v29 = vsel %vm1484_vm3, %v3711_v12, %v17011_v4  ;;  %v17013_v46 = vrot.slane %v10835_v45, 2  ;;  %v11382_v45 = vsel %vm1484_vm3, %v3726_v10, %v3727_v39  ;;  %v3275_v4 = vcombine.low %v10912_v52, %v10925_v13 }
 0x158   :  { %17012 = vst [vmem:[#allocation65_spill] sm:$0xff] %v11357_v29  ;;  %17018 = vst [vmem:[#allocation69_spill] sm:$0xff] %v11382_v45 }
 0x159   :  { %9232 = vrot.lane.b32.xlu0 %v9231_v36, %s10165_s14  ;;  %v11365_v36 = vsel %vm1484_vm3, %v3716_v34, %v17013_v46 }
 0x15a   :  { %17014 = vst [vmem:[#allocation66_spill] sm:$0xff] %v11365_v36 }
 0x15b   :  { %9212 = vrot.lane.b32.xlu1 %v9211_v54, %s10159_s25  ;;  %v11313_v0 = vpop.permute.xlu1 %9097  ;;  %v11315_v55 = vpop.permute.xlu0 %9077  ;;  %v17016_v54 = vrot.slane %v10806_v28, 2 }
 0x15c   :  { %17000 = vst [vmem:[#allocation54_spill] sm:$0xff] %v11313_v0  ;;  %17001 = vst [vmem:[#allocation55_spill] sm:$0xff] %v11315_v55  ;;  %v17047_v0 = vld [vmem:[#allocation44_spill] sm:$0xff] }
 0x15d   :  { %9237 = vrot.lane.b32.xlu0 %v9236_v21, %s10166_s15  ;;  %v11377_v21 = vsel %vm1484_vm3, %v3721_v47, %v17016_v54 }
 0x15e   :  { %17017 = vst [vmem:[#allocation68_spill] sm:$0xff] %v11377_v21 }
 0x15f   :  { %9217 = vrot.lane.b32.xlu1 %v9216_v19, %s10162_s12  ;;  %v11321_v22 = vpop.permute.xlu1 %9102  ;;  %v11323_v18 = vpop.permute.xlu0 %9107 }
 0x160   :  { %17002 = vst [vmem:[#allocation56_spill] sm:$0xff] %v11321_v22  ;;  %17003 = vst [vmem:[#allocation57_spill] sm:$0xff] %v11323_v18 }
 0x161   :  { %3959 = vrot.lane.b32.xlu0 %v11326_v44, %s10168_s17 }
 0x163   :  { %1731 = vrot.lane.b32.xlu1 %v10757_v1, %s10168_s17  ;;  %v11332_v37 = vpop.permute.xlu1 %9112  ;;  %v11334_v7 = vpop.permute.xlu0 %9117 }
 0x164   :  { %17005 = vst [vmem:[#allocation59_spill] sm:$0xff] %v11332_v37  ;;  %17006 = vst [vmem:[#allocation60_spill] sm:$0xff] %v11334_v7  ;;  %v17024_v37 = vld [vmem:[#allocation46_spill] sm:$0xff] }
 0x165   :  { %3481 = vrot.lane.b32.xlu0 %v10912_v52, %s10169_s18 }
 0x167   :  { %3485 = vrot.lane.b32.xlu1 %v10920_v3, %s10169_s18  ;;  %v11340_v26 = vpop.permute.xlu1 %9122  ;;  %v11342_v8 = vpop.permute.xlu0 %9127 }
 0x168   :  { %17007 = vst [vmem:[#allocation61_spill] sm:$0xff] %v11340_v26  ;;  %17008 = vst [vmem:[#allocation62_spill] sm:$0xff] %v11342_v8 }
 0x169   :  { %3489 = vrot.lane.b32.xlu0 %v10925_v13, %s10169_s18  ;;  %v17021_v13 = vld [vmem:[#allocation32_spill] sm:$0xff] }
 0x16b   :  { %3493 = vrot.lane.b32.xlu1 %v10936_v57, %s10169_s18  ;;  %v11350_v20 = vpop.permute.xlu1 %9132  ;;  %v11352_v58 = vpop.permute.xlu0 %1719 }
 0x16c   :  { %17009 = vst [vmem:[#allocation63_spill] sm:$0xff] %v11350_v20  ;;  %17010 = vst [vmem:[#allocation64_spill] sm:$0xff] %v11352_v58 }
 0x16d   :  { %3945 = vrot.lane.b32.xlu0 %v11357_v29, %s10168_s17 }
 0x16f   :  { %3949 = vrot.lane.b32.xlu1 %v11365_v36, %s10168_s17  ;;  %v11370_v11 = vpop.permute.xlu1 %1721  ;;  %v11372_v27 = vpop.permute.xlu0 %1723 }
 0x170   :  { %17015 = vst [vmem:[#allocation67_spill] sm:$0xff] %v11372_v27 }
 0x171   :  { %3953 = vrot.lane.b32.xlu0 %v11377_v21, %s10168_s17 }
 0x173   :  { %3957 = vrot.lane.b32.xlu1 %v11382_v45, %s10168_s17  ;;  %v11386_v60 = vpop.permute.xlu1 %1725  ;;  %v11388_v19 = vpop.permute.xlu0 %1727 }
 0x174   :  { %17019 = vst [vmem:[#allocation70_spill] sm:$0xff] %v11386_v60  ;;  %17020 = vst [vmem:[#allocation71_spill] sm:$0xff] %v11388_v19 }
 0x175   :  { %1949 = vrot.lane.b32.xlu0 %v10550_v30, %s10169_s18  ;;  %v3343_v30 = vcombine.low %v11070_v61, %v11103_v6 }
 0x177   :  { %1951 = vrot.lane.b32.xlu1 %v10562_v16, %s10169_s18  ;;  %v11394_v28 = vpop.permute.xlu1 %2785  ;;  %v11396_v12 = vpop.permute.xlu0 %2789  ;;  %v3359_v16 = vcombine.low %v11081_v35, %v11111_v15  ;;  %v11423_v54 = vrot.slane %v3343_v30, %v10268_v23 }
 0x179   :  { %1953 = vrot.lane.b32.xlu0 %v10737_v56, %s10169_s18  ;;  %v3291_v56 = vcombine.low %v10920_v3, %v10936_v57  ;;  %v11431_v57 = vrot.slane %v3275_v4, %v10268_v23 }
 0x17b   :  { %1955 = vrot.lane.b32.xlu1 %v10745_v53, %s10169_s18  ;;  %v11402_v39 = vpop.permute.xlu1 %2793  ;;  %v11404_v34 = vpop.permute.xlu0 %2797  ;;  %v11434_v52 = vrot.slane %v3291_v56, %v10268_v23 }
 0x17c   :  { %v2875_v53 = vcombine.low %v11394_v28, %v11402_v39  ;;  %v2891_v47 = vcombine.low %v11396_v12, %v11404_v34 }
 0x17d   :  { %1957 = vrot.lane.b32.xlu0 %v10752_v42, %s10169_s18  ;;  %v11426_v42 = vrot.slane %v3359_v16, %v10268_v23 }
 0x17e   :  { %v11437_v3 = vrot.slane %v2875_v53, %v10268_v23 }
 0x17f   :  { %1959 = vrot.lane.b32.xlu1 %v10769_v43, %s10169_s18  ;;  %v2784_v46 = vpop.permute.xlu1 %2783  ;;  %v2788_v10 = vpop.permute.xlu0 %2787  ;;  %v11440_v43 = vrot.slane %v2891_v47, %v10268_v23 }
 0x181   :  { %1961 = vrot.lane.b32.xlu0 %v10757_v1, %s10169_s18 }
 0x183   :  { %1963 = vrot.lane.b32.xlu1 %v17021_v13, %s10169_s18  ;;  %v2792_v30 = vpop.permute.xlu1 %2791  ;;  %v2796_v16 = vpop.permute.xlu0 %2795 }
 0x184   :  { %v2807_v20 = vcombine.low %v2784_v46, %v2792_v30  ;;  %v2808_v41 = vcombine.high %v2784_v46, %v2792_v30  ;;  %v2823_v1 = vcombine.low %v2788_v10, %v2796_v16  ;;  %v2824_v8 = vcombine.high %v2788_v10, %v2796_v16 }
 0x185   :  { %4175 = vrot.lane.b32.xlu0 %v11357_v29, %s10169_s18  ;;  %v3375_v46 = vcombine.low %v11423_v54, %v11426_v42  ;;  %v3307_v10 = vcombine.low %v11431_v57, %v11434_v52  ;;  %v2573_v16 = vcombine.low %v10852_v17, %v10886_v50 }
 0x186   :  { %v11445_v4 = vrot.slane %v2807_v20, %v10268_v23  ;;  %v11448_v56 = vrot.slane %v2808_v41, %v10268_v23  ;;  %v11451_v53 = vrot.slane %v2823_v1, %v10268_v23  ;;  %v11454_v47 = vrot.slane %v2824_v8, %v10268_v23  ;;  %v17022_v41 = vld [vmem:[#allocation45_spill] sm:$0xff] }
 0x187   :  { %v2907_v20 = vcombine.low %v11437_v3, %v11440_v43  ;;  %4177 = vrot.lane.b32.xlu1 %v17022_v41, %s10169_s18  ;;  %v3016_v13 = vpop.permute.xlu1 %3015  ;;  %v3020_v30 = vpop.permute.xlu0 %3019  ;;  %v2589_v1 = vcombine.low %v10876_v2, %v10906_v51  ;;  %v11484_v17 = vrot.slane %v3375_v46, %v10270_v24  ;;  %v11487_v2 = vrot.slane %v3307_v10, %v10270_v24  ;;  %v17029_v46 = vld [vmem:[#allocation39_spill] sm:$0xff]  ;;  %v17030_v10 = vld [vmem:[#allocation40_spill] sm:$0xff] }
 0x188   :  { %v2856_v8 = vcombine.high %v11448_v56, %v11454_v47  ;;  %v2839_v26 = vcombine.low %v11445_v4, %v11451_v53  ;;  %v17031_v27 = vcombine.high %v17029_v46, %v17030_v10 }
 0x189   :  { %4179 = vrot.lane.b32.xlu0 %v11365_v36, %s10169_s18  ;;  %v11479_v48 = vrot.slane %v2907_v20, %v10270_v24  ;;  %17025 = vst [vmem:[#allocation72_spill] sm:$0xff] %v11484_v17  ;;  %17026 = vst [vmem:[#allocation73_spill] sm:$0xff] %v11487_v2  ;;  %v11499_v29 = vrot.slane %v2589_v1, %v10268_v23 }
 0x18a   :  { %v11490_v51 = vrot.slane %v2856_v8, %v10270_v24  ;;  %v11493_v20 = vrot.slane %v2839_v26, %v10270_v24  ;;  %v11505_v58 = vrot.slane %v17031_v27, %v10270_v24  ;;  %v3376_v27 = vcombine.high %v11423_v54, %v11426_v42 }
 0x18b   :  { %17023 = vst [vmem:[#allocation32_spill] sm:$0xff] %v11479_v48  ;;  %4181 = vrot.lane.b32.xlu1 %v17024_v37, %s10169_s18  ;;  %v3024_v18 = vpop.permute.xlu1 %3023  ;;  %v3028_v22 = vpop.permute.xlu0 %3027  ;;  %v11496_v37 = vrot.slane %v2573_v16, %v10268_v23  ;;  %v3407_v54 = vcombine.high %v11484_v17, %v16947_v49 }
 0x18c   :  { %17027 = vst [vmem:[#allocation74_spill] sm:$0xff] %v11490_v51  ;;  %v3105_v7 = vcombine.low %v3016_v13, %v3024_v18  ;;  %v3106_v50 = vcombine.high %v3016_v13, %v3024_v18  ;;  %v3121_v41 = vcombine.low %v3020_v30, %v3028_v22  ;;  %v3122_v36 = vcombine.high %v3020_v30, %v3028_v22 }
 0x18d   :  { %17028 = vst [vmem:[#allocation75_spill] sm:$0xff] %v11493_v20  ;;  %17032 = vst [vmem:[#allocation39_spill] sm:$0xff] %v11505_v58  ;;  %4183 = vrot.lane.b32.xlu0 %v11377_v21, %s10169_s18  ;;  %v3360_v13 = vcombine.high %v11081_v35, %v11111_v15  ;;  %v2939_v35 = vcombine.high %v11479_v48, %v16947_v49  ;;  %v2871_v42 = vcombine.high %v11493_v20, %v16947_v49  ;;  %v17039_v20 = vld [vmem:[#allocation41_spill] sm:$0xff] }
 0x18e   :  { %v11508_v8 = vrot.slane %v3105_v7, %v10268_v23  ;;  %v11511_v22 = vrot.slane %v3106_v50, %v10268_v23  ;;  %v11514_v18 = vrot.slane %v3121_v41, %v10268_v23  ;;  %v11517_v26 = vrot.slane %v3122_v36, %v10268_v23  ;;  %v17033_v50 = vld [vmem:[#allocation47_spill] sm:$0xff] }
 0x18f   :  { %v2908_v7 = vcombine.high %v11437_v3, %v11440_v43  ;;  %4185 = vrot.lane.b32.xlu1 %v17033_v50, %s10169_s18  ;;  %v11529_v41 = vpop.permute.xlu1 %3013  ;;  %v11531_v30 = vpop.permute.xlu0 %3017  ;;  %v3339_v3 = vcombine.high %v11487_v2, %v16947_v49  ;;  %v11549_v43 = vcombine.high %v11490_v51, %v16947_v49  ;;  %v11553_v1 = vcombine.high %v11505_v58, %v16947_v49  ;;  %v17040_v2 = vld [vmem:[#allocation42_spill] sm:$0xff] }
 0x190   :  { %17034 = vst [vmem:[#allocation40_spill] sm:$0xff] %v11529_v41  ;;  %17035 = vst [vmem:[#allocation76_spill] sm:$0xff] %v11531_v30  ;;  %v3137_v16 = vcombine.low %v11508_v8, %v11514_v18  ;;  %v3154_v15 = vcombine.high %v11511_v22, %v11517_v26  ;;  %v2876_v36 = vcombine.high %v11394_v28, %v11402_v39 }
 0x191   :  { %17036 = vst [vmem:[#allocation77_spill] sm:$0xff] %v11549_v43  ;;  %17037 = vst [vmem:[#allocation78_spill] sm:$0xff] %v11553_v1  ;;  %4187 = vrot.lane.b32.xlu0 %v11382_v45, %s10169_s18  ;;  %v17041_v17 = vcombine.low %v17039_v20, %v17040_v2  ;;  %v2605_v51 = vcombine.low %v11496_v37, %v11499_v29  ;;  %v2892_v58 = vcombine.high %v11396_v12, %v11404_v34 }
 0x192   :  { %v11558_v48 = vrot.slane %v3137_v16, %v10270_v24  ;;  %v2922_v16 = vrot.slane %v2908_v7, %v10270_v24  ;;  %v11580_v45 = vrot.slane %v3154_v15, %v10270_v24  ;;  %v2840_v21 = vcombine.high %v11445_v4, %v11451_v53  ;;  %v17046_v15 = vld [vmem:[#allocation43_spill] sm:$0xff] }
 0x193   :  { %v11566_v50 = vrot.slane %v17041_v17, %v10270_v24  ;;  %4189 = vrot.lane.b32.xlu1 %v11326_v44, %s10169_s18  ;;  %v11574_v28 = vpop.permute.xlu1 %3021  ;;  %v11576_v39 = vpop.permute.xlu0 %3025  ;;  %v9241_v44 = vpack.i.bf16 %v3407_v54, %v2939_v35  ;;  %v9246_v19 = vpack.i.bf16 %v3339_v3, %v2871_v42  ;;  %v3390_v55 = vrot.slane %v3376_v27, %v10270_v24 }
 0x194   :  { %17038 = vst [vmem:[#allocation79_spill] sm:$0xff] %v11558_v48  ;;  %17043 = vst [vmem:[#allocation42_spill] sm:$0xff] %v11574_v28  ;;  %v3037_v12 = vcombine.low %v11529_v41, %v11574_v28  ;;  %v3053_v34 = vcombine.low %v11531_v30, %v11576_v39  ;;  %v3169_v7 = vcombine.high %v11558_v48, %v16947_v49 }
 0x195   :  { %17042 = vst [vmem:[#allocation41_spill] sm:$0xff] %v11566_v50  ;;  %17044 = vst [vmem:[#allocation80_spill] sm:$0xff] %v11576_v39  ;;  %v17048_v17 = vcombine.high %v17046_v15, %v17047_v0  ;;  %v3308_v4 = vcombine.high %v11431_v57, %v11434_v52  ;;  %9242 = vrot.lane.b32.xlu0 %v9241_v44, %s10163_s13  ;;  %v2705_v27 = vcombine.high %v11566_v50, %v16947_v49 }
 0x196   :  { %17045 = vst [vmem:[#allocation81_spill] sm:$0xff] %v11580_v45  ;;  %v11602_v53 = vrot.slane %v3037_v12, %v10268_v23  ;;  %v11605_v35 = vrot.slane %v3053_v34, %v10268_v23  ;;  %v11611_v54 = vrot.slane %v2876_v36, %v10268_v23  ;;  %v11614_v42 = vrot.slane %v2892_v58, %v10268_v23 }
 0x197   :  { %v11597_v43 = vrot.slane %v17048_v17, %v10270_v24  ;;  %9247 = vrot.lane.b32.xlu1 %v9246_v19, %s10163_s13  ;;  %v11617_v57 = vpop.permute.xlu1 %1729  ;;  %v11620_v52 = vrot.slane %v2605_v51, %v10270_v24  ;;  %v11626_v17 = vpop.permute.xlu0 %1733  ;;  %v9251_v36 = vpack.i.bf16 %v3390_v55, %v2922_v16  ;;  %v2854_v12 = vrot.slane %v2840_v21, %v10270_v24 }
 0x198   :  { %v3069_v44 = vcombine.low %v11602_v53, %v11605_v35  ;;  %v2940_v58 = vcombine.high %v2922_v16, %v16947_v49  ;;  %v3138_v19 = vcombine.high %v11508_v8, %v11514_v18  ;;  %v1811_v51 = vcombine.low %v11370_v11, %v11617_v57 }
 0x199   :  { %17049 = vst [vmem:[#allocation43_spill] sm:$0xff] %v11597_v43  ;;  %17050 = vst [vmem:[#allocation44_spill] sm:$0xff] %v11620_v52  ;;  %v1827_v34 = vcombine.low %v11386_v60, %v11626_v17  ;;  %v9256_v3 = vpack.i.bf16 %v3169_v7, %v2705_v27  ;;  %v17051_v50 = vcombine.high %v11070_v61, %v11103_v6  ;;  %9252 = vrot.lane.b32.xlu0 %v9251_v36, %s10160_s26 }
 0x19a   :  { %v11643_v21 = vrot.slane %v3360_v13, %v10268_v23  ;;  %v11646_v16 = vrot.slane %v3069_v44, %v10270_v24  ;;  %v3322_v8 = vrot.slane %v3308_v4, %v10270_v24  ;;  %v3408_v7 = vcombine.high %v3390_v55, %v16947_v49 }
 0x19b   :  { %v11640_v48 = vrot.slane %v17051_v50, %v10268_v23  ;;  %9257 = vrot.lane.b32.xlu1 %v9256_v3, %s10163_s13  ;;  %v11651_v18 = vpop.permute.xlu1 %3483  ;;  %v2923_v61 = vcombine.low %v11611_v54, %v11614_v42  ;;  %v11656_v6 = vpop.permute.xlu0 %3487  ;;  %v2637_v50 = vcombine.high %v11620_v52, %v16947_v49  ;;  %v11663_v4 = vrot.slane %v1811_v51, %v10268_v23 }
 0x19c   :  { %17052 = vst [vmem:[#allocation82_spill] sm:$0xff] %v11646_v16  ;;  %v9261_v13 = vpack.i.bf16 %v3322_v8, %v2854_v12  ;;  %v3101_v27 = vcombine.high %v11646_v16, %v16947_v49  ;;  %v11666_v3 = vrot.slane %v1827_v34, %v10268_v23  ;;  %v9266_v44 = vpack.i.bf16 %v3408_v7, %v2940_v58 }
 0x19d   :  { %v11669_v55 = vrot.slane %v3138_v19, %v10270_v24  ;;  %v3391_v36 = vcombine.low %v11640_v48, %v11643_v21  ;;  %v17053_v51 = vcombine.high %v17039_v20, %v17040_v2  ;;  %v2872_v7 = vcombine.high %v2854_v12, %v16947_v49 }
 0x19e   :  { %9262 = vrot.lane.b32.xlu0 %v9261_v13, %s10160_s26  ;;  %v9271_v1 = vpack.i.bf16 %v3101_v27, %v2637_v50  ;;  %v11687_v13 = vrot.slane %v2923_v61, %v10270_v24  ;;  %v3070_v50 = vcombine.high %v11602_v53, %v11605_v35  ;;  %v1843_v27 = vcombine.low %v11663_v4, %v11666_v3 }
 0x19f   :  { %9267 = vrot.lane.b32.xlu1 %v9266_v44, %s10164_s0  ;;  %v11675_v52 = vpop.permute.xlu1 %3491  ;;  %v2688_v34 = vrot.slane %v17053_v51, %v10270_v24  ;;  %v11683_v19 = vpop.permute.xlu0 %3495  ;;  %v3323_v44 = vcombine.low %v17029_v46, %v17030_v10  ;;  %v3340_v61 = vcombine.high %v3322_v8, %v16947_v49  ;;  %v11704_v53 = vrot.slane %v3391_v36, %v10270_v24 }
 0x1a0   :  { %v3573_v58 = vcombine.low %v11651_v18, %v11675_v52  ;;  %v3589_v2 = vcombine.low %v11656_v6, %v11683_v19  ;;  %v9050_v35 = vunpack.i.h.bf16 %v11236_v62  ;;  %v2606_v46 = vcombine.high %v11496_v37, %v11499_v29 }
 0x1a1   :  { %v9276_v20 = vpack.i.bf16 %v11669_v55, %v2688_v34  ;;  %v11717_v10 = vcombine.high %v11597_v43, %v16947_v49  ;;  %v9281_v36 = vpack.i.bf16 %v3340_v61, %v2872_v7  ;;  %v11731_v37 = vrot.slane %v1843_v27, %v10270_v24 }
 0x1a2   :  { %v11699_v12 = vrot.slane %v3573_v58, %v10268_v23  ;;  %9272 = vrot.lane.b32.xlu0 %v9271_v1, %s10163_s13  ;;  %v11708_v51 = vrot.slane %v3589_v2, %v10268_v23  ;;  %v9049_v1 = vunpack.i.l.bf16 %v11236_v62  ;;  %v9286_v58 = vpack.i.bf16 %v11704_v53, %v11687_v13 }
 0x1a3   :  { %9277 = vrot.lane.b32.xlu1 %v9276_v20, %s10160_s26  ;;  %v11711_v16 = vpop.permute.xlu1 %3947  ;;  %17054 = vst [vmem:[#allocation83_spill] sm:$0xff] %v11717_v10  ;;  %v11720_v8 = vpop.permute.xlu0 %3951  ;;  %v11726_v2 = vcombine.high %v11580_v45, %v16947_v49  ;;  %v2855_v20 = vcombine.low %v11448_v56, %v11454_v47  ;;  %17056 = vst [vmem:[#allocation85_spill] sm:$0xff] %v11731_v37  ;;  %v11736_v62 = vrot.slane %v3070_v50, %v10270_v24  ;;  %v17059_v45 = vld [vmem:[#allocation28_spill] sm:$0xff] }
 0x1a4   :  { %v3605_v29 = vcombine.low %v11699_v12, %v11708_v51  ;;  %v11742_v61 = vrot.slane %v3323_v44, %v10270_v24  ;;  %v9035_v47 = vunpack.i.h.bf16 %v11234_v14  ;;  %v9034_v27 = vunpack.i.l.bf16 %v11234_v14  ;;  %v17058_v44 = vld [vmem:[#allocation29_spill] sm:$0xff] }
 0x1a5   :  { %17055 = vst [vmem:[#allocation84_spill] sm:$0xff] %v11726_v2  ;;  %v11755_v7 = vrot.slane %v2606_v46, %v10270_v24  ;;  %v537_v56 = vsel %vm233_vm5, %v17059_v45, %v9049_v1  ;;  %v9055_v10 = vunpack.i.h.bf16 %v11254_v63  ;;  %v9054_v14 = vunpack.i.l.bf16 %v11254_v63 }
 0x1a6   :  { %9282 = vrot.lane.b32.xlu0 %v9281_v36, %s10164_s0  ;;  %v11749_v43 = vrot.slane %v3605_v29, %v10270_v24  ;;  %v544_v36 = vsel %vm233_vm5, %v17058_v44, %v9050_v35  ;;  %v1875_v46 = vcombine.high %v11731_v37, %v16947_v49  ;;  %v11772_v35 = vrot.slane %v2855_v20, %v10270_v24 }
 0x1a7   :  { %9287 = vrot.lane.b32.xlu1 %v9286_v58, %s10159_s25  ;;  %v11752_v50 = vpop.permute.xlu1 %3955  ;;  %v11763_v29 = vpop.permute.xlu0 %9137  ;;  %v9296_v58 = vpack.i.bf16 %v11736_v62, %v11755_v7  ;;  %v9040_v45 = vunpack.i.h.bf16 %v11252_v33  ;;  %v9085_v1 = vunpack.i.h.bf16 %v11286_v31  ;;  %v9084_v63 = vunpack.i.l.bf16 %v11286_v31 }
 0x1a8   :  { %17057 = vst [vmem:[#allocation86_spill] sm:$0xff] %v11749_v43  ;;  %v3637_v2 = vcombine.high %v11749_v43, %v16947_v49  ;;  %v2706_v44 = vcombine.high %v2688_v34, %v16947_v49  ;;  %v538_v30 = vsel %vm235_vm6, %v537_v56, %v9034_v27  ;;  %v9069_v39 = vunpack.i.l.bf16 %v11298_v38 }
 0x1a9   :  { %v3170_v43 = vcombine.high %v11669_v55, %v16947_v49  ;;  %v9039_v20 = vunpack.i.l.bf16 %v11252_v33  ;;  %v539_v41 = vsel %vm237_vm7, %v538_v30, %v9054_v14  ;;  %v545_v28 = vsel %vm235_vm6, %v544_v36, %v9035_v47  ;;  %v17060_v30 = vld [vmem:[#allocation31_spill] sm:$0xff]  ;;  %v17061_v47 = vld [vmem:[#allocation30_spill] sm:$0xff] }
 0x1aa   :  { %v9291_v37 = vpack.i.bf16 %v3637_v2, %v1875_v46  ;;  %v9070_v31 = vunpack.i.h.bf16 %v11298_v38  ;;  %v546_v34 = vsel %vm237_vm7, %v545_v28, %v9055_v10  ;;  %v9060_v56 = vunpack.i.h.bf16 %v11271_v40 }
 0x1ab   :  { %9297 = vrot.lane.b32.xlu1 %v9296_v58, %s10160_s26  ;;  %v11787_v60 = vpop.permute.xlu0 %9142  ;;  %v9059_v27 = vunpack.i.l.bf16 %v11271_v40  ;;  %v9306_v33 = vpack.i.bf16 %v11742_v61, %v11772_v35  ;;  %v1247_v55 = vsel %vm233_vm5, %v17060_v30, %v9085_v1  ;;  %v1240_v38 = vsel %vm233_vm5, %v17061_v47, %v9084_v63 }
 0x1ac   :  { %9292 = vrot.lane.b32.xlu0 %v9291_v37, %s10163_s13  ;;  %v9090_v36 = vunpack.i.h.bf16 %v11296_v25  ;;  %v9089_v28 = vunpack.i.l.bf16 %v11296_v25  ;;  %v1241_v10 = vsel %vm235_vm6, %v1240_v38, %v9069_v39  ;;  %v3606_v40 = vcombine.high %v11699_v12, %v11708_v51 }
 0x1ad   :  { %v11792_v2 = vpop.permute.xlu1 %9152  ;;  %v9301_v37 = vpack.i.bf16 %v3170_v43, %v2706_v44  ;;  %v2941_v14 = vcombine.high %v11687_v13, %v16947_v49  ;;  %v9045_v58 = vunpack.i.h.bf16 %v11269_v5  ;;  %v1248_v46 = vsel %vm235_vm6, %v1247_v55, %v9070_v31 }
 0x1ae   :  { %v9074_v1 = vunpack.i.l.bf16 %v11307_v9  ;;  %v3409_v25 = vcombine.high %v11704_v53, %v16947_v49  ;;  %v540_v39 = vsel %vm239_vm8, %v539_v41, %v9039_v20  ;;  %v9075_v12 = vunpack.i.h.bf16 %v11307_v9 }
 0x1af   :  { %9307 = vrot.lane.b32.xlu1 %v9306_v33, %s10159_s25  ;;  %v11812_v63 = vpop.permute.xlu0 %9147  ;;  %v1844_v43 = vcombine.high %v11663_v4, %v11666_v3  ;;  %v547_v13 = vsel %vm239_vm8, %v546_v34, %v9040_v45  ;;  %v9044_v44 = vunpack.i.l.bf16 %v11269_v5  ;;  %v541_v31 = vsel %vm241_vm9, %v540_v39, %v9059_v27 }
 0x1b0   :  { %9302 = vrot.lane.b32.xlu0 %v9301_v37, %s10164_s0  ;;  %v1242_v33 = vsel %vm237_vm7, %v1241_v10, %v9089_v28  ;;  %v548_v53 = vsel %vm241_vm9, %v547_v13, %v9060_v56  ;;  %v1249_v41 = vsel %vm237_vm7, %v1248_v46, %v9090_v36  ;;  %v3153_v9 = vcombine.low %v11511_v22, %v11517_v26 }
 0x1b1   :  { %v11820_v51 = vpop.permute.xlu1 %9157  ;;  %v9311_v4 = vpack.i.bf16 %v3409_v25, %v2941_v14  ;;  %v11832_v3 = vrot.slane %v3606_v40, %v10270_v24  ;;  %v9095_v20 = vunpack.i.h.bf16 %v11305_v32  ;;  %v9094_v45 = vunpack.i.l.bf16 %v11305_v32  ;;  %v17064_v14 = vld [vmem:[#allocation54_spill] sm:$0xff]  ;;  %v17065_v25 = vld [vmem:[#allocation48_spill] sm:$0xff] }
 0x1b2   :  { %v1243_v5 = vsel %vm239_vm8, %v1242_v33, %v9074_v1  ;;  %v2924_v34 = vcombine.high %v11611_v54, %v11614_v42  ;;  %v1250_v56 = vsel %vm239_vm8, %v1249_v41, %v9075_v12  ;;  %v11844_v22 = vrot.slane %v1844_v43, %v10270_v24 }
 0x1b3   :  { %v9188_v27 = vpop.permute.xlu0 %9187  ;;  %v9065_v32 = vunpack.i.h.bf16 %v11288_v59  ;;  %v17062_v26 = vcombine.low %v17046_v15, %v17047_v0  ;;  %v17063_v42 = vcombine.high %v11640_v48, %v11643_v21  ;;  %v9064_v36 = vunpack.i.l.bf16 %v11288_v59 }
 0x1b4   :  { %v9190_v30 = vunpack.i.h.bf16 %v9188_v27  ;;  %v9189_v55 = vunpack.i.l.bf16 %v9188_v27  ;;  %9312 = vrot.lane.b32.xlu0 %v9311_v4, %s10165_s14  ;;  %v9321_v28 = vpack.i.bf16 %v11832_v3, %v11844_v22  ;;  %v11863_v10 = vrot.slane %v3153_v9, %v10270_v24  ;;  %v17067_v9 = vld [vmem:[#allocation55_spill] sm:$0xff]  ;;  %v17069_v27 = vld [vmem:[#allocation50_spill] sm:$0xff] }
 0x1b5   :  { %v11840_v47 = vpop.permute.xlu1 %9162  ;;  %v11851_v54 = vrot.slane %v17062_v26, %v10270_v24  ;;  %v11857_v38 = vrot.slane %v17063_v42, %v10270_v24  ;;  %v11866_v40 = vsel %vm243_vm10, %v548_v53, %v9045_v58  ;;  %v1244_v0 = vsel %vm241_vm9, %v1243_v5, %v9094_v45  ;;  %v17066_v58 = vld [vmem:[#allocation49_spill] sm:$0xff]  ;;  %v17068_v5 = vld [vmem:[#allocation51_spill] sm:$0xff] }
 0x1b6   :  { %v11870_v37 = vrot.slane %v2924_v34, %v10270_v24  ;;  %v1251_v48 = vsel %vm241_vm9, %v1250_v56, %v9095_v20  ;;  %v11874_v21 = vsel %vm243_vm10, %v541_v31, %v9044_v44  ;;  %v9100_v46 = vunpack.i.h.bf16 %v17064_v14 }
 0x1b7   :  { %v9193_v15 = vpop.permute.xlu0 %9192  ;;  %v9099_v1 = vunpack.i.l.bf16 %v17064_v14  ;;  %v1008_v39 = vsel %vm233_vm5, %v17065_v25, %v9190_v30  ;;  %v1001_v12 = vsel %vm233_vm5, %v17066_v58, %v9189_v55  ;;  %v9080_v44 = vunpack.i.h.bf16 %v17067_v9 }
 0x1b8   :  { %9322 = vrot.lane.b32.xlu0 %v9321_v28, %s10160_s26  ;;  %v9195_v13 = vunpack.i.h.bf16 %v9193_v15  ;;  %v9194_v33 = vunpack.i.l.bf16 %v9193_v15  ;;  %v9155_v31 = vunpack.i.h.bf16 %v11792_v2  ;;  %v9154_v4 = vunpack.i.l.bf16 %v11792_v2 }
 0x1b9   :  { %v9168_v43 = vpop.permute.xlu1 %9167  ;;  %v9331_v20 = vpack.i.bf16 %v11863_v10, %v11851_v54  ;;  %v9079_v45 = vunpack.i.l.bf16 %v17067_v9  ;;  %v9341_v55 = vpack.i.bf16 %v11857_v38, %v11870_v37  ;;  %v9140_v26 = vunpack.i.h.bf16 %v11763_v29 }
 0x1ba   :  { %v9170_v53 = vunpack.i.h.bf16 %v9168_v43  ;;  %v9169_v41 = vunpack.i.l.bf16 %v9168_v43  ;;  %v9139_v2 = vunpack.i.l.bf16 %v11763_v29  ;;  %v1002_v42 = vsel %vm235_vm6, %v1001_v12, %v9154_v4 }
 0x1bb   :  { %v9198_v30 = vpop.permute.xlu0 %9197  ;;  %v1009_v28 = vsel %vm235_vm6, %v1008_v39, %v9155_v31  ;;  %v1003_v25 = vsel %vm237_vm7, %v1002_v42, %v9194_v33  ;;  %v9160_v29 = vunpack.i.h.bf16 %v11820_v51  ;;  %v9159_v12 = vunpack.i.l.bf16 %v11820_v51 }
 0x1bc   :  { %v778_v34 = vsel %vm233_vm5, %v17068_v5, %v9170_v53  ;;  %v771_v56 = vsel %vm233_vm5, %v17069_v27, %v9169_v41  ;;  %9332 = vrot.lane.b32.xlu0 %v9331_v20, %s10159_s25  ;;  %v1010_v58 = vsel %vm237_vm7, %v1009_v28, %v9195_v13  ;;  %v9200_v41 = vunpack.i.h.bf16 %v9198_v30 }
 0x1bd   :  { %v9173_v15 = vpop.permute.xlu1 %9172  ;;  %v9199_v9 = vunpack.i.l.bf16 %v9198_v30  ;;  %v772_v5 = vsel %vm235_vm6, %v771_v56, %v9139_v2  ;;  %v779_v27 = vsel %vm235_vm6, %v778_v34, %v9140_v26  ;;  %v1245_v13 = vsel %vm243_vm10, %v1244_v0, %v9079_v45 }
 0x1be   :  { %v9175_v43 = vunpack.i.h.bf16 %v9173_v15  ;;  %v9174_v53 = vunpack.i.l.bf16 %v9173_v15  ;;  %v9145_v33 = vunpack.i.h.bf16 %v11787_v60  ;;  %v9144_v20 = vunpack.i.l.bf16 %v11787_v60 }
 0x1bf   :  { %v9203_v4 = vpop.permute.xlu0 %9202  ;;  %v1252_v34 = vsel %vm243_vm10, %v1251_v48, %v9080_v44  ;;  %v1004_v56 = vsel %vm239_vm8, %v1003_v25, %v9159_v12  ;;  %v1011_v2 = vsel %vm239_vm8, %v1010_v58, %v9160_v29  ;;  %v9150_v25 = vunpack.i.h.bf16 %v11812_v63 }
 0x1c0   :  { %v773_v39 = vsel %vm237_vm7, %v772_v5, %v9174_v53  ;;  %v780_v31 = vsel %vm237_vm7, %v779_v27, %v9175_v43  ;;  %9342 = vrot.lane.b32.xlu0 %v9341_v55, %s10162_s12  ;;  %v1005_v42 = vsel %vm241_vm9, %v1004_v56, %v9199_v9  ;;  %v1012_v45 = vsel %vm241_vm9, %v1011_v2, %v9200_v41 }
 0x1c1   :  { %v9178_v30 = vpop.permute.xlu1 %9177  ;;  %v774_v28 = vsel %vm239_vm8, %v773_v39, %v9144_v20  ;;  %v781_v0 = vsel %vm239_vm8, %v780_v31, %v9145_v33  ;;  %v9205_v60 = vunpack.i.h.bf16 %v9203_v4  ;;  %v9204_v15 = vunpack.i.l.bf16 %v9203_v4 }
 0x1c2   :  { %v9180_v51 = vunpack.i.h.bf16 %v9178_v30  ;;  %v9179_v26 = vunpack.i.l.bf16 %v9178_v30  ;;  %v9149_v58 = vunpack.i.l.bf16 %v11812_v63  ;;  %v9165_v43 = vunpack.i.h.bf16 %v11840_v47 }
 0x1c3   :  { %v11921_v44 = vpop.permute.xlu0 %9222  ;;  %v9164_v53 = vunpack.i.l.bf16 %v11840_v47  ;;  %v1253_v41 = vsel %vm245_vm11, %v1252_v34, %v9100_v46  ;;  %v1246_v29 = vsel %vm245_vm11, %v1245_v13, %v9099_v1  ;;  %v550_v56 = vsel %vm245_vm11, %v11866_v40, %v9065_v32  ;;  %v17077_v40 = vld [vmem:[#allocation71_spill] sm:$0xff] }
 0x1c4   :  { %v775_v55 = vsel %vm241_vm9, %v774_v28, %v9179_v26  ;;  %v782_v48 = vsel %vm241_vm9, %v781_v0, %v9180_v51  ;;  %17070 = vst [vmem:[#allocation29_spill] sm:$0xff] %v11921_v44  ;;  %v1013_v39 = vsel %vm243_vm10, %v1012_v45, %v9165_v43  ;;  %v2188_v13 = vrot.slane %v1253_v41, 4  ;;  %v17079_v43 = vld [vmem:[#allocation67_spill] sm:$0xff] }
 0x1c5   :  { %v9183_v9 = vpop.permute.xlu1 %9182  ;;  %v783_v12 = vsel %vm243_vm10, %v782_v48, %v9150_v25  ;;  %v776_v63 = vsel %vm243_vm10, %v775_v55, %v9149_v58  ;;  %v1006_v31 = vsel %vm243_vm10, %v1005_v42, %v9164_v53  ;;  %v1014_v33 = vsel %vm245_vm11, %v1013_v39, %v9205_v60  ;;  %v17083_v39 = vld [vmem:[#allocation66_spill] sm:$0xff] }
 0x1c6   :  { %v9185_v5 = vunpack.i.h.bf16 %v9183_v9  ;;  %v9184_v27 = vunpack.i.l.bf16 %v9183_v9  ;;  %v1007_v14 = vsel %vm245_vm11, %v1006_v31, %v9204_v15  ;;  %v2187_v34 = vrot.slane %v1246_v29, 4  ;;  %v17080_v9 = vld [vmem:[#allocation68_spill] sm:$0xff] }
 0x1c7   :  { %v11937_v47 = vpop.permute.xlu0 %9227  ;;  %v543_v51 = vsel %vm245_vm11, %v11874_v21, %v9064_v36  ;;  %v2207_v2 = vsel %vm2203_vm12, %v1014_v33, %v2188_v13  ;;  %v4037_v36 = vcombine.low %v11711_v16, %v11752_v50  ;;  %v17078_v21 = vld [vmem:[#allocation64_spill] sm:$0xff]  ;;  %v17086_v13 = vld [vmem:[#allocation58_spill] sm:$0xff] }
 0x1c8   :  { %17071 = vst [vmem:[#allocation28_spill] sm:$0xff] %v11937_v47  ;;  %v784_v4 = vsel %vm245_vm11, %v783_v12, %v9185_v5  ;;  %v777_v46 = vsel %vm245_vm11, %v776_v63, %v9184_v27  ;;  %v2206_v28 = vsel %vm2203_vm12, %v1007_v14, %v2187_v34  ;;  %v1743_v55 = vcombine.low %v17078_v21, %v17077_v40  ;;  %v17081_v5 = vld [vmem:[#allocation65_spill] sm:$0xff] }
 0x1c9   :  { %v11943_v20 = vpop.permute.xlu1 %9207  ;;  %v2182_v1 = vrot.slane %v784_v4, 4  ;;  %v2181_v30 = vrot.slane %v777_v46, 4  ;;  %v3739_v27 = vcombine.low %v17081_v5, %v17080_v9  ;;  %v4045_v41 = vrot.slane %v4037_v36, %v10268_v23  ;;  %v17082_v12 = vld [vmem:[#allocation69_spill] sm:$0xff]  ;;  %v17084_v46 = vld [vmem:[#allocation47_spill] sm:$0xff] }
 0x1ca   :  { %17072 = vst [vmem:[#allocation31_spill] sm:$0xff] %v11943_v20  ;;  %v3755_v63 = vcombine.low %v17083_v39, %v17082_v12  ;;  %v1751_v31 = vrot.slane %v1743_v55, %v10268_v23  ;;  %v17085_v14 = vld [vmem:[#allocation45_spill] sm:$0xff] }
 0x1cb   :  { %v2205_v26 = vsel %vm2203_vm12, %v550_v56, %v2182_v1  ;;  %v2204_v42 = vsel %vm2203_vm12, %v543_v51, %v2181_v30  ;;  %v11957_v0 = vpop.permute.xlu0 %9232  ;;  %v3807_v1 = vcombine.low %v17085_v14, %v17084_v46  ;;  %v17087_v30 = vld [vmem:[#allocation46_spill] sm:$0xff] }
 0x1cc   :  { %17073 = vst [vmem:[#allocation30_spill] sm:$0xff] %v11957_v0  ;;  %v2213_v45 = vpack.c.bf16 %v2207_v2, %v2205_v26  ;;  %v2212_v60 = vpack.c.bf16 %v2206_v28, %v2204_v42  ;;  %v3823_v34 = vcombine.low %v17087_v30, %v17086_v13  ;;  %v11994_v28 = vrot.slane %v3739_v27, %v10268_v23  ;;  %v17090_v27 = vld [vmem:[#allocation8_spill] sm:$0xff] }
 0x1cd   :  { %v11959_v15 = vpop.permute.xlu1 %9212  ;;  %v12003_v36 = vrot.slane %v3755_v63, %v10268_v23  ;;  %v3102_v0 = vcombine.high %v11736_v62, %v16947_v49 }
 0x1ce   :  { %17074 = vst [vmem:[#allocation54_spill] sm:$0xff] %v11959_v15  ;;  %2229 = vmatprep.subr.bf16.mxu0 %v2213_v45  ;;  %v12023_v63 = vrot.slane %v3823_v34, %v10268_v23 }
 0x1cf   :  { %2230 = vmatpush1.bf16.msra.mxu0 %v2212_v60  ;;  %v11961_v59 = vpop.permute.xlu0 %9237  ;;  %v3771_v34 = vcombine.low %v11994_v28, %v12003_v36 }
 0x1d0   :  { %17075 = vst [vmem:[#allocation48_spill] sm:$0xff] %v11961_v59 }
 0x1d1   :  { %v11963_v32 = vpop.permute.xlu1 %9217 }
 0x1d2   :  { %17076 = vst [vmem:[#allocation49_spill] sm:$0xff] %v11963_v32 }
 0x1d3   :  { %v11969_v48 = vpop.permute.xlu0 %3959 }
 0x1d4   :  { %v4053_v25 = vcombine.low %v11720_v8, %v11969_v48 }
 0x1d5   :  { %v11973_v58 = vpop.permute.xlu1 %1731 }
 0x1d6   :  { %v1759_v53 = vcombine.low %v17079_v43, %v11973_v58  ;;  %v4061_v29 = vrot.slane %v4053_v25, %v10268_v23 }
 0x1d7   :  { %v11985_v33 = vpop.permute.xlu0 %3481 }
 0x1d8   :  { %v1767_v4 = vrot.slane %v1759_v53, %v10268_v23  ;;  %v4069_v56 = vcombine.low %v4045_v41, %v4061_v29  ;;  %v4070_v51 = vcombine.high %v4045_v41, %v4061_v29  ;;  %v17091_v41 = vld [vmem:[#allocation12_spill] sm:$0xff] }
 0x1d9   :  { %v11991_v26 = vpop.permute.xlu1 %3485  ;;  %v17092_v29 = vcombine.low %v17090_v27, %v17091_v41 }
 0x1da   :  { %v1775_v2 = vcombine.low %v1751_v31, %v1767_v4  ;;  %v1776_v42 = vcombine.high %v1751_v31, %v1767_v4  ;;  %v11997_v45 = vrot.slane %v4069_v56, %v10270_v24  ;;  %v12000_v60 = vrot.slane %v4070_v51, %v10270_v24 }
 0x1db   :  { %v12008_v25 = vpop.permute.xlu0 %3489  ;;  %v12017_v31 = vrot.slane %v17092_v29, %v10270_v24  ;;  %v12020_v4 = vrot.slane %v3807_v1, %v10268_v23 }
 0x1dc   :  { %17088 = vst [vmem:[#allocation55_spill] sm:$0xff] %v11997_v45  ;;  %v12006_v55 = vrot.slane %v1775_v2, %v10270_v24  ;;  %v12011_v53 = vrot.slane %v1776_v42, %v10270_v24  ;;  %v4101_v51 = vcombine.high %v11997_v45, %v16947_v49  ;;  %v3505_v2 = vcombine.low %v11985_v33, %v12008_v25 }
 0x1dd   :  { %17093 = vst [vmem:[#allocation50_spill] sm:$0xff] %v12017_v31  ;;  %v12025_v56 = vpop.permute.xlu1 %3493  ;;  %v2411_v32 = vcombine.high %v12017_v31, %v16947_v49  ;;  %v3839_v47 = vcombine.low %v12020_v4, %v12023_v63 }
 0x1de   :  { %17089 = vst [vmem:[#allocation51_spill] sm:$0xff] %v12006_v55  ;;  %v3521_v42 = vcombine.low %v11991_v26, %v12025_v56  ;;  %v9351_v29 = vpack.i.bf16 %v12011_v53, %v12000_v60  ;;  %v1807_v1 = vcombine.high %v12006_v55, %v16947_v49  ;;  %v2638_v55 = vcombine.high %v11755_v7, %v16947_v49 }
 0x1df   :  { %v12040_v59 = vpop.permute.xlu0 %3945  ;;  %v12059_v31 = vrot.slane %v3505_v2, %v10268_v23  ;;  %v2707_v7 = vcombine.high %v11851_v54, %v16947_v49 }
 0x1e0   :  { %9352 = vrot.lane.b32.xlu0 %v9351_v29, %s10160_s26  ;;  %v9316_v45 = vpack.i.bf16 %v1807_v1, %v4101_v51  ;;  %v3171_v29 = vcombine.high %v11863_v10, %v16947_v49  ;;  %v3574_v51 = vcombine.high %v11651_v18, %v11675_v52  ;;  %v3590_v1 = vcombine.high %v11656_v6, %v11683_v19  ;;  %v17094_v6 = vld [vmem:[#allocation70_spill] sm:$0xff] }
 0x1e1   :  { %v12048_v15 = vpop.permute.xlu1 %3949  ;;  %v12062_v62 = vrot.slane %v3521_v42, %v10268_v23  ;;  %v2873_v10 = vcombine.high %v11772_v35, %v16947_v49  ;;  %v3341_v52 = vcombine.high %v11742_v61, %v16947_v49  ;;  %v1812_v18 = vcombine.high %v11370_v11, %v11617_v57 }
 0x1e2   :  { %9317 = vrot.lane.b32.xlu1 %v9316_v45, %s10163_s13  ;;  %v1828_v19 = vcombine.high %v17094_v6, %v11626_v17  ;;  %v9326_v45 = vpack.i.bf16 %v3102_v0, %v2638_v55  ;;  %v12079_v42 = vrot.slane %v3771_v34, %v10270_v24  ;;  %v9366_v61 = vpack.i.bf16 %v3171_v29, %v2707_v7  ;;  %v17097_v34 = vld [vmem:[#allocation42_spill] sm:$0xff]  ;;  %v17098_v29 = vld [vmem:[#allocation40_spill] sm:$0xff] }
 0x1e3   :  { %v12076_v2 = vpop.permute.xlu0 %3953  ;;  %v2942_v11 = vcombine.high %v11870_v37, %v16947_v49  ;;  %v12088_v57 = vrot.slane %v3839_v47, %v10270_v24  ;;  %v12091_v17 = vrot.slane %v3574_v51, %v10268_v23  ;;  %v12094_v0 = vrot.slane %v3590_v1, %v10268_v23  ;;  %v17099_v6 = vld [vmem:[#allocation80_spill] sm:$0xff] }
 0x1e4   :  { %2444 = vrot.lane.b32.xlu0 %v2411_v32, %s10163_s13  ;;  %17095 = vst [vmem:[#allocation71_spill] sm:$0xff] %v12079_v42  ;;  %v3969_v35 = vcombine.low %v12040_v59, %v12076_v2  ;;  %v3537_v32 = vcombine.low %v12059_v31, %v12062_v62  ;;  %v3038_v37 = vcombine.high %v17098_v29, %v17097_v34  ;;  %v17100_v1 = vld [vmem:[#allocation76_spill] sm:$0xff]  ;;  %v17103_v29 = vld [vmem:[#allocation38_spill] sm:$0xff] }
 0x1e5   :  { %v12083_v54 = vpop.permute.xlu1 %3957  ;;  %17096 = vst [vmem:[#allocation64_spill] sm:$0xff] %v12088_v57  ;;  %v9336_v7 = vpack.i.bf16 %v3341_v52, %v2873_v10  ;;  %v3410_v51 = vcombine.high %v11857_v38, %v16947_v49  ;;  %v3054_v20 = vcombine.high %v17100_v1, %v17099_v6  ;;  %v12109_v44 = vrot.slane %v1812_v18, %v10268_v23  ;;  %v17102_v10 = vld [vmem:[#allocation33_spill] sm:$0xff]  ;;  %v17104_v38 = vld [vmem:[#allocation34_spill] sm:$0xff] }
 0x1e6   :  { %v3985_v55 = vcombine.low %v12048_v15, %v12083_v54  ;;  %9327 = vrot.lane.b32.xlu1 %v9326_v45, %s10164_s0  ;;  %v3977_v47 = vrot.slane %v3969_v35, %v10268_v23  ;;  %v12112_v39 = vrot.slane %v1828_v19, %v10268_v23  ;;  %v17101_v35 = vld [vmem:[#allocation37_spill] sm:$0xff]  ;;  %v2590_v12 = vcombine.high %v17104_v38, %v17103_v29 }
 0x1e7   :  { %v12116_v34 = vpop.permute.xlu0 %1949  ;;  %v2574_v52 = vcombine.high %v17102_v10, %v17101_v35  ;;  %v3803_v6 = vcombine.high %v12079_v42, %v16947_v49  ;;  %v3871_v18 = vcombine.high %v12088_v57, %v16947_v49  ;;  %v3621_v19 = vcombine.low %v12091_v17, %v12094_v0  ;;  %v17173_v42 = vld [vmem:[#allocation75_spill] sm:$0xff] }
 0x1e8   :  { %v3993_v45 = vrot.slane %v3985_v55, %v10268_v23  ;;  %9367 = vrot.lane.b32.xlu0 %v9366_v61, %s10165_s14  ;;  %v12129_v55 = vrot.slane %v3537_v32, %v10270_v24  ;;  %v9376_v1 = vpack.i.bf16 %v3410_v51, %v2942_v11  ;;  %v12133_v35 = vrot.slane %v3038_v37, %v10268_v23 }
 0x1e9   :  { %v12136_v10 = vrot.slane %v3054_v20, %v10268_v23  ;;  %v1859_v29 = vcombine.low %v12109_v44, %v12112_v39  ;;  %v12147_v57 = vrot.slane %v2574_v52, %v10268_v23  ;;  %v12150_v11 = vrot.slane %v2590_v12, %v10268_v23 }
 0x1ea   :  { %17105 = vst [vmem:[#allocation67_spill] sm:$0xff] %v12129_v55  ;;  %v4001_v61 = vcombine.low %v3977_v47, %v3993_v45  ;;  %9337 = vrot.lane.b32.xlu1 %v9336_v7, %s10165_s14  ;;  %v9386_v37 = vpack.i.bf16 %v3803_v6, %v3871_v18  ;;  %v3569_v20 = vcombine.high %v12129_v55, %v16947_v49 }
 0x1eb   :  { %v12144_v32 = vpop.permute.xlu0 %1953  ;;  %v12157_v51 = vrot.slane %v3621_v19, %v10270_v24  ;;  %v12165_v12 = vrot.slane %v1859_v29, %v10270_v24  ;;  %v3638_v6 = vcombine.high %v11832_v3, %v16947_v49  ;;  %v4054_v18 = vcombine.high %v11720_v8, %v11969_v48 }
 0x1ec   :  { %v12141_v38 = vrot.slane %v4001_v61, %v10270_v24  ;;  %9377 = vrot.lane.b32.xlu0 %v9376_v1, %s10166_s15  ;;  %v3085_v61 = vcombine.low %v12133_v35, %v12136_v10  ;;  %v2621_v19 = vcombine.low %v12147_v57, %v12150_v11  ;;  %v1760_v55 = vcombine.high %v17079_v43, %v11973_v58 }
 0x1ed   :  { %v1876_v29 = vcombine.high %v11844_v22, %v16947_v49  ;;  %v1744_v3 = vcombine.high %v17078_v21, %v17077_v40  ;;  %v4038_v8 = vcombine.high %v11711_v16, %v11752_v50  ;;  %v3538_v48 = vcombine.high %v12059_v31, %v12062_v62 }
 0x1ee   :  { %17106 = vst [vmem:[#allocation68_spill] sm:$0xff] %v12141_v38  ;;  %v4033_v7 = vcombine.high %v12141_v38, %v16947_v49  ;;  %v4002_v38 = vcombine.high %v3977_v47, %v3993_v45  ;;  %v17107_v43 = vcombine.high %v17090_v27, %v17091_v41  ;;  %v3093_v22 = vrot.slane %v3085_v61, %v10270_v24 }
 0x1ef   :  { %v12162_v52 = vpop.permute.xlu0 %1957  ;;  %v9356_v58 = vpack.i.bf16 %v3638_v6, %v1876_v29  ;;  %v12195_v45 = vrot.slane %v4054_v18, %v10268_v23  ;;  %v12198_v40 = vrot.slane %v1760_v55, %v10268_v23  ;;  %v2629_v21 = vrot.slane %v2621_v19, %v10270_v24  ;;  %v17109_v6 = vld [vmem:[#allocation43_spill] sm:$0xff] }
 0x1f0   :  { %9387 = vrot.lane.b32.xlu0 %v9386_v37, %s10163_s13  ;;  %v9346_v1 = vpack.i.bf16 %v4033_v7, %v3569_v20  ;;  %v9396_v37 = vpack.i.bf16 %v12157_v51, %v12165_v12  ;;  %v12191_v47 = vrot.slane %v17107_v43, %v10270_v24  ;;  %v4016_v16 = vrot.slane %v4002_v38, %v10270_v24  ;;  %v12220_v7 = vpop.permute.xlu1 %1951 }
 0x1f1   :  { %v12206_v27 = vrot.slane %v4038_v8, %v10268_v23  ;;  %v12209_v41 = vrot.slane %v1744_v3, %v10268_v23  ;;  %v3552_v31 = vrot.slane %v3538_v48, %v10270_v24  ;;  %v9361_v62 = vpack.i.bf16 %v3093_v22, %v2629_v21  ;;  %v17111_v8 = vld [vmem:[#allocation39_spill] sm:$0xff]  ;;  %v17112_v48 = vld [vmem:[#allocation74_spill] sm:$0xff] }
 0x1f2   :  { %9347 = vrot.lane.b32.xlu1 %v9346_v1, %s10163_s13  ;;  %v4034_v20 = vcombine.high %v4016_v16, %v16947_v49  ;;  %v17108_v1 = vld [vmem:[#allocation81_spill] sm:$0xff]  ;;  %v3970_v29 = vcombine.high %v12040_v59, %v12076_v2  ;;  %v3986_v3 = vcombine.high %v12048_v15, %v12083_v54  ;;  %v1808_v15 = vcombine.high %v12011_v53, %v16947_v49  ;;  %v17114_v54 = vld [vmem:[#allocation6_spill] sm:$0xff] }
 0x1f3   :  { %v12201_v50 = vpop.permute.xlu0 %1961  ;;  %v4085_v55 = vcombine.low %v12206_v27, %v12195_v45  ;;  %v1791_v38 = vcombine.low %v12209_v41, %v12198_v40  ;;  %v17110_v18 = vpack.i.bf16 %v17108_v1, %v17109_v6  ;;  %v3570_v19 = vcombine.high %v3552_v31, %v16947_v49 }
 0x1f4   :  { %9397 = vrot.lane.b32.xlu0 %v9396_v37, %s10159_s25  ;;  %v3506_v1 = vcombine.high %v11985_v33, %v12008_v25  ;;  %v9381_v59 = vpack.i.bf16 %v4016_v16, %v3552_v31  ;;  %v4102_v2 = vcombine.high %v12000_v60, %v16947_v49  ;;  %v3086_v33 = vcombine.high %v12133_v35, %v12136_v10 }
 0x1f5   :  { %v4093_v37 = vrot.slane %v4085_v55, %v10270_v24  ;;  %v9416_v43 = vpack.i.bf16 %v4034_v20, %v3570_v19  ;;  %v3522_v55 = vcombine.high %v11991_v26, %v12025_v56  ;;  %v17115_v20 = vld [vmem:[#allocation10_spill] sm:$0xff]  ;;  %v12257_v26 = vrot.slane %v3970_v29, %v10268_v23  ;;  %v12262_v56 = vpop.permute.xlu1 %1955 }
 0x1f6   :  { %9357 = vrot.lane.b32.xlu1 %v9356_v58, %s10164_s0  ;;  %v17113_v58 = vpack.i.bf16 %v17111_v8, %v17112_v48  ;;  %v17116_v6 = vcombine.low %v17114_v54, %v17115_v20  ;;  %v12260_v25 = vrot.slane %v3986_v3, %v10268_v23  ;;  %v2622_v16 = vcombine.high %v12147_v57, %v12150_v11 }
 0x1f7   :  { %v12222_v61 = vpop.permute.xlu0 %4175  ;;  %v12270_v31 = vrot.slane %v3506_v1, %v10268_v23  ;;  %v12273_v35 = vrot.slane %v3522_v55, %v10268_v23  ;;  %v9391_v10 = vpack.i.bf16 %v1808_v15, %v4102_v2  ;;  %v3100_v11 = vrot.slane %v3086_v33, %v10270_v24  ;;  %v17119_v33 = vld [vmem:[#allocation69_spill] sm:$0xff] }
 0x1f8   :  { %2448 = vrot.lane.b32.xlu0 %v12191_v47, %s10160_s26  ;;  %v4017_v29 = vcombine.low %v12257_v26, %v12260_v25  ;;  %v2639_v55 = vcombine.high %v2629_v21, %v16947_v49  ;;  %v3824_v21 = vcombine.high %v17087_v30, %v17086_v13 }
 0x1f9   :  { %v3553_v3 = vcombine.low %v12270_v31, %v12273_v35  ;;  %v12288_v8 = vpop.permute.xlu1 %1959 }
 0x1fa   :  { %9362 = vrot.lane.b32.xlu1 %v9361_v62, %s10159_s25  ;;  %v1799_v62 = vrot.slane %v1791_v38, %v10270_v24  ;;  %v12252_v38 = vrot.slane %v17116_v6, %v10270_v24  ;;  %v3740_v6 = vcombine.high %v17081_v5, %v17080_v9  ;;  %v12332_v30 = vrot.slane %v3824_v21, %v10268_v23 }
 0x1fb   :  { %v12264_v53 = vpop.permute.xlu0 %4179  ;;  %v12302_v2 = vrot.slane %v3553_v3, %v10270_v24  ;;  %v3104_v21 = vcombine.high %v3100_v11, %v16947_v49 }
 0x1fc   :  { %9407 = vrot.lane.b32.xlu0 %v17110_v18, %s10162_s12  ;;  %17117 = vst [vmem:[#allocation65_spill] sm:$0xff] %v12252_v38  ;;  %v9426_v60 = vpack.i.bf16 %v1799_v62, %v4093_v37  ;;  %v17118_v18 = vcombine.high %v17114_v54, %v17115_v20  ;;  %v2343_v57 = vcombine.high %v12252_v38, %v16947_v49  ;;  %v17166_v38 = vld [vmem:[#allocation30_spill] sm:$0xff] }
 0x1fd   :  { %v3772_v54 = vcombine.high %v11994_v28, %v12003_v36  ;;  %v3808_v20 = vcombine.high %v17085_v14, %v17084_v46  ;;  %v1809_v46 = vcombine.high %v1799_v62, %v16947_v49  ;;  %v4103_v14 = vcombine.high %v4093_v37, %v16947_v49  ;;  %v17122_v37 = vld [vmem:[#allocation77_spill] sm:$0xff] }
 0x1fe   :  { %9372 = vrot.lane.b32.xlu1 %v17113_v58, %s10162_s12  ;;  %v2326_v19 = vrot.slane %v17118_v18, %v10270_v24  ;;  %v2636_v58 = vrot.slane %v2622_v16, %v10270_v24  ;;  %v12335_v36 = vrot.slane %v3740_v6, %v10268_v23 }
 0x1ff   :  { %v12290_v48 = vpop.permute.xlu0 %4183  ;;  %v3786_v9 = vrot.slane %v3772_v54, %v10270_v24  ;;  %v12329_v13 = vrot.slane %v3808_v20, %v10268_v23  ;;  %v1877_v20 = vcombine.high %v12165_v12, %v16947_v49  ;;  %v1989_v12 = vcombine.low %v12144_v32, %v12201_v50 }
 0x200   :  { %9417 = vrot.lane.b32.xlu0 %v9416_v43, %s10164_s0  ;;  %v3103_v43 = vcombine.high %v3093_v22, %v16947_v49  ;;  %v9436_v1 = vpack.i.bf16 %v3100_v11, %v2636_v58  ;;  %v3840_v22 = vcombine.high %v12020_v4, %v12023_v63  ;;  %v17121_v63 = vld [vmem:[#allocation78_spill] sm:$0xff]  ;;  %v2640_v6 = vcombine.high %v2636_v58, %v16947_v49 }
 0x201   :  { %v17123_v62 = vpack.i.bf16 %v17121_v63, %v17122_v37  ;;  %v3855_v54 = vcombine.low %v12329_v13, %v12332_v30 }
 0x202   :  { %9382 = vrot.lane.b32.xlu1 %v9381_v59, %s10160_s26  ;;  %v12298_v59 = vrot.slane %v4017_v29, %v10270_v24  ;;  %v9401_v15 = vpack.i.bf16 %v3103_v43, %v2639_v55  ;;  %v3854_v5 = vrot.slane %v3840_v22, %v10270_v24  ;;  %v9456_v29 = vpack.i.bf16 %v1809_v46, %v4103_v14 }
 0x203   :  { %v12318_v18 = vpop.permute.xlu0 %4187  ;;  %v3639_v55 = vcombine.high %v12157_v51, %v16947_v49  ;;  %v3622_v22 = vcombine.high %v12091_v17, %v12094_v0  ;;  %v3863_v0 = vrot.slane %v3855_v54, %v10270_v24  ;;  %v9466_v58 = vpack.i.bf16 %v3104_v21, %v2640_v6  ;;  %v17128_v6 = vld [vmem:[#allocation83_spill] sm:$0xff] }
 0x204   :  { %9427 = vrot.lane.b32.xlu0 %v9426_v60, %s10159_s25  ;;  %v17120_v60 = vld [vmem:[#allocation66_spill] sm:$0xff]  ;;  %v9446_v28 = vpack.i.bf16 %v12298_v59, %v12302_v2  ;;  %v9421_v43 = vpack.i.bf16 %v3786_v9, %v3854_v5  ;;  %v12387_v46 = vrot.slane %v1989_v12, %v10268_v23 }
 0x205   :  { %v3756_v16 = vcombine.high %v17120_v60, %v17119_v33  ;;  %v9431_v51 = vpack.i.bf16 %v3639_v55, %v1877_v20  ;;  %v2412_v33 = vcombine.high %v12191_v47, %v16947_v49  ;;  %v3636_v60 = vrot.slane %v3622_v22, %v10270_v24  ;;  %v17124_v22 = vld [vmem:[#allocation9_spill] sm:$0xff] }
 0x206   :  { %9392 = vrot.lane.b32.xlu1 %v9391_v10, %s10164_s0  ;;  %v12316_v10 = vpop.permute.xlu1 %1963  ;;  %v17125_v20 = vld [vmem:[#allocation13_spill] sm:$0xff] }
 0x207   :  { %v12338_v4 = vrot.slane %v3756_v16, %v10268_v23  ;;  %v12346_v3 = vpop.permute.xlu0 %9242  ;;  %v1973_v16 = vcombine.low %v12116_v34, %v12162_v52  ;;  %v3640_v37 = vcombine.high %v3636_v60, %v16947_v49 }
 0x208   :  { %2420 = vrot.lane.b32.xlu0 %v2326_v19, %s10160_s26 }
 0x20a   :  { %2416 = vrot.lane.b32.xlu1 %v2343_v57, %s10163_s13  ;;  %v12344_v57 = vpop.permute.xlu1 %4177 }
 0x20b   :  { %v12377_v11 = vpop.permute.xlu0 %9252 }
 0x20c   :  { %9437 = vrot.lane.b32.xlu0 %v9436_v1, %s10162_s12  ;;  %v2344_v1 = vcombine.high %v2326_v19, %v16947_v49  ;;  %v1860_v19 = vcombine.high %v12109_v44, %v12112_v39  ;;  %v2057_v44 = vcombine.low %v12262_v56, %v12316_v10 }
 0x20e   :  { %9402 = vrot.lane.b32.xlu1 %v9401_v15, %s10165_s14  ;;  %v3787_v15 = vcombine.low %v12335_v36, %v12338_v4  ;;  %v12375_v39 = vpop.permute.xlu1 %4181  ;;  %v1874_v47 = vrot.slane %v1860_v19, %v10270_v24  ;;  %v12390_v14 = vrot.slane %v2057_v44, %v10268_v23 }
 0x210   :  { %9447 = vrot.lane.b32.xlu0 %v9446_v28, %s10159_s25  ;;  %v3795_v17 = vrot.slane %v3787_v15, %v10270_v24  ;;  %v2041_v28 = vcombine.low %v12220_v7, %v12288_v8  ;;  %v12404_v15 = vpop.permute.xlu0 %9262  ;;  %v1878_v54 = vcombine.high %v1874_v47, %v16947_v49 }
 0x212   :  { %9412 = vrot.lane.b32.xlu1 %v17123_v62, %s10166_s15  ;;  %v9476_v63 = vpack.i.bf16 %v3795_v17, %v3863_v0  ;;  %v3804_v62 = vcombine.high %v3786_v9, %v16947_v49  ;;  %v12402_v55 = vpop.permute.xlu1 %4185  ;;  %v17126_v9 = vcombine.low %v17124_v22, %v17125_v20  ;;  %v9486_v12 = vpack.i.bf16 %v3640_v37, %v1878_v54 }
 0x213   :  { %v3873_v37 = vcombine.high %v3863_v0, %v16947_v49 }
 0x214   :  { %9457 = vrot.lane.b32.xlu0 %v9456_v29, %s10165_s14  ;;  %v3872_v29 = vcombine.high %v3854_v5, %v16947_v49  ;;  %v2403_v21 = vrot.slane %v17126_v9, %v10270_v24  ;;  %v12430_v9 = vpop.permute.xlu0 %9272 }
 0x216   :  { %9422 = vrot.lane.b32.xlu1 %v9421_v43, %s10160_s26  ;;  %v12397_v43 = vrot.slane %v1973_v16, %v10268_v23  ;;  %v9451_v44 = vpack.i.bf16 %v3804_v62, %v3872_v29  ;;  %v9461_v62 = vpack.i.bf16 %v3636_v60, %v1874_v47  ;;  %v4035_v60 = vcombine.high %v12298_v59, %v16947_v49 }
 0x217   :  { %v3788_v47 = vcombine.high %v12335_v36, %v12338_v4  ;;  %v17132_v59 = vcombine.high %v17124_v22, %v17125_v20  ;;  %v4215_v22 = vcombine.low %v12264_v53, %v12318_v18 }
 0x218   :  { %2424 = vrot.lane.b32.xlu0 %v2344_v1, %s10164_s0  ;;  %v12400_v1 = vrot.slane %v2041_v28, %v10268_v23  ;;  %v2005_v5 = vcombine.low %v12397_v43, %v12387_v46  ;;  %v12447_v0 = vpop.permute.xlu0 %9282 }
 0x21a   :  { %9432 = vrot.lane.b32.xlu1 %v9431_v51, %s10165_s14  ;;  %v2073_v19 = vcombine.low %v12400_v1, %v12390_v14  ;;  %v17127_v51 = vld [vmem:[#allocation84_spill] sm:$0xff]  ;;  %v12423_v16 = vrot.slane %v2005_v5, %v10270_v24 }
 0x21c   :  { %9467 = vrot.lane.b32.xlu0 %v9466_v58, %s10166_s15  ;;  %v2413_v58 = vcombine.high %v2403_v21, %v16947_v49  ;;  %17130 = vst [vmem:[#allocation47_spill] sm:$0xff] %v12423_v16  ;;  %v12426_v28 = vrot.slane %v2073_v19, %v10270_v24  ;;  %v2037_v54 = vcombine.high %v12423_v16, %v16947_v49 }
 0x21d   :  { %v4086_v19 = vcombine.high %v12206_v27, %v12195_v45 }
 0x21e   :  { %2452 = vrot.lane.b32.xlu1 %v2412_v33, %s10164_s0  ;;  %v17129_v33 = vpack.i.bf16 %v17127_v51, %v17128_v6  ;;  %17131 = vst [vmem:[#allocation45_spill] sm:$0xff] %v12426_v28  ;;  %v3805_v51 = vcombine.high %v3795_v17, %v16947_v49  ;;  %v2105_v5 = vcombine.high %v12426_v28, %v16947_v49  ;;  %v12459_v27 = vpop.permute.xlu0 %9292  ;;  %v17165_v28 = vld [vmem:[#allocation61_spill] sm:$0xff] }
 0x21f   :  { %v1792_v17 = vcombine.high %v12209_v41, %v12198_v40  ;;  %v3571_v40 = vcombine.high %v12302_v2, %v16947_v49  ;;  %v2006_v2 = vcombine.high %v12397_v43, %v12387_v46  ;;  %v4267_v46 = vcombine.low %v12344_v57, %v12402_v55 }
 0x220   :  { %9477 = vrot.lane.b32.xlu0 %v9476_v63, %s10159_s25  ;;  %v12428_v63 = vpop.permute.xlu1 %4189  ;;  %v9496_v29 = vpack.i.bf16 %v3805_v51, %v3873_v37  ;;  %v9506_v45 = vpack.i.bf16 %v2105_v5, %v2037_v54  ;;  %v4199_v51 = vcombine.low %v12222_v61, %v12290_v48  ;;  %v3554_v43 = vcombine.high %v12270_v31, %v12273_v35  ;;  %v17133_v37 = vld [vmem:[#allocation7_spill] sm:$0xff] }
 0x221   :  { %v9471_v41 = vpack.i.bf16 %v4035_v60, %v3571_v40  ;;  %v1806_v36 = vrot.slane %v1792_v17, %v10270_v24  ;;  %v4283_v20 = vcombine.low %v12375_v39, %v12428_v63  ;;  %v4275_v17 = vrot.slane %v4267_v46, %v10268_v23 }
 0x222   :  { %9442 = vrot.lane.b32.xlu1 %v17129_v33, %s10166_s15  ;;  %v3856_v33 = vcombine.high %v12329_v13, %v12332_v30  ;;  %v4100_v13 = vrot.slane %v4086_v19, %v10270_v24  ;;  %v12469_v30 = vrot.slane %v3788_v47, %v10270_v24  ;;  %v12502_v5 = vpop.permute.xlu0 %9302  ;;  %v12506_v19 = vrot.slane %v2006_v2, %v10270_v24 }
 0x223   :  { %v4291_v54 = vrot.slane %v4283_v20, %v10268_v23  ;;  %v4207_v35 = vrot.slane %v4199_v51, %v10268_v23  ;;  %v2058_v40 = vcombine.high %v12262_v56, %v12316_v10  ;;  %v1974_v20 = vcombine.high %v12116_v34, %v12162_v52 }
 0x224   :  { %9487 = vrot.lane.b32.xlu0 %v9486_v12, %s10166_s15  ;;  %v12445_v6 = vpop.permute.xlu1 %9247  ;;  %v2410_v12 = vrot.slane %v17132_v59, %v10270_v24  ;;  %v12472_v4 = vrot.slane %v3856_v33, %v10270_v24  ;;  %v1990_v33 = vcombine.high %v12144_v32, %v12201_v50  ;;  %v2042_v32 = vcombine.high %v12220_v7, %v12288_v8 }
 0x225   :  { %v4300_v59 = vcombine.high %v4275_v17, %v4291_v54  ;;  %v2072_v51 = vrot.slane %v2058_v40, %v10268_v23 }
 0x226   :  { %9452 = vrot.lane.b32.xlu1 %v9451_v44, %s10164_s0  ;;  %v12531_v50 = vpop.permute.xlu0 %9312  ;;  %v2414_v10 = vcombine.high %v2410_v12, %v16947_v49  ;;  %v2056_v46 = vrot.slane %v2042_v32, %v10268_v23 }
 0x227   :  { %v12544_v52 = vrot.slane %v4300_v59, %v10270_v24 }
 0x228   :  { %2460 = vrot.lane.b32.xlu0 %v2413_v58, %s10165_s14  ;;  %v12482_v44 = vpop.permute.xlu1 %9257  ;;  %v4018_v58 = vcombine.high %v12257_v26, %v12260_v25  ;;  %v4223_v25 = vrot.slane %v4215_v22, %v10268_v23  ;;  %v4104_v22 = vcombine.high %v4100_v13, %v16947_v49  ;;  %v2090_v32 = vcombine.high %v2056_v46, %v2072_v51 }
 0x22a   :  { %9462 = vrot.lane.b32.xlu1 %v9461_v62, %s10162_s12  ;;  %v17134_v62 = vld [vmem:[#allocation11_spill] sm:$0xff]  ;;  %v4032_v47 = vrot.slane %v4018_v58, %v10270_v24  ;;  %v2004_v58 = vrot.slane %v1990_v33, %v10268_v23  ;;  %v12553_v33 = vpop.permute.xlu0 %9322 }
 0x22b   :  { %v17136_v8 = vcombine.high %v17133_v37, %v17134_v62 }
 0x22c   :  { %9497 = vrot.lane.b32.xlu0 %v9496_v29, %s10165_s14  ;;  %v17135_v29 = vcombine.low %v17133_v37, %v17134_v62  ;;  %v12513_v60 = vpop.permute.xlu1 %9267 }
 0x22e   :  { %2456 = vrot.lane.b32.xlu1 %v2403_v21, %s10159_s25  ;;  %v2074_v21 = vcombine.high %v12400_v1, %v12390_v14  ;;  %v9481_v14 = vpack.i.bf16 %v1806_v36, %v4100_v13  ;;  %v9516_v1 = vpack.i.bf16 %v12469_v30, %v12472_v4  ;;  %v2335_v26 = vrot.slane %v17135_v29, %v10270_v24 }
 0x22f   :  { %v1988_v13 = vrot.slane %v1974_v20, %v10268_v23  ;;  %v2089_v29 = vcombine.low %v2056_v46, %v2072_v51  ;;  %v2104_v51 = vrot.slane %v2090_v32, %v10270_v24  ;;  %v4284_v46 = vcombine.high %v12375_v39, %v12428_v63 }
 0x230   :  { %9507 = vrot.lane.b32.xlu0 %v9506_v45, %s10163_s13  ;;  %v12509_v31 = vrot.slane %v2074_v21, %v10270_v24  ;;  %v3568_v45 = vrot.slane %v3554_v43, %v10270_v24  ;;  %v1810_v21 = vcombine.high %v1806_v36, %v16947_v49  ;;  %v12537_v36 = vpop.permute.xlu1 %9277  ;;  %v4299_v43 = vcombine.low %v4275_v17, %v4291_v54 }
 0x231   :  { %v2345_v37 = vcombine.high %v2335_v26, %v16947_v49  ;;  %v2097_v59 = vrot.slane %v2089_v29, %v10270_v24  ;;  %v3806_v29 = vcombine.high %v12469_v30, %v16947_v49  ;;  %v2108_v63 = vcombine.high %v2104_v51, %v16947_v49 }
 0x232   :  { %9472 = vrot.lane.b32.xlu1 %v9471_v41, %s10165_s14  ;;  %v4232_v41 = vcombine.high %v4207_v35, %v4223_v25  ;;  %v9526_v2 = vpack.i.bf16 %v12509_v31, %v12506_v19  ;;  %v9491_v56 = vpack.i.bf16 %v4032_v47, %v3568_v45  ;;  %v9501_v7 = vpack.i.bf16 %v1810_v21, %v4104_v22 }
 0x233   :  { %v3572_v17 = vcombine.high %v3568_v45, %v16947_v49  ;;  %v2038_v30 = vcombine.high %v12506_v19, %v16947_v49 }
 0x234   :  { %2464 = vrot.lane.b32.xlu0 %v2410_v12, %s10162_s12  ;;  %v12541_v34 = vrot.slane %v4232_v41, %v10270_v24  ;;  %v2342_v12 = vrot.slane %v17136_v8, %v10270_v24  ;;  %v12563_v41 = vrot.slane %v4299_v43, %v10270_v24 }
 0x236   :  { %9482 = vrot.lane.b32.xlu1 %v9481_v14, %s10162_s12  ;;  %v4231_v14 = vcombine.low %v4207_v35, %v4223_v25  ;;  %v9536_v40 = vpack.i.bf16 %v12544_v52, %v12541_v34  ;;  %17138 = vst [vmem:[#allocation46_spill] sm:$0xff] %v12563_v41  ;;  %v12565_v25 = vpop.permute.xlu1 %9287  ;;  %v2346_v54 = vcombine.high %v2342_v12, %v16947_v49 }
 0x237   :  { %v4036_v35 = vcombine.high %v4032_v47, %v16947_v49  ;;  %v4331_v20 = vcombine.high %v12563_v41, %v16947_v49  ;;  %v2022_v47 = vcombine.high %v1988_v13, %v2004_v58  ;;  %v17162_v41 = vld [vmem:[#allocation25_spill] sm:$0xff] }
 0x238   :  { %9517 = vrot.lane.b32.xlu0 %v9516_v1, %s10162_s12  ;;  %v2021_v1 = vcombine.low %v1988_v13, %v2004_v58  ;;  %v12560_v62 = vrot.slane %v4231_v14, %v10270_v24  ;;  %v4216_v13 = vcombine.high %v12264_v53, %v12318_v18  ;;  %v4268_v53 = vcombine.high %v12344_v57, %v12402_v55 }
 0x239   :  { %v9511_v21 = vpack.i.bf16 %v4036_v35, %v3572_v17  ;;  %v2036_v14 = vrot.slane %v2022_v47, %v10270_v24 }
 0x23a   :  { %2428 = vrot.lane.b32.xlu1 %v2335_v26, %s10159_s25  ;;  %17137 = vst [vmem:[#allocation58_spill] sm:$0xff] %v12560_v62  ;;  %v2029_v26 = vrot.slane %v2021_v1, %v10270_v24  ;;  %v4263_v22 = vcombine.high %v12560_v62, %v16947_v49  ;;  %v4230_v35 = vrot.slane %v4216_v13, %v10268_v23  ;;  %v16710_v13 = vmov 0  }
 0x23b   :  { %v9571_v39 = vpack.i.bf16 %v2104_v51, %v2036_v14  ;;  %2261 = vmatprep.mubr.bf16.mxu0 %v16710_v13  ;;  %4481 = vmatprep.mubr.bf16.mxu1 %v16710_v13 }
 0x23c   :  { %9527 = vrot.lane.b32.xlu0 %v9526_v2, %s10160_s26  ;;  %v12574_v2 = vpop.permute.xlu0 %9332  ;;  %v9551_v45 = vpack.i.bf16 %v2097_v59, %v2029_v26  ;;  %v9521_v8 = vpack.i.bf16 %v4331_v20, %v4263_v22  ;;  %v4332_v22 = vcombine.high %v12544_v52, %v16947_v49  ;;  %9591 = vset.pattern.permute.xlu1 %v16710_v13 }
 0x23d   :  { %9592 = vset.pattern.permute.xlu0 %v16710_v13 }
 0x23e   :  { %9492 = vrot.lane.b32.xlu1 %v9491_v56, %s10162_s12  ;;  %v12581_v56 = vpop.permute.xlu1 %9297 }
 0x240   :  { %2468 = vrot.lane.b32.xlu0 %v2414_v10, %s10166_s15  ;;  %v2039_v10 = vcombine.high %v2029_v26, %v16947_v49  ;;  %v12588_v43 = vpop.permute.xlu0 %9342 }
 0x242   :  { %9502 = vrot.lane.b32.xlu1 %v9501_v7, %s10166_s15  ;;  %v2107_v7 = vcombine.high %v2097_v59, %v16947_v49  ;;  %v12596_v1 = vpop.permute.xlu1 %9307 }
 0x244   :  { %9537 = vrot.lane.b32.xlu0 %v9536_v40, %s10160_s26  ;;  %v9561_v58 = vpack.i.bf16 %v2107_v7, %v2039_v10  ;;  %v3874_v40 = vcombine.high %v12472_v4, %v16947_v49  ;;  %v2106_v4 = vcombine.high %v12509_v31, %v16947_v49 }
 0x246   :  { %2432 = vrot.lane.b32.xlu1 %v2345_v37, %s10165_s14  ;;  %v2040_v37 = vcombine.high %v2036_v14, %v16947_v49  ;;  %v9531_v57 = vpack.i.bf16 %v3806_v29, %v3874_v40  ;;  %v9541_v26 = vpack.i.bf16 %v2106_v4, %v2038_v30 }
 0x248   :  { %2440 = vrot.lane.b32.xlu0 %v2346_v54, %s10166_s15  ;;  %v4200_v54 = vcombine.high %v12222_v61, %v12290_v48  ;;  %v4298_v61 = vrot.slane %v4284_v46, %v10268_v23  ;;  %v9581_v19 = vpack.i.bf16 %v2108_v63, %v2040_v37 }
 0x24a   :  { %9512 = vrot.lane.b32.xlu1 %v9511_v21, %s10166_s15  ;;  %v4214_v55 = vrot.slane %v4200_v54, %v10268_v23  ;;  %v4264_v21 = vcombine.high %v12541_v34, %v16947_v49 }
 0x24c   :  { %9552 = vrot.lane.b32.xlu0 %v9551_v45, %s10159_s25  ;;  %v4247_v31 = vcombine.low %v4214_v55, %v4230_v35  ;;  %v9546_v32 = vpack.i.bf16 %v4332_v22, %v4264_v21  ;;  %v17145_v21 = vld [vmem:[#allocation17_spill] sm:$0xff]  ;;  %v17146_v22 = vld [vmem:[#allocation4_spill] sm:$0xff] }
 0x24e   :  { %9522 = vrot.lane.b32.xlu1 %v9521_v8, %s10163_s13  ;;  %v4255_v45 = vrot.slane %v4247_v31, %v10270_v24  ;;  %v4248_v8 = vcombine.high %v4214_v55, %v4230_v35  ;;  %v17144_v31 = vld [vmem:[#allocation29_spill] sm:$0xff] }
 0x250   :  { %9562 = vrot.lane.b32.xlu0 %v9561_v58, %s10165_s14  ;;  %v4265_v58 = vcombine.high %v4255_v45, %v16947_v49  ;;  %v4262_v37 = vrot.slane %v4248_v8, %v10270_v24 }
 0x252   :  { %2436 = vrot.lane.b32.xlu1 %v2342_v12, %s10162_s12  ;;  %v12609_v18 = vpop.permute.xlu0 %9352  ;;  %v4282_v12 = vrot.slane %v4268_v53, %v10268_v23  ;;  %v4266_v30 = vcombine.high %v4262_v37, %v16947_v49 }
 0x254   :  { %v12618_v48 = vpop.permute.xlu1 %9317  ;;  %9572 = vrot.lane.b32.xlu0 %v9571_v39, %s10162_s12  ;;  %v4315_v59 = vcombine.low %v4282_v12, %v4298_v61  ;;  %v4316_v34 = vcombine.high %v4282_v12, %v4298_v61  ;;  %v17143_v12 = vld [vmem:[#allocation56_spill] sm:$0xff] }
 0x256   :  { %9532 = vrot.lane.b32.xlu1 %v9531_v57, %s10166_s15  ;;  %v12624_v17 = vpop.permute.xlu0 %2444  ;;  %v4323_v10 = vrot.slane %v4315_v59, %v10270_v24  ;;  %v4330_v54 = vrot.slane %v4316_v34, %v10270_v24  ;;  %v9225_v59 = vunpack.i.h.bf16 %v17144_v31  ;;  %v17149_v34 = vld [vmem:[#allocation31_spill] sm:$0xff] }
 0x257   :  { %17139 = vst [vmem:[#allocation8_spill] sm:$0xff] %v12624_v17 }
 0x258   :  { %9582 = vrot.lane.b32.xlu0 %v9581_v19, %s10166_s15  ;;  %v12631_v20 = vpop.permute.xlu1 %9327  ;;  %v9556_v52 = vpack.i.bf16 %v4323_v10, %v4255_v45  ;;  %v4333_v51 = vcombine.high %v4323_v10, %v16947_v49  ;;  %v9576_v63 = vpack.i.bf16 %v4330_v54, %v4262_v37  ;;  %v4334_v4 = vcombine.high %v4330_v54, %v16947_v49  ;;  %v17147_v45 = vld [vmem:[#allocation20_spill] sm:$0xff]  ;;  %v17148_v10 = vld [vmem:[#allocation5_spill] sm:$0xff]  ;;  %v17158_v49 = vld [vmem:[#allocation18_spill] sm:$0xff] }
 0x259   :  { %v9105_v19 = vunpack.i.h.bf16 %v17143_v12  ;;  %v247_v8 = vsel %vm233_vm5, %v17148_v10, %v17147_v45  ;;  %v17152_v37 = vld [vmem:[#allocation57_spill] sm:$0xff]  ;;  %v17157_v45 = vld [vmem:[#allocation52_spill] sm:$0xff] }
 0x25a   :  { %9542 = vrot.lane.b32.xlu1 %v9541_v26, %s10164_s0  ;;  %v12634_v47 = vpop.permute.xlu0 %9367  ;;  %v9566_v40 = vpack.i.bf16 %v4333_v51, %v4265_v58  ;;  %v9586_v57 = vpack.i.bf16 %v4334_v4, %v4266_v30  ;;  %v17151_v51 = vld [vmem:[#allocation23_spill] sm:$0xff]  ;;  %v9110_v54 = vunpack.i.h.bf16 %v17152_v37  ;;  %v1477_v10 = vsel %vm233_vm5, %v17157_v45, %v9225_v59  ;;  %v17163_v59 = vld [vmem:[#allocation28_spill] sm:$0xff] }
 0x25b   :  { %v17154_v4 = vld [vmem:[#allocation59_spill] sm:$0xff] }
 0x25c   :  { %v12641_v14 = vpop.permute.xlu1 %9337 }
 0x25e   :  { %9547 = vrot.lane.b32.xlu1 %v9546_v32, %s10164_s0  ;;  %v12639_v7 = vpop.permute.xlu0 %9377  ;;  %v234_v32 = vsel %vm233_vm5, %v17146_v22, %v17145_v21  ;;  %v17156_v21 = vld [vmem:[#allocation15_spill] sm:$0xff] }
 0x25f   :  { %v236_v22 = vsel %vm235_vm6, %v234_v32, %v17156_v21  ;;  %v9230_v21 = vunpack.i.h.bf16 %v17163_v59 }
 0x260   :  { %v12698_v24 = vsel %vm237_vm7, %v236_v22, %v17158_v49  ;;  %v9245_v49 = vunpack.i.h.bf16 %v12346_v3 }
 0x262   :  { %9557 = vrot.lane.b32.xlu1 %v9556_v52, %s10159_s25  ;;  %v12648_v46 = vpop.permute.xlu0 %9387  ;;  %v9210_v52 = vunpack.i.h.bf16 %v17149_v34 }
 0x263   :  { %17140 = vst [vmem:[#allocation12_spill] sm:$0xff] %v12648_v46 }
 0x264   :  { %v12652_v29 = vpop.permute.xlu1 %9347  ;;  %v1478_v23 = vsel %vm235_vm6, %v1477_v10, %v9210_v52  ;;  %v9244_v52 = vunpack.i.l.bf16 %v12346_v3  ;;  %v9250_v10 = vunpack.i.h.bf16 %v12445_v6  ;;  %v9254_v3 = vunpack.i.l.bf16 %v12377_v11 }
 0x265   :  { %17141 = vst [vmem:[#allocation70_spill] sm:$0xff] %v12652_v29  ;;  %v9284_v29 = vunpack.i.l.bf16 %v12447_v0 }
 0x266   :  { %9567 = vrot.lane.b32.xlu1 %v9566_v40, %s10165_s14  ;;  %v12657_v53 = vpop.permute.xlu0 %9397  ;;  %v248_v40 = vsel %vm235_vm6, %v247_v8, %v17151_v51  ;;  %v17159_v8 = vld [vmem:[#allocation22_spill] sm:$0xff] }
 0x267   :  { %v249_v51 = vsel %vm237_vm7, %v248_v40, %v17159_v8  ;;  %v17164_v40 = vld [vmem:[#allocation60_spill] sm:$0xff] }
 0x268   :  { %v12659_v39 = vpop.permute.xlu1 %9357  ;;  %v12708_v16 = vsel %vm239_vm8, %v249_v51, %v17162_v41  ;;  %v17169_v41 = vld [vmem:[#allocation72_spill] sm:$0xff] }
 0x269   :  { %v3474_v51 = vsel %vm233_vm5, %v17169_v41, %v9245_v49  ;;  %v9270_v49 = vunpack.i.h.bf16 %v12513_v60  ;;  %v9269_v41 = vunpack.i.l.bf16 %v12513_v60  ;;  %v9280_v60 = vunpack.i.h.bf16 %v12537_v36 }
 0x26a   :  { %9577 = vrot.lane.b32.xlu1 %v9576_v63, %s10162_s12  ;;  %v12664_v35 = vpop.permute.xlu0 %2448  ;;  %v17153_v63 = vld [vmem:[#allocation36_spill] sm:$0xff] }
 0x26b   :  { %17142 = vst [vmem:[#allocation42_spill] sm:$0xff] %v12664_v35  ;;  %v1712_v30 = vsel %vm233_vm5, %v17153_v63, %v9105_v19  ;;  %v17160_v19 = vld [vmem:[#allocation54_spill] sm:$0xff]  ;;  %v17168_v35 = vld [vmem:[#allocation49_spill] sm:$0xff] }
 0x26c   :  { %v12666_v61 = vpop.permute.xlu1 %9362  ;;  %v9215_v63 = vunpack.i.h.bf16 %v17160_v19  ;;  %v1713_v32 = vsel %vm235_vm6, %v1712_v30, %v9110_v54  ;;  %v1479_v54 = vsel %vm237_vm7, %v1478_v23, %v9230_v21  ;;  %v9249_v30 = vunpack.i.l.bf16 %v12445_v6  ;;  %v17170_v21 = vld [vmem:[#allocation32_spill] sm:$0xff] }
 0x26d   :  { %v9260_v23 = vunpack.i.h.bf16 %v12482_v44  ;;  %v9259_v6 = vunpack.i.l.bf16 %v12482_v44  ;;  %v9275_v44 = vunpack.i.h.bf16 %v12430_v9 }
 0x26e   :  { %9587 = vrot.lane.b32.xlu1 %v9586_v57, %s10166_s15  ;;  %v12669_v55 = vpop.permute.xlu0 %9407  ;;  %v9115_v57 = vunpack.i.h.bf16 %v17154_v4 }
 0x270   :  { %v12672_v26 = vpop.permute.xlu1 %9372  ;;  %v12714_v22 = vsel %vm237_vm7, %v1713_v32, %v9115_v57  ;;  %v12727_v57 = vsel %vm239_vm8, %v1479_v54, %v9215_v63  ;;  %v9255_v32 = vunpack.i.h.bf16 %v12377_v11  ;;  %v17171_v63 = vld [vmem:[#allocation73_spill] sm:$0xff]  ;;  %v9264_v11 = vunpack.i.l.bf16 %v12404_v15 }
 0x271   :  { %v3467_v54 = vsel %vm233_vm5, %v17171_v63, %v9250_v10  ;;  %v9274_v10 = vunpack.i.l.bf16 %v12430_v9  ;;  %v9279_v63 = vunpack.i.l.bf16 %v12537_v36  ;;  %v9285_v9 = vunpack.i.h.bf16 %v12447_v0 }
 0x272   :  { %v12682_v58 = vpop.permute.xlu0 %9417  ;;  %v9290_v36 = vunpack.i.h.bf16 %v12565_v25  ;;  %v9300_v0 = vunpack.i.h.bf16 %v12581_v56 }
 0x273   :  { %17150 = vst [vmem:[#allocation40_spill] sm:$0xff] %v12682_v58  ;;  %v3006_v58 = vsel %vm233_vm5, %v17170_v21, %v9244_v52  ;;  %v3475_v21 = vsel %vm235_vm6, %v3474_v51, %v9255_v32  ;;  %v9289_v32 = vunpack.i.l.bf16 %v12565_v25 }
 0x274   :  { %v12690_v13 = vpop.permute.xlu1 %9382  ;;  %v3007_v52 = vsel %vm235_vm6, %v3006_v58, %v9254_v3 }
 0x275   :  { %17155 = vst [vmem:[#allocation80_spill] sm:$0xff] %v12690_v13  ;;  %v2999_v13 = vsel %vm233_vm5, %v17173_v42, %v9249_v30  ;;  %v17175_v42 = vld [vmem:[#allocation41_spill] sm:$0xff]  ;;  %v3008_v46 = vsel %vm237_vm7, %v3007_v52, %v9269_v41  ;;  %v9310_v52 = vunpack.i.h.bf16 %v12596_v1 }
 0x276   :  { %v12704_v62 = vpop.permute.xlu0 %9427  ;;  %v2772_v30 = vsel %vm233_vm5, %v17175_v42, %v9259_v6  ;;  %v3000_v51 = vsel %vm235_vm6, %v2999_v13, %v9264_v11  ;;  %v17177_v42 = vld [vmem:[#allocation44_spill] sm:$0xff] }
 0x277   :  { %17161 = vst [vmem:[#allocation76_spill] sm:$0xff] %v12704_v62  ;;  %v9265_v62 = vunpack.i.h.bf16 %v12404_v15  ;;  %v2773_v13 = vsel %vm235_vm6, %v2772_v30, %v9279_v63  ;;  %v9304_v63 = vunpack.i.l.bf16 %v12502_v5 }
 0x278   :  { %v12719_v8 = vpop.permute.xlu1 %9392 }
 0x279   :  { %v3468_v58 = vsel %vm235_vm6, %v3467_v54, %v9265_v62  ;;  %v2765_v62 = vsel %vm233_vm5, %v17177_v42, %v9274_v10  ;;  %v9299_v54 = vunpack.i.l.bf16 %v12581_v56  ;;  %v9305_v10 = vunpack.i.h.bf16 %v12502_v5 }
 0x27a   :  { %v12731_v45 = vpop.permute.xlu0 %2420  ;;  %v3469_v25 = vsel %vm237_vm7, %v3468_v58, %v9285_v9  ;;  %v9294_v5 = vunpack.i.l.bf16 %v12459_v27 }
 0x27b   :  { %17167 = vst [vmem:[#allocation37_spill] sm:$0xff] %v12731_v45 }
 0x27c   :  { %v12744_v45 = vpop.permute.xlu1 %2416 }
 0x27d   :  { %17172 = vst [vmem:[#allocation33_spill] sm:$0xff] %v12744_v45  ;;  %v17174_v45 = vld [vmem:[#allocation79_spill] sm:$0xff] }
 0x27e   :  { %v12755_v15 = vpop.permute.xlu0 %9437  ;;  %v3236_v17 = vsel %vm233_vm5, %v17174_v45, %v9260_v23  ;;  %v3476_v45 = vsel %vm237_vm7, %v3475_v21, %v9270_v49  ;;  %v17176_v23 = vld [vmem:[#allocation82_spill] sm:$0xff]  ;;  %v3001_v49 = vsel %vm237_vm7, %v3000_v51, %v9284_v29  ;;  %v3009_v21 = vsel %vm239_vm8, %v3008_v46, %v9289_v32 }
 0x27f   :  { %v3229_v6 = vsel %vm233_vm5, %v17176_v23, %v9275_v44  ;;  %v3237_v41 = vsel %vm235_vm6, %v3236_v17, %v9280_v60  ;;  %v9309_v44 = vunpack.i.l.bf16 %v12596_v1  ;;  %v3477_v56 = vsel %vm239_vm8, %v3476_v45, %v9290_v36 }
 0x280   :  { %v12767_v3 = vpop.permute.xlu1 %9402  ;;  %v9315_v17 = vunpack.i.h.bf16 %v12531_v50  ;;  %v9314_v29 = vunpack.i.l.bf16 %v12531_v50  ;;  %v9334_v60 = vunpack.i.l.bf16 %v12574_v2  ;;  %v2766_v1 = vsel %vm235_vm6, %v2765_v62, %v9299_v54 }
 0x281   :  { %v3230_v58 = vsel %vm235_vm6, %v3229_v6, %v9300_v0  ;;  %v9335_v46 = vunpack.i.h.bf16 %v12574_v2  ;;  %v9344_v51 = vunpack.i.l.bf16 %v12588_v43  ;;  %v3002_v32 = vsel %vm239_vm8, %v3001_v49, %v9309_v44 }
 0x282   :  { %v12779_v11 = vpop.permute.xlu0 %9447  ;;  %v3470_v45 = vsel %vm239_vm8, %v3469_v25, %v9310_v52  ;;  %v9345_v50 = vunpack.i.h.bf16 %v12588_v43  ;;  %v3238_v23 = vsel %vm237_vm7, %v3237_v41, %v9305_v10  ;;  %v2774_v36 = vsel %vm237_vm7, %v2773_v13, %v9304_v63 }
 0x283   :  { %v9330_v6 = vunpack.i.h.bf16 %v12631_v20  ;;  %v9329_v2 = vunpack.i.l.bf16 %v12631_v20  ;;  %v3010_v62 = vsel %vm241_vm9, %v3009_v21, %v9314_v29  ;;  %v3478_v0 = vsel %vm241_vm9, %v3477_v56, %v9315_v17 }
 0x284   :  { %v12789_v30 = vpop.permute.xlu1 %9412  ;;  %v9324_v54 = vunpack.i.l.bf16 %v12553_v33  ;;  %v2775_v49 = vsel %vm239_vm8, %v2774_v36, %v9334_v60  ;;  %v3239_v43 = vsel %vm239_vm8, %v3238_v23, %v9335_v46  ;;  %v9340_v41 = vunpack.i.h.bf16 %v12641_v14 }
 0x285   :  { %v9339_v13 = vunpack.i.l.bf16 %v12641_v14  ;;  %v3011_v20 = vsel %vm243_vm10, %v3010_v62, %v9344_v51  ;;  %v9379_v44 = vunpack.i.l.bf16 %v12639_v7  ;;  %v9365_v25 = vunpack.i.h.bf16 %v12666_v61 }
 0x286   :  { %v12799_v9 = vpop.permute.xlu0 %9457  ;;  %v9364_v21 = vunpack.i.l.bf16 %v12666_v61  ;;  %v3479_v10 = vsel %vm243_vm10, %v3478_v0, %v9345_v50  ;;  %v2767_v63 = vsel %vm237_vm7, %v2766_v1, %v9329_v2  ;;  %v3231_v56 = vsel %vm237_vm7, %v3230_v58, %v9330_v6 }
 0x287   :  { %v9405_v17 = vunpack.i.h.bf16 %v12767_v3  ;;  %v9404_v14 = vunpack.i.l.bf16 %v12767_v3  ;;  %v9370_v60 = vunpack.i.h.bf16 %v12634_v47  ;;  %v9369_v46 = vunpack.i.l.bf16 %v12634_v47 }
 0x288   :  { %v12809_v42 = vpop.permute.xlu1 %9422  ;;  %v9375_v51 = vunpack.i.h.bf16 %v12672_v26  ;;  %v9374_v61 = vunpack.i.l.bf16 %v12672_v26  ;;  %v3003_v50 = vsel %vm241_vm9, %v3002_v32, %v9339_v13  ;;  %v3471_v1 = vsel %vm241_vm9, %v3470_v45, %v9340_v41 }
 0x289   :  { %v9415_v58 = vunpack.i.h.bf16 %v12789_v30  ;;  %v9414_v23 = vunpack.i.l.bf16 %v12789_v30  ;;  %v9380_v3 = vunpack.i.h.bf16 %v12639_v7  ;;  %v2768_v6 = vsel %vm239_vm8, %v2767_v63, %v9364_v21 }
 0x28a   :  { %v12818_v52 = vpop.permute.xlu0 %2424  ;;  %v3232_v2 = vsel %vm239_vm8, %v3231_v56, %v9365_v25  ;;  %v3012_v47 = vsel %vm245_vm11, %v3011_v20, %v9379_v44  ;;  %v2769_v62 = vsel %vm241_vm9, %v2768_v6, %v9404_v14  ;;  %v3004_v41 = vsel %vm243_vm10, %v3003_v50, %v9374_v61 }
 0x28b   :  { %v3233_v26 = vsel %vm241_vm9, %v3232_v2, %v9405_v17  ;;  %v3472_v30 = vsel %vm243_vm10, %v3471_v1, %v9375_v51  ;;  %v9440_v7 = vunpack.i.h.bf16 %v12755_v15  ;;  %v9439_v13 = vunpack.i.l.bf16 %v12755_v15 }
 0x28c   :  { %v12829_v29 = vpop.permute.xlu1 %9432  ;;  %v9410_v25 = vunpack.i.h.bf16 %v12669_v55  ;;  %v9409_v20 = vunpack.i.l.bf16 %v12669_v55  ;;  %v3005_v21 = vsel %vm245_vm11, %v3004_v41, %v9414_v23  ;;  %v3473_v63 = vsel %vm245_vm11, %v3472_v30, %v9415_v58 }
 0x28d   :  { %v2776_v56 = vsel %vm241_vm9, %v2775_v49, %v9369_v46  ;;  %v3480_v17 = vsel %vm245_vm11, %v3479_v10, %v9380_v3  ;;  %v2770_v14 = vsel %vm243_vm10, %v2769_v62, %v9439_v13  ;;  %v3234_v51 = vsel %vm243_vm10, %v3233_v26, %v9440_v7 }
 0x28e   :  { %v9468_v36 = vpop.permute.xlu0 %9467  ;;  %v3240_v15 = vsel %vm241_vm9, %v3239_v43, %v9370_v60  ;;  %v4408_v50 = vrot.slane %v3012_v47, 4  ;;  %v4407_v6 = vrot.slane %v3005_v21, 4  ;;  %v4413_v58 = vrot.slane %v3473_v63, 4 }
 0x28f   :  { %v9470_v32 = vunpack.i.h.bf16 %v9468_v36  ;;  %v9469_v0 = vunpack.i.l.bf16 %v9468_v36  ;;  %v9359_v49 = vunpack.i.l.bf16 %v12659_v39  ;;  %v2777_v10 = vsel %vm243_vm10, %v2776_v56, %v9409_v20  ;;  %v17181_v56 = vld [vmem:[#allocation48_spill] sm:$0xff] }
 0x290   :  { %v12845_v45 = vpop.permute.xlu1 %2452  ;;  %v3241_v3 = vsel %vm243_vm10, %v3240_v15, %v9410_v25  ;;  %v4414_v2 = vrot.slane %v3480_v17, 4  ;;  %v17178_v26 = vunpack.i.h.bf16 %v17166_v38  ;;  %v9209_v25 = vunpack.i.l.bf16 %v17149_v34  ;;  %v17182_v15 = vld [vmem:[#allocation24_spill] sm:$0xff] }
 0x291   :  { %v2771_v55 = vsel %vm245_vm11, %v2770_v14, %v9469_v0  ;;  %v3235_v1 = vsel %vm245_vm11, %v3234_v51, %v9470_v32  ;;  %v17179_v0 = vld [vmem:[#allocation85_spill] sm:$0xff]  ;;  %v17180_v20 = vunpack.i.h.bf16 %v17168_v35  ;;  %v9240_v17 = vunpack.i.h.bf16 %v17181_v56 }
 0x292   :  { %v12853_v44 = vpop.permute.xlu0 %9477  ;;  %v4429_v47 = vsel %vm2203_vm12, %v2771_v55, %v4407_v6  ;;  %v4431_v62 = vsel %vm2203_vm12, %v3235_v1, %v4413_v58  ;;  %v1481_v32 = vsel %vm241_vm9, %v12727_v57, %v17178_v26  ;;  %v1942_v41 = vsel %vm233_vm5, %v17179_v0, %v9294_v5  ;;  %v17185_v6 = vld [vmem:[#allocation62_spill] sm:$0xff] }
 0x293   :  { %v1482_v21 = vsel %vm243_vm10, %v1481_v32, %v17180_v20  ;;  %v1943_v57 = vsel %vm235_vm6, %v1942_v41, %v9324_v54  ;;  %v9434_v14 = vunpack.i.l.bf16 %v12829_v29  ;;  %v251_v34 = vsel %vm241_vm9, %v12708_v16, %v17182_v15  ;;  %v17189_v41 = vld [vmem:[#allocation27_spill] sm:$0xff]  ;;  %v17191_v15 = vld [vmem:[#allocation26_spill] sm:$0xff] }
 0x294   :  { %v9443_v61 = vpop.permute.xlu1 %9442  ;;  %v1944_v5 = vsel %vm237_vm7, %v1943_v57, %v9359_v49  ;;  %v17183_v55 = vunpack.i.h.bf16 %v17164_v40  ;;  %v9399_v1 = vunpack.i.l.bf16 %v12657_v53  ;;  %v9130_v58 = vunpack.i.h.bf16 %v17185_v6  ;;  %v17190_v20 = vld [vmem:[#allocation35_spill] sm:$0xff] }
 0x295   :  { %v9445_v36 = vunpack.i.h.bf16 %v9443_v61  ;;  %v9444_v23 = vunpack.i.l.bf16 %v9443_v61  ;;  %v4437_v61 = vpack.c.bf16 %v4431_v62, %v4429_v47  ;;  %v17186_v49 = vunpack.i.l.bf16 %v17144_v31  ;;  %v17188_v47 = vld [vmem:[#allocation63_spill] sm:$0xff] }
 0x296   :  { %v12865_v46 = vpop.permute.xlu0 %9487  ;;  %v1715_v54 = vsel %vm239_vm8, %v12714_v22, %v17183_v55  ;;  %v9135_v62 = vunpack.i.h.bf16 %v17188_v47  ;;  %v9229_v31 = vunpack.i.l.bf16 %v17163_v59  ;;  %v9114_v57 = vunpack.i.l.bf16 %v17154_v4 }
 0x297   :  { %v2778_v43 = vsel %vm245_vm11, %v2777_v10, %v9444_v23  ;;  %v3242_v60 = vsel %vm245_vm11, %v3241_v3, %v9445_v36  ;;  %v17184_v36 = vunpack.i.h.bf16 %v17165_v28  ;;  %v17187_v10 = vld [vmem:[#allocation53_spill] sm:$0xff]  ;;  %v1483_v3 = vsel %vm245_vm11, %v1482_v21, %v9240_v17 }
 0x298   :  { %v12881_v30 = vpop.permute.xlu1 %9452  ;;  %v4430_v7 = vsel %vm2203_vm12, %v2778_v43, %v4408_v50  ;;  %v4432_v13 = vsel %vm2203_vm12, %v3242_v60, %v4414_v2  ;;  %v9104_v50 = vunpack.i.l.bf16 %v17143_v12  ;;  %v1470_v16 = vsel %vm233_vm5, %v17187_v10, %v17186_v49 }
 0x299   :  { %v4438_v63 = vpack.c.bf16 %v4432_v13, %v4430_v7  ;;  %v1716_v23 = vsel %vm241_vm9, %v1715_v54, %v17184_v36  ;;  %v1471_v22 = vsel %vm235_vm6, %v1470_v16, %v9209_v25  ;;  %v9214_v2 = vunpack.i.l.bf16 %v17160_v19  ;;  %v17193_v54 = vld [vmem:[#allocation14_spill] sm:$0xff] }
 0x29a   :  { %v12895_v51 = vpop.permute.xlu0 %2460  ;;  %v1945_v43 = vsel %vm239_vm8, %v1944_v5, %v9399_v1  ;;  %v9489_v32 = vunpack.i.l.bf16 %v12865_v46  ;;  %v252_v7 = vsel %vm243_vm10, %v251_v34, %v17189_v41  ;;  %v9109_v13 = vunpack.i.l.bf16 %v17152_v37  ;;  %v17195_v41 = vld [vmem:[#allocation16_spill] sm:$0xff] }
 0x29b   :  { %4449 = vmatprep.subr.bf16.mxu1 %v4438_v63  ;;  %v1946_v26 = vsel %vm241_vm9, %v1945_v43, %v9434_v14  ;;  %v2194_v25 = vrot.slane %v1483_v3, 4  ;;  %v1705_v21 = vsel %vm233_vm5, %v17190_v20, %v9104_v50  ;;  %v1472_v59 = vsel %vm237_vm7, %v1471_v22, %v9229_v31  ;;  %v17194_v43 = vld [vmem:[#allocation19_spill] sm:$0xff] }
 0x29c   :  { %v12914_v12 = vpop.permute.xlu1 %9462  ;;  %4450 = vmatpush1.bf16.msra.mxu1 %v4437_v61  ;;  %v1717_v5 = vsel %vm243_vm10, %v1716_v23, %v9130_v58  ;;  %v1473_v14 = vsel %vm239_vm8, %v1472_v59, %v9214_v2  ;;  %v9219_v37 = vunpack.i.l.bf16 %v17168_v35  ;;  %v12943_v34 = vsel %vm245_vm11, %v252_v7, %v17191_v15  ;;  %v17196_v59 = vld [vmem:[#allocation21_spill] sm:$0xff] }
 0x29d   :  { %v9464_v60 = vunpack.i.l.bf16 %v12914_v12  ;;  %17192 = vst [vmem:[#allocation38_spill] sm:$0xff] %v12943_v34  ;;  %v9234_v50 = vunpack.i.l.bf16 %v17166_v38  ;;  %v1718_v55 = vsel %vm245_vm11, %v1717_v5, %v9135_v62  ;;  %v240_v1 = vsel %vm239_vm8, %v12698_v24, %v17193_v54 }
 0x29e   :  { %v12925_v0 = vpop.permute.xlu0 %9497  ;;  %v2209_v36 = vsel %vm2203_vm12, %v12943_v34, %v2194_v25  ;;  %v1706_v23 = vsel %vm235_vm6, %v1705_v21, %v9109_v13  ;;  %v9119_v58 = vunpack.i.l.bf16 %v17164_v40  ;;  %v9124_v3 = vunpack.i.l.bf16 %v17165_v28 }
 0x29f   :  { %v1947_v19 = vsel %vm243_vm10, %v1946_v26, %v9464_v60  ;;  %v1474_v49 = vsel %vm241_vm9, %v1473_v14, %v9234_v50  ;;  %v1707_v16 = vsel %vm237_vm7, %v1706_v23, %v9114_v57  ;;  %v9239_v22 = vunpack.i.l.bf16 %v17181_v56  ;;  %v17199_v14 = vld [vmem:[#allocation86_spill] sm:$0xff] }
 0x2a0   :  { %v12935_v63 = vpop.permute.xlu1 %2456  ;;  %v1948_v17 = vsel %vm245_vm11, %v1947_v19, %v9489_v32  ;;  %v1475_v24 = vsel %vm243_vm10, %v1474_v49, %v9219_v37  ;;  %v242_v60 = vsel %vm241_vm9, %v240_v1, %v17194_v43  ;;  %v1708_v40 = vsel %vm239_vm8, %v1707_v16, %v9119_v58  ;;  %v17202_v49 = vld [vmem:[#allocation70_spill] sm:$0xff] }
 0x2a1   :  { %v2200_v61 = vrot.slane %v1948_v17, 4  ;;  %v9129_v62 = vunpack.i.l.bf16 %v17185_v6  ;;  %v1476_v26 = vsel %vm245_vm11, %v1475_v24, %v9239_v22  ;;  %v1709_v28 = vsel %vm241_vm9, %v1708_v40, %v9124_v3  ;;  %v17198_v17 = vld [vmem:[#allocation51_spill] sm:$0xff]  ;;  %v17203_v24 = vld [vmem:[#allocation8_spill] sm:$0xff]  ;;  %v17204_v22 = vld [vmem:[#allocation50_spill] sm:$0xff] }
 0x2a2   :  { %v12946_v4 = vpop.permute.xlu0 %9507  ;;  %v9134_v32 = vunpack.i.l.bf16 %v17188_v47  ;;  %v9320_v56 = vunpack.i.h.bf16 %v12618_v48  ;;  %v244_v7 = vsel %vm243_vm10, %v242_v60, %v17195_v41  ;;  %v9295_v13 = vunpack.i.h.bf16 %v12459_v27 }
 0x2a3   :  { %v2211_v35 = vsel %vm2203_vm12, %v1718_v55, %v2200_v61  ;;  %v9319_v19 = vunpack.i.l.bf16 %v12618_v48  ;;  %v9325_v6 = vunpack.i.h.bf16 %v12553_v33  ;;  %v2193_v20 = vrot.slane %v1476_v26, 4  ;;  %v17200_v61 = vld [vmem:[#allocation55_spill] sm:$0xff]  ;;  %v17205_v26 = vld [vmem:[#allocation80_spill] sm:$0xff] }
 0x2a4   :  { %v12958_v38 = vpop.permute.xlu1 %9472  ;;  %v2215_v10 = vpack.c.bf16 %v2211_v35, %v2209_v36  ;;  %v1710_v21 = vsel %vm243_vm10, %v1709_v28, %v9129_v62  ;;  %v12988_v47 = vsel %vm245_vm11, %v244_v7, %v17196_v59  ;;  %v1935_v5 = vsel %vm233_vm5, %v17198_v17, %v9320_v56  ;;  %v17201_v36 = vld [vmem:[#allocation12_spill] sm:$0xff] }
 0x2a5   :  { %17197 = vst [vmem:[#allocation34_spill] sm:$0xff] %v12988_v47  ;;  %v9395_v27 = vunpack.i.h.bf16 %v12719_v8  ;;  %v1711_v48 = vsel %vm245_vm11, %v1710_v21, %v9134_v32  ;;  %v3704_v37 = vsel %vm233_vm5, %v17199_v14, %v9295_v13  ;;  %v9355_v33 = vunpack.i.h.bf16 %v12609_v18  ;;  %v17206_v32 = vld [vmem:[#allocation76_spill] sm:$0xff]  ;;  %v17207_v13 = vld [vmem:[#allocation71_spill] sm:$0xff] }
 0x2a6   :  { %v12964_v2 = vpop.permute.xlu0 %2464  ;;  %2231 = vmatprep.subr.bf16.mxu0 %v2215_v10  ;;  %v4168_v15 = vsel %vm233_vm5, %v17200_v61, %v9319_v19  ;;  %v9360_v50 = vunpack.i.h.bf16 %v12659_v39  ;;  %v3705_v54 = vsel %vm235_vm6, %v3704_v37, %v9325_v6  ;;  %v9354_v1 = vunpack.i.l.bf16 %v12609_v18  ;;  %v17208_v59 = vld [vmem:[#allocation64_spill] sm:$0xff]  ;;  %v17210_v14 = vld [vmem:[#allocation67_spill] sm:$0xff] }
 0x2a7   :  { %v9390_v35 = vunpack.i.h.bf16 %v17201_v36  ;;  %v13007_v23 = vsel %vm2203_vm12, %v12988_v47, %v2193_v20  ;;  %v9389_v58 = vunpack.i.l.bf16 %v17201_v36  ;;  %v9350_v10 = vunpack.i.h.bf16 %v17202_v49 }
 0x2a8   :  { %v12970_v31 = vpop.permute.xlu1 %9482  ;;  %v9349_v16 = vunpack.i.l.bf16 %v17202_v49  ;;  %v1936_v39 = vsel %vm235_vm6, %v1935_v5, %v9355_v33  ;;  %v2478_v18 = vsel %vm233_vm5, %v17204_v22, %v17203_v24  ;;  %v4169_v60 = vsel %vm235_vm6, %v4168_v15, %v9354_v1  ;;  %v17209_v5 = vld [vmem:[#allocation68_spill] sm:$0xff]  ;;  %v17211_v15 = vld [vmem:[#allocation42_spill] sm:$0xff] }
 0x2a9   :  { %v1937_v43 = vsel %vm237_vm7, %v1936_v39, %v9395_v27  ;;  %v9460_v40 = vunpack.i.h.bf16 %v12799_v9  ;;  %v3706_v62 = vsel %vm237_vm7, %v3705_v54, %v9360_v50  ;;  %v9384_v28 = vunpack.i.l.bf16 %v17205_v26  ;;  %v17212_v1 = vld [vmem:[#allocation40_spill] sm:$0xff] }
 0x2aa   :  { %v12980_v25 = vpop.permute.xlu0 %9517  ;;  %v9430_v56 = vunpack.i.h.bf16 %v17206_v32  ;;  %v9485_v41 = vunpack.i.h.bf16 %v12970_v31  ;;  %v3931_v19 = vsel %vm233_vm5, %v17207_v13, %v9390_v35  ;;  %v9400_v6 = vunpack.i.h.bf16 %v12657_v53 }
 0x2ab   :  { %v9385_v20 = vunpack.i.h.bf16 %v17205_v26  ;;  %v9394_v21 = vunpack.i.l.bf16 %v12719_v8  ;;  %v3938_v17 = vsel %vm233_vm5, %v17208_v59, %v9389_v58  ;;  %v4161_v27 = vsel %vm233_vm5, %v17209_v5, %v9350_v10 }
 0x2ac   :  { %v12984_v57 = vpop.permute.xlu1 %2428  ;;  %v3697_v37 = vsel %vm233_vm5, %v17210_v14, %v9349_v16  ;;  %v1938_v33 = vsel %vm239_vm8, %v1937_v43, %v9430_v56  ;;  %v2479_v53 = vsel %vm235_vm6, %v2478_v18, %v17211_v15  ;;  %v3707_v8 = vsel %vm239_vm8, %v3706_v62, %v9400_v6  ;;  %v17214_v56 = vld [vmem:[#allocation65_spill] sm:$0xff] }
 0x2ad   :  { %v1939_v50 = vsel %vm241_vm9, %v1938_v33, %v9460_v40  ;;  %v9420_v36 = vunpack.i.h.bf16 %v17212_v1  ;;  %v9419_v35 = vunpack.i.l.bf16 %v17212_v1  ;;  %v3698_v58 = vsel %vm235_vm6, %v3697_v37, %v9384_v28  ;;  %v17213_v28 = vld [vmem:[#allocation33_spill] sm:$0xff] }
 0x2ae   :  { %v13000_v55 = vpop.permute.xlu0 %9527  ;;  %v1940_v49 = vsel %vm243_vm10, %v1939_v50, %v9485_v41  ;;  %v4162_v16 = vsel %vm235_vm6, %v4161_v27, %v9385_v20  ;;  %v9429_v39 = vunpack.i.l.bf16 %v17206_v32  ;;  %v4170_v24 = vsel %vm237_vm7, %v4169_v60, %v9394_v21  ;;  %v17215_v15 = vld [vmem:[#allocation37_spill] sm:$0xff] }
 0x2af   :  { %v9449_v18 = vunpack.i.l.bf16 %v12779_v11  ;;  %v9425_v43 = vunpack.i.h.bf16 %v12809_v42  ;;  %v9424_v40 = vunpack.i.l.bf16 %v12809_v42  ;;  %v2471_v41 = vsel %vm233_vm5, %v17214_v56, %v17213_v28 }
 0x2b0   :  { %v13013_v3 = vpop.permute.xlu1 %9492  ;;  %v9435_v13 = vunpack.i.h.bf16 %v12829_v29  ;;  %v9455_v32 = vunpack.i.h.bf16 %v12881_v30  ;;  %v9454_v60 = vunpack.i.l.bf16 %v12881_v30  ;;  %v3699_v6 = vsel %vm237_vm7, %v3698_v58, %v9419_v35 }
 0x2b1   :  { %v4163_v20 = vsel %vm237_vm7, %v4162_v16, %v9420_v36  ;;  %v9465_v21 = vunpack.i.h.bf16 %v12914_v12  ;;  %v9450_v5 = vunpack.i.h.bf16 %v12779_v11  ;;  %v9459_v27 = vunpack.i.l.bf16 %v12799_v9 }
 0x2b2   :  { %v13025_v7 = vpop.permute.xlu0 %2468  ;;  %v4171_v29 = vsel %vm239_vm8, %v4170_v24, %v9429_v39  ;;  %v3700_v30 = vsel %vm239_vm8, %v3699_v6, %v9449_v18  ;;  %v3932_v37 = vsel %vm235_vm6, %v3931_v19, %v9425_v43  ;;  %v3939_v33 = vsel %vm235_vm6, %v3938_v17, %v9424_v40 }
 0x2b3   :  { %v2472_v12 = vsel %vm235_vm6, %v2471_v41, %v17215_v15  ;;  %v3933_v11 = vsel %vm237_vm7, %v3932_v37, %v9455_v32  ;;  %v3940_v9 = vsel %vm237_vm7, %v3939_v33, %v9454_v60  ;;  %v9479_v1 = vunpack.i.l.bf16 %v12853_v44 }
 0x2b4   :  { %v13039_v61 = vpop.permute.xlu1 %9502  ;;  %v9499_v17 = vunpack.i.l.bf16 %v12925_v0  ;;  %v4164_v35 = vsel %vm239_vm8, %v4163_v20, %v9450_v5  ;;  %v2480_v58 = vsel %vm237_vm7, %v2479_v53, %v12845_v45  ;;  %v2473_v16 = vsel %vm237_vm7, %v2472_v12, %v12818_v52 }
 0x2b5   :  { %v9505_v54 = vunpack.i.h.bf16 %v13039_v61  ;;  %v3941_v39 = vsel %vm239_vm8, %v3940_v9, %v9479_v1  ;;  %v9475_v18 = vunpack.i.h.bf16 %v12958_v38  ;;  %v9474_v45 = vunpack.i.l.bf16 %v12958_v38 }
 0x2b6   :  { %v13050_v10 = vpop.permute.xlu0 %9537  ;;  %v3942_v53 = vsel %vm241_vm9, %v3941_v39, %v9499_v17  ;;  %v9484_v52 = vunpack.i.l.bf16 %v12970_v31  ;;  %v9495_v43 = vunpack.i.h.bf16 %v13013_v3  ;;  %v9494_v40 = vunpack.i.l.bf16 %v13013_v3 }
 0x2b7   :  { %v1941_v22 = vsel %vm245_vm11, %v1940_v49, %v9505_v54  ;;  %v9500_v54 = vunpack.i.h.bf16 %v12925_v0  ;;  %v9490_v49 = vunpack.i.h.bf16 %v12865_v46  ;;  %v2481_v0 = vsel %vm239_vm8, %v2480_v58, %v12935_v63 }
 0x2b8   :  { %v2199_v62 = vrot.slane %v1941_v22, 4  ;;  %v2433_v26 = vpop.permute.xlu1 %2432  ;;  %v2482_v63 = vsel %vm241_vm9, %v2481_v0, %v12895_v51  ;;  %v9504_v28 = vunpack.i.l.bf16 %v13039_v61  ;;  %v9520_v38 = vunpack.i.h.bf16 %v12980_v25 }
 0x2b9   :  { %v2474_v31 = vsel %vm239_vm8, %v2473_v16, %v12984_v57  ;;  %v9510_v3 = vunpack.i.h.bf16 %v12946_v4  ;;  %v3701_v6 = vsel %vm241_vm9, %v3700_v30, %v9474_v45  ;;  %v4165_v20 = vsel %vm241_vm9, %v4164_v35, %v9475_v18 }
 0x2ba   :  { %v13068_v59 = vpop.permute.xlu0 %2440  ;;  %v2210_v42 = vsel %vm2203_vm12, %v1711_v48, %v2199_v62  ;;  %v3708_v48 = vsel %vm241_vm9, %v3707_v8, %v9435_v13  ;;  %v4172_v8 = vsel %vm241_vm9, %v4171_v29, %v9459_v27  ;;  %v9519_v13 = vunpack.i.l.bf16 %v12980_v25 }
 0x2bb   :  { %v2214_v14 = vpack.c.bf16 %v2210_v42, %v13007_v23  ;;  %v9480_v23 = vunpack.i.h.bf16 %v12853_v44  ;;  %v3709_v19 = vsel %vm243_vm10, %v3708_v48, %v9465_v21  ;;  %v2475_v51 = vsel %vm241_vm9, %v2474_v31, %v2433_v26 }
 0x2bc   :  { %v9513_v50 = vpop.permute.xlu1 %9512  ;;  %v3710_v46 = vsel %vm245_vm11, %v3709_v19, %v9490_v49  ;;  %v4173_v61 = vsel %vm243_vm10, %v4172_v8, %v9484_v52  ;;  %v3702_v21 = vsel %vm243_vm10, %v3701_v6, %v9494_v40  ;;  %v4166_v42 = vsel %vm243_vm10, %v4165_v20, %v9495_v43  ;;  %v17219_v19 = vld [vmem:[#allocation47_spill] sm:$0xff] }
 0x2bd   :  { %2232 = vmatpush1.bf16.msra.mxu0 %v2214_v14  ;;  %v3934_v44 = vsel %vm239_vm8, %v3933_v11, %v9480_v23  ;;  %v9515_v56 = vunpack.i.h.bf16 %v9513_v50  ;;  %v9514_v41 = vunpack.i.l.bf16 %v9513_v50  ;;  %v4420_v32 = vrot.slane %v3710_v46, 4  ;;  %v17218_v23 = vld [vmem:[#allocation45_spill] sm:$0xff] }
 0x2be   :  { %v13088_v36 = vpop.permute.xlu0 %9552  ;;  %v3935_v22 = vsel %vm241_vm9, %v3934_v44, %v9500_v54  ;;  %v9509_v57 = vunpack.i.l.bf16 %v12946_v4  ;;  %v4174_v5 = vsel %vm245_vm11, %v4173_v61, %v9504_v28  ;;  %v2483_v14 = vsel %vm243_vm10, %v2482_v63, %v12964_v2 }
 0x2bf   :  { %v3703_v27 = vsel %vm245_vm11, %v3702_v21, %v9514_v41  ;;  %v4167_v29 = vsel %vm245_vm11, %v4166_v42, %v9515_v56  ;;  %v3936_v26 = vsel %vm243_vm10, %v3935_v22, %v9520_v38  ;;  %v3943_v30 = vsel %vm243_vm10, %v3942_v53, %v9519_v13 }
 0x2c0   :  { %v13101_v24 = vpop.permute.xlu1 %9522  ;;  %v9530_v37 = vunpack.i.h.bf16 %v13000_v55  ;;  %v13139_v4 = vsel %vm245_vm11, %v2483_v14, %v13025_v7  ;;  %v9529_v2 = vunpack.i.l.bf16 %v13000_v55  ;;  %v4426_v11 = vrot.slane %v4174_v5, 4  ;;  %v27_v5 = vld [vmem:[%s16584_s1] sm:$0x3] }
 0x2c1   :  { %17216 = vst [vmem:[#allocation81_spill] sm:$0xff] %v13139_v4  ;;  %v4419_v9 = vrot.slane %v3703_v27, 4  ;;  %v4425_v54 = vrot.slane %v4167_v29, 4  ;;  %v2172_v1 = vsel %vm233_vm5, %v17218_v23, %v9510_v3  ;;  %v2165_v17 = vsel %vm233_vm5, %v17219_v19, %v9509_v57  ;;  %v17220_v29 = vld [vmem:[#allocation46_spill] sm:$0xff] }
 0x2c2   :  { %v13111_v62 = vpop.permute.xlu0 %9562  ;;  %v2166_v22 = vsel %vm235_vm6, %v2165_v17, %v9529_v2  ;;  %v2173_v18 = vsel %vm235_vm6, %v2172_v1, %v9530_v37  ;;  %v9555_v45 = vunpack.i.h.bf16 %v13088_v36  ;;  %v9554_v46 = vunpack.i.l.bf16 %v13088_v36 }
 0x2c3   :  { %v9565_v52 = vunpack.i.h.bf16 %v13111_v62  ;;  %v9564_v43 = vunpack.i.l.bf16 %v13111_v62  ;;  %v9524_v57 = vunpack.i.l.bf16 %v13101_v24 }
 0x2c4   :  { %v2437_v60 = vpop.permute.xlu1 %2436 }
 0x2c5   :  { %v2476_v25 = vsel %vm243_vm10, %v2475_v51, %v2437_v60 }
 0x2c6   :  { %v9573_v33 = vpop.permute.xlu0 %9572  ;;  %v13143_v12 = vsel %vm245_vm11, %v2476_v25, %v13068_v59  ;;  %v4434_v59 = vsel %vm2203_vm12, %v13139_v4, %v4420_v32  ;;  %v9525_v25 = vunpack.i.h.bf16 %v13101_v24  ;;  %v9540_v24 = vunpack.i.h.bf16 %v13050_v10 }
 0x2c7   :  { %17217 = vst [vmem:[#allocation43_spill] sm:$0xff] %v13143_v12  ;;  %v4433_v55 = vsel %vm2203_vm12, %v13143_v12, %v4419_v9  ;;  %v9575_v28 = vunpack.i.h.bf16 %v9573_v33  ;;  %v9574_v56 = vunpack.i.l.bf16 %v9573_v33 }
 0x2c8   :  { %v9533_v15 = vpop.permute.xlu1 %9532  ;;  %v4398_v14 = vsel %vm233_vm5, %v17220_v29, %v9525_v25 }
 0x2c9   :  { %v9535_v50 = vunpack.i.h.bf16 %v9533_v15  ;;  %v9534_v48 = vunpack.i.l.bf16 %v9533_v15  ;;  %v17222_v15 = vmov 0   ;;  %v4399_v1 = vsel %vm235_vm6, %v4398_v14, %v9540_v24 }
 0x2ca   :  { %v9583_v53 = vpop.permute.xlu0 %9582 }
 0x2cb   :  { %v3944_v7 = vsel %vm245_vm11, %v3943_v30, %v9534_v48  ;;  %v3937_v35 = vsel %vm245_vm11, %v3936_v26, %v9535_v50  ;;  %v9585_v31 = vunpack.i.h.bf16 %v9583_v53  ;;  %v9584_v36 = vunpack.i.l.bf16 %v9583_v53  ;;  %v17221_v26 = vld [vmem:[#allocation58_spill] sm:$0xff] }
 0x2cc   :  { %v9543_v8 = vpop.permute.xlu1 %9542  ;;  %v4436_v58 = vsel %vm2203_vm12, %v3944_v7, %v4426_v11  ;;  %v4435_v49 = vsel %vm2203_vm12, %v3937_v35, %v4425_v54  ;;  %v4391_v30 = vsel %vm233_vm5, %v17221_v26, %v9524_v57  ;;  %v9539_v50 = vunpack.i.l.bf16 %v13050_v10 }
 0x2cd   :  { %v9545_v16 = vunpack.i.h.bf16 %v9543_v8  ;;  %v9544_v44 = vunpack.i.l.bf16 %v9543_v8  ;;  %v4440_v39 = vpack.c.bf16 %v4436_v58, %v4434_v59  ;;  %v4439_v0 = vpack.c.bf16 %v4435_v49, %v4433_v55 }
 0x2ce   :  { %v4392_v23 = vsel %vm235_vm6, %v4391_v30, %v9539_v50 }
 0x2cf   :  { %v2167_v40 = vsel %vm237_vm7, %v2166_v22, %v9544_v44  ;;  %v2174_v63 = vsel %vm237_vm7, %v2173_v18, %v9545_v16  ;;  %4451 = vmatprep.subr.bf16.mxu1 %v4440_v39 }
 0x2d0   :  { %v2168_v41 = vsel %vm239_vm8, %v2167_v40, %v9554_v46  ;;  %v2175_v38 = vsel %vm239_vm8, %v2174_v63, %v9555_v45  ;;  %v9548_v13 = vpop.permute.xlu1 %9547  ;;  %4452 = vmatpush1.bf16.msra.mxu1 %v4439_v0 }
 0x2d1   :  { %v2176_v32 = vsel %vm241_vm9, %v2175_v38, %v9565_v52  ;;  %v2169_v60 = vsel %vm241_vm9, %v2168_v41, %v9564_v43  ;;  %v9550_v37 = vunpack.i.h.bf16 %v9548_v13  ;;  %v9549_v33 = vunpack.i.l.bf16 %v9548_v13 }
 0x2d2   :  { %v2177_v62 = vsel %vm243_vm10, %v2176_v32, %v9575_v28  ;;  %v2170_v3 = vsel %vm243_vm10, %v2169_v60, %v9574_v56 }
 0x2d3   :  { %v2178_v6 = vsel %vm245_vm11, %v2177_v62, %v9585_v31  ;;  %v2171_v20 = vsel %vm245_vm11, %v2170_v3, %v9584_v36  ;;  %v4393_v7 = vsel %vm237_vm7, %v4392_v23, %v9549_v33  ;;  %v4400_v35 = vsel %vm237_vm7, %v4399_v1, %v9550_v37 }
 0x2d4   :  { %v9558_v51 = vpop.permute.xlu1 %9557  ;;  %v2217_v61 = vpack.c.bf16 %v2178_v6, %v2178_v6  ;;  %v2216_v21 = vpack.c.bf16 %v2171_v20, %v2171_v20 }
 0x2d5   :  { %v9560_v48 = vunpack.i.h.bf16 %v9558_v51  ;;  %v9559_v2 = vunpack.i.l.bf16 %v9558_v51 }
 0x2d6   :  { %9000 = vmatprep.subr.msk.bf16.mxu0 %vm2222_vm13, %v2217_v61  ;;  %v2224_v42 = vsel %vm2222_vm13, %v2216_v21, 0 }
 0x2d7   :  { %2234 = vmatpush1.bf16.msra.mxu0 %v2224_v42  ;;  %v4394_v59 = vsel %vm239_vm8, %v4393_v7, %v9559_v2  ;;  %v4401_v8 = vsel %vm239_vm8, %v4400_v35, %v9560_v48  ;;  %v29_v48 = vld [vmem:[%s16585_s2] sm:$0xf] }
 0x2d8   :  { %v9568_v27 = vpop.permute.xlu1 %9567 }
 0x2d9   :  { %v9570_v9 = vunpack.i.h.bf16 %v9568_v27  ;;  %v9569_v54 = vunpack.i.l.bf16 %v9568_v27 }
 0x2da   :  { %9001 = vmatmul.mubr.msk.bf16.vlgmr.msra.gmra.mrb[0].mxu0 %vm2218_vm14, %v27_v5 }
 0x2db   :  { %6728 = vmatprep.mubr.bf16.mxu0 %v17222_v15  ;;  %v4395_v58 = vsel %vm241_vm9, %v4394_v59, %v9569_v54  ;;  %v4402_v55 = vsel %vm241_vm9, %v4401_v8, %v9570_v9  ;;  %v30_v9 = vld [vmem:[%s16586_s3] sm:$0xf] }
 0x2dc   :  { %v9578_v11 = vpop.permute.xlu1 %9577 }
 0x2dd   :  { %v9580_v19 = vunpack.i.h.bf16 %v9578_v11  ;;  %v9579_v17 = vunpack.i.l.bf16 %v9578_v11 }
 0x2df   :  { %v4403_v44 = vsel %vm243_vm10, %v4402_v55, %v9580_v19  ;;  %v4396_v39 = vsel %vm243_vm10, %v4395_v58, %v9579_v17 }
 0x2e0   :  { %v9588_v10 = vpop.permute.xlu1 %9587 }
 0x2e1   :  { %v9590_v49 = vunpack.i.h.bf16 %v9588_v10  ;;  %v9589_v16 = vunpack.i.l.bf16 %v9588_v10 }
 0x2e3   :  { %v4404_v0 = vsel %vm245_vm11, %v4403_v44, %v9590_v49  ;;  %v4397_v22 = vsel %vm245_vm11, %v4396_v39, %v9589_v16 }
 0x2e4   :  { %v4442_v18 = vpack.c.bf16 %v4404_v0, %v4404_v0  ;;  %v4441_v45 = vpack.c.bf16 %v4397_v22, %v4397_v22 }
 0x2e6   :  { %9010 = vmatprep.subr.msk.bf16.mxu1 %vm2222_vm13, %v4442_v18  ;;  %v4444_v46 = vsel %vm2222_vm13, %v4441_v45, 0 }
 0x2e7   :  { %4454 = vmatpush1.bf16.msra.mxu1 %v4444_v46 }
 0x2ea   :  { %9011 = vmatmul.mubr.msk.bf16.vlgmr.msra.gmra.mrb[0].mxu1 %vm2218_vm14, %v27_v5 }
 0x2eb   :  { %8913 = vmatprep.mubr.bf16.mxu1 %v17222_v15 }
 0x3ad   :  { %v2263_v53 = vpop.f32.mrb[0].mxu0 }
 0x3ae   :  { %v4490_v52 = vsel %vm2203_vm12, %v2263_v53, 0.0  ;;  %v4502_v43 = vmul.f32 %v2263_v53, %v2263_v53  ;;  %v2265_v40 = vpop.f32.mrb[1].mxu0 }
 0x3af   :  { %v4491_v63 = vsel %vm2203_vm12, %v2265_v40, 0.0  ;;  %v4503_v28 = vmul.f32 %v2265_v40, %v2265_v40  ;;  %v2267_v56 = vpop.f32.mrb[2].mxu0 }
 0x3b0   :  { %v2268_v41 = vpop.f32.mrb[3].mxu0  ;;  %v4492_v38 = vadd.f32 %v4491_v63, %v4490_v52  ;;  %v4504_v13 = vsel %vm2203_vm12, %v4502_v43, 0.0  ;;  %v17227_v56 = vld [vmem:[#allocation2_spill] sm:$0xff] }
 0x3b1   :  { %v4505_v31 = vsel %vm2203_vm12, %v4503_v28, 0.0 }
 0x3b2   :  { %4493 = vadd.xlane.f32.xlu0 %v4492_v38  ;;  %v4506_v36 = vadd.f32 %v4505_v31, %v4504_v13 }
 0x3b6   :  { %4507 = vadd.xlane.f32.xlu0 %v4506_v36 }
 0x3bd   :  { %v4483_v32 = vpop.f32.mrb[0].mxu1 }
 0x3be   :  { %v4496_v60 = vsel %vm2203_vm12, %v4483_v32, 0.0  ;;  %v4510_v62 = vmul.f32 %v4483_v32, %v4483_v32  ;;  %v4485_v3 = vpop.f32.mrb[1].mxu1 }
 0x3bf   :  { %v4497_v6 = vsel %vm2203_vm12, %v4485_v3, 0.0  ;;  %v4511_v20 = vmul.f32 %v4485_v3, %v4485_v3  ;;  %v4487_v51 = vpop.f32.mrb[2].mxu1 }
 0x3c0   :  { %v4488_v61 = vpop.f32.mrb[3].mxu1  ;;  %v4498_v21 = vadd.f32 %v4497_v6, %v4496_v60  ;;  %v4512_v42 = vsel %vm2203_vm12, %v4510_v62, 0.0  ;;  %v17228_v51 = vld [vmem:[#allocation3_spill] sm:$0xff] }
 0x3c1   :  { %v4513_v25 = vsel %vm2203_vm12, %v4511_v20, 0.0 }
 0x3c2   :  { %4499 = vadd.xlane.f32.xlu1 %v4498_v21  ;;  %v4514_v57 = vadd.f32 %v4513_v25, %v4512_v42 }
 0x3c4   :  { %4515 = vadd.xlane.f32.xlu0 %v4514_v57 }
 0x43f   :  { %v4494_v5 = vpop.xlane.xlu0 %4493 }
 0x443   :  { %v4508_v27 = vpop.xlane.xlu0 %4507 }
 0x44f   :  { %v4500_v29 = vpop.xlane.xlu1 %4499 }
 0x450   :  { %v4501_v14 = vadd.f32 %v4500_v29, %v4494_v5 }
 0x451   :  { %v4516_v26 = vpop.xlane.xlu0 %4515 }
 0x452   :  { %v4518_v30 = vmul.f32 0.001953125, %v4501_v14  ;;  %v4517_v37 = vadd.f32 %v4516_v26, %v4508_v27 }
 0x454   :  { %v4520_v33 = vmul.f32 %v4518_v30, %v4518_v30  ;;  %v4519_v15 = vmul.f32 0.001953125, %v4517_v37 }
 0x456   :  { %v4521_v24 = vsub.f32 %v4519_v15, %v4520_v33 }
 0x458   :  { %v4522_v50 = vadd.f32 1e-05, %v4521_v24 }
 0x45a   :  { %10153 = vrsqrt.f32 %v4522_v50 }
 0x464   :  { %v10154_v2 = vpop.eup %10153 }
 0x465   :  { %v4524_v11 = vmul.f32 %v10154_v2, %v29_v48 }
 0x467   :  { %4529 = vperm.xlu1 %9591, %v4524_v11   ;;  %v4525_v54 = vmul.f32 %v4524_v11, %v4518_v30 }
 0x469   :  { %v4526_v23 = vsub.f32 %v30_v9, %v4525_v54 }
 0x46b   :  { %4536 = vperm.xlu0 %9592, %v4526_v23  }
 0x4e6   :  { %v4530_v1 = vpop.permute.xlu1 %4529 }
 0x4e7   :  { %v4532_v19 = vmul.f32 %v4530_v1, %v2263_v53  ;;  %v4533_v17 = vmul.f32 %v4530_v1, %v2265_v40  ;;  %v4543_v58 = vmul.f32 %v4530_v1, %v4483_v32  ;;  %v4544_v16 = vmul.f32 %v4530_v1, %v4485_v3 }
 0x4ea   :  { %v4537_v7 = vpop.permute.xlu0 %4536 }
 0x4eb   :  { %v4539_v35 = vadd.f32 %v4537_v7, %v4532_v19  ;;  %v4540_v59 = vadd.f32 %v4537_v7, %v4533_v17  ;;  %v4545_v55 = vadd.f32 %v4543_v58, %v4537_v7  ;;  %v4546_v44 = vadd.f32 %v4544_v16, %v4537_v7 }
 0x4ed   :  { %v13219_v8 = vmax.f32 %v4539_v35, 0.0  ;;  %v13221_v10 = vmax.f32 %v4540_v59, 0.0  ;;  %v13235_v49 = vmax.f32 %v4545_v55, 0.0  ;;  %v13249_v39 = vmax.f32 %v4546_v44, 0.0 }
 0x4ef   :  { %17223 = vst [vmem:[#allocation39_spill] sm:$0xff] %v13219_v8  ;;  %17224 = vst [vmem:[#allocation74_spill] sm:$0xff] %v13221_v10  ;;  %4575 = vrot.lane.b32.xlu0 %v13221_v10, %s10162_s12  ;;  %4550 = vrot.lane.b32.xlu1 %v13219_v8, %s10166_s15 }
 0x4f0   :  { %17225 = vst [vmem:[#allocation6_spill] sm:$0xff] %v13235_v49  ;;  %17226 = vst [vmem:[#allocation10_spill] sm:$0xff] %v13249_v39 }
 0x4f3   :  { %4581 = vrot.lane.b32.xlu0 %v13221_v10, %s10159_s25  ;;  %4553 = vrot.lane.b32.xlu1 %v13219_v8, %s10162_s12 }
 0x4f7   :  { %4587 = vrot.lane.b32.xlu0 %v13221_v10, %s10160_s26  ;;  %4556 = vrot.lane.b32.xlu1 %v13219_v8, %s10165_s14 }
 0x4fb   :  { %4559 = vrot.lane.b32.xlu1 %v13219_v8, %s10159_s25  ;;  %6741 = vrot.lane.b32.xlu0 %v13235_v49, %s10162_s12 }
 0x4ff   :  { %4562 = vrot.lane.b32.xlu1 %v13219_v8, %s10164_s0  ;;  %6747 = vrot.lane.b32.xlu0 %v13235_v49, %s10159_s25 }
 0x503   :  { %4565 = vrot.lane.b32.xlu1 %v13219_v8, %s10160_s26  ;;  %6753 = vrot.lane.b32.xlu0 %v13235_v49, %s10160_s26 }
 0x507   :  { %4568 = vrot.lane.b32.xlu1 %v13219_v8, %s10163_s13  ;;  %6760 = vrot.lane.b32.xlu0 %v13249_v39, %s10166_s15 }
 0x50b   :  { %4572 = vrot.lane.b32.xlu1 %v13221_v10, %s10166_s15  ;;  %6766 = vrot.lane.b32.xlu0 %v13249_v39, %s10165_s14 }
 0x50f   :  { %4578 = vrot.lane.b32.xlu1 %v13221_v10, %s10165_s14  ;;  %6772 = vrot.lane.b32.xlu0 %v13249_v39, %s10164_s0 }
 0x513   :  { %4584 = vrot.lane.b32.xlu1 %v13221_v10, %s10164_s0  ;;  %6778 = vrot.lane.b32.xlu0 %v13249_v39, %s10163_s13 }
 0x517   :  { %4590 = vrot.lane.b32.xlu1 %v13221_v10, %s10163_s13 }
 0x51b   :  { %6738 = vrot.lane.b32.xlu1 %v13235_v49, %s10166_s15 }
 0x51f   :  { %6744 = vrot.lane.b32.xlu1 %v13235_v49, %s10165_s14 }
 0x523   :  { %6750 = vrot.lane.b32.xlu1 %v13235_v49, %s10164_s0 }
 0x527   :  { %6756 = vrot.lane.b32.xlu1 %v13235_v49, %s10163_s13 }
 0x52b   :  { %6763 = vrot.lane.b32.xlu1 %v13249_v39, %s10162_s12 }
 0x52f   :  { %6769 = vrot.lane.b32.xlu1 %v13249_v39, %s10159_s25 }
 0x533   :  { %6775 = vrot.lane.b32.xlu1 %v13249_v39, %s10160_s26 }
 0x561   :  { %v4551_v0 = vpop.permute.xlu1 %4550  ;;  %v4576_v45 = vpop.permute.xlu0 %4575 }
 0x562   :  { %v4661_v26 = vcombine.low %v13221_v10, %v4576_v45 }
 0x564   :  { %v4668_v2 = vrot.slane %v4661_v26, %v17227_v56 }
 0x565   :  { %v4554_v22 = vpop.permute.xlu1 %4553  ;;  %v4582_v53 = vpop.permute.xlu0 %4581 }
 0x566   :  { %v4593_v63 = vcombine.low %v13219_v8, %v4554_v22 }
 0x568   :  { %v4600_v31 = vrot.slane %v4593_v63, %v17227_v56 }
 0x569   :  { %v4557_v18 = vpop.permute.xlu1 %4556  ;;  %v4588_v28 = vpop.permute.xlu0 %4587 }
 0x56a   :  { %v4601_v43 = vcombine.low %v4551_v0, %v4557_v18  ;;  %v4677_v33 = vcombine.low %v4582_v53, %v4588_v28 }
 0x56c   :  { %v4608_v41 = vrot.slane %v4601_v43, %v17227_v56  ;;  %v4684_v54 = vrot.slane %v4677_v33, %v17227_v56 }
 0x56d   :  { %v4560_v46 = vpop.permute.xlu1 %4559  ;;  %v6742_v3 = vpop.permute.xlu0 %6741 }
 0x56e   :  { %v4625_v32 = vcombine.low %v4600_v31, %v4608_v41  ;;  %v4626_v27 = vcombine.high %v4600_v31, %v4608_v41 }
 0x570   :  { %v4633_v61 = vrot.slane %v4625_v32, %v17228_v51  ;;  %v4640_v15 = vrot.slane %v4626_v27, %v17228_v51 }
 0x571   :  { %v4563_v52 = vpop.permute.xlu1 %4562  ;;  %v6748_v5 = vpop.permute.xlu0 %6747 }
 0x575   :  { %v4566_v40 = vpop.permute.xlu1 %4565  ;;  %v6754_v50 = vpop.permute.xlu0 %6753 }
 0x576   :  { %v4609_v38 = vcombine.low %v4560_v46, %v4566_v40  ;;  %v6781_v46 = vcombine.low %v13235_v49, %v6742_v3  ;;  %v6797_v43 = vcombine.low %v6748_v5, %v6754_v50 }
 0x578   :  { %v4616_v60 = vrot.slane %v4609_v38, %v17227_v56  ;;  %v6788_v41 = vrot.slane %v6781_v46, %v17227_v56 }
 0x579   :  { %v4569_v13 = vpop.permute.xlu1 %4568  ;;  %v6761_v35 = vpop.permute.xlu0 %6760 }
 0x57a   :  { %v4617_v36 = vcombine.low %v4563_v52, %v4569_v13 }
 0x57c   :  { %v4624_v62 = vrot.slane %v4617_v36, %v17227_v56  ;;  %v6804_v36 = vrot.slane %v6797_v43, %v17227_v56 }
 0x57d   :  { %v4573_v6 = vpop.permute.xlu1 %4572  ;;  %v6767_v18 = vpop.permute.xlu0 %6766 }
 0x57e   :  { %v4641_v20 = vcombine.low %v4616_v60, %v4624_v62  ;;  %v4642_v25 = vcombine.high %v4616_v60, %v4624_v62 }
 0x580   :  { %v4649_v21 = vrot.slane %v4641_v20, %v17228_v51  ;;  %v4656_v30 = vrot.slane %v4642_v25, %v17228_v51 }
 0x581   :  { %v4579_v42 = vpop.permute.xlu1 %4578  ;;  %v6773_v31 = vpop.permute.xlu0 %6772 }
 0x582   :  { %v4657_v57 = vcombine.low %v4633_v61, %v4649_v21  ;;  %v4669_v29 = vcombine.low %v4573_v6, %v4579_v42  ;;  %v4658_v37 = vcombine.high %v4633_v61, %v4649_v21  ;;  %v4659_v9 = vcombine.low %v4640_v15, %v4656_v30 }
 0x583   :  { %v4660_v7 = vcombine.high %v4640_v15, %v4656_v30 }
 0x584   :  { %4737 = vrot.lane.b32.xlu0 %v4657_v57, %s10167_s16  ;;  %v4676_v24 = vrot.slane %v4669_v29, %v17227_v56  ;;  %v6857_v57 = vcombine.low %v6761_v35, %v6767_v18 }
 0x585   :  { %v4585_v14 = vpop.permute.xlu1 %4584  ;;  %v6779_v42 = vpop.permute.xlu0 %6778 }
 0x586   :  { %v4693_v23 = vcombine.low %v4668_v2, %v4676_v24  ;;  %v4694_v0 = vcombine.high %v4668_v2, %v4676_v24  ;;  %v6873_v29 = vcombine.low %v6773_v31, %v6779_v42 }
 0x588   :  { %4741 = vrot.lane.b32.xlu0 %v4658_v37, %s10167_s16  ;;  %v4701_v59 = vrot.slane %v4693_v23, %v17228_v51  ;;  %v4708_v40 = vrot.slane %v4694_v0, %v17228_v51  ;;  %v6864_v37 = vrot.slane %v6857_v57, %v17227_v56  ;;  %v6880_v50 = vrot.slane %v6873_v29, %v17227_v56 }
 0x589   :  { %v4591_v48 = vpop.permute.xlu1 %4590 }
 0x58a   :  { %v4685_v11 = vcombine.low %v4585_v14, %v4591_v48 }
 0x58c   :  { %v4692_v1 = vrot.slane %v4685_v11, %v17227_v56  ;;  %4745 = vrot.lane.b32.xlu0 %v4659_v9, %s10167_s16 }
 0x58d   :  { %v6739_v19 = vpop.permute.xlu1 %6738 }
 0x58e   :  { %v4709_v17 = vcombine.low %v4684_v54, %v4692_v1  ;;  %v4710_v16 = vcombine.high %v4684_v54, %v4692_v1 }
 0x590   :  { %v4717_v58 = vrot.slane %v4709_v17, %v17228_v51  ;;  %4749 = vrot.lane.b32.xlu0 %v4660_v7, %s10167_s16  ;;  %v4724_v53 = vrot.slane %v4710_v16, %v17228_v51 }
 0x591   :  { %v6745_v55 = vpop.permute.xlu1 %6744 }
 0x592   :  { %v4725_v44 = vcombine.low %v4701_v59, %v4717_v58  ;;  %v6789_v22 = vcombine.low %v6739_v19, %v6745_v55  ;;  %v4726_v52 = vcombine.high %v4701_v59, %v4717_v58  ;;  %v4727_v13 = vcombine.low %v4708_v40, %v4724_v53 }
 0x593   :  { %v4728_v6 = vcombine.high %v4708_v40, %v4724_v53 }
 0x594   :  { %4739 = vrot.lane.b32.xlu1 %v4725_v44, %s10167_s16  ;;  %v6796_v63 = vrot.slane %v6789_v22, %v17227_v56 }
 0x595   :  { %v6751_v45 = vpop.permute.xlu1 %6750 }
 0x596   :  { %v6813_v32 = vcombine.low %v6788_v41, %v6796_v63  ;;  %v6814_v14 = vcombine.high %v6788_v41, %v6796_v63 }
 0x598   :  { %4743 = vrot.lane.b32.xlu1 %v4726_v52, %s10167_s16  ;;  %v6821_v20 = vrot.slane %v6813_v32, %v17228_v51  ;;  %v6828_v48 = vrot.slane %v6814_v14, %v17228_v51 }
 0x599   :  { %v6757_v28 = vpop.permute.xlu1 %6756 }
 0x59a   :  { %v6805_v38 = vcombine.low %v6751_v45, %v6757_v28 }
 0x59c   :  { %v6812_v60 = vrot.slane %v6805_v38, %v17227_v56  ;;  %4747 = vrot.lane.b32.xlu1 %v4727_v13, %s10167_s16 }
 0x59d   :  { %v6764_v62 = vpop.permute.xlu1 %6763 }
 0x59e   :  { %v6829_v3 = vcombine.low %v6804_v36, %v6812_v60  ;;  %v6849_v21 = vcombine.low %v13249_v39, %v6764_v62  ;;  %v6830_v5 = vcombine.high %v6804_v36, %v6812_v60 }
 0x5a0   :  { %v6837_v61 = vrot.slane %v6829_v3, %v17228_v51  ;;  %4751 = vrot.lane.b32.xlu1 %v4728_v6, %s10167_s16  ;;  %v6856_v26 = vrot.slane %v6849_v21, %v17227_v56  ;;  %v6844_v33 = vrot.slane %v6830_v5, %v17228_v51 }
 0x5a1   :  { %v6770_v25 = vpop.permute.xlu1 %6769 }
 0x5a2   :  { %v6845_v27 = vcombine.low %v6821_v20, %v6837_v61  ;;  %v6846_v24 = vcombine.high %v6821_v20, %v6837_v61  ;;  %v6881_v2 = vcombine.low %v6856_v26, %v6864_v37  ;;  %v6847_v54 = vcombine.low %v6828_v48, %v6844_v33 }
 0x5a3   :  { %v6848_v17 = vcombine.high %v6828_v48, %v6844_v33  ;;  %v6882_v35 = vcombine.high %v6856_v26, %v6864_v37 }
 0x5a4   :  { %6925 = vrot.lane.b32.xlu0 %v6845_v27, %s10167_s16  ;;  %v6889_v23 = vrot.slane %v6881_v2, %v17228_v51 }
 0x5a5   :  { %v6776_v30 = vpop.permute.xlu1 %6775  ;;  %v6896_v55 = vrot.slane %v6882_v35, %v17228_v51 }
 0x5a6   :  { %v6865_v15 = vcombine.low %v6770_v25, %v6776_v30 }
 0x5a8   :  { %v6872_v11 = vrot.slane %v6865_v15, %v17227_v56  ;;  %6929 = vrot.lane.b32.xlu0 %v6846_v24, %s10167_s16 }
 0x5aa   :  { %v6897_v9 = vcombine.low %v6872_v11, %v6880_v50  ;;  %v6898_v19 = vcombine.high %v6872_v11, %v6880_v50 }
 0x5ac   :  { %v6905_v1 = vrot.slane %v6897_v9, %v17228_v51  ;;  %6933 = vrot.lane.b32.xlu0 %v6847_v54, %s10167_s16  ;;  %v6912_v59 = vrot.slane %v6898_v19, %v17228_v51 }
 0x5ae   :  { %v6913_v7 = vcombine.low %v6889_v23, %v6905_v1  ;;  %v6914_v58 = vcombine.high %v6889_v23, %v6905_v1  ;;  %v6915_v16 = vcombine.low %v6896_v55, %v6912_v59  ;;  %v6916_v44 = vcombine.high %v6896_v55, %v6912_v59 }
 0x5b0   :  { %6937 = vrot.lane.b32.xlu0 %v6848_v17, %s10167_s16  ;;  %6927 = vrot.lane.b32.xlu1 %v6913_v7, %s10167_s16 }
 0x5b4   :  { %6931 = vrot.lane.b32.xlu1 %v6914_v58, %s10167_s16 }
 0x5b8   :  { %6935 = vrot.lane.b32.xlu1 %v6915_v16, %s10167_s16 }
 0x5bc   :  { %6939 = vrot.lane.b32.xlu1 %v6916_v44, %s10167_s16 }
 0x5f6   :  { %v4738_v0 = vpop.permute.xlu0 %4737 }
 0x5f7   :  { %v4761_v22 = vsel %vm286_vm0, 0.0, %v4738_v0 }
 0x5f8   :  { %v4769_v18 = vsel %vm295_vm1, %v4761_v22, 0.0 }
 0x5f9   :  { %v4785_v45 = vrot.slane %v4769_v18, 7 }
 0x5fa   :  { %v4742_v46 = vpop.permute.xlu0 %4741 }
 0x5fb   :  { %v13338_v53 = vsel %vm312_vm2, 0.0, %v4785_v45  ;;  %v4763_v52 = vsel %vm286_vm0, 0.0, %v4742_v46 }
 0x5fc   :  { %v4771_v43 = vsel %vm295_vm1, %v4763_v52, 0.0  ;;  %5027 = vrot.lane.b32.xlu1 %v13338_v53, %s10168_s17  ;;  %v5955_v17 = vrot.slane %v13338_v53, 2 }
 0x5fd   :  { %v4788_v40 = vrot.slane %v4771_v43, 7 }
 0x5fe   :  { %v4746_v63 = vpop.permute.xlu0 %4745 }
 0x5ff   :  { %v13345_v28 = vsel %vm312_vm2, 0.0, %v4788_v40  ;;  %v4765_v41 = vsel %vm286_vm0, 0.0, %v4746_v63 }
 0x600   :  { %v4773_v38 = vsel %vm295_vm1, %v4765_v41, 0.0  ;;  %5031 = vrot.lane.b32.xlu1 %v13345_v28, %s10168_s17  ;;  %v5960_v44 = vrot.slane %v13345_v28, 2 }
 0x601   :  { %v4791_v13 = vrot.slane %v4773_v38, 7 }
 0x602   :  { %v4750_v31 = vpop.permute.xlu0 %4749 }
 0x603   :  { %v13352_v36 = vsel %vm312_vm2, 0.0, %v4791_v13  ;;  %v4767_v32 = vsel %vm286_vm0, 0.0, %v4750_v31 }
 0x604   :  { %v4817_v60 = vcombine.low %v13338_v53, %v13352_v36  ;;  %v4818_v62 = vcombine.high %v13338_v53, %v13352_v36  ;;  %v4775_v3 = vsel %vm295_vm1, %v4767_v32, 0.0  ;;  %5035 = vrot.lane.b32.xlu1 %v13352_v36, %s10168_s17 }
 0x605   :  { %v4794_v6 = vrot.slane %v4775_v3, 7 }
 0x606   :  { %v4740_v20 = vpop.permute.xlu1 %4739  ;;  %v13384_v37 = vrot.slane %v4817_v60, %v17227_v56  ;;  %v13392_v15 = vrot.slane %v4818_v62, %v17227_v56 }
 0x607   :  { %v13363_v61 = vsel %vm312_vm2, 0.0, %v4794_v6  ;;  %v4762_v21 = vsel %vm286_vm0, 0.0, %v4740_v20 }
 0x608   :  { %v4833_v42 = vcombine.low %v13345_v28, %v13363_v61  ;;  %v4834_v25 = vcombine.high %v13345_v28, %v13363_v61  ;;  %v4770_v57 = vsel %vm295_vm1, %v4762_v21, 0.0  ;;  %5039 = vrot.lane.b32.xlu1 %v13363_v61, %s10168_s17  ;;  %17230 = vst [vmem:[#allocation66_spill] sm:$0xff] %v13384_v37 }
 0x609   :  { %v4786_v5 = vrot.slane %v4770_v57, 7 }
 0x60a   :  { %v4744_v27 = vpop.permute.xlu1 %4743  ;;  %v13374_v29 = vrot.slane %v4833_v42, %v17227_v56  ;;  %v13377_v14 = vrot.slane %v4834_v25, %v17227_v56 }
 0x60b   :  { %v13380_v26 = vsel %vm312_vm2, %v4785_v45, %v4786_v5  ;;  %v4764_v30 = vsel %vm286_vm0, 0.0, %v4744_v27  ;;  %v13404_v23 = vsel %vm312_vm2, %v4786_v5, 0.0 }
 0x60c   :  { %17229 = vst [vmem:[#allocation69_spill] sm:$0xff] %v13374_v29  ;;  %v4772_v33 = vsel %vm295_vm1, %v4764_v30, 0.0  ;;  %5259 = vrot.lane.b32.xlu1 %v13380_v26, %s10169_s18  ;;  %5029 = vrot.lane.b32.xlu0 %v13380_v26, %s10168_s17  ;;  %v16729_v50 = vrot.slane %v13380_v26, 2  ;;  %v5494_v55 = vrot.slane %v13404_v23, 1  ;;  %v16735_v45 = vrot.slane %v13380_v26, 1 }
 0x60d   :  { %v4789_v24 = vrot.slane %v4772_v33, 7  ;;  %v17242_v12 = vcombine.high %v13384_v37, %v13374_v29 }
 0x60e   :  { %v4748_v11 = vpop.permute.xlu1 %4747  ;;  %v13420_v58 = vsel %vm1484_vm3, %v5955_v17, %v16729_v50  ;;  %v13455_v60 = vsel %vm1019_vm4, %v16735_v45, %v5494_v55 }
 0x60f   :  { %v13407_v1 = vsel %vm312_vm2, %v4788_v40, %v4789_v24  ;;  %v4766_v19 = vsel %vm286_vm0, 0.0, %v4748_v11  ;;  %v13433_v46 = vsel %vm312_vm2, %v4789_v24, 0.0  ;;  %v13709_v47 = vrot.slane %v17242_v12, %v17228_v51 }
 0x610   :  { %v4774_v7 = vsel %vm295_vm1, %v4766_v19, 0.0  ;;  %5263 = vrot.lane.b32.xlu1 %v13407_v1, %s10169_s18  ;;  %5033 = vrot.lane.b32.xlu0 %v13407_v1, %s10168_s17  ;;  %v16728_v59 = vrot.slane %v13407_v1, 2  ;;  %v5499_v32 = vrot.slane %v13433_v46, 1  ;;  %v16732_v3 = vrot.slane %v13407_v1, 1 }
 0x611   :  { %v4792_v35 = vrot.slane %v4774_v7, 7  ;;  %v17245_v12 = vcombine.low %v13392_v15, %v13377_v14 }
 0x612   :  { %v4752_v16 = vpop.permute.xlu1 %4751  ;;  %v13449_v38 = vsel %vm1484_vm3, %v5960_v44, %v16728_v59  ;;  %v13488_v11 = vsel %vm1019_vm4, %v16732_v3, %v5499_v32 }
 0x613   :  { %v13425_v0 = vsel %vm312_vm2, %v4791_v13, %v4792_v35  ;;  %v13428_v22 = vsel %vm312_vm2, %v4792_v35, 0.0  ;;  %v4768_v18 = vsel %vm286_vm0, 0.0, %v4752_v16 }
 0x614   :  { %v5504_v40 = vrot.slane %v13428_v22, 1  ;;  %5267 = vrot.lane.b32.xlu1 %v13425_v0, %s10169_s18  ;;  %5037 = vrot.lane.b32.xlu0 %v13425_v0, %s10168_s17  ;;  %v4776_v63 = vsel %vm295_vm1, %v4768_v18, 0.0  ;;  %v5502_v41 = vrot.slane %v13425_v0, 1 }
 0x615   :  { %v4795_v13 = vrot.slane %v4776_v63, 7 }
 0x616   :  { %v6926_v31 = vpop.permute.xlu0 %6925  ;;  %v13460_v62 = vsel %vm1019_vm4, %v5502_v41, %v5504_v40 }
 0x617   :  { %v13464_v20 = vsel %vm312_vm2, %v4794_v6, %v4795_v13  ;;  %v13467_v21 = vsel %vm312_vm2, %v4795_v13, 0.0  ;;  %v6949_v42 = vsel %vm286_vm0, 0.0, %v6926_v31  ;;  %v5587_v25 = vcombine.low %v13455_v60, %v13460_v62 }
 0x618   :  { %v5509_v27 = vrot.slane %v13467_v21, 1  ;;  %5271 = vrot.lane.b32.xlu1 %v13464_v20, %s10169_s18  ;;  %5041 = vrot.lane.b32.xlu0 %v13464_v20, %s10168_s17  ;;  %v5588_v30 = vcombine.high %v13455_v60, %v13460_v62  ;;  %v5507_v33 = vrot.slane %v13464_v20, 1  ;;  %v6957_v24 = vsel %vm295_vm1, %v6949_v42, 0.0 }
 0x619   :  { %v6973_v55 = vrot.slane %v6957_v24, 7  ;;  %v13503_v44 = vrot.slane %v5587_v25, %v17227_v56  ;;  %v5965_v42 = vrot.slane %v13352_v36, 2  ;;  %v5970_v25 = vrot.slane %v13363_v61, 2 }
 0x61a   :  { %v6930_v6 = vpop.permute.xlu0 %6929  ;;  %v13493_v19 = vsel %vm1019_vm4, %v5507_v33, %v5509_v27  ;;  %v13507_v40 = vrot.slane %v5588_v30, %v17227_v56 }
 0x61b   :  { %v6951_v17 = vsel %vm286_vm0, 0.0, %v6930_v6  ;;  %v5603_v7 = vcombine.low %v13488_v11, %v13493_v19  ;;  %v5604_v35 = vcombine.high %v13488_v11, %v13493_v19  ;;  %17231 = vst [vmem:[#allocation78_spill] sm:$0xff] %v13503_v44 }
 0x61c   :  { %5257 = vrot.lane.b32.xlu0 %v13338_v53, %s10169_s18  ;;  %17232 = vst [vmem:[#allocation77_spill] sm:$0xff] %v13507_v40  ;;  %v6959_v31 = vsel %vm295_vm1, %v6951_v17, 0.0  ;;  %v13528_v17 = vsel %vm312_vm2, 0.0, %v6973_v55 }
 0x61d   :  { %v13510_v63 = vrot.slane %v5603_v7, %v17227_v56  ;;  %v13513_v13 = vrot.slane %v5604_v35, %v17227_v56  ;;  %v6976_v48 = vrot.slane %v6959_v31, 7  ;;  %v8143_v8 = vrot.slane %v13528_v17, 2 }
 0x61e   :  { %v6934_v16 = vpop.permute.xlu0 %6933 }
 0x61f   :  { %v6953_v18 = vsel %vm286_vm0, 0.0, %v6934_v16  ;;  %17233 = vst [vmem:[#allocation9_spill] sm:$0xff] %v13510_v63  ;;  %17234 = vst [vmem:[#allocation13_spill] sm:$0xff] %v13513_v13  ;;  %v13558_v50 = vsel %vm312_vm2, 0.0, %v6976_v48 }
 0x620   :  { %v6961_v32 = vsel %vm295_vm1, %v6953_v18, 0.0  ;;  %5261 = vrot.lane.b32.xlu0 %v13345_v28, %s10169_s18  ;;  %v16730_v18 = vrot.slane %v13425_v0, 2  ;;  %v8148_v13 = vrot.slane %v13558_v50, 2 }
 0x621   :  { %v6979_v27 = vrot.slane %v6961_v32, 7  ;;  %v16731_v32 = vrot.slane %v13464_v20, 2 }
 0x622   :  { %v6938_v7 = vpop.permute.xlu0 %6937  ;;  %v6928_v35 = vpop.permute.xlu1 %6927 }
 0x623   :  { %v13535_v6 = vsel %vm312_vm2, 0.0, %v6979_v27  ;;  %v6955_v30 = vsel %vm286_vm0, 0.0, %v6938_v7  ;;  %v6950_v24 = vsel %vm286_vm0, 0.0, %v6928_v35  ;;  %v13550_v7 = vsel %vm1484_vm3, %v5965_v42, %v16730_v18 }
 0x624   :  { %v6963_v16 = vsel %vm295_vm1, %v6955_v30, 0.0  ;;  %v6958_v54 = vsel %vm295_vm1, %v6950_v24, 0.0  ;;  %5265 = vrot.lane.b32.xlu0 %v13352_v36, %s10169_s18  ;;  %17235 = vst [vmem:[#allocation84_spill] sm:$0xff] %v13550_v7  ;;  %v13555_v35 = vsel %vm1484_vm3, %v5970_v25, %v16731_v32 }
 0x625   :  { %v6982_v5 = vrot.slane %v6963_v16, 7  ;;  %17236 = vst [vmem:[#allocation83_spill] sm:$0xff] %v13555_v35  ;;  %v6974_v24 = vrot.slane %v6958_v54, 7 }
 0x626   :  { %v6932_v31 = vpop.permute.xlu1 %6931 }
 0x627   :  { %v13561_v30 = vsel %vm312_vm2, 0.0, %v6982_v5  ;;  %v6952_v16 = vsel %vm286_vm0, 0.0, %v6932_v31  ;;  %v13572_v43 = vsel %vm312_vm2, %v6973_v55, %v6974_v24  ;;  %v13575_v54 = vsel %vm312_vm2, %v6974_v24, 0.0 }
 0x628   :  { %v6960_v18 = vsel %vm295_vm1, %v6952_v16, 0.0  ;;  %5269 = vrot.lane.b32.xlu0 %v13363_v61, %s10169_s18  ;;  %v7682_v55 = vrot.slane %v13575_v54, 1  ;;  %v16733_v24 = vrot.slane %v13572_v43, 1 }
 0x629   :  { %v6977_v25 = vrot.slane %v6960_v18, 7 }
 0x62a   :  { %v6936_v32 = vpop.permute.xlu1 %6935 }
 0x62b   :  { %v6954_v31 = vsel %vm286_vm0, 0.0, %v6936_v32  ;;  %v13579_v59 = vsel %vm312_vm2, %v6976_v48, %v6977_v25  ;;  %v13589_v16 = vsel %vm312_vm2, %v6977_v25, 0.0  ;;  %v5501_v25 = vrot.slane %v13352_v36, 1 }
 0x62c   :  { %v6962_v42 = vsel %vm295_vm1, %v6954_v31, 0.0  ;;  %7217 = vrot.lane.b32.xlu0 %v13572_v43, %s10168_s17  ;;  %7221 = vrot.lane.b32.xlu1 %v13579_v59, %s10168_s17  ;;  %v7687_v3 = vrot.slane %v13589_v16, 1  ;;  %v17254_v44 = vrot.slane %v13579_v59, 2 }
 0x62d   :  { %v6980_v52 = vrot.slane %v6962_v42, 7 }
 0x62e   :  { %v6940_v18 = vpop.permute.xlu1 %6939  ;;  %v13767_v29 = vsel %vm1484_vm3, %v8148_v13, %v17254_v44 }
 0x62f   :  { %v13592_v48 = vsel %vm312_vm2, %v6979_v27, %v6980_v52  ;;  %v13595_v32 = vsel %vm312_vm2, %v6980_v52, 0.0  ;;  %v6956_v42 = vsel %vm286_vm0, 0.0, %v6940_v18  ;;  %v5506_v27 = vrot.slane %v13363_v61, 1  ;;  %17255 = vst [vmem:[#allocation31_spill] sm:$0xff] %v13767_v29 }
 0x630   :  { %v7692_v31 = vrot.slane %v13595_v32, 1  ;;  %v6964_v57 = vsel %vm295_vm1, %v6956_v42, 0.0  ;;  %v16734_v9 = vrot.slane %v13592_v48, 1  ;;  %7225 = vrot.lane.b32.xlu0 %v13592_v48, %s10168_s17  ;;  %v13609_v52 = vsel %vm1019_vm4, %v16733_v24, %v7682_v55 }
 0x631   :  { %v6983_v2 = vrot.slane %v6964_v57, 7  ;;  %v16737_v57 = vrot.slane %v13579_v59, 1  ;;  %v13643_v45 = vsel %vm1019_vm4, %v5506_v27, %v5507_v33  ;;  %v17239_v27 = vrot.slane %v13407_v1, 1 }
 0x632   :  { %v13614_v18 = vsel %vm1019_vm4, %v16734_v9, %v7692_v31  ;;  %v5496_v9 = vrot.slane %v13345_v28, 1 }
 0x633   :  { %v13618_v42 = vsel %vm312_vm2, %v6982_v5, %v6983_v2  ;;  %v13621_v36 = vsel %vm312_vm2, %v6983_v2, 0.0  ;;  %v7775_v61 = vcombine.low %v13609_v52, %v13614_v18  ;;  %v7776_v55 = vcombine.high %v13609_v52, %v13614_v18 }
 0x634   :  { %v7697_v24 = vrot.slane %v13621_v36, 1  ;;  %7229 = vrot.lane.b32.xlu1 %v13618_v42, %s10168_s17  ;;  %7215 = vrot.lane.b32.xlu0 %v13528_v17, %s10168_s17  ;;  %v5491_v5 = vrot.slane %v13338_v53, 1  ;;  %v13637_v2 = vsel %vm1019_vm4, %v5501_v25, %v5502_v41  ;;  %v13648_v31 = vsel %vm1019_vm4, %v16737_v57, %v7687_v3 }
 0x635   :  { %v17237_v4 = vrot.slane %v13618_v42, 1  ;;  %v17238_v25 = vrot.slane %v13380_v26, 1  ;;  %v13667_v3 = vsel %vm1019_vm4, %v5496_v9, %v17239_v27 }
 0x637   :  { %v13653_v53 = vsel %vm1019_vm4, %v17237_v4, %v7697_v24  ;;  %v13662_v33 = vsel %vm1019_vm4, %v5491_v5, %v17238_v25  ;;  %v5536_v24 = vcombine.high %v13667_v3, %v13643_v45  ;;  %v13678_v5 = vrot.slane %v7775_v61, %v17227_v56 }
 0x638   :  { %v7791_v41 = vcombine.low %v13648_v31, %v13653_v53  ;;  %v7792_v28 = vcombine.high %v13648_v31, %v13653_v53  ;;  %7219 = vrot.lane.b32.xlu1 %v13558_v50, %s10168_s17  ;;  %v5519_v4 = vcombine.low %v13662_v33, %v13637_v2  ;;  %7223 = vrot.lane.b32.xlu0 %v13535_v6, %s10168_s17 }
 0x639   :  { %17240 = vst [vmem:[#allocation7_spill] sm:$0xff] %v13678_v5  ;;  %v13681_v25 = vrot.slane %v7776_v55, %v17227_v56  ;;  %v5520_v34 = vcombine.high %v13662_v33, %v13637_v2  ;;  %v5535_v61 = vcombine.low %v13667_v3, %v13643_v45  ;;  %v5550_v49 = vrot.slane %v5536_v24, %v17227_v56 }
 0x63a   :  { %v13684_v9 = vrot.slane %v7791_v41, %v17227_v56  ;;  %v13687_v27 = vrot.slane %v7792_v28, %v17227_v56  ;;  %v13719_v39 = vrot.slane %v5519_v4, %v17227_v56  ;;  %v17246_v55 = vrot.slane %v13572_v43, 2 }
 0x63b   :  { %v13722_v10 = vrot.slane %v5535_v61, %v17227_v56  ;;  %v5534_v24 = vrot.slane %v5520_v34, %v17227_v56  ;;  %v8158_v61 = vrot.slane %v13561_v30, 2 }
 0x63c   :  { %17241 = vst [vmem:[#allocation11_spill] sm:$0xff] %v13684_v9  ;;  %v7808_v41 = vcombine.high %v13678_v5, %v13684_v9  ;;  %v7823_v28 = vcombine.low %v13681_v25, %v13687_v27  ;;  %v7824_v57 = vcombine.high %v13681_v25, %v13687_v27  ;;  %7227 = vrot.lane.b32.xlu1 %v13561_v30, %s10168_s17  ;;  %v8153_v25 = vrot.slane %v13535_v6, 2 }
 0x63d   :  { %7447 = vrot.lane.b32.xlu0 %v13572_v43, %s10169_s18  ;;  %17243 = vst [vmem:[#allocation56_spill] sm:$0xff] %v13719_v39  ;;  %17244 = vst [vmem:[#allocation29_spill] sm:$0xff] %v13722_v10  ;;  %v13728_v9 = vrot.slane %v17245_v12, %v17228_v51  ;;  %v13734_v5 = vsel %vm1484_vm3, %v8143_v8, %v17246_v55  ;;  %v17248_v27 = vrot.slane %v13592_v48, 2 }
 0x63e   :  { %17247 = vst [vmem:[#allocation17_spill] sm:$0xff] %v13734_v5  ;;  %v17250_v8 = vcombine.low %v13407_v1, %v13464_v20  ;;  %v5552_v63 = vcombine.high %v13719_v39, %v13722_v10  ;;  %v17260_v10 = vcombine.high %v13407_v1, %v13464_v20 }
 0x63f   :  { %v13739_v4 = vsel %vm1484_vm3, %v8153_v25, %v17248_v27  ;;  %v5567_v25 = vcombine.low %v5534_v24, %v5550_v49  ;;  %v17252_v27 = vrot.slane %v13618_v42, 2 }
 0x640   :  { %17249 = vst [vmem:[#allocation4_spill] sm:$0xff] %v13739_v4  ;;  %7451 = vrot.lane.b32.xlu1 %v13579_v59, %s10169_s18  ;;  %v8171_v12 = vcombine.low %v13734_v5, %v13739_v4  ;;  %v8172_v34 = vcombine.high %v13734_v5, %v13739_v4  ;;  %v13753_v55 = vrot.slane %v17250_v8, %v17227_v56  ;;  %v17258_v4 = vmov 0.0  }
 0x641   :  { %7455 = vrot.lane.b32.xlu0 %v13592_v48, %s10169_s18  ;;  %v13760_v40 = vsel %vm1484_vm3, %v8158_v61, %v17252_v27  ;;  %v17256_v8 = vcombine.low %v13380_v26, %v13425_v0  ;;  %v13777_v5 = vcombine.high %v13709_v47, %v17258_v4  ;;  %v5568_v61 = vcombine.high %v5534_v24, %v5550_v49 }
 0x642   :  { %17251 = vst [vmem:[#allocation20_spill] sm:$0xff] %v13753_v55  ;;  %17253 = vst [vmem:[#allocation5_spill] sm:$0xff] %v13760_v40  ;;  %v8187_v27 = vcombine.low %v13767_v29, %v13760_v40  ;;  %v8188_v39 = vcombine.high %v13767_v29, %v13760_v40  ;;  %v13785_v44 = vcombine.high %v13728_v9, %v17258_v4 }
 0x643   :  { %v13773_v37 = vrot.slane %v17256_v8, %v17227_v56  ;;  %v17259_v49 = vcombine.high %v13380_v26, %v13425_v0  ;;  %v4916_v40 = vrot.slane %v17260_v10, %v17227_v56  ;;  %v13804_v29 = vrot.slane %v8171_v12, %v17227_v56 }
 0x644   :  { %7459 = vrot.lane.b32.xlu1 %v13618_v42, %s10169_s18  ;;  %v13807_v13 = vrot.slane %v8187_v27, %v17227_v56  ;;  %v17261_v12 = vcombine.high %v13392_v15, %v13377_v14  ;;  %v13828_v27 = vrot.slane %v8188_v39, %v17227_v56  ;;  %v13846_v15 = vrot.slane %v5552_v63, %v17228_v51 }
 0x645   :  { %17257 = vst [vmem:[#allocation23_spill] sm:$0xff] %v13773_v37  ;;  %v4918_v8 = vcombine.high %v13773_v37, %v13753_v55  ;;  %v4900_v24 = vrot.slane %v17259_v49, %v17227_v56  ;;  %7445 = vrot.lane.b32.xlu0 %v13528_v17, %s10169_s18  ;;  %v13810_v55 = vrot.slane %v5567_v25, %v17228_v51 }
 0x646   :  { %v13813_v37 = vrot.slane %v7823_v28, %v17228_v51  ;;  %v13816_v49 = vrot.slane %v8172_v34, %v17227_v56  ;;  %v13825_v7 = vrot.slane %v17261_v12, %v17228_v51  ;;  %v13857_v12 = vrot.slane %v5568_v61, %v17228_v51 }
 0x647   :  { %v13819_v10 = vrot.slane %v4918_v8, %v17228_v51  ;;  %v4933_v35 = vcombine.low %v4900_v24, %v4916_v40  ;;  %v4934_v25 = vcombine.high %v4900_v24, %v4916_v40  ;;  %v13854_v24 = vrot.slane %v7808_v41, %v17228_v51 }
 0x648   :  { %7449 = vrot.lane.b32.xlu1 %v13558_v50, %s10169_s18  ;;  %v13860_v28 = vrot.slane %v7824_v57, %v17228_v51  ;;  %v13872_v41 = vcombine.high %v13825_v7, %v17258_v4  ;;  %v13907_v14 = vcombine.high %v13813_v37, %v17258_v4  ;;  %v5963_v57 = vrot.slane %v13433_v46, 2 }
 0x649   :  { %v13838_v8 = vcombine.high %v13819_v10, %v17258_v4  ;;  %v13843_v39 = vrot.slane %v4933_v35, %v17228_v51  ;;  %7453 = vrot.lane.b32.xlu0 %v13535_v6, %s10169_s18  ;;  %v13851_v40 = vrot.slane %v4934_v25, %v17228_v51  ;;  %v5958_v35 = vrot.slane %v13404_v23, 2 }
 0x64a   :  { %17262 = vst [vmem:[#allocation57_spill] sm:$0xff] %v13907_v14  ;;  %v5968_v23 = vrot.slane %v13428_v22, 2  ;;  %v13926_v46 = vcombine.high %v13857_v12, %v17258_v4  ;;  %v13930_v22 = vcombine.high %v13860_v28, %v17258_v4  ;;  %v17269_v34 = vrot.slane %v13425_v0, 2 }
 0x64b   :  { %v13866_v63 = vcombine.high %v13843_v39, %v17258_v4  ;;  %v13876_v61 = vcombine.high %v13851_v40, %v17258_v4  ;;  %v8146_v0 = vrot.slane %v13575_v54, 2  ;;  %v7073_v54 = vcombine.low %v13572_v43, %v13592_v48 }
 0x64c   :  { %7457 = vrot.lane.b32.xlu1 %v13561_v30, %s10169_s18  ;;  %17264 = vst [vmem:[#allocation36_spill] sm:$0xff] %v13926_v46  ;;  %17265 = vst [vmem:[#allocation59_spill] sm:$0xff] %v13930_v22  ;;  %v13949_v14 = vsel %vm1484_vm3, %v17269_v34, %v5968_v23  ;;  %v17271_v34 = vcombine.low %v13528_v17, %v13535_v6  ;;  %v8161_v22 = vrot.slane %v13621_v36, 2 }
 0x64d   :  { %5727 = vrot.lane.b32.xlu0 %v13455_v60, %s10169_s18  ;;  %v13903_v60 = vcombine.high %v13810_v55, %v17258_v4  ;;  %v14011_v46 = vrot.slane %v7073_v54, %v17227_v56 }
 0x64e   :  { %v13973_v23 = vrot.slane %v17271_v34, %v17227_v56 }
 0x64f   :  { %17280 = vst [vmem:[#allocation28_spill] sm:$0xff] %v14011_v46 }
 0x650   :  { %5731 = vrot.lane.b32.xlu1 %v13488_v11, %s10169_s18  ;;  %v17263_v11 = vrot.slane %v13380_v26, 2  ;;  %v5973_v26 = vrot.slane %v13467_v21, 2  ;;  %17272 = vst [vmem:[#allocation18_spill] sm:$0xff] %v13973_v23 }
 0x651   :  { %5735 = vrot.lane.b32.xlu0 %v13460_v62, %s10169_s18  ;;  %v13944_v62 = vcombine.high %v13854_v24, %v17258_v4 }
 0x652   :  { %v13916_v25 = vsel %vm1484_vm3, %v17263_v11, %v5958_v35  ;;  %v17266_v35 = vrot.slane %v13407_v1, 2  ;;  %v13940_v11 = vcombine.high %v13846_v15, %v17258_v4 }
 0x653   :  { %17268 = vst [vmem:[#allocation52_spill] sm:$0xff] %v13944_v62  ;;  %v7090_v62 = vcombine.high %v13579_v59, %v13618_v42 }
 0x654   :  { %5739 = vrot.lane.b32.xlu1 %v13493_v19, %s10169_s18  ;;  %v13936_v19 = vsel %vm1484_vm3, %v17266_v35, %v5963_v57  ;;  %17267 = vst [vmem:[#allocation15_spill] sm:$0xff] %v13940_v11  ;;  %v17270_v57 = vrot.slane %v13464_v20, 2  ;;  %v17273_v20 = vcombine.low %v13558_v50, %v13561_v30 }
 0x655   :  { %6191 = vrot.lane.b32.xlu0 %v13916_v25, %s10168_s17  ;;  %v14034_v11 = vrot.slane %v7090_v62, %v17227_v56  ;;  %v17285_v62 = vrot.slane %v13592_v48, 2 }
 0x656   :  { %v13962_v35 = vsel %vm1484_vm3, %v17270_v57, %v5973_v26  ;;  %v13979_v26 = vrot.slane %v17273_v20, %v17227_v56  ;;  %v17275_v57 = vcombine.high %v13528_v17, %v13535_v6  ;;  %v17277_v20 = vcombine.high %v13558_v50, %v13561_v30 }
 0x657   :  { %17283 = vst [vmem:[#allocation30_spill] sm:$0xff] %v14034_v11 }
 0x658   :  { %6195 = vrot.lane.b32.xlu1 %v13936_v19, %s10168_s17  ;;  %17274 = vst [vmem:[#allocation22_spill] sm:$0xff] %v13979_v26  ;;  %v13991_v34 = vrot.slane %v17275_v57, %v17227_v56  ;;  %v13997_v1 = vrot.slane %v17277_v20, %v17227_v56  ;;  %v7074_v57 = vcombine.high %v13572_v43, %v13592_v48 }
 0x659   :  { %6199 = vrot.lane.b32.xlu0 %v13949_v14, %s10168_s17 }
 0x65a   :  { %17276 = vst [vmem:[#allocation54_spill] sm:$0xff] %v13991_v34  ;;  %17278 = vst [vmem:[#allocation25_spill] sm:$0xff] %v13997_v1 }
 0x65c   :  { %6203 = vrot.lane.b32.xlu1 %v13962_v35, %s10168_s17 }
 0x65d   :  { %7915 = vrot.lane.b32.xlu0 %v13609_v52, %s10169_s18  ;;  %v7089_v52 = vcombine.low %v13579_v59, %v13618_v42 }
 0x65f   :  { %v14014_v20 = vrot.slane %v7089_v52, %v17227_v56 }
 0x660   :  { %7919 = vrot.lane.b32.xlu1 %v13648_v31, %s10169_s18  ;;  %v17279_v31 = vrot.slane %v13572_v43, 2 }
 0x661   :  { %7923 = vrot.lane.b32.xlu0 %v13614_v18, %s10169_s18  ;;  %17281 = vst [vmem:[#allocation60_spill] sm:$0xff] %v14014_v20  ;;  %v14031_v18 = vrot.slane %v7074_v57, %v17227_v56  ;;  %v17284_v57 = vrot.slane %v13579_v59, 2 }
 0x662   :  { %v14004_v21 = vsel %vm1484_vm3, %v17279_v31, %v8146_v0  ;;  %v8151_v0 = vrot.slane %v13589_v16, 2  ;;  %v8156_v31 = vrot.slane %v13595_v32, 2  ;;  %v17292_v32 = vrot.slane %v13579_v59, 1 }
 0x663   :  { %17282 = vst [vmem:[#allocation61_spill] sm:$0xff] %v14031_v18  ;;  %v17296_v59 = vrot.slane %v13618_v42, 1 }
 0x664   :  { %7927 = vrot.lane.b32.xlu1 %v13653_v53, %s10169_s18  ;;  %v14048_v54 = vsel %vm1484_vm3, %v17284_v57, %v8151_v0  ;;  %v14053_v16 = vsel %vm1484_vm3, %v17285_v62, %v8156_v31  ;;  %v17286_v53 = vrot.slane %v13618_v42, 2  ;;  %v7689_v62 = vrot.slane %v13535_v6, 1 }
 0x665   :  { %8379 = vrot.lane.b32.xlu0 %v14004_v21, %s10168_s17 }
 0x666   :  { %v14062_v36 = vsel %vm1484_vm3, %v17286_v53, %v8161_v22  ;;  %v17288_v22 = vld [vmem:[#allocation84_spill] sm:$0xff]  ;;  %v7684_v53 = vrot.slane %v13558_v50, 1  ;;  %v7694_v50 = vrot.slane %v13561_v30, 1 }
 0x667   :  { %v17300_v30 = vld [vmem:[#allocation4_spill] sm:$0xff] }
 0x668   :  { %8383 = vrot.lane.b32.xlu1 %v14048_v54, %s10168_s17 }
 0x669   :  { %8387 = vrot.lane.b32.xlu0 %v14053_v16, %s10168_s17 }
 0x66c   :  { %8391 = vrot.lane.b32.xlu1 %v14062_v36, %s10168_s17 }
 0x66d   :  { %5725 = vrot.lane.b32.xlu0 %v13662_v33, %s10169_s18 }
 0x66e   :  { %v14072_v0 = vpop.permute.xlu1 %5027 }
 0x66f   :  { %17287 = vst [vmem:[#allocation49_spill] sm:$0xff] %v14072_v0  ;;  %v17307_v0 = vld [vmem:[#allocation20_spill] sm:$0xff] }
 0x670   :  { %5729 = vrot.lane.b32.xlu1 %v13667_v3, %s10169_s18  ;;  %v7679_v3 = vrot.slane %v13528_v17, 1  ;;  %v14101_v17 = vsel %vm1019_vm4, %v7684_v53, %v17292_v32  ;;  %v14120_v32 = vsel %vm1019_vm4, %v7694_v50, %v17296_v59  ;;  %v17302_v59 = vld [vmem:[#allocation5_spill] sm:$0xff] }
 0x671   :  { %5733 = vrot.lane.b32.xlu0 %v13637_v2, %s10169_s18  ;;  %v17289_v2 = vrot.slane %v13572_v43, 1 }
 0x672   :  { %v14082_v33 = vpop.permute.xlu1 %5031 }
 0x673   :  { %v14088_v31 = vsel %vm1019_vm4, %v7679_v3, %v17289_v2  ;;  %v17294_v3 = vrot.slane %v13592_v48, 1  ;;  %v17297_v48 = vld [vmem:[#allocation17_spill] sm:$0xff] }
 0x674   :  { %5737 = vrot.lane.b32.xlu1 %v13643_v45, %s10169_s18  ;;  %v17290_v45 = vld [vmem:[#allocation83_spill] sm:$0xff] }
 0x675   :  { %6189 = vrot.lane.b32.xlu0 %v13420_v58, %s10168_s17  ;;  %v14108_v2 = vsel %vm1019_vm4, %v7689_v62, %v17294_v3  ;;  %v17299_v3 = vld [vmem:[#allocation31_spill] sm:$0xff] }
 0x676   :  { %v14103_v43 = vpop.permute.xlu1 %5035 }
 0x677   :  { %17293 = vst [vmem:[#allocation32_spill] sm:$0xff] %v14103_v43 }
 0x678   :  { %6193 = vrot.lane.b32.xlu1 %v13449_v38, %s10168_s17 }
 0x679   :  { %6197 = vrot.lane.b32.xlu0 %v17288_v22, %s10168_s17 }
 0x67a   :  { %v14126_v53 = vpop.permute.xlu1 %5039 }
 0x67c   :  { %6201 = vrot.lane.b32.xlu1 %v17290_v45, %s10168_s17 }
 0x67d   :  { %7913 = vrot.lane.b32.xlu0 %v14088_v31, %s10169_s18 }
 0x67e   :  { %v14095_v57 = vpop.permute.xlu0 %5029  ;;  %v14136_v50 = vpop.permute.xlu1 %5259 }
 0x67f   :  { %17291 = vst [vmem:[#allocation72_spill] sm:$0xff] %v14095_v57 }
 0x680   :  { %7917 = vrot.lane.b32.xlu1 %v14101_v17, %s10169_s18 }
 0x681   :  { %7921 = vrot.lane.b32.xlu0 %v14108_v2, %s10169_s18 }
 0x682   :  { %v14115_v6 = vpop.permute.xlu0 %5033  ;;  %v14148_v11 = vpop.permute.xlu1 %5263 }
 0x683   :  { %17295 = vst [vmem:[#allocation73_spill] sm:$0xff] %v14115_v6 }
 0x684   :  { %7925 = vrot.lane.b32.xlu1 %v14120_v32, %s10169_s18 }
 0x685   :  { %8377 = vrot.lane.b32.xlu0 %v17297_v48, %s10168_s17 }
 0x686   :  { %v14128_v62 = vpop.permute.xlu0 %5037  ;;  %v14158_v46 = vpop.permute.xlu1 %5267 }
 0x687   :  { %17298 = vst [vmem:[#allocation75_spill] sm:$0xff] %v14128_v62  ;;  %v17306_v62 = vld [vmem:[#allocation23_spill] sm:$0xff] }
 0x688   :  { %8381 = vrot.lane.b32.xlu1 %v17299_v3, %s10168_s17  ;;  %v17308_v43 = vcombine.low %v17306_v62, %v17307_v0 }
 0x689   :  { %8385 = vrot.lane.b32.xlu0 %v17300_v30, %s10168_s17 }
 0x68a   :  { %v14134_v42 = vpop.permute.xlu0 %5041  ;;  %v14170_v34 = vpop.permute.xlu1 %5271  ;;  %v14186_v6 = vrot.slane %v17308_v43, %v17228_v51 }
 0x68b   :  { %17301 = vst [vmem:[#allocation79_spill] sm:$0xff] %v14134_v42 }
 0x68c   :  { %8389 = vrot.lane.b32.xlu1 %v17302_v59, %s10168_s17  ;;  %17309 = vst [vmem:[#allocation85_spill] sm:$0xff] %v14186_v6  ;;  %v4949_v0 = vcombine.high %v14186_v6, %v17258_v4 }
 0x68d   :  { %6419 = vrot.lane.b32.xlu0 %v13420_v58, %s10169_s18 }
 0x68e   :  { %v14142_v52 = vpop.permute.xlu0 %5257 }
 0x690   :  { %6421 = vrot.lane.b32.xlu1 %v13916_v25, %s10169_s18 }
 0x691   :  { %6423 = vrot.lane.b32.xlu0 %v13449_v38, %s10169_s18 }
 0x692   :  { %v14150_v18 = vpop.permute.xlu0 %5261 }
 0x694   :  { %6425 = vrot.lane.b32.xlu1 %v13936_v19, %s10169_s18 }
 0x695   :  { %6427 = vrot.lane.b32.xlu0 %v17288_v22, %s10169_s18 }
 0x696   :  { %v14156_v20 = vpop.permute.xlu0 %5265 }
 0x698   :  { %6429 = vrot.lane.b32.xlu1 %v13949_v14, %s10169_s18 }
 0x699   :  { %6431 = vrot.lane.b32.xlu0 %v17290_v45, %s10169_s18 }
 0x69a   :  { %v14164_v1 = vpop.permute.xlu0 %5269 }
 0x69c   :  { %6433 = vrot.lane.b32.xlu1 %v13962_v35, %s10169_s18 }
 0x69d   :  { %8607 = vrot.lane.b32.xlu0 %v17297_v48, %s10169_s18  ;;  %v17310_v48 = vld [vmem:[#allocation66_spill] sm:$0xff] }
 0x69e   :  { %v14172_v26 = vpop.permute.xlu0 %7217  ;;  %v14178_v23 = vpop.permute.xlu1 %7221 }
 0x69f   :  { %17303 = vst [vmem:[#allocation41_spill] sm:$0xff] %v14172_v26  ;;  %17304 = vst [vmem:[#allocation82_spill] sm:$0xff] %v14178_v23  ;;  %v17311_v26 = vld [vmem:[#allocation69_spill] sm:$0xff] }
 0x6a0   :  { %8609 = vrot.lane.b32.xlu1 %v14004_v21, %s10169_s18 }
 0x6a1   :  { %8611 = vrot.lane.b32.xlu0 %v17299_v3, %s10169_s18  ;;  %v17312_v3 = vcombine.low %v17310_v48, %v17311_v26  ;;  %v8256_v48 = vcombine.high %v14048_v54, %v14062_v36 }
 0x6a2   :  { %v14180_v57 = vpop.permute.xlu0 %7225 }
 0x6a3   :  { %17305 = vst [vmem:[#allocation44_spill] sm:$0xff] %v14180_v57  ;;  %v14196_v42 = vrot.slane %v17312_v3, %v17228_v51 }
 0x6a4   :  { %8613 = vrot.lane.b32.xlu1 %v14048_v54, %s10169_s18 }
 0x6a5   :  { %8615 = vrot.lane.b32.xlu0 %v17300_v30, %s10169_s18  ;;  %17313 = vst [vmem:[#allocation48_spill] sm:$0xff] %v14196_v42  ;;  %v4881_v43 = vcombine.high %v14196_v42, %v17258_v4  ;;  %v8240_v42 = vcombine.high %v14004_v21, %v14053_v16 }
 0x6a6   :  { %v14198_v23 = vpop.permute.xlu1 %7229  ;;  %v14200_v57 = vpop.permute.xlu0 %7215 }
 0x6a7   :  { %17314 = vst [vmem:[#allocation24_spill] sm:$0xff] %v14200_v57  ;;  %v9608_v30 = vpack.i.bf16 %v4949_v0, %v4881_v43  ;;  %v17318_v0 = vpack.i.bf16 %v13819_v10, %v13709_v47  ;;  %v17319_v43 = vpack.i.bf16 %v13838_v8, %v13777_v5  ;;  %v8254_v10 = vrot.slane %v8240_v42, %v17227_v56 }
 0x6a8   :  { %8617 = vrot.lane.b32.xlu1 %v14053_v16, %s10169_s18  ;;  %v6000_v5 = vcombine.high %v13449_v38, %v17290_v45  ;;  %v17320_v8 = vpack.i.bf16 %v13843_v39, %v13728_v9  ;;  %v6051_v39 = vcombine.low %v13916_v25, %v13949_v14 }
 0x6a9   :  { %8619 = vrot.lane.b32.xlu0 %v17302_v59, %s10169_s18  ;;  %v6068_v59 = vcombine.high %v13936_v19, %v13962_v35 }
 0x6aa   :  { %v14210_v62 = vpop.permute.xlu1 %7219  ;;  %v14212_v26 = vpop.permute.xlu0 %7223 }
 0x6ab   :  { %17315 = vst [vmem:[#allocation62_spill] sm:$0xff] %v14210_v62  ;;  %17316 = vst [vmem:[#allocation53_spill] sm:$0xff] %v14212_v26  ;;  %v8255_v26 = vcombine.low %v14048_v54, %v14062_v36  ;;  %v6082_v47 = vrot.slane %v6068_v59, %v17227_v56  ;;  %v8239_v54 = vcombine.low %v14004_v21, %v14053_v16 }
 0x6ac   :  { %8621 = vrot.lane.b32.xlu1 %v14062_v36, %s10169_s18  ;;  %v17321_v36 = vpack.i.bf16 %v13866_v63, %v13785_v44  ;;  %v5984_v59 = vcombine.high %v13420_v58, %v17288_v22  ;;  %v6014_v21 = vrot.slane %v6000_v5, %v17227_v56  ;;  %v17322_v44 = vpack.i.bf16 %v13851_v40, %v13825_v7 }
 0x6ad   :  { %9609 = vrot.lane.b32.xlu0 %v9608_v30, %s10163_s13  ;;  %v6052_v30 = vcombine.high %v13916_v25, %v13949_v14  ;;  %v17323_v14 = vpack.i.bf16 %v13876_v61, %v13872_v41  ;;  %v6059_v40 = vrot.slane %v6051_v39, %v17227_v56  ;;  %v5983_v5 = vcombine.low %v13420_v58, %v17288_v22 }
 0x6ae   :  { %v14219_v3 = vpop.permute.xlu1 %7227  ;;  %v5998_v25 = vrot.slane %v5984_v59, %v17227_v56  ;;  %v17324_v41 = vpack.i.bf16 %v13846_v15, %v13854_v24  ;;  %v17326_v15 = vcombine.low %v13816_v49, %v13828_v27 }
 0x6af   :  { %v14221_v6 = vpop.permute.xlu0 %7447  ;;  %v6066_v42 = vrot.slane %v6052_v30, %v17227_v56  ;;  %v5999_v30 = vcombine.low %v13449_v38, %v17290_v45 }
 0x6b0   :  { %17317 = vst [vmem:[#allocation63_spill] sm:$0xff] %v14221_v6  ;;  %9594 = vrot.lane.b32.xlu1 %v17318_v0, %s10160_s26  ;;  %v8270_v6 = vrot.slane %v8256_v48, %v17227_v56  ;;  %v6067_v48 = vcombine.low %v13936_v19, %v13962_v35  ;;  %v8263_v19 = vrot.slane %v8255_v26, %v17227_v56 }
 0x6b1   :  { %9614 = vrot.lane.b32.xlu0 %v17319_v43, %s10164_s0  ;;  %v6099_v63 = vcombine.low %v6066_v42, %v6082_v47  ;;  %v8247_v43 = vrot.slane %v8239_v54, %v17227_v56  ;;  %v6031_v45 = vcombine.low %v5998_v25, %v6014_v21  ;;  %v17325_v54 = vpack.i.bf16 %v13810_v55, %v13813_v37 }
 0x6b2   :  { %v14238_v57 = vpop.permute.xlu1 %7451  ;;  %v8287_v9 = vcombine.low %v8254_v10, %v8270_v6  ;;  %v6075_v16 = vrot.slane %v6067_v48, %v17227_v56  ;;  %v6007_v48 = vrot.slane %v5999_v30, %v17227_v56  ;;  %v14314_v24 = vrot.slane %v17326_v15, %v17228_v51  ;;  %v17329_v30 = vld [vmem:[#allocation29_spill] sm:$0xff] }
 0x6b3   :  { %v14242_v62 = vpop.permute.xlu0 %7455  ;;  %v8272_v38 = vcombine.high %v8247_v43, %v8263_v19  ;;  %v14299_v61 = vrot.slane %v6099_v63, %v17228_v51  ;;  %v8288_v59 = vcombine.high %v8254_v10, %v8270_v6  ;;  %v14324_v55 = vrot.slane %v6031_v45, %v17228_v51 }
 0x6b4   :  { %9599 = vrot.lane.b32.xlu1 %v17320_v8, %s10159_s25  ;;  %v14287_v7 = vrot.slane %v8287_v9, %v17228_v51  ;;  %v6084_v58 = vcombine.high %v6059_v40, %v6075_v16  ;;  %v5991_v9 = vrot.slane %v5983_v5, %v17227_v56  ;;  %v17328_v63 = vpack.i.bf16 %v13857_v12, %v13860_v28 }
 0x6b5   :  { %9619 = vrot.lane.b32.xlu0 %v17321_v36, %s10165_s14  ;;  %v14320_v37 = vrot.slane %v8272_v38, %v17228_v51  ;;  %v14340_v45 = vrot.slane %v8288_v59, %v17228_v51  ;;  %v17333_v12 = vcombine.high %v13804_v29, %v13807_v13  ;;  %v6083_v15 = vcombine.low %v6059_v40, %v6075_v16  ;;  %v17338_v16 = vld [vmem:[#allocation9_spill] sm:$0xff] }
 0x6b6   :  { %v14263_v0 = vpop.permute.xlu1 %7459  ;;  %v9653_v36 = vpack.i.bf16 %v14287_v7, %v14299_v61  ;;  %v14331_v6 = vrot.slane %v6084_v58, %v17228_v51  ;;  %v6016_v10 = vcombine.high %v5991_v9, %v6007_v48 }
 0x6b7   :  { %v14268_v35 = vpop.permute.xlu0 %7445 }
 0x6b8   :  { %9604 = vrot.lane.b32.xlu1 %v17322_v44, %s10162_s12  ;;  %v6100_v44 = vcombine.high %v6066_v42, %v6082_v47  ;;  %v8271_v47 = vcombine.low %v8247_v43, %v8263_v19  ;;  %v9643_v28 = vpack.i.bf16 %v14320_v37, %v14331_v6  ;;  %v6030_v19 = vrot.slane %v6016_v10, %v17228_v51 }
 0x6b9   :  { %9624 = vrot.lane.b32.xlu0 %v17323_v14, %s10166_s15  ;;  %v17330_v14 = vld [vmem:[#allocation56_spill] sm:$0xff] }
 0x6ba   :  { %v14284_v26 = vpop.permute.xlu1 %7449  ;;  %v5551_v5 = vcombine.low %v17330_v14, %v17329_v30  ;;  %v14352_v58 = vrot.slane %v6100_v44, %v17228_v51 }
 0x6bb   :  { %v14292_v8 = vpop.permute.xlu0 %7453 }
 0x6bc   :  { %9629 = vrot.lane.b32.xlu1 %v17324_v41, %s10160_s26  ;;  %v9658_v41 = vpack.i.bf16 %v14314_v24, %v14324_v55  ;;  %v9663_v59 = vpack.i.bf16 %v14340_v45, %v14352_v58  ;;  %v14365_v14 = vrot.slane %v5551_v5, %v17228_v51 }
 0x6bd   :  { %9634 = vrot.lane.b32.xlu0 %v17325_v54, %s10159_s25  ;;  %v8218_v54 = vrot.slane %v17333_v12, %v17228_v51 }
 0x6be   :  { %v14306_v22 = vpop.permute.xlu1 %7457  ;;  %17336 = vst [vmem:[#allocation19_spill] sm:$0xff] %v14365_v14  ;;  %v5583_v12 = vcombine.high %v14365_v14, %v17258_v4 }
 0x6bf   :  { %v14317_v39 = vpop.permute.xlu0 %5727  ;;  %v9648_v10 = vpack.i.bf16 %v8218_v54, %v6030_v19 }
 0x6c0   :  { %17327 = vst [vmem:[#allocation27_spill] sm:$0xff] %v14317_v39  ;;  %9654 = vrot.lane.b32.xlu1 %v9653_v36, %s10159_s25  ;;  %v6032_v36 = vcombine.high %v5998_v25, %v6014_v21  ;;  %v17337_v21 = vld [vmem:[#allocation78_spill] sm:$0xff]  ;;  %v17379_v39 = vld [vmem:[#allocation53_spill] sm:$0xff] }
 0x6c1   :  { %9639 = vrot.lane.b32.xlu0 %v17328_v63, %s10162_s12  ;;  %v17335_v63 = vcombine.high %v13816_v49, %v13828_v27  ;;  %v17339_v25 = vcombine.low %v17337_v21, %v17338_v16  ;;  %v14382_v27 = vrot.slane %v6083_v15, %v17228_v51  ;;  %v7707_v15 = vcombine.low %v14088_v31, %v14108_v2 }
 0x6c2   :  { %v14335_v38 = vpop.permute.xlu1 %5731  ;;  %v6046_v49 = vrot.slane %v6032_v36, %v17228_v51 }
 0x6c3   :  { %17331 = vst [vmem:[#allocation35_spill] sm:$0xff] %v14335_v38  ;;  %v14342_v42 = vpop.permute.xlu0 %5735  ;;  %v8234_v30 = vrot.slane %v17335_v63, %v17228_v51  ;;  %v14371_v40 = vrot.slane %v17339_v25, %v17228_v51  ;;  %17343 = vst [vmem:[#allocation86_spill] sm:$0xff] %v14382_v27 }
 0x6c4   :  { %17332 = vst [vmem:[#allocation26_spill] sm:$0xff] %v14342_v42  ;;  %9659 = vrot.lane.b32.xlu1 %v9658_v41, %s10159_s25  ;;  %v14376_v41 = vrot.slane %v8271_v47, %v17228_v51  ;;  %v6015_v47 = vcombine.low %v5991_v9, %v6007_v48  ;;  %v6115_v48 = vcombine.high %v14382_v27, %v17258_v4 }
 0x6c5   :  { %9644 = vrot.lane.b32.xlu0 %v9643_v28, %s10160_s26  ;;  %17340 = vst [vmem:[#allocation16_spill] sm:$0xff] %v14371_v40  ;;  %v9668_v28 = vpack.i.bf16 %v8234_v30, %v6046_v49  ;;  %v5651_v63 = vcombine.high %v14371_v40, %v17258_v4  ;;  %v7723_v9 = vcombine.low %v14101_v17, %v14120_v32 }
 0x6c6   :  { %v14356_v43 = vpop.permute.xlu1 %5739  ;;  %17342 = vst [vmem:[#allocation51_spill] sm:$0xff] %v14376_v41  ;;  %v8303_v36 = vcombine.high %v14376_v41, %v17258_v4  ;;  %v17349_v41 = vcombine.low %v13804_v29, %v13807_v13  ;;  %v6048_v29 = vcombine.high %v6030_v19, %v17258_v4  ;;  %v8305_v13 = vcombine.high %v14287_v7, %v17258_v4 }
 0x6c7   :  { %17334 = vst [vmem:[#allocation14_spill] sm:$0xff] %v14356_v43  ;;  %v14373_v44 = vpop.permute.xlu0 %6191 }
 0x6c8   :  { %17341 = vst [vmem:[#allocation21_spill] sm:$0xff] %v14373_v44  ;;  %9664 = vrot.lane.b32.xlu1 %v9663_v59, %s10162_s12  ;;  %v7708_v59 = vcombine.high %v14088_v31, %v14108_v2  ;;  %v14413_v44 = vrot.slane %v17349_v41, %v17228_v51  ;;  %v9688_v2 = vpack.i.bf16 %v8303_v36, %v6115_v48 }
 0x6c9   :  { %9649 = vrot.lane.b32.xlu0 %v9648_v10, %s10160_s26  ;;  %v17346_v10 = vld [vmem:[#allocation57_spill] sm:$0xff]  ;;  %v14435_v41 = vrot.slane %v7723_v9, %v17227_v56  ;;  %v8304_v48 = vcombine.high %v14320_v37, %v17258_v4  ;;  %v5365_v9 = vcombine.low %v14148_v11, %v14170_v34  ;;  %v17358_v37 = vld [vmem:[#allocation36_spill] sm:$0xff] }
 0x6ca   :  { %v14384_v5 = vpop.permute.xlu1 %6195  ;;  %v17347_v14 = vpack.i.bf16 %v13903_v60, %v17346_v10  ;;  %17350 = vst [vmem:[#allocation8_spill] sm:$0xff] %v14413_v44  ;;  %v8236_v60 = vcombine.high %v8218_v54, %v17258_v4  ;;  %v14423_v10 = vrot.slane %v7707_v15, %v17227_v56  ;;  %v8235_v36 = vcombine.high %v14413_v44, %v17258_v4  ;;  %v17356_v54 = vld [vmem:[#allocation52_spill] sm:$0xff] }
 0x6cb   :  { %17344 = vst [vmem:[#allocation55_spill] sm:$0xff] %v14384_v5  ;;  %v14390_v25 = vpop.permute.xlu0 %6199 }
 0x6cc   :  { %17345 = vst [vmem:[#allocation12_spill] sm:$0xff] %v14390_v25  ;;  %9669 = vrot.lane.b32.xlu1 %v9668_v28, %s10162_s12  ;;  %v9673_v28 = vpack.i.bf16 %v5651_v63, %v5583_v12  ;;  %v14426_v12 = vrot.slane %v7708_v59, %v17227_v56  ;;  %v5297_v63 = vcombine.low %v14150_v18, %v14164_v1 }
 0x6cd   :  { %9684 = vrot.lane.b32.xlu0 %v17347_v14, %s10165_s14  ;;  %v14419_v14 = vrot.slane %v6015_v47, %v17228_v51  ;;  %v9708_v19 = vpack.i.bf16 %v8236_v60, %v6048_v29  ;;  %v6117_v59 = vcombine.high %v14299_v61, %v17258_v4  ;;  %v6116_v60 = vcombine.high %v14331_v6, %v17258_v4  ;;  %v17359_v29 = vld [vmem:[#allocation59_spill] sm:$0xff] }
 0x6ce   :  { %v14407_v40 = vpop.permute.xlu1 %6203  ;;  %v14463_v61 = vcombine.high %v14324_v55, %v17258_v4  ;;  %v5349_v6 = vcombine.low %v14136_v50, %v14158_v46  ;;  %v5298_v55 = vcombine.high %v14150_v18, %v14164_v1  ;;  %v5366_v1 = vcombine.high %v14148_v11, %v14170_v34 }
 0x6cf   :  { %17348 = vst [vmem:[#allocation70_spill] sm:$0xff] %v14407_v40  ;;  %v14415_v31 = vpop.permute.xlu0 %7915  ;;  %17352 = vst [vmem:[#allocation80_spill] sm:$0xff] %v14419_v14  ;;  %v6047_v7 = vcombine.high %v14419_v14, %v17258_v4  ;;  %v17360_v14 = vpack.i.bf16 %v17358_v37, %v17359_v29  ;;  %v9713_v27 = vpack.i.bf16 %v8305_v13, %v6117_v59  ;;  %v17363_v59 = vld [vmem:[#allocation73_spill] sm:$0xff] }
 0x6d0   :  { %17351 = vst [vmem:[#allocation50_spill] sm:$0xff] %v14415_v31  ;;  %9674 = vrot.lane.b32.xlu1 %v9673_v28, %s10163_s13  ;;  %v5281_v28 = vcombine.low %v14142_v52, %v14156_v20  ;;  %v8237_v31 = vcombine.high %v14314_v24, %v17258_v4  ;;  %v5067_v13 = vcombine.low %v14082_v33, %v14126_v53  ;;  %v17362_v24 = vld [vmem:[#allocation79_spill] sm:$0xff] }
 0x6d1   :  { %9689 = vrot.lane.b32.xlu0 %v9688_v2, %s10163_s13  ;;  %v17355_v2 = vld [vmem:[#allocation15_spill] sm:$0xff]  ;;  %v14490_v29 = vcombine.high %v14352_v58, %v17258_v4  ;;  %v14495_v18 = vrot.slane %v5365_v9, %v17227_v56  ;;  %v17368_v58 = vld [vmem:[#allocation72_spill] sm:$0xff]  ;;  %v5136_v11 = vcombine.high %v17363_v59, %v17362_v24  ;;  %v8306_v34 = vcombine.high %v14340_v45, %v17258_v4 }
 0x6d2   :  { %v14439_v47 = vpop.permute.xlu1 %7919  ;;  %v17357_v44 = vpack.i.bf16 %v17355_v2, %v17356_v54  ;;  %v14478_v54 = vrot.slane %v5297_v63, %v17227_v56  ;;  %v5282_v63 = vcombine.high %v14142_v52, %v14156_v20  ;;  %v5350_v20 = vcombine.high %v14136_v50, %v14158_v46 }
 0x6d3   :  { %17353 = vst [vmem:[#allocation76_spill] sm:$0xff] %v14439_v47  ;;  %v14443_v15 = vpop.permute.xlu0 %7923  ;;  %v14515_v52 = vrot.slane %v5349_v6, %v17227_v56  ;;  %v5312_v9 = vrot.slane %v5298_v55, %v17227_v56  ;;  %v14532_v6 = vrot.slane %v5067_v13, %v17227_v56  ;;  %v5380_v55 = vrot.slane %v5366_v1, %v17227_v56 }
 0x6d4   :  { %17354 = vst [vmem:[#allocation71_spill] sm:$0xff] %v14443_v15  ;;  %9679 = vrot.lane.b32.xlu1 %v17357_v44, %s10164_s0  ;;  %v6050_v15 = vcombine.high %v6046_v49, %v17258_v4  ;;  %v8238_v44 = vcombine.high %v8234_v30, %v17258_v4  ;;  %v5135_v49 = vcombine.low %v17363_v59, %v17362_v24 }
 0x6d5   :  { %9694 = vrot.lane.b32.xlu0 %v17360_v14, %s10166_s15  ;;  %v9698_v14 = vpack.i.bf16 %v8235_v36, %v6047_v7  ;;  %v9703_v30 = vpack.i.bf16 %v8304_v48, %v6116_v60  ;;  %v14500_v36 = vrot.slane %v5281_v28, %v17227_v56  ;;  %v17365_v7 = vld [vmem:[#allocation32_spill] sm:$0xff]  ;;  %v17366_v48 = vld [vmem:[#allocation49_spill] sm:$0xff]  ;;  %v5068_v24 = vcombine.high %v14082_v33, %v14126_v53 }
 0x6d6   :  { %v14480_v2 = vpop.permute.xlu1 %7927  ;;  %v5051_v60 = vcombine.low %v17366_v48, %v17365_v7  ;;  %v14527_v45 = vrot.slane %v5135_v49, %v17227_v56  ;;  %v9728_v50 = vpack.i.bf16 %v8238_v44, %v6050_v15  ;;  %v5382_v59 = vcombine.high %v14515_v52, %v14495_v18 }
 0x6d7   :  { %17361 = vst [vmem:[#allocation64_spill] sm:$0xff] %v14480_v2  ;;  %v14486_v37 = vpop.permute.xlu0 %8379  ;;  %v5314_v28 = vcombine.high %v14500_v36, %v14478_v54  ;;  %v5052_v33 = vcombine.high %v17366_v48, %v17365_v7  ;;  %v5150_v44 = vrot.slane %v5136_v11, %v17227_v56  ;;  %v5364_v13 = vrot.slane %v5350_v20, %v17227_v56  ;;  %v17374_v20 = vld [vmem:[#allocation44_spill] sm:$0xff] }
 0x6d8   :  { %17364 = vst [vmem:[#allocation68_spill] sm:$0xff] %v14486_v37  ;;  %9699 = vrot.lane.b32.xlu1 %v9698_v14, %s10163_s13  ;;  %v17367_v37 = vld [vmem:[#allocation75_spill] sm:$0xff]  ;;  %v14542_v53 = vrot.slane %v5051_v60, %v17227_v56  ;;  %v14558_v7 = vrot.slane %v5068_v24, %v17227_v56  ;;  %v9718_v60 = vpack.i.bf16 %v8237_v31, %v14463_v61 }
 0x6d9   :  { %v5119_v47 = vcombine.low %v17368_v58, %v17367_v37  ;;  %9709 = vrot.lane.b32.xlu0 %v9708_v19, %s10164_s0  ;;  %v5120_v19 = vcombine.high %v17368_v58, %v17367_v37  ;;  %v17371_v37 = vld [vmem:[#allocation82_spill] sm:$0xff]  ;;  %v5397_v11 = vcombine.low %v5364_v13, %v5380_v55  ;;  %v14572_v24 = vrot.slane %v5382_v59, %v17228_v51 }
 0x6da   :  { %v14520_v14 = vpop.permute.xlu1 %8383  ;;  %v7323_v1 = vcombine.low %v17371_v37, %v14198_v23  ;;  %v5084_v58 = vcombine.high %v14542_v53, %v14532_v6  ;;  %v9723_v31 = vpack.i.bf16 %v8306_v34, %v14490_v29  ;;  %v17377_v29 = vld [vmem:[#allocation62_spill] sm:$0xff] }
 0x6db   :  { %17369 = vst [vmem:[#allocation67_spill] sm:$0xff] %v14520_v14  ;;  %v14529_v46 = vpop.permute.xlu0 %8387  ;;  %v5296_v14 = vrot.slane %v5282_v63, %v17227_v56  ;;  %v14545_v15 = vrot.slane %v5119_v47, %v17227_v56  ;;  %v14555_v63 = vrot.slane %v5314_v28, %v17228_v51  ;;  %v5134_v47 = vrot.slane %v5120_v19, %v17227_v56 }
 0x6dc   :  { %17370 = vst [vmem:[#allocation42_spill] sm:$0xff] %v14529_v46  ;;  %9704 = vrot.lane.b32.xlu1 %v9703_v30, %s10164_s0  ;;  %v17375_v46 = vld [vmem:[#allocation41_spill] sm:$0xff]  ;;  %v14575_v19 = vrot.slane %v5052_v33, %v17227_v56  ;;  %v14580_v61 = vrot.slane %v7323_v1, %v17227_v56  ;;  %v7255_v34 = vcombine.low %v17377_v29, %v14219_v3 }
 0x6dd   :  { %9714 = vrot.lane.b32.xlu0 %v9713_v27, %s10165_s14  ;;  %v5329_v49 = vcombine.low %v5296_v14, %v5312_v9  ;;  %v5152_v48 = vcombine.high %v14545_v15, %v14527_v45  ;;  %v7307_v28 = vcombine.low %v17375_v46, %v17374_v20  ;;  %v5330_v2 = vcombine.high %v5296_v14, %v5312_v9 }
 0x6de   :  { %v14552_v30 = vpop.permute.xlu1 %8391  ;;  %v5099_v9 = vcombine.low %v14575_v19, %v14558_v7  ;;  %v5398_v14 = vcombine.high %v5364_v13, %v5380_v55  ;;  %v14610_v55 = vrot.slane %v5397_v11, %v17228_v51  ;;  %v5168_v13 = vcombine.high %v5134_v47, %v5150_v44 }
 0x6df   :  { %17372 = vst [vmem:[#allocation40_spill] sm:$0xff] %v14552_v30  ;;  %v14563_v27 = vpop.permute.xlu0 %5725  ;;  %v5167_v30 = vcombine.low %v5134_v47, %v5150_v44  ;;  %v14589_v59 = vrot.slane %v5329_v49, %v17228_v51  ;;  %v14598_v1 = vrot.slane %v5152_v48, %v17228_v51  ;;  %v14607_v49 = vrot.slane %v5084_v58, %v17228_v51 }
 0x6e0   :  { %17373 = vst [vmem:[#allocation33_spill] sm:$0xff] %v14563_v27  ;;  %9729 = vrot.lane.b32.xlu1 %v9728_v50, %s10166_s15  ;;  %v7485_v27 = vcombine.low %v14284_v26, %v14306_v22  ;;  %v9748_v50 = vpack.i.bf16 %v14572_v24, %v14555_v63  ;;  %v7256_v58 = vcombine.high %v17377_v29, %v14219_v3 }
 0x6e1   :  { %9719 = vrot.lane.b32.xlu0 %v9718_v60, %s10165_s14  ;;  %v14601_v60 = vrot.slane %v7307_v28, %v17227_v56  ;;  %v14616_v48 = vrot.slane %v5167_v30, %v17228_v51  ;;  %v14619_v28 = vrot.slane %v5330_v2, %v17228_v51  ;;  %v9753_v47 = vpack.i.bf16 %v14610_v55, %v14589_v59 }
 0x6e2   :  { %v14584_v25 = vpop.permute.xlu1 %5729  ;;  %v14626_v11 = vrot.slane %v7485_v27, %v17227_v56  ;;  %v7324_v30 = vcombine.high %v17371_v37, %v14198_v23  ;;  %v14635_v2 = vrot.slane %v7255_v34, %v17227_v56  ;;  %v9733_v5 = vpack.i.bf16 %v14598_v1, %v14607_v49 }
 0x6e3   :  { %17376 = vst [vmem:[#allocation65_spill] sm:$0xff] %v14584_v25  ;;  %v14595_v33 = vpop.permute.xlu0 %5733  ;;  %v7469_v25 = vcombine.low %v14268_v35, %v14292_v8  ;;  %v14642_v3 = vrot.slane %v5398_v14, %v17228_v51  ;;  %v5100_v27 = vcombine.high %v14575_v19, %v14558_v7  ;;  %v14653_v23 = vrot.slane %v5099_v9, %v17228_v51 }
 0x6e4   :  { %17378 = vst [vmem:[#allocation37_spill] sm:$0xff] %v14595_v33  ;;  %9749 = vrot.lane.b32.xlu1 %v9748_v50, %s10160_s26  ;;  %v17380_v33 = vld [vmem:[#allocation24_spill] sm:$0xff]  ;;  %v7340_v50 = vcombine.high %v14601_v60, %v14580_v61  ;;  %v7308_v37 = vcombine.high %v17375_v46, %v17374_v20  ;;  %v7486_v19 = vcombine.high %v14284_v26, %v14306_v22 }
 0x6e5   :  { %v7239_v42 = vcombine.low %v17380_v33, %v17379_v39  ;;  %9724 = vrot.lane.b32.xlu0 %v9723_v31, %s10166_s15  ;;  %17383 = vst [vmem:[#allocation46_spill] sm:$0xff] %v14642_v3  ;;  %v7240_v29 = vcombine.high %v17380_v33, %v17379_v39  ;;  %v9758_v7 = vpack.i.bf16 %v14642_v3, %v14619_v28 }
 0x6e6   :  { %v14628_v44 = vpop.permute.xlu1 %5737  ;;  %v14664_v39 = vrot.slane %v5168_v13, %v17228_v51  ;;  %v7553_v34 = vcombine.low %v14238_v57, %v14263_v0  ;;  %v9738_v26 = vpack.i.bf16 %v14616_v48, %v14653_v23  ;;  %v17387_v22 = vcombine.high %v14101_v17, %v14120_v32  ;;  %v17389_v32 = vld [vmem:[#allocation63_spill] sm:$0xff] }
 0x6e7   :  { %17381 = vst [vmem:[#allocation45_spill] sm:$0xff] %v14628_v44  ;;  %v14637_v31 = vpop.permute.xlu0 %6189  ;;  %v14649_v44 = vrot.slane %v7469_v25, %v17227_v56  ;;  %v14658_v14 = vrot.slane %v7239_v42, %v17227_v56  ;;  %v14667_v25 = vrot.slane %v7256_v58, %v17227_v56  ;;  %v14676_v42 = vrot.slane %v7340_v50, %v17228_v51 }
 0x6e8   :  { %17382 = vst [vmem:[#allocation47_spill] sm:$0xff] %v14637_v31  ;;  %9754 = vrot.lane.b32.xlu1 %v9753_v47, %s10159_s25  ;;  %v14693_v13 = vrot.slane %v17387_v22, %v17227_v56  ;;  %v7254_v50 = vrot.slane %v7240_v29, %v17227_v56  ;;  %v7470_v58 = vcombine.high %v14268_v35, %v14292_v8 }
 0x6e9   :  { %9734 = vrot.lane.b32.xlu0 %v9733_v5, %s10160_s26  ;;  %v7502_v46 = vcombine.high %v14649_v44, %v14626_v11  ;;  %17385 = vst [vmem:[#allocation3_spill] sm:$0xff] %v14676_v42  ;;  %v14679_v5 = vrot.slane %v7324_v30, %v17227_v56  ;;  %v7272_v9 = vcombine.high %v14658_v14, %v14635_v2 }
 0x6ea   :  { %v14673_v20 = vpop.permute.xlu1 %6193  ;;  %v17388_v47 = vcombine.high %v17337_v21, %v17338_v16  ;;  %v7740_v31 = vcombine.high %v14423_v10, %v14435_v41  ;;  %v7322_v17 = vrot.slane %v7308_v37, %v17227_v56  ;;  %v7537_v22 = vcombine.low %v17389_v32, %v14242_v62 }
 0x6eb   :  { %17384 = vst [vmem:[#allocation58_spill] sm:$0xff] %v14673_v20  ;;  %v14685_v33 = vpop.permute.xlu0 %6197  ;;  %v14712_v35 = vrot.slane %v5100_v27, %v17228_v51  ;;  %v7287_v8 = vcombine.low %v7254_v50, %v14667_v25  ;;  %v14716_v29 = vrot.slane %v7486_v19, %v17227_v56  ;;  %v14723_v37 = vrot.slane %v7502_v46, %v17228_v51  ;;  %v17394_v46 = vld [vmem:[#allocation18_spill] sm:$0xff] }
 0x6ec   :  { %17386 = vst [vmem:[#allocation84_spill] sm:$0xff] %v14685_v33  ;;  %9759 = vrot.lane.b32.xlu1 %v9758_v7, %s10162_s12  ;;  %v14703_v30 = vrot.slane %v17388_v47, %v17228_v51  ;;  %v7355_v7 = vcombine.low %v7322_v17, %v14679_v5  ;;  %v14734_v19 = vrot.slane %v7272_v9, %v17228_v51 }
 0x6ed   :  { %9739 = vrot.lane.b32.xlu0 %v9738_v26, %s10159_s25  ;;  %17391 = vst [vmem:[#allocation17_spill] sm:$0xff] %v14723_v37  ;;  %v14727_v26 = vrot.slane %v7553_v34, %v17227_v56  ;;  %v9743_v47 = vpack.i.bf16 %v14664_v39, %v14712_v35  ;;  %v7755_v33 = vcombine.low %v14426_v12, %v14693_v13  ;;  %v17395_v34 = vld [vmem:[#allocation22_spill] sm:$0xff] }
 0x6ee   :  { %v14718_v21 = vpop.permute.xlu1 %6201  ;;  %v9763_v16 = vpack.i.bf16 %v14676_v42, %v14703_v30  ;;  %17393 = vst [vmem:[#allocation4_spill] sm:$0xff] %v14734_v19  ;;  %v14739_v20 = vrot.slane %v7470_v58, %v17227_v56  ;;  %v14753_v9 = vrot.slane %v7740_v31, %v17228_v51  ;;  %v14762_v43 = vrot.slane %v7287_v8, %v17228_v51 }
 0x6ef   :  { %17390 = vst [vmem:[#allocation83_spill] sm:$0xff] %v14718_v21  ;;  %v14729_v27 = vpop.permute.xlu0 %7913  ;;  %v17396_v21 = vcombine.high %v17394_v46, %v17395_v34  ;;  %v14773_v42 = vrot.slane %v7355_v7, %v17228_v51  ;;  %v7538_v8 = vcombine.high %v17389_v32, %v14242_v62  ;;  %v5151_v7 = vcombine.low %v14545_v15, %v14527_v45 }
 0x6f0   :  { %17392 = vst [vmem:[#allocation31_spill] sm:$0xff] %v14729_v27  ;;  %9764 = vrot.lane.b32.xlu1 %v9763_v16, %s10160_s26  ;;  %v14749_v27 = vrot.slane %v7537_v22, %v17227_v56  ;;  %v7517_v58 = vcombine.low %v14739_v20, %v14716_v29  ;;  %v7554_v22 = vcombine.high %v14238_v57, %v14263_v0  ;;  %v17399_v57 = vld [vmem:[#allocation77_spill] sm:$0xff] }
 0x6f1   :  { %v14746_v40 = vrot.slane %v17396_v21, %v17228_v51  ;;  %9744 = vrot.lane.b32.xlu0 %v9743_v47, %s10162_s12  ;;  %v9768_v31 = vpack.i.bf16 %v14753_v9, %v14734_v19  ;;  %v17400_v0 = vld [vmem:[#allocation13_spill] sm:$0xff]  ;;  %v7288_v19 = vcombine.high %v7254_v50, %v14667_v25  ;;  %v7356_v32 = vcombine.high %v7322_v17, %v14679_v5  ;;  %v17406_v5 = vld [vmem:[#allocation54_spill] sm:$0xff] }
 0x6f2   :  { %v14757_v38 = vpop.permute.xlu1 %7917  ;;  %v7570_v21 = vcombine.high %v14749_v27, %v14727_v26  ;;  %v14796_v62 = vrot.slane %v7517_v58, %v17228_v51  ;;  %v5083_v15 = vcombine.low %v14542_v53, %v14532_v6  ;;  %v7756_v25 = vcombine.high %v14426_v12, %v14693_v13  ;;  %v17407_v50 = vld [vmem:[#allocation25_spill] sm:$0xff] }
 0x6f3   :  { %17397 = vst [vmem:[#allocation5_spill] sm:$0xff] %v14757_v38  ;;  %v9783_v16 = vpack.i.bf16 %v14723_v37, %v14746_v40  ;;  %v14768_v47 = vpop.permute.xlu0 %7921  ;;  %v14777_v38 = vrot.slane %v7755_v33, %v17228_v51  ;;  %v17408_v17 = vcombine.low %v17406_v5, %v17407_v50  ;;  %v14827_v12 = vrot.slane %v5151_v7, %v17228_v51 }
 0x6f4   :  { %17398 = vst [vmem:[#allocation23_spill] sm:$0xff] %v14768_v47  ;;  %v17401_v47 = vcombine.low %v17399_v57, %v17400_v0  ;;  %17403 = vst [vmem:[#allocation66_spill] sm:$0xff] %v14796_v62  ;;  %v14805_v45 = vrot.slane %v7570_v21, %v17228_v51  ;;  %v17409_v21 = vld [vmem:[#allocation28_spill] sm:$0xff]  ;;  %v14844_v7 = vrot.slane %v5083_v15, %v17228_v51 }
 0x6f5   :  { %9784 = vrot.lane.b32.xlu1 %v9783_v16, %s10160_s26  ;;  %9769 = vrot.lane.b32.xlu0 %v9768_v31, %s10160_s26  ;;  %v9788_v33 = vpack.i.bf16 %v14777_v38, %v14762_v43  ;;  %v7568_v31 = vrot.slane %v7554_v22, %v17227_v56  ;;  %v14816_v58 = vrot.slane %v17408_v17, %v17228_v51 }
 0x6f6   :  { %v14786_v37 = vrot.slane %v17401_v47, %v17228_v51  ;;  %v14791_v16 = vpop.permute.xlu1 %7925  ;;  %17405 = vst [vmem:[#allocation29_spill] sm:$0xff] %v14805_v45  ;;  %v7552_v22 = vrot.slane %v7538_v8, %v17227_v56  ;;  %17412 = vst [vmem:[#allocation56_spill] sm:$0xff] %v14827_v12  ;;  %v5183_v15 = vcombine.high %v14827_v12, %v17258_v4 }
 0x6f7   :  { %17402 = vst [vmem:[#allocation20_spill] sm:$0xff] %v14791_v16  ;;  %v14800_v3 = vpop.permute.xlu0 %8377  ;;  %v9803_v13 = vpack.i.bf16 %v14796_v62, %v14816_v58  ;;  %17415 = vst [vmem:[#allocation57_spill] sm:$0xff] %v14844_v7 }
 0x6f8   :  { %17404 = vst [vmem:[#allocation69_spill] sm:$0xff] %v14800_v3  ;;  %v9773_v47 = vpack.i.bf16 %v14773_v42, %v14786_v37  ;;  %v17410_v3 = vld [vmem:[#allocation60_spill] sm:$0xff]  ;;  %v7585_v8 = vcombine.low %v7552_v22, %v7568_v31 }
 0x6f9   :  { %9789 = vrot.lane.b32.xlu1 %v9788_v33, %s10159_s25  ;;  %v17411_v16 = vcombine.high %v17409_v21, %v17410_v3  ;;  %v14834_v33 = vrot.slane %v7288_v19, %v17228_v51  ;;  %v17416_v19 = vcombine.high %v17399_v57, %v17400_v0  ;;  %v5115_v57 = vcombine.high %v14844_v7, %v17258_v4  ;;  %v17419_v0 = vld [vmem:[#allocation61_spill] sm:$0xff] }
 0x6fa   :  { %9774 = vrot.lane.b32.xlu0 %v9773_v47, %s10159_s25  ;;  %v14829_v53 = vpop.permute.xlu1 %8381 }
 0x6fb   :  { %v14824_v6 = vrot.slane %v17411_v16, %v17228_v51  ;;  %17413 = vst [vmem:[#allocation78_spill] sm:$0xff] %v14829_v53  ;;  %v14836_v17 = vpop.permute.xlu0 %8385  ;;  %v14841_v16 = vrot.slane %v7356_v32, %v17228_v51  ;;  %v14848_v53 = vrot.slane %v7756_v25, %v17228_v51 }
 0x6fc   :  { %17414 = vst [vmem:[#allocation9_spill] sm:$0xff] %v14836_v17  ;;  %v14855_v17 = vrot.slane %v17416_v19, %v17228_v51  ;;  %v17420_v19 = vld [vmem:[#allocation30_spill] sm:$0xff] }
 0x6fd   :  { %v9778_v47 = vpack.i.bf16 %v14805_v45, %v14824_v6  ;;  %9804 = vrot.lane.b32.xlu1 %v9803_v13, %s10159_s25  ;;  %v9808_v32 = vpack.i.bf16 %v14848_v53, %v14834_v33  ;;  %v7586_v13 = vcombine.high %v7552_v22, %v7568_v31  ;;  %v17421_v12 = vcombine.low %v17419_v0, %v17420_v19 }
 0x6fe   :  { %v14857_v56 = vpop.permute.xlu1 %8389  ;;  %v9793_v25 = vpack.i.bf16 %v14841_v16, %v14855_v17  ;;  %v7739_v22 = vcombine.low %v14423_v10, %v14435_v41 }
 0x6ff   :  { %9779 = vrot.lane.b32.xlu0 %v9778_v47, %s10160_s26  ;;  %17417 = vst [vmem:[#allocation15_spill] sm:$0xff] %v14857_v56  ;;  %v14863_v62 = vpop.permute.xlu0 %6419  ;;  %v14868_v47 = vrot.slane %v7585_v8, %v17228_v51  ;;  %v7129_v31 = vrot.slane %v17421_v12, %v17228_v51  ;;  %v9823_v56 = vpack.i.bf16 %v5183_v15, %v5115_v57 }
 0x700   :  { %17418 = vst [vmem:[#allocation52_spill] sm:$0xff] %v14863_v62  ;;  %v5184_v8 = vcombine.high %v14598_v1, %v17258_v4  ;;  %v7518_v12 = vcombine.high %v14739_v20, %v14716_v29  ;;  %v14898_v41 = vrot.slane %v7586_v13, %v17228_v51  ;;  %v5116_v1 = vcombine.high %v14607_v49, %v17258_v4  ;;  %v17426_v20 = vld [vmem:[#allocation11_spill] sm:$0xff] }
 0x701   :  { %9809 = vrot.lane.b32.xlu1 %v9808_v32, %s10162_s12  ;;  %v17422_v32 = vcombine.low %v17394_v46, %v17395_v34  ;;  %v9798_v10 = vpack.i.bf16 %v14868_v47, %v7129_v31  ;;  %v17424_v46 = vcombine.high %v17406_v5, %v17407_v50  ;;  %v5381_v15 = vcombine.low %v14515_v52, %v14495_v18 }
 0x702   :  { %v14880_v62 = vpop.permute.xlu1 %6421  ;;  %v17430_v5 = vcombine.low %v17409_v21, %v17410_v3  ;;  %v14930_v13 = vcombine.high %v14753_v9, %v17258_v4  ;;  %v7569_v18 = vcombine.low %v14749_v27, %v14727_v26  ;;  %v9828_v57 = vpack.i.bf16 %v5184_v8, %v5116_v1 }
 0x703   :  { %9794 = vrot.lane.b32.xlu0 %v9793_v25, %s10162_s12  ;;  %v14888_v7 = vrot.slane %v17422_v32, %v17228_v51  ;;  %v5313_v25 = vcombine.low %v14500_v36, %v14478_v54  ;;  %v14894_v45 = vpop.permute.xlu0 %6423  ;;  %v7068_v54 = vrot.slane %v17424_v46, %v17228_v51  ;;  %v17425_v36 = vld [vmem:[#allocation7_spill] sm:$0xff]  ;;  %v14950_v26 = vrot.slane %v7518_v12, %v17228_v51 }
 0x704   :  { %v17427_v29 = vcombine.low %v17425_v36, %v17426_v20  ;;  %v14926_v50 = vrot.slane %v17430_v5, %v17228_v51  ;;  %v14953_v27 = vrot.slane %v7739_v22, %v17228_v51  ;;  %v5117_v8 = vcombine.high %v14653_v23, %v17258_v4 }
 0x705   :  { %17423 = vst [vmem:[#allocation36_spill] sm:$0xff] %v14888_v7  ;;  %9824 = vrot.lane.b32.xlu1 %v9823_v56, %s10163_s13  ;;  %v17429_v56 = vcombine.high %v17419_v0, %v17420_v19  ;;  %v5185_v0 = vcombine.high %v14616_v48, %v17258_v4  ;;  %v14940_v19 = vcombine.high %v14888_v7, %v17258_v4 }
 0x706   :  { %v14911_v34 = vrot.slane %v17427_v29, %v17228_v51  ;;  %17431 = vst [vmem:[#allocation79_spill] sm:$0xff] %v14926_v50  ;;  %v14934_v52 = vpop.permute.xlu1 %6425  ;;  %v14943_v3 = vrot.slane %v5313_v25, %v17228_v51  ;;  %17433 = vst [vmem:[#allocation32_spill] sm:$0xff] %v14953_v27  ;;  %v7339_v48 = vcombine.low %v14601_v60, %v14580_v61 }
 0x707   :  { %9799 = vrot.lane.b32.xlu0 %v9798_v10, %s10159_s25  ;;  %v14920_v49 = vrot.slane %v17429_v56, %v17228_v51  ;;  %v14945_v21 = vpop.permute.xlu0 %6427  ;;  %v14966_v25 = vcombine.high %v14786_v37, %v17258_v4  ;;  %v14969_v12 = vrot.slane %v5381_v15, %v17228_v51  ;;  %v5186_v61 = vcombine.high %v14664_v39, %v17258_v4 }
 0x708   :  { %17428 = vst [vmem:[#allocation59_spill] sm:$0xff] %v14911_v34  ;;  %17432 = vst [vmem:[#allocation73_spill] sm:$0xff] %v14943_v3  ;;  %v14962_v32 = vcombine.high %v14911_v34, %v17258_v4  ;;  %v7137_v60 = vcombine.high %v14926_v50, %v17258_v4  ;;  %v14978_v23 = vcombine.high %v14746_v40, %v17258_v4 }
 0x709   :  { %v9813_v9 = vpack.i.bf16 %v14898_v41, %v14920_v49  ;;  %9829 = vrot.lane.b32.xlu1 %v9828_v57, %s10164_s0  ;;  %17434 = vst [vmem:[#allocation49_spill] sm:$0xff] %v14969_v12  ;;  %v7271_v22 = vcombine.low %v14658_v14, %v14635_v2  ;;  %v14983_v37 = vrot.slane %v7569_v18, %v17228_v51 }
 0x70a   :  { %v7501_v10 = vcombine.low %v14649_v44, %v14626_v11  ;;  %v14987_v1 = vpop.permute.xlu1 %6429  ;;  %v9833_v46 = vpack.i.bf16 %v5185_v0, %v5117_v8  ;;  %v9818_v36 = vpack.i.bf16 %v14950_v26, %v7068_v54  ;;  %v5345_v40 = vcombine.high %v14943_v3, %v17258_v4 }
 0x70b   :  { %9814 = vrot.lane.b32.xlu0 %v9813_v9, %s10162_s12  ;;  %17435 = vst [vmem:[#allocation75_spill] sm:$0xff] %v14983_v37  ;;  %v14989_v39 = vpop.permute.xlu0 %6431  ;;  %v14996_v20 = vcombine.high %v14953_v27, %v17258_v4  ;;  %v15000_v2 = vcombine.high %v14703_v30, %v17258_v4  ;;  %v15003_v11 = vrot.slane %v7339_v48, %v17228_v51 }
 0x70c   :  { %v5118_v44 = vcombine.high %v14712_v35, %v17258_v4  ;;  %v15010_v14 = vcombine.high %v14777_v38, %v17258_v4  ;;  %v15014_v29 = vcombine.high %v14824_v6, %v17258_v4  ;;  %v5413_v30 = vcombine.high %v14969_v12, %v17258_v4  ;;  %v17463_v12 = vld [vmem:[#allocation50_spill] sm:$0xff] }
 0x70d   :  { %17436 = vst [vmem:[#allocation72_spill] sm:$0xff] %v15003_v11  ;;  %9834 = vrot.lane.b32.xlu1 %v9833_v46, %s10165_s14  ;;  %v15021_v15 = vcombine.high %v14855_v17, %v17258_v4  ;;  %v15024_v56 = vcombine.high %v7129_v31, %v17258_v4  ;;  %v15028_v38 = vcombine.high %v14816_v58, %v17258_v4 }
 0x70e   :  { %v15031_v35 = vrot.slane %v7271_v22, %v17228_v51  ;;  %v15034_v6 = vrot.slane %v7501_v10, %v17228_v51  ;;  %v15036_v5 = vpop.permute.xlu1 %6433  ;;  %v9838_v18 = vpack.i.bf16 %v5186_v61, %v5118_v44  ;;  %v7601_v17 = vcombine.high %v14983_v37, %v17258_v4 }
 0x70f   :  { %9819 = vrot.lane.b32.xlu0 %v9818_v36, %s10162_s12  ;;  %v15040_v57 = vpop.permute.xlu0 %8607  ;;  %v9843_v31 = vpack.i.bf16 %v5413_v30, %v5345_v40  ;;  %v5346_v0 = vcombine.high %v14555_v63, %v17258_v4  ;;  %v5347_v58 = vcombine.high %v14589_v59, %v17258_v4  ;;  %v15047_v9 = vcombine.high %v7068_v54, %v17258_v4  ;;  %v17440_v59 = vld [vmem:[#allocation46_spill] sm:$0xff]  ;;  %v17443_v40 = vld [vmem:[#allocation4_spill] sm:$0xff] }
 0x710   :  { %17437 = vst [vmem:[#allocation82_spill] sm:$0xff] %v15031_v35  ;;  %17438 = vst [vmem:[#allocation44_spill] sm:$0xff] %v15034_v6  ;;  %v5414_v48 = vcombine.high %v14572_v24, %v17258_v4  ;;  %v5415_v8 = vcombine.high %v14610_v55, %v17258_v4  ;;  %v15056_v61 = vcombine.high %v14619_v28, %v17258_v4  ;;  %v17441_v24 = vld [vmem:[#allocation3_spill] sm:$0xff] }
 0x711   :  { %17439 = vst [vmem:[#allocation41_spill] sm:$0xff] %v15040_v57  ;;  %9839 = vrot.lane.b32.xlu1 %v9838_v18, %s10166_s15  ;;  %v15060_v63 = vcombine.high %v15003_v11, %v17258_v4  ;;  %v5416_v54 = vcombine.high %v17440_v59, %v17258_v4  ;;  %v15067_v22 = vcombine.high %v14773_v42, %v17258_v4 }
 0x712   :  { %v15071_v55 = vcombine.high %v17441_v24, %v17258_v4  ;;  %v15075_v28 = vcombine.high %v14841_v16, %v17258_v4  ;;  %v15077_v10 = vpop.permute.xlu1 %8609  ;;  %v9878_v46 = vpack.i.bf16 %v7601_v17, %v7137_v60  ;;  %v7533_v36 = vcombine.high %v15034_v6, %v17258_v4 }
 0x713   :  { %9844 = vrot.lane.b32.xlu0 %v9843_v31, %s10163_s13  ;;  %17442 = vst [vmem:[#allocation62_spill] sm:$0xff] %v15077_v10  ;;  %v7304_v44 = vcombine.high %v17443_v40, %v17258_v4  ;;  %v15085_v42 = vcombine.high %v15031_v35, %v17258_v4  ;;  %v15087_v30 = vpop.permute.xlu0 %8611  ;;  %v9848_v18 = vpack.i.bf16 %v5414_v48, %v5346_v0  ;;  %v17454_v35 = vld [vmem:[#allocation12_spill] sm:$0xff] }
 0x714   :  { %17444 = vst [vmem:[#allocation53_spill] sm:$0xff] %v15087_v30  ;;  %v9853_v31 = vpack.i.bf16 %v5415_v8, %v5347_v58  ;;  %v15091_v16 = vcombine.high %v14848_v53, %v17258_v4  ;;  %v15095_v60 = vcombine.high %v14920_v49, %v17258_v4  ;;  %v9858_v17 = vpack.i.bf16 %v5416_v54, %v15056_v61  ;;  %v17445_v58 = vld [vmem:[#allocation29_spill] sm:$0xff] }
 0x715   :  { %9879 = vrot.lane.b32.xlu1 %v9878_v46, %s10163_s13  ;;  %v15103_v24 = vcombine.high %v14762_v43, %v17258_v4  ;;  %v15107_v0 = vcombine.high %v14834_v33, %v17258_v4  ;;  %v9893_v53 = vpack.i.bf16 %v15067_v22, %v14966_v25  ;;  %v15116_v48 = vcombine.high %v17445_v58, %v17258_v4  ;;  %v17447_v22 = vld [vmem:[#allocation14_spill] sm:$0xff]  ;;  %v17448_v46 = vld [vmem:[#allocation35_spill] sm:$0xff] }
 0x716   :  { %v15120_v8 = vpop.permute.xlu1 %8613  ;;  %v9883_v33 = vpack.i.bf16 %v7533_v36, %v14940_v19  ;;  %v9888_v61 = vpack.i.bf16 %v14930_v13, %v7304_v44  ;;  %v15128_v25 = vcombine.high %v14868_v47, %v17258_v4  ;;  %v5833_v40 = vcombine.low %v17448_v46, %v17447_v22  ;;  %v17450_v58 = vld [vmem:[#allocation55_spill] sm:$0xff]  ;;  %v17452_v19 = vld [vmem:[#allocation26_spill] sm:$0xff] }
 0x717   :  { %9849 = vrot.lane.b32.xlu0 %v9848_v18, %s10164_s0  ;;  %17446 = vst [vmem:[#allocation24_spill] sm:$0xff] %v15120_v8  ;;  %v17449_v18 = vld [vmem:[#allocation70_spill] sm:$0xff]  ;;  %v15136_v59 = vpop.permute.xlu0 %8615  ;;  %v15140_v13 = vcombine.high %v14898_v41, %v17258_v4  ;;  %v17453_v36 = vld [vmem:[#allocation27_spill] sm:$0xff]  ;;  %v17455_v41 = vld [vmem:[#allocation21_spill] sm:$0xff] }
 0x718   :  { %v6297_v49 = vcombine.low %v17450_v58, %v17449_v18  ;;  %v6298_v43 = vcombine.high %v17450_v58, %v17449_v18  ;;  %17451 = vst [vmem:[#allocation63_spill] sm:$0xff] %v15136_v59  ;;  %v5817_v44 = vcombine.low %v17453_v36, %v17452_v19  ;;  %v5818_v47 = vcombine.high %v17453_v36, %v17452_v19  ;;  %v17456_v19 = vld [vmem:[#allocation64_spill] sm:$0xff]  ;;  %v17459_v18 = vld [vmem:[#allocation17_spill] sm:$0xff] }
 0x719   :  { %9884 = vrot.lane.b32.xlu1 %v9883_v33, %s10163_s13  ;;  %v5834_v58 = vcombine.high %v17448_v46, %v17447_v22  ;;  %v6281_v27 = vcombine.low %v17455_v41, %v17454_v35  ;;  %v6282_v11 = vcombine.high %v17455_v41, %v17454_v35  ;;  %v17457_v36 = vld [vmem:[#allocation76_spill] sm:$0xff]  ;;  %v7534_v6 = vcombine.high %v17459_v18, %v17258_v4  ;;  %v17460_v46 = vld [vmem:[#allocation66_spill] sm:$0xff]  ;;  %v17462_v22 = vld [vmem:[#allocation71_spill] sm:$0xff] }
 0x71a   :  { %v8021_v54 = vcombine.low %v17457_v36, %v17456_v19  ;;  %v15162_v34 = vpop.permute.xlu1 %8617  ;;  %v15170_v7 = vcombine.high %v17460_v46, %v17258_v4  ;;  %v17461_v35 = vld [vmem:[#allocation2_spill] sm:$0xff]  ;;  %v8005_v10 = vcombine.low %v17463_v12, %v17462_v22  ;;  %v8022_v46 = vcombine.high %v17457_v36, %v17456_v19 }
 0x71b   :  { %9854 = vrot.lane.b32.xlu0 %v9853_v31, %s10165_s14  ;;  %17458 = vst [vmem:[#allocation18_spill] sm:$0xff] %v15162_v34  ;;  %v5841_v31 = vrot.slane %v5833_v40, %v17461_v35  ;;  %v6305_v41 = vrot.slane %v6297_v49, %v17461_v35  ;;  %v6312_v33 = vrot.slane %v6298_v43, %v17461_v35  ;;  %v15175_v50 = vpop.permute.xlu0 %8619  ;;  %v17466_v34 = vld [vmem:[#allocation67_spill] sm:$0xff] }
 0x71c   :  { %v5825_v18 = vrot.slane %v5817_v44, %v17461_v35  ;;  %v5832_v3 = vrot.slane %v5818_v47, %v17461_v35  ;;  %v5848_v49 = vrot.slane %v5834_v58, %v17461_v35  ;;  %v6289_v43 = vrot.slane %v6281_v27, %v17461_v35  ;;  %v17469_v27 = vld [vmem:[#allocation68_spill] sm:$0xff] }
 0x71d   :  { %9889 = vrot.lane.b32.xlu1 %v9888_v61, %s10164_s0  ;;  %v6296_v40 = vrot.slane %v6282_v11, %v17461_v35  ;;  %v15192_v44 = vcombine.high %v14950_v26, %v17258_v4  ;;  %v8006_v47 = vcombine.high %v17463_v12, %v17462_v22  ;;  %v8029_v37 = vrot.slane %v8021_v54, %v17461_v35  ;;  %v17468_v22 = vld [vmem:[#allocation42_spill] sm:$0xff] }
 0x71e   :  { %v15197_v19 = vpop.permute.xlu1 %8621  ;;  %v9903_v61 = vpack.i.bf16 %v7534_v6, %v14978_v23  ;;  %v5849_v58 = vcombine.low %v5825_v18, %v5841_v31  ;;  %v6314_v11 = vcombine.high %v6289_v43, %v6305_v41  ;;  %v5850_v59 = vcombine.high %v5825_v18, %v5841_v31 }
 0x71f   :  { %9859 = vrot.lane.b32.xlu0 %v9858_v17, %s10166_s15  ;;  %17464 = vst [vmem:[#allocation22_spill] sm:$0xff] %v15197_v19  ;;  %v6329_v36 = vcombine.low %v6296_v40, %v6312_v33  ;;  %v17465_v17 = vld [vmem:[#allocation40_spill] sm:$0xff]  ;;  %v15204_v26 = vpop.permute.xlu0 %9609  ;;  %v6330_v8 = vcombine.high %v6296_v40, %v6312_v33  ;;  %v8013_v12 = vrot.slane %v8005_v10, %v17461_v35 }
 0x720   :  { %v8485_v57 = vcombine.low %v17466_v34, %v17465_v17  ;;  %17467 = vst [vmem:[#allocation77_spill] sm:$0xff] %v15204_v26  ;;  %v8036_v54 = vrot.slane %v8022_v46, %v17461_v35  ;;  %v5865_v23 = vcombine.low %v5832_v3, %v5848_v49  ;;  %v5866_v6 = vcombine.high %v5832_v3, %v5848_v49 }
 0x721   :  { %9894 = vrot.lane.b32.xlu1 %v9893_v53, %s10165_s14  ;;  %v8469_v19 = vcombine.low %v17469_v27, %v17468_v22  ;;  %v8486_v30 = vcombine.high %v17466_v34, %v17465_v17  ;;  %v17470_v26 = vpack.i.bf16 %v14962_v32, %v15060_v63  ;;  %v6313_v33 = vcombine.low %v6289_v43, %v6305_v41  ;;  %v17486_v17 = vld [vmem:[#allocation15_spill] sm:$0xff] }
 0x722   :  { %v8020_v10 = vrot.slane %v8006_v47, %v17461_v35  ;;  %v8037_v31 = vcombine.low %v8013_v12, %v8029_v37  ;;  %v15218_v18 = vpop.permute.xlu1 %9594  ;;  %v8470_v53 = vcombine.high %v17469_v27, %v17468_v22  ;;  %v8493_v46 = vrot.slane %v8485_v57, %v17461_v35 }
 0x723   :  { %9864 = vrot.lane.b32.xlu0 %v17470_v26, %s10163_s13  ;;  %17471 = vst [vmem:[#allocation13_spill] sm:$0xff] %v15218_v18  ;;  %v15225_v34 = vpop.permute.xlu0 %9614  ;;  %v15228_v49 = vrot.slane %v6314_v11, %v17228_v51  ;;  %v15231_v32 = vrot.slane %v6329_v36, %v17228_v51  ;;  %v8038_v63 = vcombine.high %v8013_v12, %v8029_v37  ;;  %v17498_v18 = vld [vmem:[#allocation69_spill] sm:$0xff] }
 0x724   :  { %17472 = vst [vmem:[#allocation54_spill] sm:$0xff] %v15225_v34  ;;  %v8053_v41 = vcombine.low %v8020_v10, %v8036_v54  ;;  %v8054_v43 = vcombine.high %v8020_v10, %v8036_v54  ;;  %v15235_v40 = vrot.slane %v6330_v8, %v17228_v51  ;;  %v8477_v47 = vrot.slane %v8469_v19, %v17461_v35  ;;  %v17497_v34 = vld [vmem:[#allocation9_spill] sm:$0xff] }
 0x725   :  { %9904 = vrot.lane.b32.xlu1 %v9903_v61, %s10164_s0  ;;  %v8500_v57 = vrot.slane %v8486_v30, %v17461_v35  ;;  %v17473_v27 = vpack.i.bf16 %v14996_v20, %v15085_v42  ;;  %v15244_v11 = vrot.slane %v5850_v59, %v17228_v51  ;;  %v15247_v37 = vrot.slane %v5865_v23, %v17228_v51 }
 0x726   :  { %v15250_v61 = vrot.slane %v5849_v58, %v17228_v51  ;;  %v15253_v8 = vrot.slane %v6313_v33, %v17228_v51  ;;  %v15256_v19 = vrot.slane %v8037_v31, %v17228_v51  ;;  %v15258_v30 = vpop.permute.xlu1 %9599  ;;  %v15261_v20 = vrot.slane %v5866_v6, %v17228_v51  ;;  %v17481_v31 = vld [vmem:[#allocation83_spill] sm:$0xff]  ;;  %v17492_v58 = vld [vmem:[#allocation84_spill] sm:$0xff] }
 0x727   :  { %9869 = vrot.lane.b32.xlu0 %v17473_v27, %s10163_s13  ;;  %17477 = vst [vmem:[#allocation61_spill] sm:$0xff] %v15258_v30  ;;  %v8484_v42 = vrot.slane %v8470_v53, %v17461_v35  ;;  %v8501_v59 = vcombine.low %v8477_v47, %v8493_v46  ;;  %v15264_v36 = vpop.permute.xlu0 %9619  ;;  %v17479_v26 = vpack.i.bf16 %v15010_v14, %v15103_v24  ;;  %v17482_v53 = vld [vmem:[#allocation58_spill] sm:$0xff]  ;;  %v17484_v24 = vld [vmem:[#allocation37_spill] sm:$0xff] }
 0x728   :  { %17474 = vst [vmem:[#allocation25_spill] sm:$0xff] %v15250_v61  ;;  %17475 = vst [vmem:[#allocation28_spill] sm:$0xff] %v15253_v8  ;;  %v15275_v12 = vrot.slane %v8038_v63, %v17228_v51  ;;  %v15278_v54 = vrot.slane %v8053_v41, %v17228_v51  ;;  %v15283_v6 = vrot.slane %v8054_v43, %v17228_v51  ;;  %v17485_v63 = vld [vmem:[#allocation33_spill] sm:$0xff]  ;;  %v17487_v43 = vld [vmem:[#allocation78_spill] sm:$0xff] }
 0x729   :  { %17476 = vst [vmem:[#allocation60_spill] sm:$0xff] %v15256_v19  ;;  %17478 = vst [vmem:[#allocation30_spill] sm:$0xff] %v15264_v36  ;;  %9909 = vrot.lane.b32.xlu1 %v17479_v26, %s10165_s14  ;;  %v8502_v22 = vcombine.high %v8477_v47, %v8493_v46  ;;  %v8517_v33 = vcombine.low %v8484_v42, %v8500_v57  ;;  %v8518_v10 = vcombine.high %v8484_v42, %v8500_v57  ;;  %v17491_v42 = vld [vmem:[#allocation65_spill] sm:$0xff]  ;;  %v17495_v36 = vld [vmem:[#allocation20_spill] sm:$0xff] }
 0x72a   :  { %17480 = vst [vmem:[#allocation7_spill] sm:$0xff] %v15278_v54  ;;  %v6229_v27 = vcombine.low %v17482_v53, %v17481_v31  ;;  %v17483_v14 = vpack.i.bf16 %v15071_v55, %v15000_v2  ;;  %v5749_v41 = vcombine.low %v17485_v63, %v17484_v24  ;;  %v6230_v26 = vcombine.high %v17482_v53, %v17481_v31  ;;  %v15297_v46 = vpop.permute.xlu1 %9604  ;;  %v17490_v55 = vld [vmem:[#allocation45_spill] sm:$0xff]  ;;  %v17493_v31 = vld [vmem:[#allocation47_spill] sm:$0xff] }
 0x72b   :  { %v8417_v23 = vcombine.low %v17487_v43, %v17486_v17  ;;  %17488 = vst [vmem:[#allocation11_spill] sm:$0xff] %v15297_v46  ;;  %v15301_v47 = vcombine.high %v15256_v19, %v17258_v4  ;;  %v15304_v57 = vrot.slane %v8501_v59, %v17228_v51  ;;  %v5750_v2 = vcombine.high %v17485_v63, %v17484_v24  ;;  %v15312_v3 = vpop.permute.xlu0 %9624  ;;  %v17496_v59 = vld [vmem:[#allocation5_spill] sm:$0xff] }
 0x72c   :  { %9874 = vrot.lane.b32.xlu0 %v17483_v14, %s10164_s0  ;;  %v5765_v14 = vcombine.low %v17491_v42, %v17490_v55  ;;  %v6213_v53 = vcombine.low %v17493_v31, %v17492_v58  ;;  %17494 = vst [vmem:[#allocation3_spill] sm:$0xff] %v15312_v3  ;;  %v5766_v46 = vcombine.high %v17491_v42, %v17490_v55 }
 0x72d   :  { %17489 = vst [vmem:[#allocation46_spill] sm:$0xff] %v15304_v57  ;;  %v6214_v19 = vcombine.high %v17493_v31, %v17492_v58  ;;  %v7953_v30 = vcombine.low %v17496_v59, %v17495_v36  ;;  %v8401_v24 = vcombine.low %v17498_v18, %v17497_v34  ;;  %v17499_v63 = vpack.i.bf16 %v15075_v28, %v15021_v15  ;;  %v17502_v28 = vld [vmem:[#allocation23_spill] sm:$0xff] }
 0x72e   :  { %v6237_v61 = vrot.slane %v6229_v27, %v17461_v35  ;;  %v17500_v55 = vpack.i.bf16 %v15116_v48, %v15014_v29  ;;  %v15332_v58 = vrot.slane %v8502_v22, %v17228_v51  ;;  %v15335_v42 = vrot.slane %v8517_v33, %v17228_v51  ;;  %v17503_v27 = vld [vmem:[#allocation31_spill] sm:$0xff]  ;;  %v15347_v29 = vpop.permute.xlu1 %9629 }
 0x72f   :  { %9914 = vrot.lane.b32.xlu1 %v17499_v63, %s10166_s15  ;;  %v15338_v31 = vrot.slane %v8518_v10, %v17228_v51  ;;  %v5757_v3 = vrot.slane %v5749_v41, %v17461_v35  ;;  %v6244_v15 = vrot.slane %v6230_v26, %v17461_v35  ;;  %v7937_v63 = vcombine.low %v17503_v27, %v17502_v28  ;;  %v15354_v41 = vpop.permute.xlu0 %9634 }
 0x730   :  { %9899 = vrot.lane.b32.xlu0 %v17500_v55, %s10164_s0  ;;  %17501 = vst [vmem:[#allocation4_spill] sm:$0xff] %v15335_v42  ;;  %v15345_v8 = vrot.slane %v8417_v23, %v17461_v35  ;;  %17504 = vst [vmem:[#allocation29_spill] sm:$0xff] %v15347_v29  ;;  %v5764_v48 = vrot.slane %v5750_v2, %v17461_v35  ;;  %v5773_v22 = vrot.slane %v5765_v14, %v17461_v35 }
 0x731   :  { %v6221_v33 = vrot.slane %v6213_v53, %v17461_v35  ;;  %v7954_v10 = vcombine.high %v17496_v59, %v17495_v36  ;;  %17505 = vst [vmem:[#allocation14_spill] sm:$0xff] %v15354_v41  ;;  %v5780_v26 = vrot.slane %v5766_v46, %v17461_v35  ;;  %v6228_v55 = vrot.slane %v6214_v19, %v17461_v35  ;;  %v17531_v41 = vld [vmem:[#allocation41_spill] sm:$0xff] }
 0x732   :  { %v15359_v23 = vrot.slane %v7953_v30, %v17461_v35  ;;  %v15362_v29 = vrot.slane %v8401_v24, %v17461_v35  ;;  %v17506_v2 = vpack.i.bf16 %v15170_v7, %v15028_v38  ;;  %v7938_v36 = vcombine.high %v17503_v27, %v17502_v28  ;;  %v15383_v24 = vpop.permute.xlu1 %9654 }
 0x733   :  { %v6246_v14 = vcombine.high %v6221_v33, %v6237_v61  ;;  %v8418_v46 = vcombine.high %v17487_v43, %v17486_v17  ;;  %v17507_v19 = vpack.i.bf16 %v15128_v25, %v15024_v56  ;;  %v9948_v30 = vpack.i.bf16 %v15332_v58, %v15275_v12  ;;  %v15388_v25 = vpop.permute.xlu0 %9639  ;;  %v17523_v43 = vld [vmem:[#allocation52_spill] sm:$0xff] }
 0x734   :  { %9924 = vrot.lane.b32.xlu1 %v17506_v2, %s10165_s14  ;;  %v6261_v53 = vcombine.low %v6228_v55, %v6244_v15  ;;  %v6262_v59 = vcombine.high %v6228_v55, %v6244_v15  ;;  %v15379_v7 = vrot.slane %v7937_v63, %v17461_v35  ;;  %v8434_v38 = vcombine.high %v15362_v29, %v15345_v8 }
 0x735   :  { %9919 = vrot.lane.b32.xlu0 %v17507_v19, %s10165_s14  ;;  %v5782_v28 = vcombine.high %v5757_v3, %v5773_v22  ;;  %v7968_v17 = vrot.slane %v7954_v10, %v17461_v35  ;;  %v8402_v56 = vcombine.high %v17498_v18, %v17497_v34  ;;  %17508 = vst [vmem:[#allocation35_spill] sm:$0xff] %v15388_v25  ;;  %v17527_v10 = vld [vmem:[#allocation24_spill] sm:$0xff] }
 0x736   :  { %v5797_v15 = vcombine.low %v5764_v48, %v5780_v26  ;;  %v5798_v27 = vcombine.high %v5764_v48, %v5780_v26  ;;  %v7970_v63 = vcombine.high %v15379_v7, %v15359_v23  ;;  %v17509_v55 = vpack.i.bf16 %v15091_v16, %v15107_v0  ;;  %v15408_v26 = vpop.permute.xlu1 %9659 }
 0x737   :  { %v5781_v2 = vcombine.low %v5757_v3, %v5773_v22  ;;  %v6245_v18 = vcombine.low %v6221_v33, %v6237_v61  ;;  %v7952_v34 = vrot.slane %v7938_v36, %v17461_v35  ;;  %v15402_v19 = vrot.slane %v8418_v46, %v17461_v35 }
 0x738   :  { %9929 = vrot.lane.b32.xlu1 %v17509_v55, %s10166_s15  ;;  %v17510_v48 = vpack.i.bf16 %v15192_v44, %v15047_v9  ;;  %v15411_v16 = vrot.slane %v8434_v38, %v17228_v51  ;;  %v15414_v0 = vrot.slane %v6246_v14, %v17228_v51  ;;  %v15417_v3 = vrot.slane %v6261_v53, %v17228_v51  ;;  %v15425_v9 = vpop.permute.xlu0 %9644 }
 0x739   :  { %v15420_v61 = vrot.slane %v6262_v59, %v17228_v51  ;;  %v7985_v22 = vcombine.low %v7952_v34, %v7968_v17  ;;  %v15423_v33 = vrot.slane %v8402_v56, %v17461_v35  ;;  %v15428_v44 = vrot.slane %v5782_v28, %v17228_v51 }
 0x73a   :  { %9939 = vrot.lane.b32.xlu0 %v17510_v48, %s10166_s15  ;;  %17511 = vst [vmem:[#allocation70_spill] sm:$0xff] %v15414_v0  ;;  %v15432_v36 = vcombine.high %v15304_v57, %v17258_v4  ;;  %v7986_v14 = vcombine.high %v7952_v34, %v7968_v17  ;;  %v17514_v46 = vpack.i.bf16 %v15140_v13, %v15095_v60 }
 0x73b   :  { %17512 = vst [vmem:[#allocation55_spill] sm:$0xff] %v15420_v61  ;;  %17513 = vst [vmem:[#allocation26_spill] sm:$0xff] %v15428_v44  ;;  %v15439_v53 = vrot.slane %v7970_v63, %v17228_v51  ;;  %v15442_v59 = vrot.slane %v5797_v15, %v17228_v51  ;;  %v15445_v38 = vrot.slane %v5798_v27, %v17228_v51  ;;  %v15461_v15 = vpop.permute.xlu1 %9664 }
 0x73c   :  { %9934 = vrot.lane.b32.xlu1 %v17514_v46, %s10166_s15  ;;  %v15448_v28 = vrot.slane %v5781_v2, %v17228_v51  ;;  %v15451_v56 = vrot.slane %v6245_v18, %v17228_v51  ;;  %v8449_v17 = vcombine.low %v15423_v33, %v15402_v19  ;;  %v6527_v60 = vcombine.low %v14934_v52, %v15036_v5  ;;  %v15477_v46 = vpop.permute.xlu0 %9649 }
 0x73d   :  { %17515 = vst [vmem:[#allocation27_spill] sm:$0xff] %v15439_v53  ;;  %17516 = vst [vmem:[#allocation12_spill] sm:$0xff] %v15442_v59  ;;  %v17520_v13 = vpack.i.bf16 %v15228_v49, %v15244_v11  ;;  %v9958_v27 = vpack.i.bf16 %v15411_v16, %v15439_v53  ;;  %v9953_v63 = vpack.i.bf16 %v15414_v0, %v15428_v44  ;;  %v17532_v0 = vld [vmem:[#allocation18_spill] sm:$0xff] }
 0x73e   :  { %17517 = vst [vmem:[#allocation21_spill] sm:$0xff] %v15445_v38  ;;  %17518 = vst [vmem:[#allocation64_spill] sm:$0xff] %v15448_v28  ;;  %v6459_v34 = vcombine.low %v14894_v45, %v14989_v39  ;;  %v6511_v48 = vcombine.low %v14880_v62, %v14987_v1  ;;  %v8450_v55 = vcombine.high %v15423_v33, %v15402_v19  ;;  %v17533_v53 = vld [vmem:[#allocation62_spill] sm:$0xff] }
 0x73f   :  { %17519 = vst [vmem:[#allocation76_spill] sm:$0xff] %v15451_v56  ;;  %9944 = vrot.lane.b32.xlu0 %v17520_v13, %s10160_s26  ;;  %v15480_v13 = vrot.slane %v7985_v22, %v17228_v51  ;;  %v6460_v18 = vcombine.high %v14894_v45, %v14989_v39  ;;  %v15490_v2 = vrot.slane %v7986_v14, %v17228_v51  ;;  %v17525_v39 = vld [vmem:[#allocation53_spill] sm:$0xff] }
 0x740   :  { %9959 = vrot.lane.b32.xlu1 %v9958_v27, %s10160_s26  ;;  %v6443_v57 = vcombine.low %v17523_v43, %v14945_v21  ;;  %v6528_v22 = vcombine.high %v14934_v52, %v15036_v5  ;;  %v15497_v25 = vrot.slane %v6527_v60, %v17461_v35  ;;  %v15501_v19 = vrot.slane %v8449_v17, %v17228_v51  ;;  %v17526_v27 = vld [vmem:[#allocation22_spill] sm:$0xff]  ;;  %v15511_v5 = vpop.permute.xlu1 %9669 }
 0x741   :  { %17521 = vst [vmem:[#allocation17_spill] sm:$0xff] %v15480_v13  ;;  %17522 = vst [vmem:[#allocation66_spill] sm:$0xff] %v15490_v2  ;;  %v6444_v45 = vcombine.high %v17523_v43, %v14945_v21  ;;  %v8647_v33 = vcombine.low %v17525_v39, %v15175_v50  ;;  %v8648_v14 = vcombine.high %v17525_v39, %v15175_v50  ;;  %v15523_v43 = vpop.permute.xlu0 %9684  ;;  %v17530_v39 = vld [vmem:[#allocation63_spill] sm:$0xff] }
 0x742   :  { %17524 = vst [vmem:[#allocation2_spill] sm:$0xff] %v15497_v25  ;;  %v8715_v52 = vcombine.low %v17527_v10, %v17526_v27  ;;  %v15514_v60 = vrot.slane %v6459_v34, %v17461_v35  ;;  %v15519_v17 = vrot.slane %v6511_v48, %v17461_v35  ;;  %v8716_v21 = vcombine.high %v17527_v10, %v17526_v27 }
 0x743   :  { %9949 = vrot.lane.b32.xlu0 %v9948_v30, %s10160_s26  ;;  %v6512_v30 = vcombine.high %v14880_v62, %v14987_v1  ;;  %17529 = vst [vmem:[#allocation50_spill] sm:$0xff] %v15523_v43  ;;  %v15526_v50 = vrot.slane %v6460_v18, %v17461_v35  ;;  %v8631_v44 = vcombine.low %v17531_v41, %v17530_v39 }
 0x744   :  { %17528 = vst [vmem:[#allocation71_spill] sm:$0xff] %v15519_v17  ;;  %v8632_v34 = vcombine.high %v17531_v41, %v17530_v39  ;;  %v8699_v62 = vcombine.low %v17533_v53, %v17532_v0  ;;  %v17534_v1 = vpack.i.bf16 %v15335_v42, %v15278_v54  ;;  %v15539_v10 = vrot.slane %v6443_v57, %v17461_v35 }
 0x745   :  { %v6542_v18 = vrot.slane %v6528_v22, %v17461_v35  ;;  %v6544_v48 = vcombine.high %v15519_v17, %v15497_v25  ;;  %v8700_v27 = vcombine.high %v17533_v53, %v17532_v0  ;;  %v15548_v41 = vrot.slane %v6444_v45, %v17461_v35  ;;  %v15557_v22 = vpop.permute.xlu1 %9674 }
 0x746   :  { %9969 = vrot.lane.b32.xlu1 %v17534_v1, %s10159_s25  ;;  %v15551_v39 = vrot.slane %v8647_v33, %v17461_v35  ;;  %v8662_v1 = vrot.slane %v8648_v14, %v17461_v35  ;;  %v15555_v57 = vrot.slane %v8715_v52, %v17461_v35  ;;  %17537 = vst [vmem:[#allocation42_spill] sm:$0xff] %v15557_v22 }
 0x747   :  { %9954 = vrot.lane.b32.xlu0 %v9953_v63, %s10160_s26  ;;  %v6476_v43 = vcombine.high %v15539_v10, %v15514_v60  ;;  %v6526_v0 = vrot.slane %v6512_v30, %v17461_v35  ;;  %v8730_v53 = vrot.slane %v8716_v21, %v17461_v35  ;;  %v9690_v63 = vpop.permute.xlu0 %9689  ;;  %v15564_v45 = vrot.slane %v8450_v55, %v17228_v51 }
 0x748   :  { %17535 = vst [vmem:[#allocation40_spill] sm:$0xff] %v15551_v39  ;;  %17536 = vst [vmem:[#allocation67_spill] sm:$0xff] %v15555_v57  ;;  %v6491_v33 = vcombine.low %v15548_v41, %v15526_v50  ;;  %v15569_v14 = vrot.slane %v8631_v44, %v17461_v35  ;;  %v8646_v52 = vrot.slane %v8632_v34, %v17461_v35 }
 0x749   :  { %17538 = vst [vmem:[#allocation68_spill] sm:$0xff] %v15564_v45  ;;  %v15573_v22 = vrot.slane %v8699_v62, %v17461_v35  ;;  %v17541_v30 = vpack.i.bf16 %v15235_v40, %v15261_v20  ;;  %v6559_v21 = vcombine.low %v6526_v0, %v6542_v18  ;;  %v6560_v42 = vcombine.high %v6526_v0, %v6542_v18  ;;  %v15591_v25 = vpop.permute.xlu1 %9679 }
 0x74a   :  { %17539 = vst [vmem:[#allocation83_spill] sm:$0xff] %v15569_v14  ;;  %v8714_v55 = vrot.slane %v8700_v27, %v17461_v35  ;;  %v17542_v54 = vpack.i.bf16 %v15231_v32, %v15247_v37  ;;  %v15585_v44 = vrot.slane %v6544_v48, %v17228_v51  ;;  %v8664_v34 = vcombine.high %v15569_v14, %v15551_v39 }
 0x74b   :  { %17540 = vst [vmem:[#allocation58_spill] sm:$0xff] %v15573_v22  ;;  %9984 = vrot.lane.b32.xlu1 %v17541_v30, %s10162_s12  ;;  %v8679_v62 = vcombine.low %v8646_v52, %v8662_v1  ;;  %v8680_v17 = vcombine.high %v8646_v52, %v8662_v1  ;;  %v8732_v30 = vcombine.high %v15573_v22, %v15555_v57  ;;  %17544 = vst [vmem:[#allocation33_spill] sm:$0xff] %v15591_v25  ;;  %v15593_v27 = vpop.permute.xlu0 %9694 }
 0x74c   :  { %9964 = vrot.lane.b32.xlu0 %v17542_v54, %s10159_s25  ;;  %17543 = vst [vmem:[#allocation37_spill] sm:$0xff] %v15585_v44  ;;  %v8747_v18 = vcombine.low %v8714_v55, %v8730_v53  ;;  %v8748_v35 = vcombine.high %v8714_v55, %v8730_v53  ;;  %17545 = vst [vmem:[#allocation15_spill] sm:$0xff] %v15593_v27  ;;  %v9978_v54 = vpack.i.bf16 %v15501_v19, %v15480_v13  ;;  %v17551_v13 = vld [vmem:[#allocation8_spill] sm:$0xff] }
 0x74d   :  { %v15598_v48 = vrot.slane %v6476_v43, %v17228_v51  ;;  %v9692_v14 = vunpack.i.h.bf16 %v9690_v63  ;;  %v9691_v1 = vunpack.i.l.bf16 %v9690_v63  ;;  %v17547_v52 = vpack.i.bf16 %v15420_v61, %v15445_v38 }
 0x74e   :  { %v9998_v53 = vpack.i.bf16 %v15564_v45, %v15490_v2  ;;  %v17548_v55 = vpack.i.bf16 %v15417_v3, %v15442_v59  ;;  %v15615_v0 = vrot.slane %v6491_v33, %v17228_v51  ;;  %v15618_v63 = vrot.slane %v6559_v21, %v17228_v51  ;;  %v17550_v2 = vld [vmem:[#allocation86_spill] sm:$0xff]  ;;  %v17552_v59 = vld [vmem:[#allocation80_spill] sm:$0xff] }
 0x74f   :  { %17546 = vst [vmem:[#allocation78_spill] sm:$0xff] %v15598_v48  ;;  %9994 = vrot.lane.b32.xlu1 %v17547_v52, %s10162_s12  ;;  %v10003_v43 = vpack.i.bf16 %v15585_v44, %v15598_v48  ;;  %v15621_v27 = vrot.slane %v6560_v42, %v17228_v51  ;;  %v9700_v52 = vpop.permute.xlu1 %9699  ;;  %v15624_v39 = vrot.slane %v8679_v62, %v17228_v51  ;;  %v9710_v33 = vpop.permute.xlu0 %9709  ;;  %v9652_v62 = vunpack.i.h.bf16 %v15477_v46  ;;  %v17549_v48 = vld [vmem:[#allocation51_spill] sm:$0xff] }
 0x750   :  { %9974 = vrot.lane.b32.xlu0 %v17548_v55, %s10159_s25  ;;  %v15627_v25 = vrot.slane %v8664_v34, %v17228_v51  ;;  %v15630_v55 = vrot.slane %v8732_v30, %v17228_v51  ;;  %v15633_v44 = vrot.slane %v8680_v17, %v17228_v51  ;;  %v9702_v22 = vunpack.i.h.bf16 %v9700_v52 }
 0x751   :  { %v9701_v21 = vunpack.i.l.bf16 %v9700_v52  ;;  %v15636_v57 = vrot.slane %v8747_v18, %v17228_v51  ;;  %v15639_v42 = vrot.slane %v8748_v35, %v17228_v51  ;;  %v9651_v34 = vunpack.i.l.bf16 %v15477_v46 }
 0x752   :  { %v8370_v30 = vsel %vm233_vm5, %v17549_v48, %v9692_v14  ;;  %v6182_v17 = vsel %vm233_vm5, %v17550_v2, %v9691_v1  ;;  %v9712_v38 = vunpack.i.h.bf16 %v9710_v33  ;;  %v9711_v52 = vunpack.i.l.bf16 %v9710_v33 }
 0x753   :  { %9999 = vrot.lane.b32.xlu1 %v9998_v53, %s10162_s12  ;;  %v8363_v18 = vsel %vm233_vm5, %v17551_v13, %v9702_v22  ;;  %v6175_v35 = vsel %vm233_vm5, %v17552_v59, %v9701_v21  ;;  %v9647_v46 = vunpack.i.h.bf16 %v15425_v9  ;;  %v9646_v45 = vunpack.i.l.bf16 %v15425_v9  ;;  %v9705_v48 = vpop.permute.xlu1 %9704  ;;  %v9715_v1 = vpop.permute.xlu0 %9714 }
 0x754   :  { %9979 = vrot.lane.b32.xlu0 %v9978_v54, %s10159_s25  ;;  %v8364_v14 = vsel %vm235_vm6, %v8363_v18, %v9652_v62  ;;  %v6176_v2 = vsel %vm235_vm6, %v6175_v35, %v9651_v34  ;;  %v9707_v53 = vunpack.i.h.bf16 %v9705_v48  ;;  %v9706_v33 = vunpack.i.l.bf16 %v9705_v48 }
 0x755   :  { %v6177_v61 = vsel %vm237_vm7, %v6176_v2, %v9711_v52  ;;  %v8365_v13 = vsel %vm237_vm7, %v8364_v14, %v9712_v38  ;;  %v9657_v59 = vunpack.i.h.bf16 %v15383_v24  ;;  %v9656_v22 = vunpack.i.l.bf16 %v15383_v24 }
 0x756   :  { %v6183_v54 = vsel %vm235_vm6, %v6182_v17, %v9646_v45  ;;  %v8371_v9 = vsel %vm235_vm6, %v8370_v30, %v9647_v46  ;;  %v9717_v21 = vunpack.i.h.bf16 %v9715_v1  ;;  %v9716_v62 = vunpack.i.l.bf16 %v9715_v1 }
 0x757   :  { %10004 = vrot.lane.b32.xlu1 %v10003_v43, %s10160_s26  ;;  %v8372_v34 = vsel %vm237_vm7, %v8371_v9, %v9707_v53  ;;  %v6184_v18 = vsel %vm237_vm7, %v6183_v54, %v9706_v33  ;;  %v17553_v38 = vpack.i.bf16 %v15338_v31, %v15283_v6  ;;  %v9730_v45 = vpop.permute.xlu1 %9729  ;;  %v10018_v30 = vpack.i.bf16 %v15636_v57, %v15624_v39  ;;  %v9720_v46 = vpop.permute.xlu0 %9719 }
 0x758   :  { %v6185_v52 = vsel %vm239_vm8, %v6184_v18, %v9656_v22  ;;  %v8373_v24 = vsel %vm239_vm8, %v8372_v34, %v9657_v59  ;;  %v10008_v43 = vpack.i.bf16 %v15630_v55, %v15627_v25  ;;  %v9662_v17 = vunpack.i.h.bf16 %v15408_v26 }
 0x759   :  { %9989 = vrot.lane.b32.xlu0 %v17553_v38, %s10162_s12  ;;  %v9661_v35 = vunpack.i.l.bf16 %v15408_v26  ;;  %v6186_v14 = vsel %vm241_vm9, %v6185_v52, %v9716_v62  ;;  %v8374_v2 = vsel %vm241_vm9, %v8373_v24, %v9717_v21  ;;  %v9722_v48 = vunpack.i.h.bf16 %v9720_v46 }
 0x75a   :  { %v9721_v1 = vunpack.i.l.bf16 %v9720_v46  ;;  %v10028_v53 = vpack.i.bf16 %v15639_v42, %v15633_v44  ;;  %v10013_v33 = vpack.i.bf16 %v15618_v63, %v15615_v0  ;;  %v9672_v59 = vunpack.i.h.bf16 %v15511_v5 }
 0x75b   :  { %10019 = vrot.lane.b32.xlu1 %v10018_v30, %s10159_s25  ;;  %v9671_v22 = vunpack.i.l.bf16 %v15511_v5  ;;  %v6178_v26 = vsel %vm239_vm8, %v6177_v61, %v9661_v35  ;;  %v8366_v54 = vsel %vm239_vm8, %v8365_v13, %v9662_v17  ;;  %v9732_v62 = vunpack.i.h.bf16 %v9730_v45  ;;  %v15692_v18 = vpop.permute.xlu1 %9749  ;;  %v9725_v24 = vpop.permute.xlu0 %9724 }
 0x75c   :  { %v6179_v9 = vsel %vm241_vm9, %v6178_v26, %v9721_v1  ;;  %v8367_v21 = vsel %vm241_vm9, %v8366_v54, %v9722_v48  ;;  %v9731_v34 = vunpack.i.l.bf16 %v9730_v45  ;;  %v9667_v38 = vunpack.i.h.bf16 %v15461_v15  ;;  %v17564_v26 = vld [vmem:[#allocation25_spill] sm:$0xff] }
 0x75d   :  { %10009 = vrot.lane.b32.xlu0 %v10008_v43, %s10160_s26  ;;  %v9666_v52 = vunpack.i.l.bf16 %v15461_v15  ;;  %v6180_v5 = vsel %vm243_vm10, %v6179_v9, %v9671_v22  ;;  %v8368_v61 = vsel %vm243_vm10, %v8367_v21, %v9672_v59  ;;  %v9727_v43 = vunpack.i.h.bf16 %v9725_v24 }
 0x75e   :  { %v15699_v13 = vsel %vm245_vm11, %v6180_v5, %v9731_v34  ;;  %v15702_v30 = vsel %vm245_vm11, %v8368_v61, %v9732_v62  ;;  %v9726_v17 = vunpack.i.l.bf16 %v9725_v24  ;;  %v8375_v35 = vsel %vm243_vm10, %v8374_v2, %v9667_v38 }
 0x75f   :  { %17554 = vst [vmem:[#allocation45_spill] sm:$0xff] %v15699_v13  ;;  %17555 = vst [vmem:[#allocation65_spill] sm:$0xff] %v15702_v30  ;;  %10029 = vrot.lane.b32.xlu1 %v10028_v53, %s10162_s12  ;;  %v6187_v45 = vsel %vm243_vm10, %v6186_v14, %v9666_v52  ;;  %v10038_v15 = vpack.i.bf16 %v15432_v36, %v15301_v47  ;;  %v17556_v46 = vcombine.high %v15548_v41, %v15526_v50  ;;  %v15732_v36 = vpop.permute.xlu0 %9734  ;;  %v17586_v30 = vld [vmem:[#allocation19_spill] sm:$0xff]  ;;  %v17587_v13 = vld [vmem:[#allocation33_spill] sm:$0xff] }
 0x760   :  { %v17557_v1 = vcombine.low %v15362_v29, %v15345_v8  ;;  %v15723_v14 = vsel %vm245_vm11, %v6187_v45, %v9726_v17  ;;  %v15726_v2 = vsel %vm245_vm11, %v8375_v35, %v9727_v43  ;;  %v6277_v47 = vcombine.high %v15451_v56, %v17258_v4  ;;  %v17561_v8 = vld [vmem:[#allocation28_spill] sm:$0xff] }
 0x761   :  { %10014 = vrot.lane.b32.xlu0 %v10013_v33, %s10159_s25  ;;  %v15714_v48 = vrot.slane %v17556_v46, %v17228_v51  ;;  %17559 = vst [vmem:[#allocation47_spill] sm:$0xff] %v15723_v14  ;;  %17560 = vst [vmem:[#allocation20_spill] sm:$0xff] %v15726_v2  ;;  %v15728_v33 = vpop.permute.xlu1 %9754  ;;  %v6345_v29 = vcombine.high %v17561_v8, %v17258_v4  ;;  %v17562_v41 = vcombine.low %v15379_v7, %v15359_v23  ;;  %v17566_v46 = vld [vmem:[#allocation71_spill] sm:$0xff]  ;;  %v17590_v14 = vld [vmem:[#allocation29_spill] sm:$0xff] }
 0x762   :  { %v15720_v53 = vrot.slane %v17557_v1, %v17228_v51  ;;  %v5813_v22 = vcombine.high %v15448_v28, %v17258_v4  ;;  %v5881_v54 = vcombine.high %v17564_v26, %v17258_v4  ;;  %v8534_v7 = vcombine.high %v15332_v58, %v17258_v4 }
 0x763   :  { %v10023_v50 = vpack.i.bf16 %v15621_v27, %v15714_v48  ;;  %v15742_v59 = vrot.slane %v17562_v41, %v17228_v51  ;;  %10039 = vrot.lane.b32.xlu1 %v10038_v15, %s10163_s13  ;;  %v15754_v34 = vpop.permute.xlu0 %9739  ;;  %v6346_v38 = vcombine.high %v15228_v49, %v17258_v4  ;;  %v15765_v5 = vcombine.high %v15231_v32, %v17258_v4  ;;  %v17565_v15 = vld [vmem:[#allocation2_spill] sm:$0xff]  ;;  %v17569_v41 = vld [vmem:[#allocation4_spill] sm:$0xff] }
 0x764   :  { %17558 = vst [vmem:[#allocation84_spill] sm:$0xff] %v15720_v53  ;;  %v10043_v21 = vpack.i.bf16 %v6277_v47, %v5813_v22  ;;  %v8465_v62 = vcombine.high %v15720_v53, %v17258_v4  ;;  %v10033_v23 = vpack.i.bf16 %v6345_v29, %v5881_v54  ;;  %v15769_v61 = vcombine.high %v15235_v40, %v17258_v4 }
 0x765   :  { %17563 = vst [vmem:[#allocation5_spill] sm:$0xff] %v15742_v59  ;;  %10024 = vrot.lane.b32.xlu0 %v10023_v50, %s10162_s12  ;;  %v15750_v9 = vpop.permute.xlu1 %9759  ;;  %v8001_v52 = vcombine.high %v15742_v59, %v17258_v4  ;;  %v8070_v58 = vcombine.high %v15275_v12, %v17258_v4  ;;  %v5882_v49 = vcombine.high %v15244_v11, %v17258_v4  ;;  %v17568_v50 = vld [vmem:[#allocation7_spill] sm:$0xff]  ;;  %v9682_v2 = vunpack.i.h.bf16 %v17587_v13 }
 0x766   :  { %v15780_v17 = vcombine.high %v15247_v37, %v17258_v4  ;;  %v15784_v32 = vcombine.high %v15261_v20, %v17258_v4  ;;  %v6475_v40 = vcombine.low %v15539_v10, %v15514_v60  ;;  %v8466_v11 = vcombine.high %v15411_v16, %v17258_v4  ;;  %v17567_v10 = vld [vmem:[#allocation27_spill] sm:$0xff] }
 0x767   :  { %10044 = vrot.lane.b32.xlu1 %v10043_v21, %s10163_s13  ;;  %v10048_v43 = vpack.i.bf16 %v8465_v62, %v8001_v52  ;;  %v15788_v45 = vpop.permute.xlu0 %9744  ;;  %v10058_v12 = vpack.i.bf16 %v8534_v7, %v8070_v58  ;;  %v10053_v35 = vpack.i.bf16 %v6346_v38, %v5882_v49  ;;  %v6543_v1 = vcombine.low %v17566_v46, %v17565_v15  ;;  %v17573_v49 = vld [vmem:[#allocation26_spill] sm:$0xff]  ;;  %v17576_v15 = vld [vmem:[#allocation12_spill] sm:$0xff] }
 0x768   :  { %v15801_v60 = vcombine.high %v15283_v6, %v17258_v4  ;;  %v8002_v16 = vcombine.high %v17567_v10, %v17258_v4  ;;  %v15808_v47 = vcombine.high %v15338_v31, %v17258_v4  ;;  %v15812_v29 = vcombine.high %v17568_v50, %v17258_v4  ;;  %v17570_v6 = vld [vmem:[#allocation70_spill] sm:$0xff] }
 0x769   :  { %10034 = vrot.lane.b32.xlu0 %v10033_v23, %s10163_s13  ;;  %v15776_v24 = vpop.permute.xlu1 %9764  ;;  %v15816_v22 = vcombine.high %v17569_v41, %v17258_v4  ;;  %v6278_v21 = vcombine.high %v17570_v6, %v17258_v4  ;;  %v6279_v62 = vcombine.high %v15417_v3, %v17258_v4  ;;  %v15826_v31 = vcombine.high %v15501_v19, %v17258_v4  ;;  %v17571_v23 = vld [vmem:[#allocation55_spill] sm:$0xff]  ;;  %v17579_v50 = vld [vmem:[#allocation42_spill] sm:$0xff] }
 0x76a   :  { %v15830_v7 = vcombine.high %v17571_v23, %v17258_v4  ;;  %v15833_v38 = vrot.slane %v6475_v40, %v17228_v51  ;;  %v10068_v58 = vpack.i.bf16 %v8466_v11, %v8002_v16  ;;  %v15844_v19 = vrot.slane %v6543_v1, %v17228_v51  ;;  %v17577_v40 = vld [vmem:[#allocation17_spill] sm:$0xff]  ;;  %v17580_v6 = vld [vmem:[#allocation66_spill] sm:$0xff] }
 0x76b   :  { %10049 = vrot.lane.b32.xlu1 %v10048_v43, %s10163_s13  ;;  %v15835_v52 = vpop.permute.xlu0 %9769  ;;  %v5814_v43 = vcombine.high %v17573_v49, %v17258_v4  ;;  %v5815_v46 = vcombine.high %v17576_v15, %v17258_v4  ;;  %v15851_v10 = vcombine.high %v17577_v40, %v17258_v4  ;;  %v17578_v11 = vld [vmem:[#allocation21_spill] sm:$0xff]  ;;  %v9676_v41 = vunpack.i.l.bf16 %v17579_v50  ;;  %v17585_v40 = vld [vmem:[#allocation58_spill] sm:$0xff] }
 0x76c   :  { %17572 = vst [vmem:[#allocation9_spill] sm:$0xff] %v15833_v38  ;;  %17575 = vst [vmem:[#allocation69_spill] sm:$0xff] %v15844_v19  ;;  %v15855_v16 = vcombine.high %v17578_v11, %v17258_v4  ;;  %v10098_v1 = vpack.i.bf16 %v15808_v47, %v15801_v60  ;;  %v15865_v23 = vcombine.high %v17580_v6, %v17258_v4  ;;  %v17581_v11 = vld [vmem:[#allocation77_spill] sm:$0xff]  ;;  %v9632_v59 = vunpack.i.h.bf16 %v17590_v14 }
 0x76d   :  { %10059 = vrot.lane.b32.xlu0 %v10058_v12, %s10164_s0  ;;  %v15818_v54 = vpop.permute.xlu1 %9784  ;;  %v17574_v12 = vld [vmem:[#allocation68_spill] sm:$0xff]  ;;  %v10083_v15 = vpack.i.bf16 %v6279_v62, %v5815_v46  ;;  %v9612_v20 = vunpack.i.h.bf16 %v17581_v11  ;;  %v9611_v60 = vunpack.i.l.bf16 %v17581_v11  ;;  %v17583_v46 = vld [vmem:[#allocation78_spill] sm:$0xff]  ;;  %v15895_v11 = vcombine.high %v15615_v0, %v17258_v4  ;;  %v17592_v0 = vld [vmem:[#allocation37_spill] sm:$0xff] }
 0x76e   :  { %v15841_v3 = vcombine.high %v17574_v12, %v17258_v4  ;;  %v10063_v12 = vpack.i.bf16 %v6278_v21, %v5814_v43  ;;  %v17582_v21 = vld [vmem:[#allocation13_spill] sm:$0xff]  ;;  %v15887_v43 = vcombine.high %v15844_v19, %v17258_v4  ;;  %v15891_v6 = vcombine.high %v17583_v46, %v17258_v4  ;;  %v17588_v19 = vld [vmem:[#allocation40_spill] sm:$0xff] }
 0x76f   :  { %10054 = vrot.lane.b32.xlu1 %v10053_v35, %s10164_s0  ;;  %v10078_v35 = vpack.i.bf16 %v15816_v22, %v15812_v29  ;;  %v15875_v47 = vpop.permute.xlu0 %9774  ;;  %v15879_v29 = vcombine.high %v15833_v38, %v17258_v4  ;;  %v9596_v62 = vunpack.i.l.bf16 %v17582_v21  ;;  %v9597_v22 = vunpack.i.h.bf16 %v17582_v21  ;;  %v17589_v38 = vld [vmem:[#allocation83_spill] sm:$0xff]  ;;  %v17595_v21 = vld [vmem:[#allocation54_spill] sm:$0xff] }
 0x770   :  { %v8663_v46 = vcombine.low %v17589_v38, %v17588_v19  ;;  %v15911_v26 = vcombine.high %v17592_v0, %v17258_v4  ;;  %v9616_v38 = vunpack.i.l.bf16 %v17595_v21  ;;  %v15926_v8 = vcombine.high %v15621_v27, %v17258_v4 }
 0x771   :  { %10069 = vrot.lane.b32.xlu0 %v10068_v58, %s10164_s0  ;;  %v15867_v49 = vpop.permute.xlu1 %9789  ;;  %v17584_v58 = vld [vmem:[#allocation67_spill] sm:$0xff]  ;;  %v9617_v0 = vunpack.i.h.bf16 %v17595_v21 }
 0x772   :  { %v8731_v37 = vcombine.low %v17585_v40, %v17584_v58  ;;  %v15915_v40 = vcombine.high %v15618_v63, %v17258_v4  ;;  %v17594_v58 = vld [vmem:[#allocation48_spill] sm:$0xff]  ;;  %v17596_v63 = vld [vmem:[#allocation61_spill] sm:$0xff] }
 0x773   :  { %10064 = vrot.lane.b32.xlu1 %v10063_v12, %s10164_s0  ;;  %v5711_v12 = vsel %vm233_vm5, %v17586_v30, %v9676_v41  ;;  %v17593_v30 = vld [vmem:[#allocation85_spill] sm:$0xff]  ;;  %v15922_v19 = vpop.permute.xlu0 %9779  ;;  %v9601_v56 = vunpack.i.l.bf16 %v17596_v63  ;;  %v9602_v27 = vunpack.i.h.bf16 %v17596_v63  ;;  %v17605_v63 = vld [vmem:[#allocation35_spill] sm:$0xff] }
 0x774   :  { %v5016_v41 = vsel %vm233_vm5, %v17593_v30, %v9612_v20  ;;  %v17597_v20 = vpack.i.bf16 %v15765_v5, %v15780_v17 }
 0x775   :  { %10084 = vrot.lane.b32.xlu0 %v10083_v15, %s10165_s14  ;;  %v15907_v53 = vpop.permute.xlu1 %9804  ;;  %v5009_v15 = vsel %vm233_vm5, %v17594_v58, %v9611_v60  ;;  %v15937_v60 = vrot.slane %v8731_v37, %v17228_v51  ;;  %v5017_v30 = vsel %vm235_vm6, %v5016_v41, %v9597_v22  ;;  %v10108_v37 = vpack.i.bf16 %v15887_v43, %v15879_v29 }
 0x776   :  { %17591 = vst [vmem:[#allocation23_spill] sm:$0xff] %v15907_v53  ;;  %v5010_v28 = vsel %vm235_vm6, %v5009_v15, %v9596_v62  ;;  %v5712_v53 = vsel %vm235_vm6, %v5711_v12, %v9632_v59  ;;  %v17599_v62 = vpack.i.bf16 %v15769_v61, %v15784_v32  ;;  %v15947_v59 = vrot.slane %v8663_v46, %v17228_v51  ;;  %v17600_v12 = vld [vmem:[#allocation14_spill] sm:$0xff] }
 0x777   :  { %10074 = vrot.lane.b32.xlu1 %v17597_v20, %s10165_s14  ;;  %17598 = vst [vmem:[#allocation31_spill] sm:$0xff] %v15937_v60  ;;  %v5713_v58 = vsel %vm237_vm7, %v5712_v53, %v9682_v2  ;;  %v9637_v5 = vunpack.i.h.bf16 %v17600_v12  ;;  %v15956_v22 = vcombine.high %v15714_v48, %v17258_v4  ;;  %v17601_v53 = vld [vmem:[#allocation30_spill] sm:$0xff]  ;;  %v5011_v41 = vsel %vm237_vm7, %v5010_v28, %v9616_v38  ;;  %v15960_v61 = vpop.permute.xlu0 %9794  ;;  %v17603_v20 = vld [vmem:[#allocation11_spill] sm:$0xff] }
 0x778   :  { %v9621_v2 = vunpack.i.l.bf16 %v17601_v53  ;;  %v9622_v46 = vunpack.i.h.bf16 %v17601_v53  ;;  %v5012_v29 = vsel %vm239_vm8, %v5011_v41, %v9601_v56  ;;  %v5018_v43 = vsel %vm237_vm7, %v5017_v30, %v9617_v0  ;;  %v17602_v15 = vld [vmem:[#allocation50_spill] sm:$0xff]  ;;  %v17604_v41 = vld [vmem:[#allocation3_spill] sm:$0xff] }
 0x779   :  { %10094 = vrot.lane.b32.xlu0 %v17599_v62, %s10166_s15  ;;  %v15950_v17 = vpop.permute.xlu1 %9809  ;;  %v5714_v48 = vsel %vm239_vm8, %v5713_v58, %v9637_v5  ;;  %v5019_v28 = vsel %vm239_vm8, %v5018_v43, %v9602_v27  ;;  %v9687_v21 = vunpack.i.h.bf16 %v17602_v15  ;;  %v8763_v38 = vcombine.high %v15937_v60, %v17258_v4 }
 0x77a   :  { %v9607_v56 = vunpack.i.h.bf16 %v17603_v20  ;;  %v9606_v0 = vunpack.i.l.bf16 %v17603_v20  ;;  %v15984_v27 = vcombine.high %v15627_v25, %v17258_v4  ;;  %v15992_v53 = vcombine.high %v15630_v55, %v17258_v4 }
 0x77b   :  { %10079 = vrot.lane.b32.xlu1 %v10078_v35, %s10165_s14  ;;  %v8695_v35 = vcombine.high %v15947_v59, %v17258_v4  ;;  %v5715_v58 = vsel %vm241_vm9, %v5714_v48, %v9687_v21  ;;  %v15988_v62 = vpop.permute.xlu0 %9799  ;;  %v9627_v43 = vunpack.i.h.bf16 %v17604_v41  ;;  %v5020_v20 = vsel %vm241_vm9, %v5019_v28, %v9622_v46  ;;  %v17607_v48 = vld [vmem:[#allocation57_spill] sm:$0xff] }
 0x77c   :  { %v9642_v32 = vunpack.i.h.bf16 %v17605_v63  ;;  %v17606_v25 = vpack.i.bf16 %v15826_v31, %v15851_v10  ;;  %v16011_v46 = vcombine.high %v15636_v57, %v17258_v4  ;;  %v5021_v31 = vsel %vm243_vm10, %v5020_v20, %v9607_v56 }
 0x77d   :  { %10099 = vrot.lane.b32.xlu0 %v10098_v1, %s10166_s15  ;;  %v9825_v30 = vpop.permute.xlu1 %9824  ;;  %v5013_v1 = vsel %vm241_vm9, %v5012_v29, %v9621_v2  ;;  %v16003_v2 = vcombine.high %v15624_v39, %v17258_v4  ;;  %v9626_v29 = vunpack.i.l.bf16 %v17604_v41  ;;  %v10118_v21 = vpack.i.bf16 %v8763_v38, %v8695_v35  ;;  %v17608_v41 = vld [vmem:[#allocation15_spill] sm:$0xff] }
 0x77e   :  { %v9826_v5 = vunpack.i.l.bf16 %v9825_v30  ;;  %v5014_v28 = vsel %vm243_vm10, %v5013_v1, %v9606_v0  ;;  %v5716_v10 = vsel %vm243_vm10, %v5715_v58, %v9642_v32  ;;  %v9736_v39 = vunpack.i.l.bf16 %v15732_v36 }
 0x77f   :  { %10089 = vrot.lane.b32.xlu1 %v17606_v25, %s10165_s14  ;;  %v9697_v51 = vunpack.i.h.bf16 %v17608_v41  ;;  %v16018_v60 = vpop.permute.xlu0 %9814  ;;  %v16024_v57 = vcombine.high %v15639_v42, %v17258_v4  ;;  %v9677_v38 = vunpack.i.h.bf16 %v17579_v50  ;;  %v9741_v56 = vunpack.i.l.bf16 %v15754_v34 }
 0x780   :  { %v5243_v55 = vsel %vm233_vm5, %v17607_v48, %v9826_v5  ;;  %v17609_v0 = vpack.i.bf16 %v15830_v7, %v15855_v16  ;;  %v16035_v35 = vcombine.high %v15633_v44, %v17258_v4  ;;  %v10138_v50 = vpack.i.bf16 %v16011_v46, %v16003_v2  ;;  %v17610_v2 = vld [vmem:[#allocation16_spill] sm:$0xff] }
 0x781   :  { %10109 = vrot.lane.b32.xlu0 %v10108_v37, %s10163_s13  ;;  %v9830_v25 = vpop.permute.xlu1 %9829  ;;  %v10128_v37 = vpack.i.bf16 %v15992_v53, %v15984_v27  ;;  %v5244_v32 = vsel %vm235_vm6, %v5243_v55, %v9736_v39  ;;  %v16038_v27 = vsel %vm245_vm11, %v5014_v28, %v9626_v29  ;;  %v16045_v1 = vsel %vm245_vm11, %v5716_v10, %v9697_v51 }
 0x782   :  { %v9831_v5 = vunpack.i.l.bf16 %v9830_v25  ;;  %v9631_v7 = vunpack.i.l.bf16 %v17590_v14  ;;  %v9827_v16 = vunpack.i.h.bf16 %v9825_v30  ;;  %v16050_v44 = vsel %vm245_vm11, %v5021_v31, %v9627_v43 }
 0x783   :  { %10104 = vrot.lane.b32.xlu1 %v17609_v0, %s10166_s15  ;;  %v16055_v48 = vpop.permute.xlu0 %9819  ;;  %v10148_v51 = vpack.i.bf16 %v16024_v57, %v16035_v35  ;;  %v5718_v30 = vsel %vm233_vm5, %v17610_v2, %v9677_v38  ;;  %v17611_v43 = vpack.i.bf16 %v15841_v3, %v15865_v23  ;;  %v6657_v46 = vrot.slane %v16045_v1, 4  ;;  %v17613_v23 = vld [vmem:[#allocation56_spill] sm:$0xff] }
 0x784   :  { %v5245_v42 = vsel %vm237_vm7, %v5244_v32, %v9831_v5  ;;  %v9752_v28 = vunpack.i.h.bf16 %v15692_v18  ;;  %v9751_v31 = vunpack.i.l.bf16 %v15692_v18  ;;  %v9757_v10 = vunpack.i.h.bf16 %v15728_v33 }
 0x785   :  { %10119 = vrot.lane.b32.xlu0 %v10118_v21, %s10163_s13  ;;  %v9835_v58 = vpop.permute.xlu1 %9834  ;;  %v5246_v4 = vsel %vm239_vm8, %v5245_v42, %v9741_v56  ;;  %v9681_v21 = vunpack.i.l.bf16 %v17587_v13  ;;  %v9766_v39 = vunpack.i.l.bf16 %v15776_v24  ;;  %v17612_v5 = vpack.i.bf16 %v15911_v26, %v15891_v6 }
 0x786   :  { %v9737_v38 = vunpack.i.h.bf16 %v15732_v36  ;;  %v9756_v3 = vunpack.i.l.bf16 %v15728_v33  ;;  %v5250_v56 = vsel %vm233_vm5, %v17613_v23, %v9827_v16  ;;  %v9832_v32 = vunpack.i.h.bf16 %v9830_v25 }
 0x787   :  { %10114 = vrot.lane.b32.xlu1 %v17611_v43, %s10166_s15  ;;  %v9742_v18 = vunpack.i.h.bf16 %v15754_v34  ;;  %v9762_v42 = vunpack.i.h.bf16 %v15750_v9  ;;  %v9761_v2 = vunpack.i.l.bf16 %v15750_v9  ;;  %v9845_v55 = vpop.permute.xlu0 %9844  ;;  %v9747_v26 = vunpack.i.h.bf16 %v15788_v45  ;;  %v17616_v43 = vld [vmem:[#allocation73_spill] sm:$0xff] }
 0x788   :  { %v9836_v6 = vunpack.i.l.bf16 %v9835_v58  ;;  %v9847_v36 = vunpack.i.h.bf16 %v9845_v55  ;;  %v9746_v33 = vunpack.i.l.bf16 %v15788_v45  ;;  %v16088_v25 = vsel %vm235_vm6, %v5718_v30, %v9766_v39 }
 0x789   :  { %10124 = vrot.lane.b32.xlu0 %v17612_v5, %s10164_s0  ;;  %v9840_v0 = vpop.permute.xlu1 %9839  ;;  %v9846_v5 = vunpack.i.l.bf16 %v9845_v55  ;;  %v9787_v34 = vunpack.i.h.bf16 %v15818_v54  ;;  %v5251_v16 = vsel %vm235_vm6, %v5250_v56, %v9737_v38  ;;  %v17614_v23 = vpack.i.bf16 %v15915_v40, %v15895_v11  ;;  %v17615_v55 = vld [vmem:[#allocation49_spill] sm:$0xff] }
 0x78a   :  { %v5252_v20 = vsel %vm237_vm7, %v5251_v16, %v9832_v32  ;;  %v9837_v29 = vunpack.i.h.bf16 %v9835_v58  ;;  %v9772_v39 = vunpack.i.h.bf16 %v15835_v52  ;;  %v9771_v38 = vunpack.i.l.bf16 %v15835_v52 }
 0x78b   :  { %10129 = vrot.lane.b32.xlu1 %v10128_v37, %s10164_s0  ;;  %v5480_v37 = vsel %vm233_vm5, %v17615_v55, %v9847_v36  ;;  %v5473_v45 = vsel %vm233_vm5, %v17616_v43, %v9846_v5  ;;  %v9786_v56 = vunpack.i.l.bf16 %v15818_v54  ;;  %v9850_v40 = vpop.permute.xlu0 %9849  ;;  %v5247_v32 = vsel %vm241_vm9, %v5246_v4, %v9836_v6  ;;  %v17626_v54 = vld [vmem:[#allocation82_spill] sm:$0xff] }
 0x78c   :  { %v9841_v58 = vunpack.i.l.bf16 %v9840_v0  ;;  %v9852_v16 = vunpack.i.h.bf16 %v9850_v40  ;;  %v5253_v36 = vsel %vm239_vm8, %v5252_v20, %v9742_v18  ;;  %v5474_v5 = vsel %vm235_vm6, %v5473_v45, %v9751_v31  ;;  %v17618_v45 = vld [vmem:[#allocation23_spill] sm:$0xff] }
 0x78d   :  { %10134 = vrot.lane.b32.xlu0 %v17614_v23, %s10165_s14  ;;  %v16101_v30 = vpop.permute.xlu1 %9879  ;;  %v9851_v23 = vunpack.i.l.bf16 %v9850_v40  ;;  %v5481_v55 = vsel %vm235_vm6, %v5480_v37, %v9752_v28  ;;  %v17617_v11 = vpack.i.bf16 %v15926_v8, %v15956_v22  ;;  %v5254_v4 = vsel %vm241_vm9, %v5253_v36, %v9837_v29 }
 0x78e   :  { %v9842_v6 = vunpack.i.h.bf16 %v9840_v0  ;;  %v9777_v43 = vunpack.i.h.bf16 %v15875_v47  ;;  %v5248_v20 = vsel %vm243_vm10, %v5247_v32, %v9746_v33  ;;  %v9776_v8 = vunpack.i.l.bf16 %v15875_v47 }
 0x78f   :  { %10139 = vrot.lane.b32.xlu1 %v10138_v50, %s10165_s14  ;;  %v5475_v40 = vsel %vm237_vm7, %v5474_v5, %v9851_v23  ;;  %v5482_v50 = vsel %vm237_vm7, %v5481_v55, %v9852_v16  ;;  %v9855_v31 = vpop.permute.xlu0 %9854  ;;  %v5249_v22 = vsel %vm245_vm11, %v5248_v20, %v9841_v58  ;;  %v9782_v37 = vunpack.i.h.bf16 %v15922_v19 }
 0x790   :  { %v5476_v28 = vsel %vm239_vm8, %v5475_v40, %v9756_v3  ;;  %v5483_v18 = vsel %vm239_vm8, %v5482_v50, %v9757_v10  ;;  %v9857_v29 = vunpack.i.h.bf16 %v9855_v31  ;;  %v9856_v0 = vunpack.i.l.bf16 %v9855_v31 }
 0x791   :  { %10144 = vrot.lane.b32.xlu0 %v17617_v11, %s10166_s15  ;;  %v9885_v53 = vpop.permute.xlu1 %9884  ;;  %v9807_v33 = vunpack.i.h.bf16 %v17618_v45  ;;  %v9806_v11 = vunpack.i.l.bf16 %v17618_v45  ;;  %v5255_v3 = vsel %vm243_vm10, %v5254_v4, %v9747_v26  ;;  %v9781_v10 = vunpack.i.l.bf16 %v15922_v19 }
 0x792   :  { %v5256_v32 = vsel %vm245_vm11, %v5255_v3, %v9842_v6  ;;  %v5477_v58 = vsel %vm241_vm9, %v5476_v28, %v9856_v0  ;;  %v5484_v16 = vsel %vm241_vm9, %v5483_v18, %v9857_v29  ;;  %v6651_v57 = vrot.slane %v5249_v22, 4  ;;  %v17619_v18 = vld [vmem:[#allocation75_spill] sm:$0xff] }
 0x793   :  { %10149 = vrot.lane.b32.xlu1 %v10148_v51, %s10166_s15  ;;  %v9882_v35 = vunpack.i.h.bf16 %v16101_v30  ;;  %v9860_v51 = vpop.permute.xlu0 %9859  ;;  %v5478_v36 = vsel %vm243_vm10, %v5477_v58, %v9761_v2  ;;  %v5485_v26 = vsel %vm243_vm10, %v5484_v16, %v9762_v42  ;;  %v9812_v19 = vunpack.i.h.bf16 %v15950_v17  ;;  %v17620_v3 = vld [vmem:[#allocation79_spill] sm:$0xff]  ;;  %v17621_v58 = vld [vmem:[#allocation36_spill] sm:$0xff] }
 0x794   :  { %v9881_v5 = vunpack.i.l.bf16 %v16101_v30  ;;  %v9886_v55 = vunpack.i.l.bf16 %v9885_v53  ;;  %v9861_v4 = vunpack.i.l.bf16 %v9860_v51  ;;  %v9797_v6 = vunpack.i.h.bf16 %v15960_v61 }
 0x795   :  { %v16138_v23 = vpop.permute.xlu1 %9889  ;;  %v9796_v40 = vunpack.i.l.bf16 %v15960_v61  ;;  %v9811_v50 = vunpack.i.l.bf16 %v15950_v17  ;;  %v9887_v20 = vunpack.i.h.bf16 %v9885_v53  ;;  %v9802_v31 = vunpack.i.h.bf16 %v15988_v62 }
 0x796   :  { %v9801_v2 = vunpack.i.l.bf16 %v15988_v62  ;;  %v6652_v9 = vrot.slane %v5256_v32, 4  ;;  %v5479_v42 = vsel %vm245_vm11, %v5478_v36, %v9861_v4  ;;  %v7668_v22 = vsel %vm233_vm5, %v17619_v18, %v9882_v35 }
 0x797   :  { %v9865_v29 = vpop.permute.xlu0 %9864  ;;  %v16160_v0 = vsel %vm2203_vm12, %v16038_v27, %v6651_v57  ;;  %v16165_v53 = vsel %vm2203_vm12, %v5479_v42, %v6657_v46  ;;  %v7204_v32 = vsel %vm233_vm5, %v17620_v3, %v9881_v5  ;;  %v7197_v16 = vsel %vm233_vm5, %v17621_v58, %v9886_v55  ;;  %v17622_v57 = vld [vmem:[#allocation44_spill] sm:$0xff]  ;;  %v17623_v42 = vld [vmem:[#allocation59_spill] sm:$0xff] }
 0x798   :  { %v9867_v36 = vunpack.i.h.bf16 %v9865_v29  ;;  %v6681_v35 = vpack.c.bf16 %v16165_v53, %v16160_v0  ;;  %v9822_v27 = vunpack.i.h.bf16 %v16055_v48  ;;  %v7661_v1 = vsel %vm233_vm5, %v17622_v57, %v9887_v20 }
 0x799   :  { %v16153_v28 = vpop.permute.xlu1 %9894  ;;  %v9862_v18 = vunpack.i.h.bf16 %v9860_v51  ;;  %v9821_v46 = vunpack.i.l.bf16 %v16055_v48  ;;  %v9866_v3 = vunpack.i.l.bf16 %v9865_v29  ;;  %v16182_v55 = vsel %vm2203_vm12, %v16050_v44, %v6652_v9 }
 0x79a   :  { %v7906_v5 = vsel %vm233_vm5, %v17623_v42, %v9867_v36  ;;  %v7198_v51 = vsel %vm235_vm6, %v7197_v16, %v9786_v56  ;;  %v7205_v20 = vsel %vm235_vm6, %v7204_v32, %v9781_v10  ;;  %v7669_v57 = vsel %vm235_vm6, %v7668_v22, %v9782_v37  ;;  %v17624_v56 = vld [vmem:[#allocation72_spill] sm:$0xff] }
 0x79b   :  { %v7907_v58 = vsel %vm235_vm6, %v7906_v5, %v9631_v7  ;;  %v9870_v4 = vpop.permute.xlu0 %9869  ;;  %v9892_v29 = vunpack.i.h.bf16 %v16138_v23  ;;  %v7662_v44 = vsel %vm235_vm6, %v7661_v1, %v9787_v34  ;;  %v5486_v14 = vsel %vm245_vm11, %v5485_v26, %v9862_v18  ;;  %v17625_v22 = vld [vmem:[#allocation32_spill] sm:$0xff] }
 0x79c   :  { %v9872_v36 = vunpack.i.h.bf16 %v9870_v4  ;;  %v9871_v42 = vunpack.i.l.bf16 %v9870_v4  ;;  %v9891_v7 = vunpack.i.l.bf16 %v16138_v23  ;;  %v9897_v9 = vunpack.i.h.bf16 %v16153_v28 }
 0x79d   :  { %v9905_v30 = vpop.permute.xlu1 %9904  ;;  %v7438_v10 = vsel %vm233_vm5, %v17624_v56, %v9866_v3  ;;  %v7908_v37 = vsel %vm237_vm7, %v7907_v58, %v9681_v21  ;;  %v9896_v26 = vunpack.i.l.bf16 %v16153_v28  ;;  %v17635_v48 = vunpack.i.h.bf16 %v16018_v60 }
 0x79e   :  { %v9906_v5 = vunpack.i.l.bf16 %v9905_v30  ;;  %v7899_v32 = vsel %vm233_vm5, %v17625_v22, %v9872_v36  ;;  %v7431_v34 = vsel %vm233_vm5, %v17626_v54, %v9871_v42  ;;  %v9907_v13 = vunpack.i.h.bf16 %v9905_v30 }
 0x79f   :  { %v7900_v23 = vsel %vm235_vm6, %v7899_v32, %v9772_v39  ;;  %v7432_v4 = vsel %vm235_vm6, %v7431_v34, %v9771_v38  ;;  %v9875_v1 = vpop.permute.xlu0 %9874  ;;  %v17627_v36 = vunpack.i.l.bf16 %v17600_v12  ;;  %v17628_v39 = vunpack.i.h.bf16 %v15776_v24 }
 0x7a0   :  { %v9877_v21 = vunpack.i.h.bf16 %v9875_v1  ;;  %v9876_v18 = vunpack.i.l.bf16 %v9875_v1  ;;  %v7433_v3 = vsel %vm237_vm7, %v7432_v4, %v9891_v7  ;;  %v7901_v58 = vsel %vm237_vm7, %v7900_v23, %v9892_v29 }
 0x7a1   :  { %v9910_v16 = vpop.permute.xlu1 %9909  ;;  %v7909_v28 = vsel %vm239_vm8, %v7908_v37, %v17627_v36  ;;  %v7199_v42 = vsel %vm237_vm7, %v7198_v51, %v9906_v5  ;;  %v7439_v52 = vsel %vm235_vm6, %v7438_v10, %v17628_v39  ;;  %v17629_v7 = vunpack.i.l.bf16 %v15867_v49 }
 0x7a2   :  { %v9912_v56 = vunpack.i.h.bf16 %v9910_v16  ;;  %v5720_v38 = vsel %vm237_vm7, %v16088_v25, %v9876_v18  ;;  %v7440_v30 = vsel %vm237_vm7, %v7439_v52, %v9877_v21  ;;  %v9911_v22 = vunpack.i.l.bf16 %v9910_v16 }
 0x7a3   :  { %v7434_v29 = vsel %vm239_vm8, %v7433_v3, %v17629_v7  ;;  %v5721_v51 = vsel %vm239_vm8, %v5720_v38, %v9776_v8  ;;  %v7441_v24 = vsel %vm239_vm8, %v7440_v30, %v9777_v43  ;;  %v17630_v5 = vunpack.i.h.bf16 %v15867_v49  ;;  %v9900_v10 = vpop.permute.xlu0 %9899 }
 0x7a4   :  { %v9902_v32 = vunpack.i.h.bf16 %v9900_v10  ;;  %v9901_v54 = vunpack.i.l.bf16 %v9900_v10  ;;  %v5722_v34 = vsel %vm241_vm9, %v5721_v51, %v9896_v26  ;;  %v7442_v16 = vsel %vm241_vm9, %v7441_v24, %v9897_v9 }
 0x7a5   :  { %v9915_v12 = vpop.permute.xlu1 %9914  ;;  %v7902_v25 = vsel %vm239_vm8, %v7901_v58, %v17630_v5  ;;  %v7663_v23 = vsel %vm237_vm7, %v7662_v44, %v9907_v13  ;;  %v5723_v47 = vsel %vm243_vm10, %v5722_v34, %v9796_v40  ;;  %v7200_v49 = vsel %vm239_vm8, %v7199_v42, %v9806_v11 }
 0x7a6   :  { %v9916_v37 = vunpack.i.l.bf16 %v9915_v12  ;;  %v17631_v43 = vunpack.i.l.bf16 %v17602_v15  ;;  %v7435_v4 = vsel %vm241_vm9, %v7434_v29, %v9911_v22  ;;  %v7903_v26 = vsel %vm241_vm9, %v7902_v25, %v9912_v56 }
 0x7a7   :  { %v9917_v1 = vunpack.i.h.bf16 %v9915_v12  ;;  %v7206_v13 = vsel %vm237_vm7, %v7205_v20, %v9901_v54  ;;  %v7670_v40 = vsel %vm237_vm7, %v7669_v57, %v9902_v32  ;;  %v7443_v11 = vsel %vm243_vm10, %v7442_v16, %v9797_v6  ;;  %v9920_v15 = vpop.permute.xlu0 %9919 }
 0x7a8   :  { %v7910_v8 = vsel %vm241_vm9, %v7909_v28, %v17631_v43  ;;  %v5724_v9 = vsel %vm245_vm11, %v5723_v47, %v9916_v37  ;;  %v9921_v18 = vunpack.i.l.bf16 %v9920_v15  ;;  %v7664_v36 = vsel %vm239_vm8, %v7663_v23, %v9807_v33 }
 0x7a9   :  { %v9925_v44 = vpop.permute.xlu1 %9924  ;;  %v6658_v21 = vrot.slane %v5724_v9, 4  ;;  %v9922_v28 = vunpack.i.h.bf16 %v9920_v15  ;;  %v7436_v20 = vsel %vm243_vm10, %v7435_v4, %v9811_v50  ;;  %v7904_v57 = vsel %vm243_vm10, %v7903_v26, %v9812_v19 }
 0x7aa   :  { %v9927_v3 = vunpack.i.h.bf16 %v9925_v44  ;;  %v9926_v58 = vunpack.i.l.bf16 %v9925_v44  ;;  %v7444_v6 = vsel %vm245_vm11, %v7443_v11, %v9917_v1  ;;  %v7207_v42 = vsel %vm239_vm8, %v7206_v13, %v9801_v2 }
 0x7ab   :  { %v6676_v61 = vsel %vm2203_vm12, %v5486_v14, %v6658_v21  ;;  %v7671_v45 = vsel %vm239_vm8, %v7670_v40, %v9802_v31  ;;  %v17632_v39 = vunpack.i.l.bf16 %v17605_v63  ;;  %v7208_v17 = vsel %vm241_vm9, %v7207_v42, %v9921_v18 }
 0x7ac   :  { %v7201_v19 = vsel %vm241_vm9, %v7200_v49, %v9926_v58  ;;  %v9940_v14 = vpop.permute.xlu0 %9939  ;;  %v7665_v38 = vsel %vm241_vm9, %v7664_v36, %v9927_v3  ;;  %v6682_v62 = vpack.c.bf16 %v6676_v61, %v16182_v55  ;;  %v7672_v31 = vsel %vm241_vm9, %v7671_v45, %v9922_v28 }
 0x7ad   :  { %v9930_v33 = vpop.permute.xlu1 %9929  ;;  %v7911_v50 = vsel %vm243_vm10, %v7910_v8, %v17632_v39  ;;  %v9942_v30 = vunpack.i.h.bf16 %v9940_v14  ;;  %v9941_v2 = vunpack.i.l.bf16 %v9940_v14  ;;  %v17633_v7 = vunpack.i.l.bf16 %v17608_v41 }
 0x7ae   :  { %v9932_v52 = vunpack.i.h.bf16 %v9930_v33  ;;  %v9931_v56 = vunpack.i.l.bf16 %v9930_v33  ;;  %v8840_v12 = vrot.slane %v7444_v6, 4  ;;  %v7202_v51 = vsel %vm243_vm10, %v7201_v19, %v9821_v46  ;;  %6696 = vmatprep.subr.bf16.mxu0 %v6682_v62 }
 0x7af   :  { %v7912_v29 = vsel %vm245_vm11, %v7911_v50, %v17633_v7  ;;  %v7666_v55 = vsel %vm243_vm10, %v7665_v38, %v9822_v27  ;;  %6697 = vmatpush1.bf16.msra.mxu0 %v6681_v35  ;;  %v17634_v32 = vunpack.i.l.bf16 %v16018_v60  ;;  %v7203_v54 = vsel %vm245_vm11, %v7202_v51, %v9941_v2 }
 0x7b0   :  { %v7437_v22 = vsel %vm245_vm11, %v7436_v20, %v9931_v56  ;;  %v7905_v63 = vsel %vm245_vm11, %v7904_v57, %v9932_v52  ;;  %v7667_v34 = vsel %vm245_vm11, %v7666_v55, %v9942_v30  ;;  %v7673_v27 = vsel %vm243_vm10, %v7672_v31, %v17635_v48 }
 0x7b1   :  { %v8839_v24 = vrot.slane %v7437_v22, 4  ;;  %v8845_v5 = vrot.slane %v7905_v63, 4  ;;  %v9935_v25 = vpop.permute.xlu1 %9934  ;;  %v16298_v41 = vpop.permute.xlu0 %9944  ;;  %v7209_v46 = vsel %vm243_vm10, %v7208_v17, %v17634_v32  ;;  %v8846_v16 = vrot.slane %v7912_v29, 4 }
 0x7b2   :  { %v9937_v10 = vunpack.i.h.bf16 %v9935_v25  ;;  %v9936_v37 = vunpack.i.l.bf16 %v9935_v25  ;;  %v9947_v61 = vunpack.i.h.bf16 %v16298_v41  ;;  %v9946_v6 = vunpack.i.l.bf16 %v16298_v41 }
 0x7b3   :  { %v8861_v35 = vsel %vm2203_vm12, %v7203_v54, %v8839_v24  ;;  %v8863_v23 = vsel %vm2203_vm12, %v7667_v34, %v8845_v5 }
 0x7b4   :  { %v7210_v0 = vsel %vm245_vm11, %v7209_v46, %v9936_v37  ;;  %v7674_v53 = vsel %vm245_vm11, %v7673_v27, %v9937_v10  ;;  %v8869_v4 = vpack.c.bf16 %v8863_v23, %v8861_v35  ;;  %v17636_v27 = vld [vmem:[#allocation46_spill] sm:$0xff]  ;;  %v17641_v37 = vld [vmem:[#allocation25_spill] sm:$0xff] }
 0x7b5   :  { %v16312_v47 = vpop.permute.xlu1 %9959  ;;  %v8862_v49 = vsel %vm2203_vm12, %v7210_v0, %v8840_v12  ;;  %v8864_v43 = vsel %vm2203_vm12, %v7674_v53, %v8846_v16  ;;  %v16316_v8 = vpop.permute.xlu0 %9949  ;;  %v17637_v0 = vld [vmem:[#allocation60_spill] sm:$0xff] }
 0x7b6   :  { %v8870_v60 = vpack.c.bf16 %v8864_v43, %v8862_v49  ;;  %v9952_v42 = vunpack.i.h.bf16 %v16316_v8  ;;  %v9951_v45 = vunpack.i.l.bf16 %v16316_v8  ;;  %v9962_v33 = vunpack.i.h.bf16 %v16312_v47 }
 0x7b7   :  { %v9961_v39 = vunpack.i.l.bf16 %v16312_v47 }
 0x7b8   :  { %8881 = vmatprep.subr.bf16.mxu1 %v8870_v60 }
 0x7b9   :  { %v16318_v26 = vpop.permute.xlu1 %9969  ;;  %8882 = vmatpush1.bf16.msra.mxu1 %v8869_v4  ;;  %v16320_v1 = vpop.permute.xlu0 %9954 }
 0x7ba   :  { %v9957_v17 = vunpack.i.h.bf16 %v16320_v1  ;;  %v9956_v19 = vunpack.i.l.bf16 %v16320_v1  ;;  %v9972_v14 = vunpack.i.h.bf16 %v16318_v26  ;;  %v9971_v52 = vunpack.i.l.bf16 %v16318_v26 }
 0x7bd   :  { %v16322_v9 = vpop.permute.xlu1 %9984 }
 0x7be   :  { %v16324_v44 = vpop.permute.xlu0 %9964  ;;  %v9987_v2 = vunpack.i.h.bf16 %v16322_v9  ;;  %v9986_v62 = vunpack.i.l.bf16 %v16322_v9 }
 0x7bf   :  { %v9967_v38 = vunpack.i.h.bf16 %v16324_v44  ;;  %v9966_v30 = vunpack.i.l.bf16 %v16324_v44 }
 0x7c1   :  { %v16326_v13 = vpop.permute.xlu1 %9994 }
 0x7c2   :  { %v16328_v40 = vpop.permute.xlu0 %9974 }
 0x7c3   :  { %v9977_v29 = vunpack.i.h.bf16 %v16328_v40  ;;  %v9976_v12 = vunpack.i.l.bf16 %v16328_v40 }
 0x7c5   :  { %v16330_v21 = vpop.permute.xlu1 %9999 }
 0x7c6   :  { %v16332_v11 = vpop.permute.xlu0 %9979 }
 0x7c7   :  { %v9982_v25 = vunpack.i.h.bf16 %v16332_v11  ;;  %v9981_v55 = vunpack.i.l.bf16 %v16332_v11 }
 0x7c9   :  { %v16334_v15 = vpop.permute.xlu1 %10004 }
 0x7cb   :  { %v16336_v18 = vpop.permute.xlu0 %9989 }
 0x7cc   :  { %v9992_v46 = vunpack.i.h.bf16 %v16336_v18  ;;  %v9991_v54 = vunpack.i.l.bf16 %v16336_v18 }
 0x7cd   :  { %v16338_v3 = vpop.permute.xlu1 %10019 }
 0x7cf   :  { %v16340_v58 = vpop.permute.xlu0 %10009 }
 0x7d1   :  { %v16342_v36 = vpop.permute.xlu1 %10029 }
 0x7d3   :  { %v16344_v28 = vpop.permute.xlu0 %10014 }
 0x7d5   :  { %v10040_v20 = vpop.permute.xlu1 %10039 }
 0x7d6   :  { %v10042_v63 = vunpack.i.h.bf16 %v10040_v20  ;;  %v10041_v7 = vunpack.i.l.bf16 %v10040_v20 }
 0x7d7   :  { %v16346_v57 = vpop.permute.xlu0 %10024 }
 0x7d8   :  { %v8600_v16 = vsel %vm233_vm5, %v17636_v27, %v10042_v63  ;;  %v8136_v53 = vsel %vm233_vm5, %v17637_v0, %v10041_v7  ;;  %v17638_v63 = vld [vmem:[#allocation76_spill] sm:$0xff] }
 0x7d9   :  { %v10045_v50 = vpop.permute.xlu1 %10044  ;;  %v17639_v7 = vld [vmem:[#allocation64_spill] sm:$0xff] }
 0x7da   :  { %v10047_v34 = vunpack.i.h.bf16 %v10045_v50  ;;  %v10046_v48 = vunpack.i.l.bf16 %v10045_v50  ;;  %v17640_v0 = vld [vmem:[#allocation28_spill] sm:$0xff] }
 0x7db   :  { %v10035_v56 = vpop.permute.xlu0 %10034 }
 0x7dc   :  { %v10037_v35 = vunpack.i.h.bf16 %v10035_v56  ;;  %v10036_v23 = vunpack.i.l.bf16 %v10035_v56  ;;  %v6405_v27 = vsel %vm233_vm5, %v17638_v63, %v10047_v34  ;;  %v5941_v56 = vsel %vm233_vm5, %v17639_v7, %v10046_v48  ;;  %v17642_v34 = vld [vmem:[#allocation84_spill] sm:$0xff]  ;;  %v17643_v48 = vld [vmem:[#allocation5_spill] sm:$0xff] }
 0x7dd   :  { %v10050_v5 = vpop.permute.xlu1 %10049 }
 0x7de   :  { %v10052_v8 = vunpack.i.h.bf16 %v10050_v5  ;;  %v10051_v60 = vunpack.i.l.bf16 %v10050_v5  ;;  %v8601_v5 = vsel %vm235_vm6, %v8600_v16, %v9952_v42  ;;  %v6412_v20 = vsel %vm233_vm5, %v17640_v0, %v10037_v35 }
 0x7df   :  { %v10060_v32 = vpop.permute.xlu0 %10059  ;;  %v5948_v51 = vsel %vm233_vm5, %v17641_v37, %v10036_v23  ;;  %v6413_v23 = vsel %vm235_vm6, %v6412_v20, %v9947_v61 }
 0x7e0   :  { %v10062_v49 = vunpack.i.h.bf16 %v10060_v32  ;;  %v10061_v43 = vunpack.i.l.bf16 %v10060_v32  ;;  %v8137_v32 = vsel %vm235_vm6, %v8136_v53, %v9951_v45  ;;  %v8593_v63 = vsel %vm233_vm5, %v17642_v34, %v10052_v8 }
 0x7e1   :  { %v10055_v4 = vpop.permute.xlu1 %10054  ;;  %v8129_v45 = vsel %vm233_vm5, %v17643_v48, %v10051_v60  ;;  %v5949_v37 = vsel %vm235_vm6, %v5948_v51, %v9946_v6  ;;  %v8594_v61 = vsel %vm235_vm6, %v8593_v63, %v9962_v33 }
 0x7e2   :  { %v10057_v10 = vunpack.i.h.bf16 %v10055_v4  ;;  %v10056_v31 = vunpack.i.l.bf16 %v10055_v4  ;;  %v8138_v50 = vsel %vm237_vm7, %v8137_v32, %v10061_v43  ;;  %v8602_v22 = vsel %vm237_vm7, %v8601_v5, %v10062_v49 }
 0x7e3   :  { %v10070_v24 = vpop.permute.xlu0 %10069  ;;  %v5942_v49 = vsel %vm235_vm6, %v5941_v56, %v9956_v19  ;;  %v6406_v43 = vsel %vm235_vm6, %v6405_v27, %v9957_v17  ;;  %v8130_v41 = vsel %vm235_vm6, %v8129_v45, %v9961_v39  ;;  %v8139_v1 = vsel %vm239_vm8, %v8138_v50, %v9971_v52 }
 0x7e4   :  { %v10072_v42 = vunpack.i.h.bf16 %v10070_v24  ;;  %v10071_v16 = vunpack.i.l.bf16 %v10070_v24  ;;  %v6414_v8 = vsel %vm237_vm7, %v6413_v23, %v10057_v10  ;;  %v5950_v24 = vsel %vm237_vm7, %v5949_v37, %v10056_v31  ;;  %v17645_v37 = vld [vmem:[#allocation47_spill] sm:$0xff] }
 0x7e5   :  { %v10065_v53 = vpop.permute.xlu1 %10064  ;;  %v8603_v17 = vsel %vm239_vm8, %v8602_v22, %v9972_v14  ;;  %v5951_v26 = vsel %vm239_vm8, %v5950_v24, %v9966_v30  ;;  %v6415_v14 = vsel %vm239_vm8, %v6414_v8, %v9967_v38 }
 0x7e6   :  { %v10067_v35 = vunpack.i.h.bf16 %v10065_v53  ;;  %v10066_v0 = vunpack.i.l.bf16 %v10065_v53  ;;  %v8131_v19 = vsel %vm237_vm7, %v8130_v41, %v10071_v16  ;;  %v8595_v31 = vsel %vm237_vm7, %v8594_v61, %v10072_v42 }
 0x7e7   :  { %v10085_v7 = vpop.permute.xlu0 %10084  ;;  %v8596_v61 = vsel %vm239_vm8, %v8595_v31, %v9982_v25  ;;  %v17650_v25 = vld [vmem:[#allocation69_spill] sm:$0xff] }
 0x7e8   :  { %v5943_v60 = vsel %vm237_vm7, %v5942_v49, %v10066_v0  ;;  %v6407_v4 = vsel %vm237_vm7, %v6406_v43, %v10067_v35  ;;  %v10087_v27 = vunpack.i.h.bf16 %v10085_v7  ;;  %v17644_v35 = vld [vmem:[#allocation74_spill] sm:$0xff] }
 0x7e9   :  { %v10075_v6 = vpop.permute.xlu1 %10074  ;;  %v5944_v47 = vsel %vm239_vm8, %v5943_v60, %v9976_v12  ;;  %v6408_v33 = vsel %vm239_vm8, %v6407_v4, %v9977_v29  ;;  %v10086_v12 = vunpack.i.l.bf16 %v10085_v7 }
 0x7ea   :  { %v10077_v10 = vunpack.i.h.bf16 %v10075_v6  ;;  %v10076_v39 = vunpack.i.l.bf16 %v10075_v6  ;;  %v6409_v45 = vsel %vm241_vm9, %v6408_v33, %v10087_v27  ;;  %v17646_v6 = vunpack.i.l.bf16 %v16326_v13 }
 0x7eb   :  { %v10095_v51 = vpop.permute.xlu0 %10094  ;;  %v5945_v48 = vsel %vm241_vm9, %v5944_v47, %v10086_v12  ;;  %v17648_v33 = vunpack.i.h.bf16 %v16326_v13 }
 0x7ec   :  { %v10097_v52 = vunpack.i.h.bf16 %v10095_v51  ;;  %v10096_v22 = vunpack.i.l.bf16 %v10095_v51  ;;  %v5952_v20 = vsel %vm241_vm9, %v5951_v26, %v10076_v39  ;;  %v6416_v50 = vsel %vm241_vm9, %v6415_v14, %v10077_v10  ;;  %v17647_v51 = vld [vmem:[#allocation9_spill] sm:$0xff] }
 0x7ed   :  { %v5953_v40 = vsel %vm243_vm10, %v5952_v20, %v9986_v62  ;;  %v6417_v30 = vsel %vm243_vm10, %v6416_v50, %v9987_v2  ;;  %v10080_v29 = vpop.permute.xlu1 %10079 }
 0x7ee   :  { %v10082_v56 = vunpack.i.h.bf16 %v10080_v29  ;;  %v10081_v38 = vunpack.i.l.bf16 %v10080_v29  ;;  %v5954_v32 = vsel %vm245_vm11, %v5953_v40, %v10096_v22  ;;  %v6418_v5 = vsel %vm245_vm11, %v6417_v30, %v10097_v52  ;;  %v17651_v22 = vld [vmem:[#allocation20_spill] sm:$0xff] }
 0x7ef   :  { %v10100_v44 = vpop.permute.xlu0 %10099  ;;  %v6664_v34 = vrot.slane %v5954_v32, 4  ;;  %v6670_v63 = vrot.slane %v6418_v5, 4  ;;  %v17652_v29 = vunpack.i.l.bf16 %v16334_v15 }
 0x7f0   :  { %v10102_v53 = vunpack.i.h.bf16 %v10100_v44  ;;  %v10101_v62 = vunpack.i.l.bf16 %v10100_v44  ;;  %v8140_v9 = vsel %vm241_vm9, %v8139_v1, %v10081_v38  ;;  %v8604_v2 = vsel %vm241_vm9, %v8603_v17, %v10082_v56 }
 0x7f1   :  { %v8141_v42 = vsel %vm243_vm10, %v8140_v9, %v9991_v54  ;;  %v8605_v16 = vsel %vm243_vm10, %v8604_v2, %v9992_v46  ;;  %v10090_v7 = vpop.permute.xlu1 %10089  ;;  %v6678_v0 = vsel %vm2203_vm12, %v17644_v35, %v6664_v34  ;;  %v6680_v23 = vsel %vm2203_vm12, %v17645_v37, %v6670_v63 }
 0x7f2   :  { %v10092_v43 = vunpack.i.h.bf16 %v10090_v7  ;;  %v10091_v8 = vunpack.i.l.bf16 %v10090_v7  ;;  %v6684_v24 = vpack.c.bf16 %v6680_v23, %v6678_v0  ;;  %v8142_v60 = vsel %vm245_vm11, %v8141_v42, %v10101_v62  ;;  %v17657_v0 = vld [vmem:[#allocation39_spill] sm:$0xff]  ;;  %v17658_v23 = vld [vmem:[#allocation45_spill] sm:$0xff] }
 0x7f3   :  { %v10110_v49 = vpop.permute.xlu0 %10109  ;;  %v8606_v54 = vsel %vm245_vm11, %v8605_v16, %v10102_v53  ;;  %v8852_v18 = vrot.slane %v8142_v60, 4  ;;  %v8132_v46 = vsel %vm239_vm8, %v8131_v19, %v9981_v55  ;;  %v5946_v1 = vsel %vm243_vm10, %v5945_v48, %v17646_v6  ;;  %v17649_v19 = vld [vmem:[#allocation10_spill] sm:$0xff]  ;;  %v17655_v53 = vld [vmem:[#allocation31_spill] sm:$0xff] }
 0x7f4   :  { %v10112_v4 = vunpack.i.h.bf16 %v10110_v49  ;;  %v10111_v41 = vunpack.i.l.bf16 %v10110_v49  ;;  %6698 = vmatprep.subr.bf16.mxu0 %v6684_v24  ;;  %v8858_v17 = vrot.slane %v8606_v54, 4  ;;  %v8133_v39 = vsel %vm241_vm9, %v8132_v46, %v10091_v8 }
 0x7f5   :  { %v10105_v47 = vpop.permute.xlu1 %10104  ;;  %v6410_v55 = vsel %vm243_vm10, %v6409_v45, %v17648_v33  ;;  %v8866_v11 = vsel %vm2203_vm12, %v17649_v19, %v8852_v18  ;;  %v8597_v50 = vsel %vm241_vm9, %v8596_v61, %v10092_v43  ;;  %v17653_v56 = vunpack.i.l.bf16 %v16330_v21  ;;  %v17662_v33 = vld [vmem:[#allocation6_spill] sm:$0xff]  ;;  %v17663_v19 = vld [vmem:[#allocation65_spill] sm:$0xff] }
 0x7f6   :  { %v6635_v10 = vsel %vm233_vm5, %v17647_v51, %v10111_v41  ;;  %v6642_v31 = vsel %vm233_vm5, %v17650_v25, %v10112_v4  ;;  %v10107_v14 = vunpack.i.h.bf16 %v10105_v47  ;;  %v10106_v52 = vunpack.i.l.bf16 %v10105_v47 }
 0x7f7   :  { %v10120_v26 = vpop.permute.xlu0 %10119  ;;  %v8868_v20 = vsel %vm2203_vm12, %v17651_v22, %v8858_v17  ;;  %v6636_v44 = vsel %vm235_vm6, %v6635_v10, %v17652_v29  ;;  %v8134_v38 = vsel %vm243_vm10, %v8133_v39, %v17653_v56  ;;  %v17654_v63 = vunpack.i.h.bf16 %v16334_v15 }
 0x7f8   :  { %v10122_v27 = vunpack.i.h.bf16 %v10120_v26  ;;  %v10121_v12 = vunpack.i.l.bf16 %v10120_v26  ;;  %v8872_v40 = vpack.c.bf16 %v8868_v20, %v8866_v11  ;;  %v5947_v13 = vsel %vm245_vm11, %v5946_v1, %v10106_v52 }
 0x7f9   :  { %v6411_v30 = vsel %vm245_vm11, %v6410_v55, %v10107_v14  ;;  %v6663_v5 = vrot.slane %v5947_v13, 4  ;;  %v6643_v48 = vsel %vm235_vm6, %v6642_v31, %v17654_v63  ;;  %v10115_v45 = vpop.permute.xlu1 %10114  ;;  %v17656_v16 = vunpack.i.h.bf16 %v16330_v21 }
 0x7fa   :  { %v8823_v32 = vsel %vm233_vm5, %v15947_v59, %v10121_v12  ;;  %v6669_v34 = vrot.slane %v6411_v30, 4  ;;  %8883 = vmatprep.subr.bf16.mxu1 %v8872_v40  ;;  %v8830_v62 = vsel %vm233_vm5, %v17655_v53, %v10122_v27  ;;  %v10117_v2 = vunpack.i.h.bf16 %v10115_v45 }
 0x7fb   :  { %v10125_v9 = vpop.permute.xlu0 %10124  ;;  %v10116_v42 = vunpack.i.l.bf16 %v10115_v45  ;;  %v8598_v7 = vsel %vm243_vm10, %v8597_v50, %v17656_v16  ;;  %v6677_v37 = vsel %vm2203_vm12, %v17657_v0, %v6663_v5  ;;  %v17659_v8 = vunpack.i.l.bf16 %v16340_v58 }
 0x7fc   :  { %v10127_v35 = vunpack.i.h.bf16 %v10125_v9  ;;  %v10126_v59 = vunpack.i.l.bf16 %v10125_v9  ;;  %v6679_v15 = vsel %vm2203_vm12, %v17658_v23, %v6669_v34  ;;  %v8599_v43 = vsel %vm245_vm11, %v8598_v7, %v10117_v2 }
 0x7fd   :  { %v8135_v49 = vsel %vm245_vm11, %v8134_v38, %v10116_v42  ;;  %v8824_v24 = vsel %vm235_vm6, %v8823_v32, %v17659_v8  ;;  %v6683_v60 = vpack.c.bf16 %v6679_v15, %v6677_v37  ;;  %v8857_v54 = vrot.slane %v8599_v43, 4  ;;  %v10130_v18 = vpop.permute.xlu1 %10129  ;;  %v28_v37 = vld [vmem:[%s16587_s4] sm:$0x3] }
 0x7fe   :  { %v6637_v21 = vsel %vm237_vm7, %v6636_v44, %v10126_v59  ;;  %v6644_v4 = vsel %vm237_vm7, %v6643_v48, %v10127_v35  ;;  %v8851_v41 = vrot.slane %v8135_v49, 4  ;;  %v17660_v61 = vunpack.i.l.bf16 %v16344_v28 }
 0x7ff   :  { %v10135_v46 = vpop.permute.xlu0 %10134  ;;  %v17661_v1 = vunpack.i.h.bf16 %v16340_v58  ;;  %v10132_v51 = vunpack.i.h.bf16 %v10130_v18  ;;  %v10131_v10 = vunpack.i.l.bf16 %v10130_v18  ;;  %6699 = vmatpush1.bf16.msra.mxu0 %v6683_v60  ;;  %v8867_v11 = vsel %vm2203_vm12, %v17663_v19, %v8857_v54 }
 0x800   :  { %v6638_v6 = vsel %vm239_vm8, %v6637_v21, %v17660_v61  ;;  %v10137_v39 = vunpack.i.h.bf16 %v10135_v46  ;;  %v10136_v47 = vunpack.i.l.bf16 %v10135_v46  ;;  %v8865_v55 = vsel %vm2203_vm12, %v17662_v33, %v8851_v41 }
 0x801   :  { %v8831_v17 = vsel %vm235_vm6, %v8830_v62, %v17661_v1  ;;  %v17664_v25 = vunpack.i.h.bf16 %v16344_v28  ;;  %v8825_v58 = vsel %vm237_vm7, %v8824_v24, %v10131_v10  ;;  %v8871_v14 = vpack.c.bf16 %v8867_v11, %v8865_v55  ;;  %v10140_v27 = vpop.permute.xlu1 %10139 }
 0x802   :  { %v8832_v26 = vsel %vm237_vm7, %v8831_v17, %v10132_v51  ;;  %v10022_v52 = vunpack.i.h.bf16 %v16338_v3  ;;  %v10021_v22 = vunpack.i.l.bf16 %v16338_v3  ;;  %v6639_v20 = vsel %vm241_vm9, %v6638_v6, %v10136_v47 }
 0x803   :  { %v6645_v31 = vsel %vm239_vm8, %v6644_v4, %v17664_v25  ;;  %v10027_v12 = vunpack.i.h.bf16 %v16346_v57  ;;  %v10026_v28 = vunpack.i.l.bf16 %v16346_v57  ;;  %v10145_v40 = vpop.permute.xlu0 %10144  ;;  %v10142_v13 = vunpack.i.h.bf16 %v10140_v27  ;;  %8884 = vmatpush1.bf16.msra.mxu1 %v8871_v14 }
 0x804   :  { %v6646_v50 = vsel %vm241_vm9, %v6645_v31, %v10137_v39  ;;  %v10141_v30 = vunpack.i.l.bf16 %v10140_v27  ;;  %v10147_v29 = vunpack.i.h.bf16 %v10145_v40  ;;  %v10146_v44 = vunpack.i.l.bf16 %v10145_v40  ;;  %v31_v40 = vld [vmem:[%s16588_s5] sm:$0xf] }
 0x805   :  { %v8826_v56 = vsel %vm239_vm8, %v8825_v58, %v10021_v22  ;;  %v8833_v38 = vsel %vm239_vm8, %v8832_v26, %v10022_v52  ;;  %v6647_v3 = vsel %vm243_vm10, %v6646_v50, %v10027_v12  ;;  %v6640_v34 = vsel %vm243_vm10, %v6639_v20, %v10026_v28  ;;  %v10150_v45 = vpop.permute.xlu1 %10149 }
 0x806   :  { %v8827_v32 = vsel %vm241_vm9, %v8826_v56, %v10141_v30  ;;  %v8834_v5 = vsel %vm241_vm9, %v8833_v38, %v10142_v13  ;;  %v10032_v57 = vunpack.i.h.bf16 %v16342_v36  ;;  %v10031_v63 = vunpack.i.l.bf16 %v16342_v36 }
 0x807   :  { %v6648_v48 = vsel %vm245_vm11, %v6647_v3, %v10147_v29  ;;  %v6641_v53 = vsel %vm245_vm11, %v6640_v34, %v10146_v44  ;;  %v10152_v9 = vunpack.i.h.bf16 %v10150_v45  ;;  %v10151_v2 = vunpack.i.l.bf16 %v10150_v45  ;;  %v32_v29 = vld [vmem:[%s16589_s6] sm:$0xf] }
 0x808   :  { %v6686_v62 = vpack.c.bf16 %v6648_v48, %v6648_v48  ;;  %v6685_v42 = vpack.c.bf16 %v6641_v53, %v6641_v53  ;;  %v8835_v16 = vsel %vm243_vm10, %v8834_v5, %v10032_v57  ;;  %v8828_v7 = vsel %vm243_vm10, %v8827_v32, %v10031_v63 }
 0x809   :  { %v8836_v35 = vsel %vm245_vm11, %v8835_v16, %v10152_v9  ;;  %v8829_v36 = vsel %vm245_vm11, %v8828_v7, %v10151_v2  ;;  %v17666_v2 = vld [vmem:[#allocation38_spill] sm:$0xff]  ;;  %v17667_v16 = vld [vmem:[#allocation43_spill] sm:$0xff] }
 0x80a   :  { %9012 = vmatprep.subr.msk.bf16.mxu0 %vm2222_vm13, %v6686_v62  ;;  %v6691_v59 = vsel %vm2222_vm13, %v6685_v42, 0  ;;  %v8874_v0 = vpack.c.bf16 %v8836_v35, %v8836_v35  ;;  %v8873_v23 = vpack.c.bf16 %v8829_v36, %v8829_v36  ;;  %v17665_v62 = vld [vmem:[#allocation34_spill] sm:$0xff]  ;;  %v17668_v35 = vld [vmem:[#allocation81_spill] sm:$0xff] }
 0x80b   :  { %6701 = vmatpush1.bf16.msra.mxu0 %v6691_v59 }
 0x80c   :  { %9014 = vmatprep.subr.msk.bf16.mxu1 %vm2222_vm13, %v8874_v0  ;;  %v8876_v15 = vsel %vm2222_vm13, %v8873_v23, 0 }
 0x80d   :  { %8886 = vmatpush1.bf16.msra.mxu1 %v8876_v15 }
 0x80e   :  { %9013 = vmatmul.mubr.msk.bf16.vlgmr.msra.gmra.mrb[4].mxu0 %vm2218_vm14, %v28_v37 }
 0x810   :  { %9015 = vmatmul.mubr.msk.bf16.vlgmr.msra.gmra.mrb[4].mxu1 %vm2218_vm14, %v28_v37 }
 0x8e1   :  { %v6730_v49 = vpop.f32.mrb[4].mxu0 }
 0x8e2   :  { %v8922_v43 = vsel %vm2203_vm12, %v6730_v49, 0.0  ;;  %v8934_v8 = vmul.f32 %v6730_v49, %v6730_v49  ;;  %v6732_v24 = vpop.f32.mrb[5].mxu0 }
 0x8e3   :  { %v8923_v60 = vsel %vm2203_vm12, %v6732_v24, 0.0  ;;  %v8935_v21 = vmul.f32 %v6732_v24, %v6732_v24  ;;  %v6734_v4 = vpop.f32.mrb[6].mxu0  ;;  %v8915_v54 = vpop.f32.mrb[4].mxu1 }
 0x8e4   :  { %v6735_v41 = vpop.f32.mrb[7].mxu0  ;;  %v8924_v18 = vadd.f32 %v8923_v60, %v8922_v43  ;;  %v8936_v46 = vsel %vm2203_vm12, %v8934_v8, 0.0  ;;  %v8928_v61 = vsel %vm2203_vm12, %v8915_v54, 0.0  ;;  %v8942_v6 = vmul.f32 %v8915_v54, %v8915_v54  ;;  %v8917_v1 = vpop.f32.mrb[5].mxu1 }
 0x8e5   :  { %v8937_v17 = vsel %vm2203_vm12, %v8935_v21, 0.0  ;;  %v8929_v51 = vsel %vm2203_vm12, %v8917_v1, 0.0  ;;  %v8943_v10 = vmul.f32 %v8917_v1, %v8917_v1  ;;  %v8919_v39 = vpop.f32.mrb[6].mxu1 }
 0x8e6   :  { %8925 = vadd.xlane.f32.xlu0 %v8924_v18  ;;  %v8938_v47 = vadd.f32 %v8937_v17, %v8936_v46  ;;  %v8920_v33 = vpop.f32.mrb[7].mxu1  ;;  %v8930_v55 = vadd.f32 %v8929_v51, %v8928_v61  ;;  %v8944_v19 = vsel %vm2203_vm12, %v8942_v6, 0.0 }
 0x8e7   :  { %v8945_v11 = vsel %vm2203_vm12, %v8943_v10, 0.0 }
 0x8e8   :  { %8931 = vadd.xlane.f32.xlu1 %v8930_v55  ;;  %v8946_v25 = vadd.f32 %v8945_v11, %v8944_v19 }
 0x8ea   :  { %8939 = vadd.xlane.f32.xlu0 %v8938_v47 }
 0x8ee   :  { %8947 = vadd.xlane.f32.xlu0 %v8946_v25 }
 0x973   :  { %v8926_v31 = vpop.xlane.xlu0 %8925 }
 0x975   :  { %v8932_v26 = vpop.xlane.xlu1 %8931 }
 0x976   :  { %v8933_v58 = vadd.f32 %v8932_v26, %v8926_v31 }
 0x977   :  { %v8940_v14 = vpop.xlane.xlu0 %8939 }
 0x978   :  { %v8950_v52 = vmul.f32 0.001953125, %v8933_v58 }
 0x97a   :  { %v8952_v50 = vmul.f32 %v8950_v52, %v8950_v52 }
 0x97b   :  { %v8948_v22 = vpop.xlane.xlu0 %8947 }
 0x97c   :  { %v8949_v20 = vadd.f32 %v8948_v22, %v8940_v14 }
 0x97e   :  { %v8951_v27 = vmul.f32 0.001953125, %v8949_v20 }
 0x980   :  { %v8953_v12 = vsub.f32 %v8951_v27, %v8952_v50 }
 0x982   :  { %v8954_v28 = vadd.f32 1e-05, %v8953_v12 }
 0x984   :  { %10155 = vrsqrt.f32 %v8954_v28 }
 0x98e   :  { %v10156_v13 = vpop.eup %10155 }
 0x98f   :  { %v8956_v30 = vmul.f32 %v10156_v13, %v31_v40 }
 0x991   :  { %8961 = vperm.xlu1 %9591, %v8956_v30   ;;  %v8957_v44 = vmul.f32 %v8956_v30, %v8950_v52 }
 0x993   :  { %v8958_v56 = vsub.f32 %v32_v29, %v8957_v44 }
 0x995   :  { %8968 = vperm.xlu0 %9592, %v8958_v56  }
 0xa10   :  { %v8962_v38 = vpop.permute.xlu1 %8961 }
 0xa11   :  { %v8964_v3 = vmul.f32 %v8962_v38, %v6730_v49  ;;  %v8965_v32 = vmul.f32 %v8962_v38, %v6732_v24  ;;  %v8982_v5 = vmul.f32 %v8962_v38, %v8915_v54  ;;  %v8983_v34 = vmul.f32 %v8962_v38, %v8917_v1 }
 0xa14   :  { %v8969_v57 = vpop.permute.xlu0 %8968 }
 0xa15   :  { %v8971_v63 = vadd.f32 %v8969_v57, %v8964_v3  ;;  %v8972_v48 = vadd.f32 %v8969_v57, %v8965_v32  ;;  %v8984_v45 = vadd.f32 %v8982_v5, %v8969_v57  ;;  %v8985_v53 = vadd.f32 %v8983_v34, %v8969_v57 }
 0xa17   :  { %v8973_v9 = vadd.f32 %v8971_v63, %v17665_v62  ;;  %v8974_v42 = vadd.f32 %v8972_v48, %v17666_v2  ;;  %v8986_v7 = vadd.f32 %v8984_v45, %v17667_v16  ;;  %v8987_v59 = vadd.f32 %v8985_v53, %v17668_v35 }
 0xa19   :  { %v8975_v36 = vmax.f32 %v8973_v9, 0.0  ;;  %v8976_v0 = vmax.f32 %v8974_v42, 0.0  ;;  %v8988_v37 = vmax.f32 %v8986_v7, 0.0  ;;  %v8989_v23 = vmax.f32 %v8987_v59, 0.0 }
 0xa1b   :  { %v8979_v15 = vcombine.low %v8975_v36, %v8976_v0  ;;  %v8992_v49 = vcombine.low %v8988_v37, %v8989_v23 }
 0xa1d   :  { %8981 = vst [vmem:[%s16590_s7] sm:$0xff] %v8979_v15  ;;  %9016 = vst [vmem:[%s16590_s7 + $0x8] sm:$0xff] %v8992_v49 }

</bundles_post_ra>
